<compile_context>
chip_gen: v5e
topology: v5e:2x2
jax: 0.10.0
libtpu: 0.0.40
codegen_flags: <defaults>
</compile_context>

<pallas_src>
import functools

import jax
import jax.numpy as jnp
from jax.experimental import pallas as pl
from jax.experimental.pallas import tpu as pltpu


# ------------------------------ small helpers -------------------------------

def _round_up(x, m):
    return (x + m - 1) // m * m


def _largest_tile(total, pref, unit):
    """Largest multiple of `unit` that divides `total` and is <= max(pref, unit)."""
    best = unit
    t = unit
    limit = min(total, max(pref, unit))
    while t <= limit:
        if total % t == 0:
            best = t
        t += unit
    return best


_VMEM_LIMIT = 48 * 1024 * 1024  # comfortably under v7x's 64 MiB physical VMEM


# ----------------------------- Pallas kernels ------------------------------

def _mm_bias_kernel(x_ref, w_ref, b_ref, o_ref, acc_ref, *, relu):
    """One (tm,tk)@(tk,tn) step of a K-tiled matmul with fused bias (+ReLU)."""
    k = pl.program_id(2)

    @pl.when(k == 0)
    def _init():
        acc_ref[...] = jnp.zeros_like(acc_ref)

    acc_ref[...] += jnp.dot(x_ref[...], w_ref[...],
                            preferred_element_type=jnp.float32)

    @pl.when(k == pl.num_programs(2) - 1)
    def _finalize():
        out = acc_ref[...] + b_ref[...]
        if relu:
            out = jnp.maximum(out, 0.0)
        o_ref[...] = out.astype(o_ref.dtype)


def pallas_matmul_bias(x, w, b, *, relu, out_dtype,
                       tm=512, tn=256, tk=512):
    """x: (M, K), w: (K, N), b: (N,) -> (M, N). Tiled, fused bias (+ReLU)."""
    M, K = x.shape
    Kw, N = w.shape
    assert K == Kw, (K, Kw)

    # ---- N (lane axis): keep lane-dense when possible ----
    if N % 128 == 0:
        Np = N
        tn = _largest_tile(Np, tn, 128)
    elif N <= 256:
        Np = N           # single full-width block (full-dim blocks are legal)
        tn = Np
    else:
        Np = _round_up(N, 128)
        tn = _largest_tile(Np, tn, 128)

    # ---- K (contraction axis) ----
    if K <= tk:
        Kp = _round_up(K, 8)   # single full-K block (e.g. layer 1's K=27)
        tk = Kp
    else:
        Kp = _round_up(K, 128)
        tk = _largest_tile(Kp, tk, 128)

    # ---- M ----
    tm = min(tm, _round_up(M, 8))
    Mp = _round_up(M, tm)

    # Zero-pad operands to the tiled shapes (zeros do not change the result).
    if (Mp, Kp) != (M, K):
        x = jnp.pad(x, ((0, Mp - M), (0, Kp - K)))
    if (Kp, Np) != (K, N):
        w = jnp.pad(w, ((0, Kp - K), (0, Np - N)))
    if Np != N:
        b = jnp.pad(b, (0, Np - N))
    b2 = b.reshape(1, Np).astype(jnp.float32)

    grid = (Mp // tm, Np // tn, Kp // tk)
    kernel = functools.partial(_mm_bias_kernel, relu=relu)

    out = pl.pallas_call(
        kernel,
        out_shape=jax.ShapeDtypeStruct((Mp, Np), out_dtype),
        grid=grid,
        in_specs=[
            pl.BlockSpec((tm, tk), lambda i, j, k: (i, k)),
            pl.BlockSpec((tk, tn), lambda i, j, k: (k, j)),
            pl.BlockSpec((1, tn), lambda i, j, k: (0, j)),
        ],
        out_specs=pl.BlockSpec((tm, tn), lambda i, j, k: (i, j)),
        scratch_shapes=[pltpu.VMEM((tm, tn), jnp.float32)],
        compiler_params=pltpu.CompilerParams(
            dimension_semantics=("parallel", "parallel", "arbitrary"),
            vmem_limit_bytes=_VMEM_LIMIT,
        ),
    )(x, w, b2)

    if (Mp, Np) != (M, N):
        out = out[:M, :N]
    return out


def _avgpool_kernel(x_ref, o_ref, *, inv):
    # Global average over the spatial axis (AdaptiveAvgPool2d((1,1))),
    # accumulated in f32; channels stay on the lane axis.
    x = x_ref[...].astype(jnp.float32)
    o_ref[...] = (jnp.sum(x, axis=1) * inv).astype(o_ref.dtype)


def pallas_global_avgpool(x):
    """x: (B, H*W, C) -> (B, C) float32."""
    B, HW, C = x.shape
    tb = min(256, _round_up(B, 8))
    Bp = _round_up(B, tb)
    if Bp != B:
        x = jnp.pad(x, ((0, Bp - B), (0, 0), (0, 0)))
    kernel = functools.partial(_avgpool_kernel, inv=1.0 / HW)
    out = pl.pallas_call(
        kernel,
        out_shape=jax.ShapeDtypeStruct((Bp, C), jnp.float32),
        grid=(Bp // tb,),
        in_specs=[pl.BlockSpec((tb, HW, C), lambda i: (i, 0, 0))],
        out_specs=pl.BlockSpec((tb, C), lambda i: (i, 0)),
        compiler_params=pltpu.CompilerParams(
            dimension_semantics=("parallel",),
            vmem_limit_bytes=_VMEM_LIMIT,
        ),
    )(x)
    return out[:B]


# ------------------------------- conv glue ---------------------------------

def im2col(x, k, stride, pad):
    """x: (B, H, W, C) -> patches (B*Ho*Wo, k*k*C), Ho, Wo. Zero padding."""
    B, H, W, C = x.shape
    xp = jnp.pad(x, ((0, 0), (pad, pad), (pad, pad), (0, 0)))
    Ho = (H + 2 * pad - k) // stride + 1
    Wo = (W + 2 * pad - k) // stride + 1
    cols = []
    for di in range(k):
        for dj in range(k):
            cols.append(
                xp[:, di:di + stride * Ho:stride, dj:dj + stride * Wo:stride, :]
            )
    patches = jnp.concatenate(cols, axis=-1)  # (B, Ho, Wo, k*k*C)
    return patches.reshape(B * Ho * Wo, k * k * C), Ho, Wo


def conv2d(x, w, b, *, stride=1, pad=0, relu=True):
    """x: (B,H,W,Cin) bf16, w: (kh,kw,Cin,Cout) bf16, b: (Cout,) f32."""
    kh, kw, cin, cout = w.shape
    B = x.shape[0]
    patches, Ho, Wo = im2col(x, kh, stride, pad)
    w2d = w.reshape(kh * kw * cin, cout)
    out = pallas_matmul_bias(patches, w2d, b, relu=relu, out_dtype=jnp.bfloat16)
    return out.reshape(B, Ho, Wo, cout)


# ----------------------------- model definition ----------------------------

# (kernel, stride, pad, cin, cout, relu_after)
_LAYERS = [
    (3, 1, 1,   3,  96, True),
    (3, 1, 1,  96,  96, True),
    (3, 2, 1,  96,  96, True),   # Dropout(0.3) -> identity in eval mode
    (3, 1, 1,  96, 192, True),
    (3, 1, 1, 192, 192, True),
    (3, 2, 1, 192, 192, True),   # Dropout(0.3) -> identity in eval mode
    (3, 1, 1, 192, 192, True),
    (1, 1, 0, 192, 192, True),
    (1, 1, 0, 192,  10, False),  # final conv, no ReLU, then global avg pool
]


def init_params(key, num_classes=10):
    """Kaiming-normal (mode='fan_out', relu) weights, zero biases (f32)."""
    del num_classes  # fixed to 10 by _LAYERS (matches the reference module)
    params = []
    for (k, _, _, cin, cout, _) in _LAYERS:
        key, sub = jax.random.split(key)
        fan_out = cout * k * k
        std = (2.0 / fan_out) ** 0.5
        w = std * jax.random.normal(sub, (k, k, cin, cout), dtype=jnp.float32)
        b = jnp.zeros((cout,), dtype=jnp.float32)
        params.append((w, b))
    return params


def prepare_params(params):
    """Pad 96-channel dims to 128 (lane density), cast weights to bf16."""
    conv_params = []
    cin_pad = _LAYERS[0][3]  # 3 (RGB input, left unpadded; K handled in wrapper)
    for spec, (w, b) in zip(_LAYERS[:-1], params[:-1]):
        k, _, _, cin, cout, _ = spec
        cout_pad = 128 if cout == 96 else cout
        wp = jnp.zeros((k, k, cin_pad, cout_pad), jnp.float32)
        wp = wp.at[:, :, :cin, :cout].set(w)
        bp = jnp.zeros((cout_pad,), jnp.float32).at[:cout].set(b)
        conv_params.append((wp.astype(jnp.bfloat16), bp))
        cin_pad = cout_pad
    # Final 1x1 conv (192 -> num_classes): applied *after* the global average
    # pool (it is linear per pixel, so pooling commutes exactly).
    w_last, b_last = params[-1]
    w_fc = w_last.reshape(w_last.shape[2], w_last.shape[3]).astype(jnp.bfloat16)
    return conv_params, (w_fc, b_last.astype(jnp.float32))


def allconv_forward(x_nchw, params):
    """x_nchw: (B, 3, H, W) float32 -> (B, num_classes) float32."""
    conv_params, (w_fc, b_fc) = prepare_params(params)
    x = jnp.transpose(x_nchw, (0, 2, 3, 1)).astype(jnp.bfloat16)  # NCHW -> NHWC
    for (kk, stride, pad, _, _, relu), (w, b) in zip(_LAYERS[:-1], conv_params):
        x = conv2d(x, w, b, stride=stride, pad=pad, relu=relu)
    B, Ho, Wo, C = x.shape
    pooled = pallas_global_avgpool(x.reshape(B, Ho * Wo, C))       # (B, 192) f32
    logits = pallas_matmul_bias(pooled.astype(jnp.bfloat16), w_fc, b_fc,
                                relu=False, out_dtype=jnp.float32)  # (B, 10)
    return logits  # == x.view(x.size(0), -1) after AdaptiveAvgPool2d((1,1))


# --------------------------------- main -------------------------------------

if __name__ == "__main__":
    key = jax.random.PRNGKey(0)
    pkey, xkey = jax.random.split(key)

    params = init_params(pkey, num_classes=10)
    x = jax.random.normal(xkey, (2, 3, 16, 16), dtype=jnp.float32)  # NCHW

    fwd = jax.jit(allconv_forward)
    out = fwd(x, params)
    out = jax.block_until_ready(out)

    assert out.shape == (2, 10), out.shape
    assert out.dtype == jnp.float32
    print("KERNEL_OK")
</pallas_src>

<mosaic_0001>
module attributes {stable_mosaic.version = 11 : i64} {
  func.func @_mm_bias_kernel(%arg0: i32, %arg1: i32, %arg2: i32, %arg3: memref<512x32xbf16, #tpu.memory_space<vmem>>, %arg4: memref<32x128xbf16, #tpu.memory_space<vmem>>, %arg5: memref<1x128xf32, #tpu.memory_space<vmem>>, %arg6: memref<512x128xbf16, #tpu.memory_space<vmem>>, %arg7: memref<512x128xf32, #tpu.memory_space<vmem>>) attributes {dimension_semantics = [#tpu.dimension_semantics<parallel>, #tpu.dimension_semantics<parallel>, #tpu.dimension_semantics<arbitrary>], iteration_bounds = array<i64: 1, 1, 1>, scalar_prefetch = 0 : i64, scratch_operands = 1 : i64, tpu.core_type = #tpu.core_type<tc>, window_params = [{transform_indices = @transform_0, window_bounds = array<i64: 512, 32>}, {transform_indices = @transform_1, window_bounds = array<i64: 32, 128>}, {transform_indices = @transform_2, window_bounds = array<i64: 1, 128>}, {transform_indices = @transform_3, window_bounds = array<i64: 512, 128>}]} {
    %c0_i32 = arith.constant 0 : i32
    %0 = arith.cmpi eq, %arg2, %c0_i32 : i32
    %1 = arith.extui %0 : i1 to i32
    %c0_i32_0 = arith.constant 0 : i32
    %2 = arith.cmpi ne, %1, %c0_i32_0 : i32
    scf.if %2 {
      %cst_10 = arith.constant 0.000000e+00 : f32
      %12 = vector.broadcast %cst_10 : f32 to vector<512x128xf32>
      %c0_11 = arith.constant 0 : index
      %c0_12 = arith.constant 0 : index
      %13 = vector.load %arg7[%c0_11, %c0_12] : memref<512x128xf32, #tpu.memory_space<vmem>>, vector<512x128xf32>
      tpu.vector_store %arg7[%c0_11, %c0_12], %12 {strides = array<i32>} : memref<512x128xf32, #tpu.memory_space<vmem>>, vector<512x128xf32>,
    } else {
    }
    %c0 = arith.constant 0 : index
    %c0_1 = arith.constant 0 : index
    %3 = vector.load %arg7[%c0, %c0_1] : memref<512x128xf32, #tpu.memory_space<vmem>>, vector<512x128xf32>
    %c0_2 = arith.constant 0 : index
    %c0_3 = arith.constant 0 : index
    %4 = vector.load %arg3[%c0_2, %c0_3] : memref<512x32xbf16, #tpu.memory_space<vmem>>, vector<512x32xbf16>
    %c0_4 = arith.constant 0 : index
    %c0_5 = arith.constant 0 : index
    %5 = vector.load %arg4[%c0_4, %c0_5] : memref<32x128xbf16, #tpu.memory_space<vmem>>, vector<32x128xbf16>
    %cst = arith.constant dense<0.000000e+00> : vector<512x128xf32>
    %6 = tpu.matmul %4, %5, %cst {dimension_numbers = #tpu.dot_dimension_numbers<[1], [0], [0], [1], [0, 0, 1, 1], [], []>} : vector<512x32xbf16>, vector<32x128xbf16>, vector<512x128xf32> -> vector<512x128xf32>
    %7 = arith.addf %3, %6 : vector<512x128xf32>
    %c0_6 = arith.constant 0 : index
    %c0_7 = arith.constant 0 : index
    %8 = vector.load %arg7[%c0_6, %c0_7] : memref<512x128xf32, #tpu.memory_space<vmem>>, vector<512x128xf32>
    tpu.vector_store %arg7[%c0_6, %c0_7], %7 {strides = array<i32>} : memref<512x128xf32, #tpu.memory_space<vmem>>, vector<512x128xf32>,
    %c0_i32_8 = arith.constant 0 : i32
    %9 = arith.cmpi eq, %arg2, %c0_i32_8 : i32
    %10 = arith.extui %9 : i1 to i32
    %c0_i32_9 = arith.constant 0 : i32
    %11 = arith.cmpi ne, %10, %c0_i32_9 : i32
    scf.if %11 {
      %c0_10 = arith.constant 0 : index
      %c0_11 = arith.constant 0 : index
      %12 = vector.load %arg7[%c0_10, %c0_11] : memref<512x128xf32, #tpu.memory_space<vmem>>, vector<512x128xf32>
      %c0_12 = arith.constant 0 : index
      %c0_13 = arith.constant 0 : index
      %13 = vector.load %arg5[%c0_12, %c0_13] : memref<1x128xf32, #tpu.memory_space<vmem>>, vector<1x128xf32>
      %14 = vector.broadcast %13 : vector<1x128xf32> to vector<512x128xf32>
      %15 = arith.addf %12, %14 : vector<512x128xf32>
      %cst_14 = arith.constant 0.000000e+00 : f32
      %16 = vector.broadcast %cst_14 : f32 to vector<512x128xf32>
      %17 = arith.maximumf %15, %16 : vector<512x128xf32>
      %18 = arith.truncf %17 : vector<512x128xf32> to vector<512x128xbf16>
      %c0_15 = arith.constant 0 : index
      %c0_16 = arith.constant 0 : index
      %19 = vector.load %arg6[%c0_15, %c0_16] : memref<512x128xbf16, #tpu.memory_space<vmem>>, vector<512x128xbf16>
      tpu.vector_store %arg6[%c0_15, %c0_16], %18 {strides = array<i32>} : memref<512x128xbf16, #tpu.memory_space<vmem>>, vector<512x128xbf16>,
    } else {
    }
    return
  }
  func.func @transform_0(%arg0: i32, %arg1: i32, %arg2: i32) -> (i32, i32) {
    %c0_i32 = arith.constant 0 : i32
    return %arg0, %arg2 : i32, i32
  }
  func.func @transform_1(%arg0: i32, %arg1: i32, %arg2: i32) -> (i32, i32) {
    %c0_i32 = arith.constant 0 : i32
    return %arg2, %arg1 : i32, i32
  }
  func.func @transform_2(%arg0: i32, %arg1: i32, %arg2: i32) -> (i32, i32) {
    %c0_i32 = arith.constant 0 : i32
    %c0_i32_0 = arith.constant 0 : i32
    return %c0_i32, %arg1 : i32, i32
  }
  func.func @transform_3(%arg0: i32, %arg1: i32, %arg2: i32) -> (i32, i32) {
    %c0_i32 = arith.constant 0 : i32
    return %arg0, %arg1 : i32, i32
  }
}

module attributes {stable_mosaic.version = 11 : i64} {
  func.func @_mm_bias_kernel(%arg0: i32, %arg1: i32, %arg2: i32, %arg3: memref<512x384xbf16, #tpu.memory_space<vmem>>, %arg4: memref<384x128xbf16, #tpu.memory_space<vmem>>, %arg5: memref<1x128xf32, #tpu.memory_space<vmem>>, %arg6: memref<512x128xbf16, #tpu.memory_space<vmem>>, %arg7: memref<512x128xf32, #tpu.memory_space<vmem>>) attributes {dimension_semantics = [#tpu.dimension_semantics<parallel>, #tpu.dimension_semantics<parallel>, #tpu.dimension_semantics<arbitrary>], iteration_bounds = array<i64: 1, 1, 3>, scalar_prefetch = 0 : i64, scratch_operands = 1 : i64, tpu.core_type = #tpu.core_type<tc>, window_params = [{transform_indices = @transform_0, window_bounds = array<i64: 512, 384>}, {transform_indices = @transform_1, window_bounds = array<i64: 384, 128>}, {transform_indices = @transform_2, window_bounds = array<i64: 1, 128>}, {transform_indices = @transform_3, window_bounds = array<i64: 512, 128>}]} {
    %c0_i32 = arith.constant 0 : i32
    %0 = arith.cmpi eq, %arg2, %c0_i32 : i32
    %1 = arith.extui %0 : i1 to i32
    %c0_i32_0 = arith.constant 0 : i32
    %2 = arith.cmpi ne, %1, %c0_i32_0 : i32
    scf.if %2 {
      %cst_9 = arith.constant 0.000000e+00 : f32
      %12 = vector.broadcast %cst_9 : f32 to vector<512x128xf32>
      %c0_10 = arith.constant 0 : index
      %c0_11 = arith.constant 0 : index
      %13 = vector.load %arg7[%c0_10, %c0_11] : memref<512x128xf32, #tpu.memory_space<vmem>>, vector<512x128xf32>
      tpu.vector_store %arg7[%c0_10, %c0_11], %12 {strides = array<i32>} : memref<512x128xf32, #tpu.memory_space<vmem>>, vector<512x128xf32>,
    } else {
    }
    %c0 = arith.constant 0 : index
    %c0_1 = arith.constant 0 : index
    %3 = vector.load %arg7[%c0, %c0_1] : memref<512x128xf32, #tpu.memory_space<vmem>>, vector<512x128xf32>
    %c0_2 = arith.constant 0 : index
    %c0_3 = arith.constant 0 : index
    %4 = vector.load %arg3[%c0_2, %c0_3] : memref<512x384xbf16, #tpu.memory_space<vmem>>, vector<512x384xbf16>
    %c0_4 = arith.constant 0 : index
    %c0_5 = arith.constant 0 : index
    %5 = vector.load %arg4[%c0_4, %c0_5] : memref<384x128xbf16, #tpu.memory_space<vmem>>, vector<384x128xbf16>
    %cst = arith.constant dense<0.000000e+00> : vector<512x128xf32>
    %6 = tpu.matmul %4, %5, %cst {dimension_numbers = #tpu.dot_dimension_numbers<[1], [0], [0], [1], [0, 0, 1, 1], [], []>} : vector<512x384xbf16>, vector<384x128xbf16>, vector<512x128xf32> -> vector<512x128xf32>
    %7 = arith.addf %3, %6 : vector<512x128xf32>
    %c0_6 = arith.constant 0 : index
    %c0_7 = arith.constant 0 : index
    %8 = vector.load %arg7[%c0_6, %c0_7] : memref<512x128xf32, #tpu.memory_space<vmem>>, vector<512x128xf32>
    tpu.vector_store %arg7[%c0_6, %c0_7], %7 {strides = array<i32>} : memref<512x128xf32, #tpu.memory_space<vmem>>, vector<512x128xf32>,
    %c2_i32 = arith.constant 2 : i32
    %9 = arith.cmpi eq, %arg2, %c2_i32 : i32
    %10 = arith.extui %9 : i1 to i32
    %c0_i32_8 = arith.constant 0 : i32
    %11 = arith.cmpi ne, %10, %c0_i32_8 : i32
    scf.if %11 {
      %c0_9 = arith.constant 0 : index
      %c0_10 = arith.constant 0 : index
      %12 = vector.load %arg7[%c0_9, %c0_10] : memref<512x128xf32, #tpu.memory_space<vmem>>, vector<512x128xf32>
      %c0_11 = arith.constant 0 : index
      %c0_12 = arith.constant 0 : index
      %13 = vector.load %arg5[%c0_11, %c0_12] : memref<1x128xf32, #tpu.memory_space<vmem>>, vector<1x128xf32>
      %14 = vector.broadcast %13 : vector<1x128xf32> to vector<512x128xf32>
      %15 = arith.addf %12, %14 : vector<512x128xf32>
      %cst_13 = arith.constant 0.000000e+00 : f32
      %16 = vector.broadcast %cst_13 : f32 to vector<512x128xf32>
      %17 = arith.maximumf %15, %16 : vector<512x128xf32>
      %18 = arith.truncf %17 : vector<512x128xf32> to vector<512x128xbf16>
      %c0_14 = arith.constant 0 : index
      %c0_15 = arith.constant 0 : index
      %19 = vector.load %arg6[%c0_14, %c0_15] : memref<512x128xbf16, #tpu.memory_space<vmem>>, vector<512x128xbf16>
      tpu.vector_store %arg6[%c0_14, %c0_15], %18 {strides = array<i32>} : memref<512x128xbf16, #tpu.memory_space<vmem>>, vector<512x128xbf16>,
    } else {
    }
    return
  }
  func.func @transform_0(%arg0: i32, %arg1: i32, %arg2: i32) -> (i32, i32) {
    %c0_i32 = arith.constant 0 : i32
    return %arg0, %arg2 : i32, i32
  }
  func.func @transform_1(%arg0: i32, %arg1: i32, %arg2: i32) -> (i32, i32) {
    %c0_i32 = arith.constant 0 : i32
    return %arg2, %arg1 : i32, i32
  }
  func.func @transform_2(%arg0: i32, %arg1: i32, %arg2: i32) -> (i32, i32) {
    %c0_i32 = arith.constant 0 : i32
    %c0_i32_0 = arith.constant 0 : i32
    return %c0_i32, %arg1 : i32, i32
  }
  func.func @transform_3(%arg0: i32, %arg1: i32, %arg2: i32) -> (i32, i32) {
    %c0_i32 = arith.constant 0 : i32
    return %arg0, %arg1 : i32, i32
  }
}

module attributes {stable_mosaic.version = 11 : i64} {
  func.func @_mm_bias_kernel(%arg0: i32, %arg1: i32, %arg2: i32, %arg3: memref<128x384xbf16, #tpu.memory_space<vmem>>, %arg4: memref<384x128xbf16, #tpu.memory_space<vmem>>, %arg5: memref<1x128xf32, #tpu.memory_space<vmem>>, %arg6: memref<128x128xbf16, #tpu.memory_space<vmem>>, %arg7: memref<128x128xf32, #tpu.memory_space<vmem>>) attributes {dimension_semantics = [#tpu.dimension_semantics<parallel>, #tpu.dimension_semantics<parallel>, #tpu.dimension_semantics<arbitrary>], iteration_bounds = array<i64: 1, 1, 3>, scalar_prefetch = 0 : i64, scratch_operands = 1 : i64, tpu.core_type = #tpu.core_type<tc>, window_params = [{transform_indices = @transform_0, window_bounds = array<i64: 128, 384>}, {transform_indices = @transform_1, window_bounds = array<i64: 384, 128>}, {transform_indices = @transform_2, window_bounds = array<i64: 1, 128>}, {transform_indices = @transform_3, window_bounds = array<i64: 128, 128>}]} {
    %c0_i32 = arith.constant 0 : i32
    %0 = arith.cmpi eq, %arg2, %c0_i32 : i32
    %1 = arith.extui %0 : i1 to i32
    %c0_i32_0 = arith.constant 0 : i32
    %2 = arith.cmpi ne, %1, %c0_i32_0 : i32
    scf.if %2 {
      %cst_9 = arith.constant 0.000000e+00 : f32
      %12 = vector.broadcast %cst_9 : f32 to vector<128x128xf32>
      %c0_10 = arith.constant 0 : index
      %c0_11 = arith.constant 0 : index
      %13 = vector.load %arg7[%c0_10, %c0_11] : memref<128x128xf32, #tpu.memory_space<vmem>>, vector<128x128xf32>
      tpu.vector_store %arg7[%c0_10, %c0_11], %12 {strides = array<i32>} : memref<128x128xf32, #tpu.memory_space<vmem>>, vector<128x128xf32>,
    } else {
    }
    %c0 = arith.constant 0 : index
    %c0_1 = arith.constant 0 : index
    %3 = vector.load %arg7[%c0, %c0_1] : memref<128x128xf32, #tpu.memory_space<vmem>>, vector<128x128xf32>
    %c0_2 = arith.constant 0 : index
    %c0_3 = arith.constant 0 : index
    %4 = vector.load %arg3[%c0_2, %c0_3] : memref<128x384xbf16, #tpu.memory_space<vmem>>, vector<128x384xbf16>
    %c0_4 = arith.constant 0 : index
    %c0_5 = arith.constant 0 : index
    %5 = vector.load %arg4[%c0_4, %c0_5] : memref<384x128xbf16, #tpu.memory_space<vmem>>, vector<384x128xbf16>
    %cst = arith.constant dense<0.000000e+00> : vector<128x128xf32>
    %6 = tpu.matmul %4, %5, %cst {dimension_numbers = #tpu.dot_dimension_numbers<[1], [0], [0], [1], [0, 0, 1, 1], [], []>} : vector<128x384xbf16>, vector<384x128xbf16>, vector<128x128xf32> -> vector<128x128xf32>
    %7 = arith.addf %3, %6 : vector<128x128xf32>
    %c0_6 = arith.constant 0 : index
    %c0_7 = arith.constant 0 : index
    %8 = vector.load %arg7[%c0_6, %c0_7] : memref<128x128xf32, #tpu.memory_space<vmem>>, vector<128x128xf32>
    tpu.vector_store %arg7[%c0_6, %c0_7], %7 {strides = array<i32>} : memref<128x128xf32, #tpu.memory_space<vmem>>, vector<128x128xf32>,
    %c2_i32 = arith.constant 2 : i32
    %9 = arith.cmpi eq, %arg2, %c2_i32 : i32
    %10 = arith.extui %9 : i1 to i32
    %c0_i32_8 = arith.constant 0 : i32
    %11 = arith.cmpi ne, %10, %c0_i32_8 : i32
    scf.if %11 {
      %c0_9 = arith.constant 0 : index
      %c0_10 = arith.constant 0 : index
      %12 = vector.load %arg7[%c0_9, %c0_10] : memref<128x128xf32, #tpu.memory_space<vmem>>, vector<128x128xf32>
      %c0_11 = arith.constant 0 : index
      %c0_12 = arith.constant 0 : index
      %13 = vector.load %arg5[%c0_11, %c0_12] : memref<1x128xf32, #tpu.memory_space<vmem>>, vector<1x128xf32>
      %14 = vector.broadcast %13 : vector<1x128xf32> to vector<128x128xf32>
      %15 = arith.addf %12, %14 : vector<128x128xf32>
      %cst_13 = arith.constant 0.000000e+00 : f32
      %16 = vector.broadcast %cst_13 : f32 to vector<128x128xf32>
      %17 = arith.maximumf %15, %16 : vector<128x128xf32>
      %18 = arith.truncf %17 : vector<128x128xf32> to vector<128x128xbf16>
      %c0_14 = arith.constant 0 : index
      %c0_15 = arith.constant 0 : index
      %19 = vector.load %arg6[%c0_14, %c0_15] : memref<128x128xbf16, #tpu.memory_space<vmem>>, vector<128x128xbf16>
      tpu.vector_store %arg6[%c0_14, %c0_15], %18 {strides = array<i32>} : memref<128x128xbf16, #tpu.memory_space<vmem>>, vector<128x128xbf16>,
    } else {
    }
    return
  }
  func.func @transform_0(%arg0: i32, %arg1: i32, %arg2: i32) -> (i32, i32) {
    %c0_i32 = arith.constant 0 : i32
    return %arg0, %arg2 : i32, i32
  }
  func.func @transform_1(%arg0: i32, %arg1: i32, %arg2: i32) -> (i32, i32) {
    %c0_i32 = arith.constant 0 : i32
    return %arg2, %arg1 : i32, i32
  }
  func.func @transform_2(%arg0: i32, %arg1: i32, %arg2: i32) -> (i32, i32) {
    %c0_i32 = arith.constant 0 : i32
    %c0_i32_0 = arith.constant 0 : i32
    return %c0_i32, %arg1 : i32, i32
  }
  func.func @transform_3(%arg0: i32, %arg1: i32, %arg2: i32) -> (i32, i32) {
    %c0_i32 = arith.constant 0 : i32
    return %arg0, %arg1 : i32, i32
  }
}

module attributes {stable_mosaic.version = 11 : i64} {
  func.func @_mm_bias_kernel(%arg0: i32, %arg1: i32, %arg2: i32, %arg3: memref<128x384xbf16, #tpu.memory_space<vmem>>, %arg4: memref<384x192xbf16, #tpu.memory_space<vmem>>, %arg5: memref<1x192xf32, #tpu.memory_space<vmem>>, %arg6: memref<128x192xbf16, #tpu.memory_space<vmem>>, %arg7: memref<128x192xf32, #tpu.memory_space<vmem>>) attributes {dimension_semantics = [#tpu.dimension_semantics<parallel>, #tpu.dimension_semantics<parallel>, #tpu.dimension_semantics<arbitrary>], iteration_bounds = array<i64: 1, 1, 3>, scalar_prefetch = 0 : i64, scratch_operands = 1 : i64, tpu.core_type = #tpu.core_type<tc>, window_params = [{transform_indices = @transform_0, window_bounds = array<i64: 128, 384>}, {transform_indices = @transform_1, window_bounds = array<i64: 384, 192>}, {transform_indices = @transform_2, window_bounds = array<i64: 1, 192>}, {transform_indices = @transform_3, window_bounds = array<i64: 128, 192>}]} {
    %c0_i32 = arith.constant 0 : i32
    %0 = arith.cmpi eq, %arg2, %c0_i32 : i32
    %1 = arith.extui %0 : i1 to i32
    %c0_i32_0 = arith.constant 0 : i32
    %2 = arith.cmpi ne, %1, %c0_i32_0 : i32
    scf.if %2 {
      %cst_9 = arith.constant 0.000000e+00 : f32
      %12 = vector.broadcast %cst_9 : f32 to vector<128x192xf32>
      %c0_10 = arith.constant 0 : index
      %c0_11 = arith.constant 0 : index
      %13 = vector.load %arg7[%c0_10, %c0_11] : memref<128x192xf32, #tpu.memory_space<vmem>>, vector<128x192xf32>
      tpu.vector_store %arg7[%c0_10, %c0_11], %12 {strides = array<i32>} : memref<128x192xf32, #tpu.memory_space<vmem>>, vector<128x192xf32>,
    } else {
    }
    %c0 = arith.constant 0 : index
    %c0_1 = arith.constant 0 : index
    %3 = vector.load %arg7[%c0, %c0_1] : memref<128x192xf32, #tpu.memory_space<vmem>>, vector<128x192xf32>
    %c0_2 = arith.constant 0 : index
    %c0_3 = arith.constant 0 : index
    %4 = vector.load %arg3[%c0_2, %c0_3] : memref<128x384xbf16, #tpu.memory_space<vmem>>, vector<128x384xbf16>
    %c0_4 = arith.constant 0 : index
    %c0_5 = arith.constant 0 : index
    %5 = vector.load %arg4[%c0_4, %c0_5] : memref<384x192xbf16, #tpu.memory_space<vmem>>, vector<384x192xbf16>
    %cst = arith.constant dense<0.000000e+00> : vector<128x192xf32>
    %6 = tpu.matmul %4, %5, %cst {dimension_numbers = #tpu.dot_dimension_numbers<[1], [0], [0], [1], [0, 0, 1, 1], [], []>} : vector<128x384xbf16>, vector<384x192xbf16>, vector<128x192xf32> -> vector<128x192xf32>
    %7 = arith.addf %3, %6 : vector<128x192xf32>
    %c0_6 = arith.constant 0 : index
    %c0_7 = arith.constant 0 : index
    %8 = vector.load %arg7[%c0_6, %c0_7] : memref<128x192xf32, #tpu.memory_space<vmem>>, vector<128x192xf32>
    tpu.vector_store %arg7[%c0_6, %c0_7], %7 {strides = array<i32>} : memref<128x192xf32, #tpu.memory_space<vmem>>, vector<128x192xf32>,
    %c2_i32 = arith.constant 2 : i32
    %9 = arith.cmpi eq, %arg2, %c2_i32 : i32
    %10 = arith.extui %9 : i1 to i32
    %c0_i32_8 = arith.constant 0 : i32
    %11 = arith.cmpi ne, %10, %c0_i32_8 : i32
    scf.if %11 {
      %c0_9 = arith.constant 0 : index
      %c0_10 = arith.constant 0 : index
      %12 = vector.load %arg7[%c0_9, %c0_10] : memref<128x192xf32, #tpu.memory_space<vmem>>, vector<128x192xf32>
      %c0_11 = arith.constant 0 : index
      %c0_12 = arith.constant 0 : index
      %13 = vector.load %arg5[%c0_11, %c0_12] : memref<1x192xf32, #tpu.memory_space<vmem>>, vector<1x192xf32>
      %14 = vector.broadcast %13 : vector<1x192xf32> to vector<128x192xf32>
      %15 = arith.addf %12, %14 : vector<128x192xf32>
      %cst_13 = arith.constant 0.000000e+00 : f32
      %16 = vector.broadcast %cst_13 : f32 to vector<128x192xf32>
      %17 = arith.maximumf %15, %16 : vector<128x192xf32>
      %18 = arith.truncf %17 : vector<128x192xf32> to vector<128x192xbf16>
      %c0_14 = arith.constant 0 : index
      %c0_15 = arith.constant 0 : index
      %19 = vector.load %arg6[%c0_14, %c0_15] : memref<128x192xbf16, #tpu.memory_space<vmem>>, vector<128x192xbf16>
      tpu.vector_store %arg6[%c0_14, %c0_15], %18 {strides = array<i32>} : memref<128x192xbf16, #tpu.memory_space<vmem>>, vector<128x192xbf16>,
    } else {
    }
    return
  }
  func.func @transform_0(%arg0: i32, %arg1: i32, %arg2: i32) -> (i32, i32) {
    %c0_i32 = arith.constant 0 : i32
    return %arg0, %arg2 : i32, i32
  }
  func.func @transform_1(%arg0: i32, %arg1: i32, %arg2: i32) -> (i32, i32) {
    %c0_i32 = arith.constant 0 : i32
    return %arg2, %arg1 : i32, i32
  }
  func.func @transform_2(%arg0: i32, %arg1: i32, %arg2: i32) -> (i32, i32) {
    %c0_i32 = arith.constant 0 : i32
    %c0_i32_0 = arith.constant 0 : i32
    return %c0_i32, %arg1 : i32, i32
  }
  func.func @transform_3(%arg0: i32, %arg1: i32, %arg2: i32) -> (i32, i32) {
    %c0_i32 = arith.constant 0 : i32
    return %arg0, %arg1 : i32, i32
  }
}

module attributes {stable_mosaic.version = 11 : i64} {
  func.func @_mm_bias_kernel(%arg0: i32, %arg1: i32, %arg2: i32, %arg3: memref<128x256xbf16, #tpu.memory_space<vmem>>, %arg4: memref<256x192xbf16, #tpu.memory_space<vmem>>, %arg5: memref<1x192xf32, #tpu.memory_space<vmem>>, %arg6: memref<128x192xbf16, #tpu.memory_space<vmem>>, %arg7: memref<128x192xf32, #tpu.memory_space<vmem>>) attributes {dimension_semantics = [#tpu.dimension_semantics<parallel>, #tpu.dimension_semantics<parallel>, #tpu.dimension_semantics<arbitrary>], iteration_bounds = array<i64: 1, 1, 7>, scalar_prefetch = 0 : i64, scratch_operands = 1 : i64, tpu.core_type = #tpu.core_type<tc>, window_params = [{transform_indices = @transform_0, window_bounds = array<i64: 128, 256>}, {transform_indices = @transform_1, window_bounds = array<i64: 256, 192>}, {transform_indices = @transform_2, window_bounds = array<i64: 1, 192>}, {transform_indices = @transform_3, window_bounds = array<i64: 128, 192>}]} {
    %c0_i32 = arith.constant 0 : i32
    %0 = arith.cmpi eq, %arg2, %c0_i32 : i32
    %1 = arith.extui %0 : i1 to i32
    %c0_i32_0 = arith.constant 0 : i32
    %2 = arith.cmpi ne, %1, %c0_i32_0 : i32
    scf.if %2 {
      %cst_9 = arith.constant 0.000000e+00 : f32
      %12 = vector.broadcast %cst_9 : f32 to vector<128x192xf32>
      %c0_10 = arith.constant 0 : index
      %c0_11 = arith.constant 0 : index
      %13 = vector.load %arg7[%c0_10, %c0_11] : memref<128x192xf32, #tpu.memory_space<vmem>>, vector<128x192xf32>
      tpu.vector_store %arg7[%c0_10, %c0_11], %12 {strides = array<i32>} : memref<128x192xf32, #tpu.memory_space<vmem>>, vector<128x192xf32>,
    } else {
    }
    %c0 = arith.constant 0 : index
    %c0_1 = arith.constant 0 : index
    %3 = vector.load %arg7[%c0, %c0_1] : memref<128x192xf32, #tpu.memory_space<vmem>>, vector<128x192xf32>
    %c0_2 = arith.constant 0 : index
    %c0_3 = arith.constant 0 : index
    %4 = vector.load %arg3[%c0_2, %c0_3] : memref<128x256xbf16, #tpu.memory_space<vmem>>, vector<128x256xbf16>
    %c0_4 = arith.constant 0 : index
    %c0_5 = arith.constant 0 : index
    %5 = vector.load %arg4[%c0_4, %c0_5] : memref<256x192xbf16, #tpu.memory_space<vmem>>, vector<256x192xbf16>
    %cst = arith.constant dense<0.000000e+00> : vector<128x192xf32>
    %6 = tpu.matmul %4, %5, %cst {dimension_numbers = #tpu.dot_dimension_numbers<[1], [0], [0], [1], [0, 0, 1, 1], [], []>} : vector<128x256xbf16>, vector<256x192xbf16>, vector<128x192xf32> -> vector<128x192xf32>
    %7 = arith.addf %3, %6 : vector<128x192xf32>
    %c0_6 = arith.constant 0 : index
    %c0_7 = arith.constant 0 : index
    %8 = vector.load %arg7[%c0_6, %c0_7] : memref<128x192xf32, #tpu.memory_space<vmem>>, vector<128x192xf32>
    tpu.vector_store %arg7[%c0_6, %c0_7], %7 {strides = array<i32>} : memref<128x192xf32, #tpu.memory_space<vmem>>, vector<128x192xf32>,
    %c6_i32 = arith.constant 6 : i32
    %9 = arith.cmpi eq, %arg2, %c6_i32 : i32
    %10 = arith.extui %9 : i1 to i32
    %c0_i32_8 = arith.constant 0 : i32
    %11 = arith.cmpi ne, %10, %c0_i32_8 : i32
    scf.if %11 {
      %c0_9 = arith.constant 0 : index
      %c0_10 = arith.constant 0 : index
      %12 = vector.load %arg7[%c0_9, %c0_10] : memref<128x192xf32, #tpu.memory_space<vmem>>, vector<128x192xf32>
      %c0_11 = arith.constant 0 : index
      %c0_12 = arith.constant 0 : index
      %13 = vector.load %arg5[%c0_11, %c0_12] : memref<1x192xf32, #tpu.memory_space<vmem>>, vector<1x192xf32>
      %14 = vector.broadcast %13 : vector<1x192xf32> to vector<128x192xf32>
      %15 = arith.addf %12, %14 : vector<128x192xf32>
      %cst_13 = arith.constant 0.000000e+00 : f32
      %16 = vector.broadcast %cst_13 : f32 to vector<128x192xf32>
      %17 = arith.maximumf %15, %16 : vector<128x192xf32>
      %18 = arith.truncf %17 : vector<128x192xf32> to vector<128x192xbf16>
      %c0_14 = arith.constant 0 : index
      %c0_15 = arith.constant 0 : index
      %19 = vector.load %arg6[%c0_14, %c0_15] : memref<128x192xbf16, #tpu.memory_space<vmem>>, vector<128x192xbf16>
      tpu.vector_store %arg6[%c0_14, %c0_15], %18 {strides = array<i32>} : memref<128x192xbf16, #tpu.memory_space<vmem>>, vector<128x192xbf16>,
    } else {
    }
    return
  }
  func.func @transform_0(%arg0: i32, %arg1: i32, %arg2: i32) -> (i32, i32) {
    %c0_i32 = arith.constant 0 : i32
    return %arg0, %arg2 : i32, i32
  }
  func.func @transform_1(%arg0: i32, %arg1: i32, %arg2: i32) -> (i32, i32) {
    %c0_i32 = arith.constant 0 : i32
    return %arg2, %arg1 : i32, i32
  }
  func.func @transform_2(%arg0: i32, %arg1: i32, %arg2: i32) -> (i32, i32) {
    %c0_i32 = arith.constant 0 : i32
    %c0_i32_0 = arith.constant 0 : i32
    return %c0_i32, %arg1 : i32, i32
  }
  func.func @transform_3(%arg0: i32, %arg1: i32, %arg2: i32) -> (i32, i32) {
    %c0_i32 = arith.constant 0 : i32
    return %arg0, %arg1 : i32, i32
  }
}

module attributes {stable_mosaic.version = 11 : i64} {
  func.func @_mm_bias_kernel(%arg0: i32, %arg1: i32, %arg2: i32, %arg3: memref<32x256xbf16, #tpu.memory_space<vmem>>, %arg4: memref<256x192xbf16, #tpu.memory_space<vmem>>, %arg5: memref<1x192xf32, #tpu.memory_space<vmem>>, %arg6: memref<32x192xbf16, #tpu.memory_space<vmem>>, %arg7: memref<32x192xf32, #tpu.memory_space<vmem>>) attributes {dimension_semantics = [#tpu.dimension_semantics<parallel>, #tpu.dimension_semantics<parallel>, #tpu.dimension_semantics<arbitrary>], iteration_bounds = array<i64: 1, 1, 7>, scalar_prefetch = 0 : i64, scratch_operands = 1 : i64, tpu.core_type = #tpu.core_type<tc>, window_params = [{transform_indices = @transform_0, window_bounds = array<i64: 32, 256>}, {transform_indices = @transform_1, window_bounds = array<i64: 256, 192>}, {transform_indices = @transform_2, window_bounds = array<i64: 1, 192>}, {transform_indices = @transform_3, window_bounds = array<i64: 32, 192>}]} {
    %c0_i32 = arith.constant 0 : i32
    %0 = arith.cmpi eq, %arg2, %c0_i32 : i32
    %1 = arith.extui %0 : i1 to i32
    %c0_i32_0 = arith.constant 0 : i32
    %2 = arith.cmpi ne, %1, %c0_i32_0 : i32
    scf.if %2 {
      %cst_9 = arith.constant 0.000000e+00 : f32
      %12 = vector.broadcast %cst_9 : f32 to vector<32x192xf32>
      %c0_10 = arith.constant 0 : index
      %c0_11 = arith.constant 0 : index
      %13 = vector.load %arg7[%c0_10, %c0_11] : memref<32x192xf32, #tpu.memory_space<vmem>>, vector<32x192xf32>
      tpu.vector_store %arg7[%c0_10, %c0_11], %12 {strides = array<i32>} : memref<32x192xf32, #tpu.memory_space<vmem>>, vector<32x192xf32>,
    } else {
    }
    %c0 = arith.constant 0 : index
    %c0_1 = arith.constant 0 : index
    %3 = vector.load %arg7[%c0, %c0_1] : memref<32x192xf32, #tpu.memory_space<vmem>>, vector<32x192xf32>
    %c0_2 = arith.constant 0 : index
    %c0_3 = arith.constant 0 : index
    %4 = vector.load %arg3[%c0_2, %c0_3] : memref<32x256xbf16, #tpu.memory_space<vmem>>, vector<32x256xbf16>
    %c0_4 = arith.constant 0 : index
    %c0_5 = arith.constant 0 : index
    %5 = vector.load %arg4[%c0_4, %c0_5] : memref<256x192xbf16, #tpu.memory_space<vmem>>, vector<256x192xbf16>
    %cst = arith.constant dense<0.000000e+00> : vector<32x192xf32>
    %6 = tpu.matmul %4, %5, %cst {dimension_numbers = #tpu.dot_dimension_numbers<[1], [0], [0], [1], [0, 0, 1, 1], [], []>} : vector<32x256xbf16>, vector<256x192xbf16>, vector<32x192xf32> -> vector<32x192xf32>
    %7 = arith.addf %3, %6 : vector<32x192xf32>
    %c0_6 = arith.constant 0 : index
    %c0_7 = arith.constant 0 : index
    %8 = vector.load %arg7[%c0_6, %c0_7] : memref<32x192xf32, #tpu.memory_space<vmem>>, vector<32x192xf32>
    tpu.vector_store %arg7[%c0_6, %c0_7], %7 {strides = array<i32>} : memref<32x192xf32, #tpu.memory_space<vmem>>, vector<32x192xf32>,
    %c6_i32 = arith.constant 6 : i32
    %9 = arith.cmpi eq, %arg2, %c6_i32 : i32
    %10 = arith.extui %9 : i1 to i32
    %c0_i32_8 = arith.constant 0 : i32
    %11 = arith.cmpi ne, %10, %c0_i32_8 : i32
    scf.if %11 {
      %c0_9 = arith.constant 0 : index
      %c0_10 = arith.constant 0 : index
      %12 = vector.load %arg7[%c0_9, %c0_10] : memref<32x192xf32, #tpu.memory_space<vmem>>, vector<32x192xf32>
      %c0_11 = arith.constant 0 : index
      %c0_12 = arith.constant 0 : index
      %13 = vector.load %arg5[%c0_11, %c0_12] : memref<1x192xf32, #tpu.memory_space<vmem>>, vector<1x192xf32>
      %14 = vector.broadcast %13 : vector<1x192xf32> to vector<32x192xf32>
      %15 = arith.addf %12, %14 : vector<32x192xf32>
      %cst_13 = arith.constant 0.000000e+00 : f32
      %16 = vector.broadcast %cst_13 : f32 to vector<32x192xf32>
      %17 = arith.maximumf %15, %16 : vector<32x192xf32>
      %18 = arith.truncf %17 : vector<32x192xf32> to vector<32x192xbf16>
      %c0_14 = arith.constant 0 : index
      %c0_15 = arith.constant 0 : index
      %19 = vector.load %arg6[%c0_14, %c0_15] : memref<32x192xbf16, #tpu.memory_space<vmem>>, vector<32x192xbf16>
      tpu.vector_store %arg6[%c0_14, %c0_15], %18 {strides = array<i32>} : memref<32x192xbf16, #tpu.memory_space<vmem>>, vector<32x192xbf16>,
    } else {
    }
    return
  }
  func.func @transform_0(%arg0: i32, %arg1: i32, %arg2: i32) -> (i32, i32) {
    %c0_i32 = arith.constant 0 : i32
    return %arg0, %arg2 : i32, i32
  }
  func.func @transform_1(%arg0: i32, %arg1: i32, %arg2: i32) -> (i32, i32) {
    %c0_i32 = arith.constant 0 : i32
    return %arg2, %arg1 : i32, i32
  }
  func.func @transform_2(%arg0: i32, %arg1: i32, %arg2: i32) -> (i32, i32) {
    %c0_i32 = arith.constant 0 : i32
    %c0_i32_0 = arith.constant 0 : i32
    return %c0_i32, %arg1 : i32, i32
  }
  func.func @transform_3(%arg0: i32, %arg1: i32, %arg2: i32) -> (i32, i32) {
    %c0_i32 = arith.constant 0 : i32
    return %arg0, %arg1 : i32, i32
  }
}

module attributes {stable_mosaic.version = 11 : i64} {
  func.func @_mm_bias_kernel(%arg0: i32, %arg1: i32, %arg2: i32, %arg3: memref<32x192xbf16, #tpu.memory_space<vmem>>, %arg4: memref<192x192xbf16, #tpu.memory_space<vmem>>, %arg5: memref<1x192xf32, #tpu.memory_space<vmem>>, %arg6: memref<32x192xbf16, #tpu.memory_space<vmem>>, %arg7: memref<32x192xf32, #tpu.memory_space<vmem>>) attributes {dimension_semantics = [#tpu.dimension_semantics<parallel>, #tpu.dimension_semantics<parallel>, #tpu.dimension_semantics<arbitrary>], iteration_bounds = array<i64: 1, 1, 1>, scalar_prefetch = 0 : i64, scratch_operands = 1 : i64, tpu.core_type = #tpu.core_type<tc>, window_params = [{transform_indices = @transform_0, window_bounds = array<i64: 32, 192>}, {transform_indices = @transform_1, window_bounds = array<i64: 192, 192>}, {transform_indices = @transform_2, window_bounds = array<i64: 1, 192>}, {transform_indices = @transform_3, window_bounds = array<i64: 32, 192>}]} {
    %c0_i32 = arith.constant 0 : i32
    %0 = arith.cmpi eq, %arg2, %c0_i32 : i32
    %1 = arith.extui %0 : i1 to i32
    %c0_i32_0 = arith.constant 0 : i32
    %2 = arith.cmpi ne, %1, %c0_i32_0 : i32
    scf.if %2 {
      %cst_10 = arith.constant 0.000000e+00 : f32
      %12 = vector.broadcast %cst_10 : f32 to vector<32x192xf32>
      %c0_11 = arith.constant 0 : index
      %c0_12 = arith.constant 0 : index
      %13 = vector.load %arg7[%c0_11, %c0_12] : memref<32x192xf32, #tpu.memory_space<vmem>>, vector<32x192xf32>
      tpu.vector_store %arg7[%c0_11, %c0_12], %12 {strides = array<i32>} : memref<32x192xf32, #tpu.memory_space<vmem>>, vector<32x192xf32>,
    } else {
    }
    %c0 = arith.constant 0 : index
    %c0_1 = arith.constant 0 : index
    %3 = vector.load %arg7[%c0, %c0_1] : memref<32x192xf32, #tpu.memory_space<vmem>>, vector<32x192xf32>
    %c0_2 = arith.constant 0 : index
    %c0_3 = arith.constant 0 : index
    %4 = vector.load %arg3[%c0_2, %c0_3] : memref<32x192xbf16, #tpu.memory_space<vmem>>, vector<32x192xbf16>
    %c0_4 = arith.constant 0 : index
    %c0_5 = arith.constant 0 : index
    %5 = vector.load %arg4[%c0_4, %c0_5] : memref<192x192xbf16, #tpu.memory_space<vmem>>, vector<192x192xbf16>
    %cst = arith.constant dense<0.000000e+00> : vector<32x192xf32>
    %6 = tpu.matmul %4, %5, %cst {dimension_numbers = #tpu.dot_dimension_numbers<[1], [0], [0], [1], [0, 0, 1, 1], [], []>} : vector<32x192xbf16>, vector<192x192xbf16>, vector<32x192xf32> -> vector<32x192xf32>
    %7 = arith.addf %3, %6 : vector<32x192xf32>
    %c0_6 = arith.constant 0 : index
    %c0_7 = arith.constant 0 : index
    %8 = vector.load %arg7[%c0_6, %c0_7] : memref<32x192xf32, #tpu.memory_space<vmem>>, vector<32x192xf32>
    tpu.vector_store %arg7[%c0_6, %c0_7], %7 {strides = array<i32>} : memref<32x192xf32, #tpu.memory_space<vmem>>, vector<32x192xf32>,
    %c0_i32_8 = arith.constant 0 : i32
    %9 = arith.cmpi eq, %arg2, %c0_i32_8 : i32
    %10 = arith.extui %9 : i1 to i32
    %c0_i32_9 = arith.constant 0 : i32
    %11 = arith.cmpi ne, %10, %c0_i32_9 : i32
    scf.if %11 {
      %c0_10 = arith.constant 0 : index
      %c0_11 = arith.constant 0 : index
      %12 = vector.load %arg7[%c0_10, %c0_11] : memref<32x192xf32, #tpu.memory_space<vmem>>, vector<32x192xf32>
      %c0_12 = arith.constant 0 : index
      %c0_13 = arith.constant 0 : index
      %13 = vector.load %arg5[%c0_12, %c0_13] : memref<1x192xf32, #tpu.memory_space<vmem>>, vector<1x192xf32>
      %14 = vector.broadcast %13 : vector<1x192xf32> to vector<32x192xf32>
      %15 = arith.addf %12, %14 : vector<32x192xf32>
      %cst_14 = arith.constant 0.000000e+00 : f32
      %16 = vector.broadcast %cst_14 : f32 to vector<32x192xf32>
      %17 = arith.maximumf %15, %16 : vector<32x192xf32>
      %18 = arith.truncf %17 : vector<32x192xf32> to vector<32x192xbf16>
      %c0_15 = arith.constant 0 : index
      %c0_16 = arith.constant 0 : index
      %19 = vector.load %arg6[%c0_15, %c0_16] : memref<32x192xbf16, #tpu.memory_space<vmem>>, vector<32x192xbf16>
      tpu.vector_store %arg6[%c0_15, %c0_16], %18 {strides = array<i32>} : memref<32x192xbf16, #tpu.memory_space<vmem>>, vector<32x192xbf16>,
    } else {
    }
    return
  }
  func.func @transform_0(%arg0: i32, %arg1: i32, %arg2: i32) -> (i32, i32) {
    %c0_i32 = arith.constant 0 : i32
    return %arg0, %arg2 : i32, i32
  }
  func.func @transform_1(%arg0: i32, %arg1: i32, %arg2: i32) -> (i32, i32) {
    %c0_i32 = arith.constant 0 : i32
    return %arg2, %arg1 : i32, i32
  }
  func.func @transform_2(%arg0: i32, %arg1: i32, %arg2: i32) -> (i32, i32) {
    %c0_i32 = arith.constant 0 : i32
    %c0_i32_0 = arith.constant 0 : i32
    return %c0_i32, %arg1 : i32, i32
  }
  func.func @transform_3(%arg0: i32, %arg1: i32, %arg2: i32) -> (i32, i32) {
    %c0_i32 = arith.constant 0 : i32
    return %arg0, %arg1 : i32, i32
  }
}

module attributes {stable_mosaic.version = 11 : i64} {
  func.func @_avgpool_kernel(%arg0: i32, %arg1: memref<8x16x192xbf16, #tpu.memory_space<vmem>>, %arg2: memref<8x192xf32, #tpu.memory_space<vmem>>) attributes {dimension_semantics = [#tpu.dimension_semantics<parallel>], iteration_bounds = array<i64: 1>, scalar_prefetch = 0 : i64, scratch_operands = 0 : i64, tpu.core_type = #tpu.core_type<tc>, window_params = [{transform_indices = @transform_0, window_bounds = array<i64: 8, 16, 192>}, {transform_indices = @transform_1, window_bounds = array<i64: 8, 192>}]} {
    %c0 = arith.constant 0 : index
    %c0_0 = arith.constant 0 : index
    %c0_1 = arith.constant 0 : index
    %0 = vector.load %arg1[%c0, %c0_0, %c0_1] : memref<8x16x192xbf16, #tpu.memory_space<vmem>>, vector<8x16x192xbf16>
    %1 = arith.extf %0 : vector<8x16x192xbf16> to vector<8x16x192xf32>
    %cst = arith.constant dense<0.000000e+00> : vector<8x192xf32>
    %2 = vector.multi_reduction <add>, %1, %cst [1] : vector<8x16x192xf32> to vector<8x192xf32>
    %cst_2 = arith.constant 6.250000e-02 : f32
    %3 = vector.broadcast %cst_2 : f32 to vector<8x192xf32>
    %4 = arith.mulf %2, %3 : vector<8x192xf32>
    %c0_3 = arith.constant 0 : index
    %c0_4 = arith.constant 0 : index
    %5 = vector.load %arg2[%c0_3, %c0_4] : memref<8x192xf32, #tpu.memory_space<vmem>>, vector<8x192xf32>
    tpu.vector_store %arg2[%c0_3, %c0_4], %4 {strides = array<i32>} : memref<8x192xf32, #tpu.memory_space<vmem>>, vector<8x192xf32>,
    return
  }
  func.func @transform_0(%arg0: i32) -> (i32, i32, i32) {
    %c0_i32 = arith.constant 0 : i32
    %c0_i32_0 = arith.constant 0 : i32
    %c0_i32_1 = arith.constant 0 : i32
    return %arg0, %c0_i32, %c0_i32_0 : i32, i32, i32
  }
  func.func @transform_1(%arg0: i32) -> (i32, i32) {
    %c0_i32 = arith.constant 0 : i32
    %c0_i32_0 = arith.constant 0 : i32
    return %arg0, %c0_i32 : i32, i32
  }
}

module attributes {stable_mosaic.version = 11 : i64} {
  func.func @_mm_bias_kernel(%arg0: i32, %arg1: i32, %arg2: i32, %arg3: memref<8x192xbf16, #tpu.memory_space<vmem>>, %arg4: memref<192x10xbf16, #tpu.memory_space<vmem>>, %arg5: memref<1x10xf32, #tpu.memory_space<vmem>>, %arg6: memref<8x10xf32, #tpu.memory_space<vmem>>, %arg7: memref<8x10xf32, #tpu.memory_space<vmem>>) attributes {dimension_semantics = [#tpu.dimension_semantics<parallel>, #tpu.dimension_semantics<parallel>, #tpu.dimension_semantics<arbitrary>], iteration_bounds = array<i64: 1, 1, 1>, scalar_prefetch = 0 : i64, scratch_operands = 1 : i64, tpu.core_type = #tpu.core_type<tc>, window_params = [{transform_indices = @transform_0, window_bounds = array<i64: 8, 192>}, {transform_indices = @transform_1, window_bounds = array<i64: 192, 10>}, {transform_indices = @transform_2, window_bounds = array<i64: 1, 10>}, {transform_indices = @transform_3, window_bounds = array<i64: 8, 10>}]} {
    %c0_i32 = arith.constant 0 : i32
    %0 = arith.cmpi eq, %arg2, %c0_i32 : i32
    %1 = arith.extui %0 : i1 to i32
    %c0_i32_0 = arith.constant 0 : i32
    %2 = arith.cmpi ne, %1, %c0_i32_0 : i32
    scf.if %2 {
      %cst_10 = arith.constant 0.000000e+00 : f32
      %12 = vector.broadcast %cst_10 : f32 to vector<8x10xf32>
      %c0_11 = arith.constant 0 : index
      %c0_12 = arith.constant 0 : index
      %13 = vector.load %arg7[%c0_11, %c0_12] : memref<8x10xf32, #tpu.memory_space<vmem>>, vector<8x10xf32>
      tpu.vector_store %arg7[%c0_11, %c0_12], %12 {strides = array<i32>} : memref<8x10xf32, #tpu.memory_space<vmem>>, vector<8x10xf32>,
    } else {
    }
    %c0 = arith.constant 0 : index
    %c0_1 = arith.constant 0 : index
    %3 = vector.load %arg7[%c0, %c0_1] : memref<8x10xf32, #tpu.memory_space<vmem>>, vector<8x10xf32>
    %c0_2 = arith.constant 0 : index
    %c0_3 = arith.constant 0 : index
    %4 = vector.load %arg3[%c0_2, %c0_3] : memref<8x192xbf16, #tpu.memory_space<vmem>>, vector<8x192xbf16>
    %c0_4 = arith.constant 0 : index
    %c0_5 = arith.constant 0 : index
    %5 = vector.load %arg4[%c0_4, %c0_5] : memref<192x10xbf16, #tpu.memory_space<vmem>>, vector<192x10xbf16>
    %cst = arith.constant dense<0.000000e+00> : vector<8x10xf32>
    %6 = tpu.matmul %4, %5, %cst {dimension_numbers = #tpu.dot_dimension_numbers<[1], [0], [0], [1], [0, 0, 1, 1], [], []>} : vector<8x192xbf16>, vector<192x10xbf16>, vector<8x10xf32> -> vector<8x10xf32>
    %7 = arith.addf %3, %6 : vector<8x10xf32>
    %c0_6 = arith.constant 0 : index
    %c0_7 = arith.constant 0 : index
    %8 = vector.load %arg7[%c0_6, %c0_7] : memref<8x10xf32, #tpu.memory_space<vmem>>, vector<8x10xf32>
    tpu.vector_store %arg7[%c0_6, %c0_7], %7 {strides = array<i32>} : memref<8x10xf32, #tpu.memory_space<vmem>>, vector<8x10xf32>,
    %c0_i32_8 = arith.constant 0 : i32
    %9 = arith.cmpi eq, %arg2, %c0_i32_8 : i32
    %10 = arith.extui %9 : i1 to i32
    %c0_i32_9 = arith.constant 0 : i32
    %11 = arith.cmpi ne, %10, %c0_i32_9 : i32
    scf.if %11 {
      %c0_10 = arith.constant 0 : index
      %c0_11 = arith.constant 0 : index
      %12 = vector.load %arg7[%c0_10, %c0_11] : memref<8x10xf32, #tpu.memory_space<vmem>>, vector<8x10xf32>
      %c0_12 = arith.constant 0 : index
      %c0_13 = arith.constant 0 : index
      %13 = vector.load %arg5[%c0_12, %c0_13] : memref<1x10xf32, #tpu.memory_space<vmem>>, vector<1x10xf32>
      %14 = vector.broadcast %13 : vector<1x10xf32> to vector<8x10xf32>
      %15 = arith.addf %12, %14 : vector<8x10xf32>
      %c0_14 = arith.constant 0 : index
      %c0_15 = arith.constant 0 : index
      %16 = vector.load %arg6[%c0_14, %c0_15] : memref<8x10xf32, #tpu.memory_space<vmem>>, vector<8x10xf32>
      tpu.vector_store %arg6[%c0_14, %c0_15], %15 {strides = array<i32>} : memref<8x10xf32, #tpu.memory_space<vmem>>, vector<8x10xf32>,
    } else {
    }
    return
  }
  func.func @transform_0(%arg0: i32, %arg1: i32, %arg2: i32) -> (i32, i32) {
    %c0_i32 = arith.constant 0 : i32
    return %arg0, %arg2 : i32, i32
  }
  func.func @transform_1(%arg0: i32, %arg1: i32, %arg2: i32) -> (i32, i32) {
    %c0_i32 = arith.constant 0 : i32
    return %arg2, %arg1 : i32, i32
  }
  func.func @transform_2(%arg0: i32, %arg1: i32, %arg2: i32) -> (i32, i32) {
    %c0_i32 = arith.constant 0 : i32
    %c0_i32_0 = arith.constant 0 : i32
    return %c0_i32, %arg1 : i32, i32
  }
  func.func @transform_3(%arg0: i32, %arg1: i32, %arg2: i32) -> (i32, i32) {
    %c0_i32 = arith.constant 0 : i32
    return %arg0, %arg1 : i32, i32
  }
}

</mosaic_0001>

<bundles_post_ra>
// kernel: allconv_forward.10
= control target key start
LH: loop header
LB: loop body
LE: loop exit
PB: predicated region body
PF: predicated region fallthrough
CT: control target
= control target key end

     0   :  { %vm387_vm0 = vcmask 261120   ;;  %s1831_s1 = inlined_call_operand.vmem [shape: bf16[32,128], index: 1, kind: input, shape index: {}]   ;;  %s1832_s0 = inlined_call_operand.vmem [shape: bf16[512,32], index: 0, kind: input, shape index: {}]   ;;  %s1833_s2 = inlined_call_operand.vmem [shape: f32[1,128], index: 2, kind: input, shape index: {}]   ;;  %s1834_s3 = inlined_call_operand.vmem [shape: bf16[512,128], index: 3, kind: output, shape index: {}]  }
   0x1   :  { %v1313_v0 = vld [vmem:[%s1831_s1 + $0x8] sm:$0xff]  ;;  %v1312_v1 = vld [vmem:[%s1831_s1] sm:$0xff]  ;;  %v1282_v10 = vld [vmem:[%s1832_s0 + $0x10] sm:$0xff] }
   0x2   :  { %490 = vmatpush.bf16.msra.mxu0 %v1313_v0  ;;  %1505 = vmatpush.bf16.msra.mxu1 %v1313_v0  ;;  %v1280_v2 = vld [vmem:[%s1832_s0] sm:$0xff]  ;;  %v1281_v6 = vld [vmem:[%s1832_s0 + $0x8] sm:$0xff]  ;;  %v1290_v11 = vld [vmem:[%s1832_s0 + $0x50] sm:$0xff] }
   0x3   :  { %1506 = vmatpush.bf16.msra.mxu2 %v1313_v0  ;;  %1507 = vmatpush.bf16.msra.mxu3 %v1313_v0  ;;  %v1288_v3 = vld [vmem:[%s1832_s0 + $0x40] sm:$0xff]  ;;  %v1289_v7 = vld [vmem:[%s1832_s0 + $0x48] sm:$0xff]  ;;  %v1298_v12 = vld [vmem:[%s1832_s0 + $0x90] sm:$0xff] }
   0x4   :  { %v1296_v4 = vld [vmem:[%s1832_s0 + $0x80] sm:$0xff]  ;;  %v1297_v8 = vld [vmem:[%s1832_s0 + $0x88] sm:$0xff]  ;;  %v1306_v13 = vld [vmem:[%s1832_s0 + $0xd0] sm:$0xff] }
   0x5   :  { %v1304_v5 = vld [vmem:[%s1832_s0 + $0xc0] sm:$0xff]  ;;  %v1305_v9 = vld [vmem:[%s1832_s0 + $0xc8] sm:$0xff]  ;;  %v1283_v14 = vld [vmem:[%s1832_s0 + $0x18] sm:$0xff] }
   0x6   :  { %491 = vmatpush.bf16.msra.mxu0 %v1312_v1  ;;  %1508 = vmatpush.bf16.msra.mxu1 %v1312_v1  ;;  %v1291_v15 = vld [vmem:[%s1832_s0 + $0x58] sm:$0xff]  ;;  %v1284_v18 = vld [vmem:[%s1832_s0 + $0x20] sm:$0xff]  ;;  %v1285_v22 = vld [vmem:[%s1832_s0 + $0x28] sm:$0xff] }
   0x7   :  { %1509 = vmatpush.bf16.msra.mxu2 %v1312_v1  ;;  %1510 = vmatpush.bf16.msra.mxu3 %v1312_v1  ;;  %v1299_v16 = vld [vmem:[%s1832_s0 + $0x98] sm:$0xff]  ;;  %v1292_v19 = vld [vmem:[%s1832_s0 + $0x60] sm:$0xff]  ;;  %v1293_v23 = vld [vmem:[%s1832_s0 + $0x68] sm:$0xff] }
   0x8   :  { %v1307_v17 = vld [vmem:[%s1832_s0 + $0xd8] sm:$0xff]  ;;  %v1300_v20 = vld [vmem:[%s1832_s0 + $0xa0] sm:$0xff]  ;;  %v1301_v24 = vld [vmem:[%s1832_s0 + $0xa8] sm:$0xff] }
   0x9   :  { %1248 = vmatmul.msk.bf16.vlgmr.msra.gmra.mxu0 %vm387_vm0, %v1280_v2  ;;  %1256 = vmatmul.msk.bf16.vlgmr.msra.gmra.mxu1 %vm387_vm0, %v1288_v3  ;;  %v1308_v21 = vld [vmem:[%s1832_s0 + $0xe0] sm:$0xff]  ;;  %v1309_v25 = vld [vmem:[%s1832_s0 + $0xe8] sm:$0xff]  ;;  %v1286_v26 = vld [vmem:[%s1832_s0 + $0x30] sm:$0xff] }
   0xa   :  { %1264 = vmatmul.msk.bf16.vlgmr.msra.gmra.mxu2 %vm387_vm0, %v1296_v4  ;;  %1272 = vmatmul.msk.bf16.vlgmr.msra.gmra.mxu3 %vm387_vm0, %v1304_v5  ;;  %v1294_v27 = vld [vmem:[%s1832_s0 + $0x70] sm:$0xff]  ;;  %v1287_v30 = vld [vmem:[%s1832_s0 + $0x38] sm:$0xff]  ;;  %v1669_v36 = vld [vmem:[%s1833_s2] ss:$0 sm:$0xff] }
   0xb   :  { %v1302_v28 = vld [vmem:[%s1832_s0 + $0xb0] sm:$0xff]  ;;  %v1295_v31 = vld [vmem:[%s1832_s0 + $0x78] sm:$0xff] }
   0xc   :  { %v1310_v29 = vld [vmem:[%s1832_s0 + $0xf0] sm:$0xff]  ;;  %v1303_v32 = vld [vmem:[%s1832_s0 + $0xb8] sm:$0xff] }
   0xd   :  { %v1311_v33 = vld [vmem:[%s1832_s0 + $0xf8] sm:$0xff] }
  0x19   :  { %1249 = vmatmul.msk.bf16.gmra.mxu0 %vm387_vm0, %v1281_v6  ;;  %1257 = vmatmul.msk.bf16.gmra.mxu1 %vm387_vm0, %v1289_v7 }
  0x1a   :  { %1265 = vmatmul.msk.bf16.gmra.mxu2 %vm387_vm0, %v1297_v8  ;;  %1273 = vmatmul.msk.bf16.gmra.mxu3 %vm387_vm0, %v1305_v9 }
  0x29   :  { %1250 = vmatmul.msk.bf16.gmra.mxu0 %vm387_vm0, %v1282_v10  ;;  %1258 = vmatmul.msk.bf16.gmra.mxu1 %vm387_vm0, %v1290_v11 }
  0x2a   :  { %1266 = vmatmul.msk.bf16.gmra.mxu2 %vm387_vm0, %v1298_v12  ;;  %1274 = vmatmul.msk.bf16.gmra.mxu3 %vm387_vm0, %v1306_v13 }
  0x39   :  { %1251 = vmatmul.msk.bf16.gmra.mxu0 %vm387_vm0, %v1283_v14  ;;  %1259 = vmatmul.msk.bf16.gmra.mxu1 %vm387_vm0, %v1291_v15 }
  0x3a   :  { %1267 = vmatmul.msk.bf16.gmra.mxu2 %vm387_vm0, %v1299_v16  ;;  %1275 = vmatmul.msk.bf16.gmra.mxu3 %vm387_vm0, %v1307_v17 }
  0x49   :  { %1252 = vmatmul.msk.bf16.gmra.mxu0 %vm387_vm0, %v1284_v18  ;;  %1260 = vmatmul.msk.bf16.gmra.mxu1 %vm387_vm0, %v1292_v19 }
  0x4a   :  { %1268 = vmatmul.msk.bf16.gmra.mxu2 %vm387_vm0, %v1300_v20  ;;  %1276 = vmatmul.msk.bf16.gmra.mxu3 %vm387_vm0, %v1308_v21 }
  0x59   :  { %1253 = vmatmul.msk.bf16.gmra.mxu0 %vm387_vm0, %v1285_v22  ;;  %1261 = vmatmul.msk.bf16.gmra.mxu1 %vm387_vm0, %v1293_v23 }
  0x5a   :  { %1269 = vmatmul.msk.bf16.gmra.mxu2 %vm387_vm0, %v1301_v24  ;;  %1277 = vmatmul.msk.bf16.gmra.mxu3 %vm387_vm0, %v1309_v25 }
  0x69   :  { %1254 = vmatmul.msk.bf16.gmra.mxu0 %vm387_vm0, %v1286_v26  ;;  %1262 = vmatmul.msk.bf16.gmra.mxu1 %vm387_vm0, %v1294_v27 }
  0x6a   :  { %1270 = vmatmul.msk.bf16.gmra.mxu2 %vm387_vm0, %v1302_v28  ;;  %1278 = vmatmul.msk.bf16.gmra.mxu3 %vm387_vm0, %v1310_v29 }
  0x79   :  { %1255 = vmatmul.msk.bf16.gmra.mxu0 %vm387_vm0, %v1287_v30  ;;  %1263 = vmatmul.msk.bf16.gmra.mxu1 %vm387_vm0, %v1295_v31 }
  0x7a   :  { %1271 = vmatmul.msk.bf16.gmra.mxu2 %vm387_vm0, %v1303_v32  ;;  %1279 = vmatmul.msk.bf16.gmra.mxu3 %vm387_vm0, %v1311_v33 }
  0x86   :  { %v493_v34 = vpop.f32.mrf.mxu0  ;;  %v533_v35 = vpop.f32.mrf.mxu1 }
  0x87   :  { %v852_v37 = vadd.f32 %v1669_v36, %v493_v34  ;;  %v868_v38 = vadd.f32 %v1669_v36, %v533_v35 }
  0x89   :  { %v916_v45 = vmax.f32 %v852_v37, 0.0  ;;  %v932_v46 = vmax.f32 %v868_v38, 0.0 }
  0x8d   :  { %v573_v39 = vpop.f32.mrf.mxu2  ;;  %v613_v40 = vpop.f32.mrf.mxu3 }
  0x8e   :  { %v495_v41 = vpop.f32.mrf.mxu0  ;;  %v535_v42 = vpop.f32.mrf.mxu1  ;;  %v884_v51 = vadd.f32 %v1669_v36, %v573_v39  ;;  %v900_v52 = vadd.f32 %v1669_v36, %v613_v40 }
  0x8f   :  { %v853_v43 = vadd.f32 %v1669_v36, %v495_v41  ;;  %v869_v44 = vadd.f32 %v1669_v36, %v535_v42 }
  0x90   :  { %v948_v59 = vmax.f32 %v884_v51, 0.0  ;;  %v964_v60 = vmax.f32 %v900_v52, 0.0 }
  0x91   :  { %v917_v47 = vmax.f32 %v853_v43, 0.0  ;;  %v933_v48 = vmax.f32 %v869_v44, 0.0 }
  0x93   :  { %v1317_v49 = vpack.c.bf16 %v917_v47, %v916_v45  ;;  %v1357_v50 = vpack.c.bf16 %v933_v48, %v932_v46 }
  0x95   :  { %1318 = vst [vmem:[%s1834_s3] sm:$0xff] %v1317_v49   ;;  %v575_v53 = vpop.f32.mrf.mxu2  ;;  %v615_v54 = vpop.f32.mrf.mxu3 }
  0x96   :  { %1481 = vst [vmem:[%s1834_s3 + $0x40] sm:$0xff] %v1357_v50   ;;  %v885_v55 = vadd.f32 %v1669_v36, %v575_v53  ;;  %v901_v56 = vadd.f32 %v1669_v36, %v615_v54  ;;  %v498_v57 = vpop.f32.mrf.mxu0  ;;  %v538_v58 = vpop.f32.mrf.mxu1 }
  0x97   :  { %v854_v1 = vadd.f32 %v1669_v36, %v498_v57  ;;  %v870_v2 = vadd.f32 %v1669_v36, %v538_v58 }
  0x98   :  { %v949_v61 = vmax.f32 %v885_v55, 0.0  ;;  %v965_v62 = vmax.f32 %v901_v56, 0.0 }
  0x99   :  { %v918_v9 = vmax.f32 %v854_v1, 0.0  ;;  %v934_v10 = vmax.f32 %v870_v2, 0.0 }
  0x9a   :  { %v1397_v63 = vpack.c.bf16 %v949_v61, %v948_v59  ;;  %v1437_v0 = vpack.c.bf16 %v965_v62, %v964_v60 }
  0x9c   :  { %1489 = vst [vmem:[%s1834_s3 + $0x80] sm:$0xff] %v1397_v63  }
  0x9d   :  { %1497 = vst [vmem:[%s1834_s3 + $0xc0] sm:$0xff] %v1437_v0   ;;  %v578_v3 = vpop.f32.mrf.mxu2  ;;  %v618_v4 = vpop.f32.mrf.mxu3 }
  0x9e   :  { %v500_v5 = vpop.f32.mrf.mxu0  ;;  %v540_v6 = vpop.f32.mrf.mxu1  ;;  %v886_v15 = vadd.f32 %v1669_v36, %v578_v3  ;;  %v902_v16 = vadd.f32 %v1669_v36, %v618_v4 }
  0x9f   :  { %v855_v7 = vadd.f32 %v1669_v36, %v500_v5  ;;  %v871_v8 = vadd.f32 %v1669_v36, %v540_v6 }
  0xa0   :  { %v950_v23 = vmax.f32 %v886_v15, 0.0  ;;  %v966_v24 = vmax.f32 %v902_v16, 0.0 }
  0xa1   :  { %v919_v11 = vmax.f32 %v855_v7, 0.0  ;;  %v935_v12 = vmax.f32 %v871_v8, 0.0 }
  0xa3   :  { %v1322_v13 = vpack.c.bf16 %v919_v11, %v918_v9  ;;  %v1362_v14 = vpack.c.bf16 %v935_v12, %v934_v10 }
  0xa5   :  { %1474 = vst [vmem:[%s1834_s3 + $0x8] sm:$0xff] %v1322_v13   ;;  %v580_v17 = vpop.f32.mrf.mxu2  ;;  %v620_v18 = vpop.f32.mrf.mxu3 }
  0xa6   :  { %1482 = vst [vmem:[%s1834_s3 + $0x48] sm:$0xff] %v1362_v14   ;;  %v887_v19 = vadd.f32 %v1669_v36, %v580_v17  ;;  %v903_v20 = vadd.f32 %v1669_v36, %v620_v18  ;;  %v503_v21 = vpop.f32.mrf.mxu0  ;;  %v543_v22 = vpop.f32.mrf.mxu1 }
  0xa7   :  { %v856_v29 = vadd.f32 %v1669_v36, %v503_v21  ;;  %v872_v30 = vadd.f32 %v1669_v36, %v543_v22 }
  0xa8   :  { %v951_v25 = vmax.f32 %v887_v19, 0.0  ;;  %v967_v26 = vmax.f32 %v903_v20, 0.0 }
  0xa9   :  { %v920_v38 = vmax.f32 %v856_v29, 0.0  ;;  %v936_v39 = vmax.f32 %v872_v30, 0.0 }
  0xaa   :  { %v1402_v27 = vpack.c.bf16 %v951_v25, %v950_v23  ;;  %v1442_v28 = vpack.c.bf16 %v967_v26, %v966_v24 }
  0xac   :  { %1490 = vst [vmem:[%s1834_s3 + $0x88] sm:$0xff] %v1402_v27  }
  0xad   :  { %1498 = vst [vmem:[%s1834_s3 + $0xc8] sm:$0xff] %v1442_v28   ;;  %v583_v31 = vpop.f32.mrf.mxu2  ;;  %v623_v32 = vpop.f32.mrf.mxu3 }
  0xae   :  { %v505_v33 = vpop.f32.mrf.mxu0  ;;  %v545_v34 = vpop.f32.mrf.mxu1  ;;  %v888_v44 = vadd.f32 %v1669_v36, %v583_v31  ;;  %v904_v45 = vadd.f32 %v1669_v36, %v623_v32 }
  0xaf   :  { %v857_v35 = vadd.f32 %v1669_v36, %v505_v33  ;;  %v873_v37 = vadd.f32 %v1669_v36, %v545_v34 }
  0xb0   :  { %v952_v52 = vmax.f32 %v888_v44, 0.0  ;;  %v968_v53 = vmax.f32 %v904_v45, 0.0 }
  0xb1   :  { %v921_v40 = vmax.f32 %v857_v35, 0.0  ;;  %v937_v41 = vmax.f32 %v873_v37, 0.0 }
  0xb3   :  { %v1327_v42 = vpack.c.bf16 %v921_v40, %v920_v38  ;;  %v1367_v43 = vpack.c.bf16 %v937_v41, %v936_v39 }
  0xb5   :  { %1475 = vst [vmem:[%s1834_s3 + $0x10] sm:$0xff] %v1327_v42   ;;  %v585_v46 = vpop.f32.mrf.mxu2  ;;  %v625_v47 = vpop.f32.mrf.mxu3 }
  0xb6   :  { %1483 = vst [vmem:[%s1834_s3 + $0x50] sm:$0xff] %v1367_v43   ;;  %v889_v48 = vadd.f32 %v1669_v36, %v585_v46  ;;  %v905_v49 = vadd.f32 %v1669_v36, %v625_v47  ;;  %v508_v50 = vpop.f32.mrf.mxu0  ;;  %v548_v51 = vpop.f32.mrf.mxu1 }
  0xb7   :  { %v858_v58 = vadd.f32 %v1669_v36, %v508_v50  ;;  %v874_v59 = vadd.f32 %v1669_v36, %v548_v51 }
  0xb8   :  { %v953_v54 = vmax.f32 %v889_v48, 0.0  ;;  %v969_v55 = vmax.f32 %v905_v49, 0.0 }
  0xb9   :  { %v922_v2 = vmax.f32 %v858_v58, 0.0  ;;  %v938_v3 = vmax.f32 %v874_v59, 0.0 }
  0xba   :  { %v1407_v56 = vpack.c.bf16 %v953_v54, %v952_v52  ;;  %v1447_v57 = vpack.c.bf16 %v969_v55, %v968_v53 }
  0xbc   :  { %1491 = vst [vmem:[%s1834_s3 + $0x90] sm:$0xff] %v1407_v56  }
  0xbd   :  { %1499 = vst [vmem:[%s1834_s3 + $0xd0] sm:$0xff] %v1447_v57   ;;  %v588_v60 = vpop.f32.mrf.mxu2  ;;  %v628_v61 = vpop.f32.mrf.mxu3 }
  0xbe   :  { %v510_v62 = vpop.f32.mrf.mxu0  ;;  %v550_v63 = vpop.f32.mrf.mxu1  ;;  %v890_v8 = vadd.f32 %v1669_v36, %v588_v60  ;;  %v906_v9 = vadd.f32 %v1669_v36, %v628_v61 }
  0xbf   :  { %v859_v0 = vadd.f32 %v1669_v36, %v510_v62  ;;  %v875_v1 = vadd.f32 %v1669_v36, %v550_v63 }
  0xc0   :  { %v954_v16 = vmax.f32 %v890_v8, 0.0  ;;  %v970_v17 = vmax.f32 %v906_v9, 0.0 }
  0xc1   :  { %v923_v4 = vmax.f32 %v859_v0, 0.0  ;;  %v939_v5 = vmax.f32 %v875_v1, 0.0 }
  0xc3   :  { %v1332_v6 = vpack.c.bf16 %v923_v4, %v922_v2  ;;  %v1372_v7 = vpack.c.bf16 %v939_v5, %v938_v3 }
  0xc5   :  { %1476 = vst [vmem:[%s1834_s3 + $0x18] sm:$0xff] %v1332_v6   ;;  %v590_v10 = vpop.f32.mrf.mxu2  ;;  %v630_v11 = vpop.f32.mrf.mxu3 }
  0xc6   :  { %1484 = vst [vmem:[%s1834_s3 + $0x58] sm:$0xff] %v1372_v7   ;;  %v891_v12 = vadd.f32 %v1669_v36, %v590_v10  ;;  %v907_v13 = vadd.f32 %v1669_v36, %v630_v11  ;;  %v513_v14 = vpop.f32.mrf.mxu0  ;;  %v553_v15 = vpop.f32.mrf.mxu1 }
  0xc7   :  { %v860_v22 = vadd.f32 %v1669_v36, %v513_v14  ;;  %v876_v23 = vadd.f32 %v1669_v36, %v553_v15 }
  0xc8   :  { %v955_v18 = vmax.f32 %v891_v12, 0.0  ;;  %v971_v19 = vmax.f32 %v907_v13, 0.0 }
  0xc9   :  { %v924_v30 = vmax.f32 %v860_v22, 0.0  ;;  %v940_v31 = vmax.f32 %v876_v23, 0.0 }
  0xca   :  { %v1412_v20 = vpack.c.bf16 %v955_v18, %v954_v16  ;;  %v1452_v21 = vpack.c.bf16 %v971_v19, %v970_v17 }
  0xcc   :  { %1492 = vst [vmem:[%s1834_s3 + $0x98] sm:$0xff] %v1412_v20  }
  0xcd   :  { %1500 = vst [vmem:[%s1834_s3 + $0xd8] sm:$0xff] %v1452_v21   ;;  %v593_v24 = vpop.f32.mrf.mxu2  ;;  %v633_v25 = vpop.f32.mrf.mxu3 }
  0xce   :  { %v515_v26 = vpop.f32.mrf.mxu0  ;;  %v555_v27 = vpop.f32.mrf.mxu1  ;;  %v892_v37 = vadd.f32 %v1669_v36, %v593_v24  ;;  %v908_v38 = vadd.f32 %v1669_v36, %v633_v25 }
  0xcf   :  { %v861_v28 = vadd.f32 %v1669_v36, %v515_v26  ;;  %v877_v29 = vadd.f32 %v1669_v36, %v555_v27 }
  0xd0   :  { %v956_v45 = vmax.f32 %v892_v37, 0.0  ;;  %v972_v46 = vmax.f32 %v908_v38, 0.0 }
  0xd1   :  { %v925_v32 = vmax.f32 %v861_v28, 0.0  ;;  %v941_v33 = vmax.f32 %v877_v29, 0.0 }
  0xd3   :  { %v1337_v34 = vpack.c.bf16 %v925_v32, %v924_v30  ;;  %v1377_v35 = vpack.c.bf16 %v941_v33, %v940_v31 }
  0xd5   :  { %1477 = vst [vmem:[%s1834_s3 + $0x20] sm:$0xff] %v1337_v34   ;;  %v595_v39 = vpop.f32.mrf.mxu2  ;;  %v635_v40 = vpop.f32.mrf.mxu3 }
  0xd6   :  { %1485 = vst [vmem:[%s1834_s3 + $0x60] sm:$0xff] %v1377_v35   ;;  %v893_v41 = vadd.f32 %v1669_v36, %v595_v39  ;;  %v909_v42 = vadd.f32 %v1669_v36, %v635_v40  ;;  %v518_v43 = vpop.f32.mrf.mxu0  ;;  %v558_v44 = vpop.f32.mrf.mxu1 }
  0xd7   :  { %v862_v51 = vadd.f32 %v1669_v36, %v518_v43  ;;  %v878_v52 = vadd.f32 %v1669_v36, %v558_v44 }
  0xd8   :  { %v957_v47 = vmax.f32 %v893_v41, 0.0  ;;  %v973_v48 = vmax.f32 %v909_v42, 0.0 }
  0xd9   :  { %v926_v59 = vmax.f32 %v862_v51, 0.0  ;;  %v942_v60 = vmax.f32 %v878_v52, 0.0 }
  0xda   :  { %v1417_v49 = vpack.c.bf16 %v957_v47, %v956_v45  ;;  %v1457_v50 = vpack.c.bf16 %v973_v48, %v972_v46 }
  0xdc   :  { %1493 = vst [vmem:[%s1834_s3 + $0xa0] sm:$0xff] %v1417_v49  }
  0xdd   :  { %1501 = vst [vmem:[%s1834_s3 + $0xe0] sm:$0xff] %v1457_v50   ;;  %v598_v53 = vpop.f32.mrf.mxu2  ;;  %v638_v54 = vpop.f32.mrf.mxu3 }
  0xde   :  { %v520_v55 = vpop.f32.mrf.mxu0  ;;  %v560_v56 = vpop.f32.mrf.mxu1  ;;  %v894_v1 = vadd.f32 %v1669_v36, %v598_v53  ;;  %v910_v2 = vadd.f32 %v1669_v36, %v638_v54 }
  0xdf   :  { %v863_v57 = vadd.f32 %v1669_v36, %v520_v55  ;;  %v879_v58 = vadd.f32 %v1669_v36, %v560_v56 }
  0xe0   :  { %v958_v9 = vmax.f32 %v894_v1, 0.0  ;;  %v974_v10 = vmax.f32 %v910_v2, 0.0 }
  0xe1   :  { %v927_v61 = vmax.f32 %v863_v57, 0.0  ;;  %v943_v62 = vmax.f32 %v879_v58, 0.0 }
  0xe3   :  { %v1342_v63 = vpack.c.bf16 %v927_v61, %v926_v59  ;;  %v1382_v0 = vpack.c.bf16 %v943_v62, %v942_v60 }
  0xe5   :  { %1478 = vst [vmem:[%s1834_s3 + $0x28] sm:$0xff] %v1342_v63   ;;  %v600_v3 = vpop.f32.mrf.mxu2  ;;  %v640_v4 = vpop.f32.mrf.mxu3 }
  0xe6   :  { %1486 = vst [vmem:[%s1834_s3 + $0x68] sm:$0xff] %v1382_v0   ;;  %v895_v5 = vadd.f32 %v1669_v36, %v600_v3  ;;  %v911_v6 = vadd.f32 %v1669_v36, %v640_v4  ;;  %v523_v7 = vpop.f32.mrf.mxu0  ;;  %v563_v8 = vpop.f32.mrf.mxu1 }
  0xe7   :  { %v864_v15 = vadd.f32 %v1669_v36, %v523_v7  ;;  %v880_v16 = vadd.f32 %v1669_v36, %v563_v8 }
  0xe8   :  { %v959_v11 = vmax.f32 %v895_v5, 0.0  ;;  %v975_v12 = vmax.f32 %v911_v6, 0.0 }
  0xe9   :  { %v928_v23 = vmax.f32 %v864_v15, 0.0  ;;  %v944_v24 = vmax.f32 %v880_v16, 0.0 }
  0xea   :  { %v1422_v13 = vpack.c.bf16 %v959_v11, %v958_v9  ;;  %v1462_v14 = vpack.c.bf16 %v975_v12, %v974_v10 }
  0xec   :  { %1494 = vst [vmem:[%s1834_s3 + $0xa8] sm:$0xff] %v1422_v13  }
  0xed   :  { %1502 = vst [vmem:[%s1834_s3 + $0xe8] sm:$0xff] %v1462_v14   ;;  %v603_v17 = vpop.f32.mrf.mxu2  ;;  %v643_v18 = vpop.f32.mrf.mxu3 }
  0xee   :  { %v525_v19 = vpop.f32.mrf.mxu0  ;;  %v565_v20 = vpop.f32.mrf.mxu1  ;;  %v896_v29 = vadd.f32 %v1669_v36, %v603_v17  ;;  %v912_v30 = vadd.f32 %v1669_v36, %v643_v18 }
  0xef   :  { %v865_v21 = vadd.f32 %v1669_v36, %v525_v19  ;;  %v881_v22 = vadd.f32 %v1669_v36, %v565_v20 }
  0xf0   :  { %v960_v38 = vmax.f32 %v896_v29, 0.0  ;;  %v976_v39 = vmax.f32 %v912_v30, 0.0 }
  0xf1   :  { %v929_v25 = vmax.f32 %v865_v21, 0.0  ;;  %v945_v26 = vmax.f32 %v881_v22, 0.0 }
  0xf3   :  { %v1347_v27 = vpack.c.bf16 %v929_v25, %v928_v23  ;;  %v1387_v28 = vpack.c.bf16 %v945_v26, %v944_v24 }
  0xf5   :  { %1479 = vst [vmem:[%s1834_s3 + $0x30] sm:$0xff] %v1347_v27   ;;  %v605_v31 = vpop.f32.mrf.mxu2  ;;  %v645_v32 = vpop.f32.mrf.mxu3 }
  0xf6   :  { %1487 = vst [vmem:[%s1834_s3 + $0x70] sm:$0xff] %v1387_v28   ;;  %v897_v33 = vadd.f32 %v1669_v36, %v605_v31  ;;  %v913_v34 = vadd.f32 %v1669_v36, %v645_v32  ;;  %v528_v35 = vpop.f32.mrf.mxu0  ;;  %v568_v37 = vpop.f32.mrf.mxu1 }
  0xf7   :  { %v866_v44 = vadd.f32 %v1669_v36, %v528_v35  ;;  %v882_v45 = vadd.f32 %v1669_v36, %v568_v37 }
  0xf8   :  { %v961_v40 = vmax.f32 %v897_v33, 0.0  ;;  %v977_v41 = vmax.f32 %v913_v34, 0.0 }
  0xf9   :  { %v930_v52 = vmax.f32 %v866_v44, 0.0  ;;  %v946_v53 = vmax.f32 %v882_v45, 0.0 }
  0xfa   :  { %v1427_v42 = vpack.c.bf16 %v961_v40, %v960_v38  ;;  %v1467_v43 = vpack.c.bf16 %v977_v41, %v976_v39 }
  0xfc   :  { %1495 = vst [vmem:[%s1834_s3 + $0xb0] sm:$0xff] %v1427_v42  }
  0xfd   :  { %1503 = vst [vmem:[%s1834_s3 + $0xf0] sm:$0xff] %v1467_v43   ;;  %v608_v46 = vpop.f32.mrf.mxu2  ;;  %v648_v47 = vpop.f32.mrf.mxu3 }
  0xfe   :  { %v530_v48 = vpop.f32.mrf.mxu0  ;;  %v570_v49 = vpop.f32.mrf.mxu1  ;;  %v898_v58 = vadd.f32 %v1669_v36, %v608_v46  ;;  %v914_v59 = vadd.f32 %v1669_v36, %v648_v47 }
  0xff   :  { %v867_v50 = vadd.f32 %v1669_v36, %v530_v48  ;;  %v883_v51 = vadd.f32 %v1669_v36, %v570_v49 }
 0x100   :  { %v962_v0 = vmax.f32 %v898_v58, 0.0  ;;  %v978_v1 = vmax.f32 %v914_v59, 0.0 }
 0x101   :  { %v931_v54 = vmax.f32 %v867_v50, 0.0  ;;  %v947_v55 = vmax.f32 %v883_v51, 0.0 }
 0x103   :  { %v1352_v56 = vpack.c.bf16 %v931_v54, %v930_v52  ;;  %v1392_v57 = vpack.c.bf16 %v947_v55, %v946_v53 }
 0x105   :  { %1480 = vst [vmem:[%s1834_s3 + $0x38] sm:$0xff] %v1352_v56   ;;  %v610_v60 = vpop.f32.mrf.mxu2  ;;  %v650_v61 = vpop.f32.mrf.mxu3 }
 0x106   :  { %1488 = vst [vmem:[%s1834_s3 + $0x78] sm:$0xff] %v1392_v57   ;;  %v899_v62 = vadd.f32 %v1669_v36, %v610_v60  ;;  %v915_v63 = vadd.f32 %v1669_v36, %v650_v61 }
 0x108   :  { %v963_v2 = vmax.f32 %v899_v62, 0.0  ;;  %v979_v3 = vmax.f32 %v915_v63, 0.0 }
 0x10a   :  { %v1432_v4 = vpack.c.bf16 %v963_v2, %v962_v0  ;;  %v1472_v5 = vpack.c.bf16 %v979_v3, %v978_v1 }
 0x10c   :  { %1496 = vst [vmem:[%s1834_s3 + $0xb8] sm:$0xff] %v1432_v4  }
 0x10d   :  { %1504 = vst [vmem:[%s1834_s3 + $0xf8] sm:$0xff] %v1472_v5  }

// kernel: allconv_forward.11
= control target key start
LH: loop header
LB: loop body
LE: loop exit
PB: predicated region body
PF: predicated region fallthrough
CT: control target
= control target key end

     0   :  { %s3641_s12 = smov 0   ;;  %s3643_s13 = smov 0   ;;  %s4553_s0 = inlined_call_operand.vmem [shape: bf16[512,1152], index: 0, kind: input, shape index: {}]   ;;  %s4554_s1 = inlined_call_operand.vmem [shape: bf16[1152,128], index: 1, kind: input, shape index: {}]   ;;  %s4555_s2 = inlined_call_operand.vmem [shape: f32[1,128], index: 2, kind: input, shape index: {}]   ;;  %s4556_s3 = inlined_call_operand.vmem [shape: bf16[512,128], index: 3, kind: output, shape index: {}]  }
   0x1   :  { %s3645_s14 = smov 0   ;;  %s3647_s15 = smov 0  }
   0x2   :  { %s3649_s16 = smov 0  }
   0x3 LB: > { %s25_s17 = sadd.s32 1, %s3614_s15  ;;  %p48_p1 = scmp.ne.s32.totalorder %s3606_s13, %s3602_s12  ;;  %s3618_s16 = sphi %s3649_s16, %s13_s16   ;;  %s3614_s15 = sphi %s3647_s15, %s4560_s15   ;;  %s3610_s14 = sphi %s3645_s14, %s4559_s14   ;;  %s3606_s13 = sphi %s3643_s13, %s4558_s13   ;;  %s3602_s12 = sphi %s3641_s12, %s4557_s12  }
   0x4   : > { %p26_p0 = scmp.ge.s32.totalorder %s25_s17, 3  ;;  %p49_p2 = scmp.eq.s32.totalorder %s3618_s16, 0 }
   0x5   : > { %s41_s19 = sadd.s32 1, %s3606_s13  ;;  %p2582_p5 = scmp.ge.s32.totalorder %s3618_s16, 3 }
   0x6   : > { %s4562_s17 = smov (%p26_p0, %s25_s17), 0  ;;  %p50_p3 = por %p49_p2, %p48_p1 }
   0x7   : > { %s37_s18 = ssub.s32 %s3614_s15, %s4562_s17  ;;  %162 = sbr.rel (%p2582_p5) target bundleno = 145 (0x91), region = 20 }
   0x8   : > { %p39_p4 = scmp.eq.s32.totalorder %s37_s18, 0 }
   0xa   : > { %s3676_s20 = scalar_select %p39_p4, %s3606_s13, %s41_s19  }
   0xc   : > { %165 = sbr.rel (!%p50_p3) target bundleno = 145 (0x91), region = 24  ;;  %s167_s21 = sand.u32 (%p50_p3), 1, %s3606_s13  }
   0xd   : > { %s3200_s22 = smul.u32 (%p50_p3), 12, %s3614_s15 }
   0xe   : > { %s3536_s23 = smul.u32 (%p50_p3), 768, %s167_s21 }
   0xf   : > { %s3684_s26 = scalar_lea.vmem (%p50_p3), %s4553_s0, %s3200_s22 }
  0x10   : > { %v190_v0 = vld [vmem:[%s3684_s26] sm:$0xff] (%p50_p3)  ;;  %v194_v2 = vld [vmem:[%s3684_s26 + $0x48] sm:$0xff] (%p50_p3)  ;;  %s3689_s27 = scalar_lea.vmem (%p50_p3), [#allocation3], %s3536_s23  ;;  %v198_v4 = vld [vmem:[%s3684_s26 + $0x90] sm:$0xff] (%p50_p3) }
  0x11   : > { %v192_v1 = vld [vmem:[%s3684_s26 + $0x24] sm:$0xff]  ;;  %191 = vst [vmem:[%s3689_s27] sm:$0xff] %v190_v0  ;;  %v196_v3 = vld [vmem:[%s3684_s26 + $0x6c] sm:$0xff]  ;;  %v200_v5 = vld [vmem:[%s3684_s26 + $0xb4] sm:$0xff] }
  0x12   : > { %193 = vst [vmem:[%s3689_s27 + $0xc] sm:$0xff] %v192_v1  ;;  %v202_v6 = vld [vmem:[%s3684_s26 + $0xd8] sm:$0xff]  ;;  %v206_v8 = vld [vmem:[%s3684_s26 + $0x120] sm:$0xff]  ;;  %v210_v10 = vld [vmem:[%s3684_s26 + $0x168] sm:$0xff] }
  0x13   : > { %195 = vst [vmem:[%s3689_s27 + $0x18] sm:$0xff] %v194_v2  ;;  %v204_v7 = vld [vmem:[%s3684_s26 + $0xfc] sm:$0xff]  ;;  %v208_v9 = vld [vmem:[%s3684_s26 + $0x144] sm:$0xff]  ;;  %v212_v11 = vld [vmem:[%s3684_s26 + $0x18c] sm:$0xff] }
  0x14   : > { %197 = vst [vmem:[%s3689_s27 + $0x24] sm:$0xff] %v196_v3  ;;  %v214_v12 = vld [vmem:[%s3684_s26 + $0x1b0] sm:$0xff]  ;;  %v218_v14 = vld [vmem:[%s3684_s26 + $0x1f8] sm:$0xff]  ;;  %v222_v16 = vld [vmem:[%s3684_s26 + $0x240] sm:$0xff] }
  0x15   : > { %199 = vst [vmem:[%s3689_s27 + $0x30] sm:$0xff] %v198_v4  ;;  %v216_v13 = vld [vmem:[%s3684_s26 + $0x1d4] sm:$0xff]  ;;  %v220_v15 = vld [vmem:[%s3684_s26 + $0x21c] sm:$0xff]  ;;  %v224_v17 = vld [vmem:[%s3684_s26 + $0x264] sm:$0xff] }
  0x16   : > { %201 = vst [vmem:[%s3689_s27 + $0x3c] sm:$0xff] %v200_v5  ;;  %v226_v18 = vld [vmem:[%s3684_s26 + $0x288] sm:$0xff]  ;;  %v230_v20 = vld [vmem:[%s3684_s26 + $0x2d0] sm:$0xff]  ;;  %v234_v22 = vld [vmem:[%s3684_s26 + $0x318] sm:$0xff] }
  0x17   : > { %203 = vst [vmem:[%s3689_s27 + $0x48] sm:$0xff] %v202_v6  ;;  %v228_v19 = vld [vmem:[%s3684_s26 + $0x2ac] sm:$0xff]  ;;  %v232_v21 = vld [vmem:[%s3684_s26 + $0x2f4] sm:$0xff]  ;;  %v236_v23 = vld [vmem:[%s3684_s26 + $0x33c] sm:$0xff] }
  0x18   : > { %205 = vst [vmem:[%s3689_s27 + $0x54] sm:$0xff] %v204_v7  ;;  %v238_v24 = vld [vmem:[%s3684_s26 + $0x360] sm:$0xff]  ;;  %v242_v26 = vld [vmem:[%s3684_s26 + $0x3a8] sm:$0xff]  ;;  %v246_v28 = vld [vmem:[%s3684_s26 + $0x3f0] sm:$0xff] }
  0x19   : > { %207 = vst [vmem:[%s3689_s27 + $0x60] sm:$0xff] %v206_v8  ;;  %v240_v25 = vld [vmem:[%s3684_s26 + $0x384] sm:$0xff]  ;;  %v244_v27 = vld [vmem:[%s3684_s26 + $0x3cc] sm:$0xff]  ;;  %v248_v29 = vld [vmem:[%s3684_s26 + $0x414] sm:$0xff] }
  0x1a   : > { %209 = vst [vmem:[%s3689_s27 + $0x6c] sm:$0xff] %v208_v9  ;;  %v250_v30 = vld [vmem:[%s3684_s26 + $0x438] sm:$0xff]  ;;  %v254_v32 = vld [vmem:[%s3684_s26 + $0x480] sm:$0xff]  ;;  %v258_v34 = vld [vmem:[%s3684_s26 + $0x4c8] sm:$0xff] }
  0x1b   : > { %211 = vst [vmem:[%s3689_s27 + $0x78] sm:$0xff] %v210_v10  ;;  %v252_v31 = vld [vmem:[%s3684_s26 + $0x45c] sm:$0xff]  ;;  %v256_v33 = vld [vmem:[%s3684_s26 + $0x4a4] sm:$0xff]  ;;  %v260_v35 = vld [vmem:[%s3684_s26 + $0x4ec] sm:$0xff] }
  0x1c   : > { %213 = vst [vmem:[%s3689_s27 + $0x84] sm:$0xff] %v212_v11  ;;  %v262_v36 = vld [vmem:[%s3684_s26 + $0x510] sm:$0xff]  ;;  %v266_v38 = vld [vmem:[%s3684_s26 + $0x558] sm:$0xff]  ;;  %v270_v40 = vld [vmem:[%s3684_s26 + $0x5a0] sm:$0xff] }
  0x1d   : > { %215 = vst [vmem:[%s3689_s27 + $0x90] sm:$0xff] %v214_v12  ;;  %v264_v37 = vld [vmem:[%s3684_s26 + $0x534] sm:$0xff]  ;;  %v268_v39 = vld [vmem:[%s3684_s26 + $0x57c] sm:$0xff]  ;;  %v272_v41 = vld [vmem:[%s3684_s26 + $0x5c4] sm:$0xff] }
  0x1e   : > { %217 = vst [vmem:[%s3689_s27 + $0x9c] sm:$0xff] %v216_v13  ;;  %v274_v42 = vld [vmem:[%s3684_s26 + $0x5e8] sm:$0xff]  ;;  %v278_v44 = vld [vmem:[%s3684_s26 + $0x630] sm:$0xff]  ;;  %v282_v46 = vld [vmem:[%s3684_s26 + $0x678] sm:$0xff] }
  0x1f   : > { %219 = vst [vmem:[%s3689_s27 + $0xa8] sm:$0xff] %v218_v14  ;;  %v276_v43 = vld [vmem:[%s3684_s26 + $0x60c] sm:$0xff]  ;;  %v280_v45 = vld [vmem:[%s3684_s26 + $0x654] sm:$0xff]  ;;  %v284_v47 = vld [vmem:[%s3684_s26 + $0x69c] sm:$0xff] }
  0x20   : > { %221 = vst [vmem:[%s3689_s27 + $0xb4] sm:$0xff] %v220_v15  ;;  %v286_v48 = vld [vmem:[%s3684_s26 + $0x6c0] sm:$0xff]  ;;  %v290_v50 = vld [vmem:[%s3684_s26 + $0x708] sm:$0xff]  ;;  %v294_v52 = vld [vmem:[%s3684_s26 + $0x750] sm:$0xff] }
  0x21   : > { %223 = vst [vmem:[%s3689_s27 + $0xc0] sm:$0xff] %v222_v16  ;;  %v288_v49 = vld [vmem:[%s3684_s26 + $0x6e4] sm:$0xff]  ;;  %v292_v51 = vld [vmem:[%s3684_s26 + $0x72c] sm:$0xff]  ;;  %v296_v53 = vld [vmem:[%s3684_s26 + $0x774] sm:$0xff] }
  0x22   : > { %225 = vst [vmem:[%s3689_s27 + $0xcc] sm:$0xff] %v224_v17  ;;  %v298_v54 = vld [vmem:[%s3684_s26 + $0x798] sm:$0xff]  ;;  %v302_v56 = vld [vmem:[%s3684_s26 + $0x7e0] sm:$0xff]  ;;  %v306_v58 = vld [vmem:[%s3684_s26 + $0x828] sm:$0xff] }
  0x23   : > { %227 = vst [vmem:[%s3689_s27 + $0xd8] sm:$0xff] %v226_v18  ;;  %v300_v55 = vld [vmem:[%s3684_s26 + $0x7bc] sm:$0xff]  ;;  %v304_v57 = vld [vmem:[%s3684_s26 + $0x804] sm:$0xff]  ;;  %v308_v59 = vld [vmem:[%s3684_s26 + $0x84c] sm:$0xff] }
  0x24   : > { %229 = vst [vmem:[%s3689_s27 + $0xe4] sm:$0xff] %v228_v19  ;;  %v310_v60 = vld [vmem:[%s3684_s26 + $0x870] sm:$0xff]  ;;  %v314_v62 = vld [vmem:[%s3684_s26 + $0x8b8] sm:$0xff]  ;;  %v2584_v0 = vld [vmem:[%s3684_s26 + $0x8] sm:$0xf] }
  0x25   : > { %231 = vst [vmem:[%s3689_s27 + $0xf0] sm:$0xff] %v230_v20  ;;  %v312_v61 = vld [vmem:[%s3684_s26 + $0x894] sm:$0xff]  ;;  %v316_v63 = vld [vmem:[%s3684_s26 + $0x8dc] sm:$0xff]  ;;  %v2586_v1 = vld [vmem:[%s3684_s26 + $0x2c] sm:$0xf] }
  0x26   : > { %233 = vst [vmem:[%s3689_s27 + $0xfc] sm:$0xff] %v232_v21  ;;  %v2588_v2 = vld [vmem:[%s3684_s26 + $0x50] sm:$0xf]  ;;  %v2590_v3 = vld [vmem:[%s3684_s26 + $0x74] sm:$0xf] }
  0x27   : > { %235 = vst [vmem:[%s3689_s27 + $0x108] sm:$0xff] %v234_v22  ;;  %v2592_v4 = vld [vmem:[%s3684_s26 + $0x98] sm:$0xf]  ;;  %v2594_v5 = vld [vmem:[%s3684_s26 + $0xbc] sm:$0xf] }
  0x28   : > { %237 = vst [vmem:[%s3689_s27 + $0x114] sm:$0xff] %v236_v23  ;;  %v2596_v6 = vld [vmem:[%s3684_s26 + $0xe0] sm:$0xf]  ;;  %v2598_v7 = vld [vmem:[%s3684_s26 + $0x104] sm:$0xf] }
  0x29   : > { %239 = vst [vmem:[%s3689_s27 + $0x120] sm:$0xff] %v238_v24  ;;  %v2600_v8 = vld [vmem:[%s3684_s26 + $0x128] sm:$0xf]  ;;  %v2602_v9 = vld [vmem:[%s3684_s26 + $0x14c] sm:$0xf] }
  0x2a   : > { %241 = vst [vmem:[%s3689_s27 + $0x12c] sm:$0xff] %v240_v25  ;;  %v2604_v10 = vld [vmem:[%s3684_s26 + $0x170] sm:$0xf]  ;;  %v2606_v11 = vld [vmem:[%s3684_s26 + $0x194] sm:$0xf] }
  0x2b   : > { %243 = vst [vmem:[%s3689_s27 + $0x138] sm:$0xff] %v242_v26  ;;  %v2608_v12 = vld [vmem:[%s3684_s26 + $0x1b8] sm:$0xf]  ;;  %v2610_v13 = vld [vmem:[%s3684_s26 + $0x1dc] sm:$0xf] }
  0x2c   : > { %245 = vst [vmem:[%s3689_s27 + $0x144] sm:$0xff] %v244_v27  ;;  %v2612_v14 = vld [vmem:[%s3684_s26 + $0x200] sm:$0xf]  ;;  %v2614_v15 = vld [vmem:[%s3684_s26 + $0x224] sm:$0xf] }
  0x2d   : > { %247 = vst [vmem:[%s3689_s27 + $0x150] sm:$0xff] %v246_v28  ;;  %v2616_v16 = vld [vmem:[%s3684_s26 + $0x248] sm:$0xf]  ;;  %v2618_v17 = vld [vmem:[%s3684_s26 + $0x26c] sm:$0xf] }
  0x2e   : > { %249 = vst [vmem:[%s3689_s27 + $0x15c] sm:$0xff] %v248_v29  ;;  %v2620_v18 = vld [vmem:[%s3684_s26 + $0x290] sm:$0xf]  ;;  %v2622_v19 = vld [vmem:[%s3684_s26 + $0x2b4] sm:$0xf] }
  0x2f   : > { %251 = vst [vmem:[%s3689_s27 + $0x168] sm:$0xff] %v250_v30  ;;  %v2624_v20 = vld [vmem:[%s3684_s26 + $0x2d8] sm:$0xf]  ;;  %v2626_v21 = vld [vmem:[%s3684_s26 + $0x2fc] sm:$0xf] }
  0x30   : > { %253 = vst [vmem:[%s3689_s27 + $0x174] sm:$0xff] %v252_v31  ;;  %v2628_v22 = vld [vmem:[%s3684_s26 + $0x320] sm:$0xf]  ;;  %v2630_v23 = vld [vmem:[%s3684_s26 + $0x344] sm:$0xf] }
  0x31   : > { %255 = vst [vmem:[%s3689_s27 + $0x180] sm:$0xff] %v254_v32  ;;  %v2632_v24 = vld [vmem:[%s3684_s26 + $0x368] sm:$0xf]  ;;  %v2634_v25 = vld [vmem:[%s3684_s26 + $0x38c] sm:$0xf] }
  0x32   : > { %257 = vst [vmem:[%s3689_s27 + $0x18c] sm:$0xff] %v256_v33  ;;  %v2636_v26 = vld [vmem:[%s3684_s26 + $0x3b0] sm:$0xf]  ;;  %v2638_v27 = vld [vmem:[%s3684_s26 + $0x3d4] sm:$0xf] }
  0x33   : > { %259 = vst [vmem:[%s3689_s27 + $0x198] sm:$0xff] %v258_v34  ;;  %v2640_v28 = vld [vmem:[%s3684_s26 + $0x3f8] sm:$0xf]  ;;  %v2642_v29 = vld [vmem:[%s3684_s26 + $0x41c] sm:$0xf] }
  0x34   : > { %261 = vst [vmem:[%s3689_s27 + $0x1a4] sm:$0xff] %v260_v35  ;;  %v2644_v30 = vld [vmem:[%s3684_s26 + $0x440] sm:$0xf]  ;;  %v2646_v31 = vld [vmem:[%s3684_s26 + $0x464] sm:$0xf] }
  0x35   : > { %263 = vst [vmem:[%s3689_s27 + $0x1b0] sm:$0xff] %v262_v36  ;;  %v2648_v32 = vld [vmem:[%s3684_s26 + $0x488] sm:$0xf]  ;;  %v2650_v33 = vld [vmem:[%s3684_s26 + $0x4ac] sm:$0xf] }
  0x36   : > { %265 = vst [vmem:[%s3689_s27 + $0x1bc] sm:$0xff] %v264_v37  ;;  %v2652_v34 = vld [vmem:[%s3684_s26 + $0x4d0] sm:$0xf]  ;;  %v2654_v35 = vld [vmem:[%s3684_s26 + $0x4f4] sm:$0xf] }
  0x37   : > { %267 = vst [vmem:[%s3689_s27 + $0x1c8] sm:$0xff] %v266_v38  ;;  %v2656_v36 = vld [vmem:[%s3684_s26 + $0x518] sm:$0xf]  ;;  %v2658_v37 = vld [vmem:[%s3684_s26 + $0x53c] sm:$0xf] }
  0x38   : > { %269 = vst [vmem:[%s3689_s27 + $0x1d4] sm:$0xff] %v268_v39  ;;  %v2660_v38 = vld [vmem:[%s3684_s26 + $0x560] sm:$0xf]  ;;  %v2662_v39 = vld [vmem:[%s3684_s26 + $0x584] sm:$0xf] }
  0x39   : > { %271 = vst [vmem:[%s3689_s27 + $0x1e0] sm:$0xff] %v270_v40  ;;  %v2664_v40 = vld [vmem:[%s3684_s26 + $0x5a8] sm:$0xf] }
  0x3a   : > { %273 = vst [vmem:[%s3689_s27 + $0x1ec] sm:$0xff] %v272_v41  ;;  %v2666_v41 = vld [vmem:[%s3684_s26 + $0x5cc] sm:$0xf] }
  0x3b   : > { %275 = vst [vmem:[%s3689_s27 + $0x1f8] sm:$0xff] %v274_v42  ;;  %v2668_v42 = vld [vmem:[%s3684_s26 + $0x5f0] sm:$0xf] }
  0x3c   : > { %277 = vst [vmem:[%s3689_s27 + $0x204] sm:$0xff] %v276_v43  ;;  %v2670_v43 = vld [vmem:[%s3684_s26 + $0x614] sm:$0xf] }
  0x3d   : > { %279 = vst [vmem:[%s3689_s27 + $0x210] sm:$0xff] %v278_v44  ;;  %v2672_v44 = vld [vmem:[%s3684_s26 + $0x638] sm:$0xf] }
  0x3e   : > { %281 = vst [vmem:[%s3689_s27 + $0x21c] sm:$0xff] %v280_v45  ;;  %v2674_v45 = vld [vmem:[%s3684_s26 + $0x65c] sm:$0xf] }
  0x3f   : > { %283 = vst [vmem:[%s3689_s27 + $0x228] sm:$0xff] %v282_v46  ;;  %v2676_v46 = vld [vmem:[%s3684_s26 + $0x680] sm:$0xf] }
  0x40   : > { %285 = vst [vmem:[%s3689_s27 + $0x234] sm:$0xff] %v284_v47  ;;  %v2678_v47 = vld [vmem:[%s3684_s26 + $0x6a4] sm:$0xf] }
  0x41   : > { %287 = vst [vmem:[%s3689_s27 + $0x240] sm:$0xff] %v286_v48  ;;  %v2680_v48 = vld [vmem:[%s3684_s26 + $0x6c8] sm:$0xf] }
  0x42   : > { %289 = vst [vmem:[%s3689_s27 + $0x24c] sm:$0xff] %v288_v49  ;;  %v2682_v49 = vld [vmem:[%s3684_s26 + $0x6ec] sm:$0xf] }
  0x43   : > { %291 = vst [vmem:[%s3689_s27 + $0x258] sm:$0xff] %v290_v50  ;;  %v2684_v50 = vld [vmem:[%s3684_s26 + $0x710] sm:$0xf] }
  0x44   : > { %293 = vst [vmem:[%s3689_s27 + $0x264] sm:$0xff] %v292_v51  ;;  %v2686_v51 = vld [vmem:[%s3684_s26 + $0x734] sm:$0xf] }
  0x45   : > { %295 = vst [vmem:[%s3689_s27 + $0x270] sm:$0xff] %v294_v52  ;;  %v2688_v52 = vld [vmem:[%s3684_s26 + $0x758] sm:$0xf] }
  0x46   : > { %297 = vst [vmem:[%s3689_s27 + $0x27c] sm:$0xff] %v296_v53  ;;  %v2690_v53 = vld [vmem:[%s3684_s26 + $0x77c] sm:$0xf] }
  0x47   : > { %299 = vst [vmem:[%s3689_s27 + $0x288] sm:$0xff] %v298_v54  ;;  %v2692_v54 = vld [vmem:[%s3684_s26 + $0x7a0] sm:$0xf] }
  0x48   : > { %301 = vst [vmem:[%s3689_s27 + $0x294] sm:$0xff] %v300_v55  ;;  %v2694_v55 = vld [vmem:[%s3684_s26 + $0x7c4] sm:$0xf] }
  0x49   : > { %303 = vst [vmem:[%s3689_s27 + $0x2a0] sm:$0xff] %v302_v56  ;;  %v2696_v56 = vld [vmem:[%s3684_s26 + $0x7e8] sm:$0xf] }
  0x4a   : > { %305 = vst [vmem:[%s3689_s27 + $0x2ac] sm:$0xff] %v304_v57  ;;  %v2698_v57 = vld [vmem:[%s3684_s26 + $0x80c] sm:$0xf] }
  0x4b   : > { %307 = vst [vmem:[%s3689_s27 + $0x2b8] sm:$0xff] %v306_v58  ;;  %v2700_v58 = vld [vmem:[%s3684_s26 + $0x830] sm:$0xf] }
  0x4c   : > { %309 = vst [vmem:[%s3689_s27 + $0x2c4] sm:$0xff] %v308_v59  ;;  %v2702_v59 = vld [vmem:[%s3684_s26 + $0x854] sm:$0xf] }
  0x4d   : > { %311 = vst [vmem:[%s3689_s27 + $0x2d0] sm:$0xff] %v310_v60  ;;  %v2704_v60 = vld [vmem:[%s3684_s26 + $0x878] sm:$0xf] }
  0x4e   : > { %313 = vst [vmem:[%s3689_s27 + $0x2dc] sm:$0xff] %v312_v61  ;;  %v2706_v61 = vld [vmem:[%s3684_s26 + $0x89c] sm:$0xf] }
  0x4f   : > { %315 = vst [vmem:[%s3689_s27 + $0x2e8] sm:$0xff] %v314_v62  ;;  %v2708_v62 = vld [vmem:[%s3684_s26 + $0x8c0] sm:$0xf] }
  0x50   : > { %317 = vst [vmem:[%s3689_s27 + $0x2f4] sm:$0xff] %v316_v63  ;;  %v2710_v63 = vld [vmem:[%s3684_s26 + $0x8e4] sm:$0xf] }
  0x51   : > { %2585 = vst [vmem:[%s3689_s27 + $0x8] sm:$0xf] %v2584_v0 }
  0x52   : > { %2587 = vst [vmem:[%s3689_s27 + $0x14] sm:$0xf] %v2586_v1 }
  0x53   : > { %2589 = vst [vmem:[%s3689_s27 + $0x20] sm:$0xf] %v2588_v2 }
  0x54   : > { %2591 = vst [vmem:[%s3689_s27 + $0x2c] sm:$0xf] %v2590_v3 }
  0x55   : > { %2593 = vst [vmem:[%s3689_s27 + $0x38] sm:$0xf] %v2592_v4 }
  0x56   : > { %2595 = vst [vmem:[%s3689_s27 + $0x44] sm:$0xf] %v2594_v5 }
  0x57   : > { %2597 = vst [vmem:[%s3689_s27 + $0x50] sm:$0xf] %v2596_v6 }
  0x58   : > { %2599 = vst [vmem:[%s3689_s27 + $0x5c] sm:$0xf] %v2598_v7 }
  0x59   : > { %2601 = vst [vmem:[%s3689_s27 + $0x68] sm:$0xf] %v2600_v8 }
  0x5a   : > { %2603 = vst [vmem:[%s3689_s27 + $0x74] sm:$0xf] %v2602_v9 }
  0x5b   : > { %2605 = vst [vmem:[%s3689_s27 + $0x80] sm:$0xf] %v2604_v10 }
  0x5c   : > { %2607 = vst [vmem:[%s3689_s27 + $0x8c] sm:$0xf] %v2606_v11 }
  0x5d   : > { %2609 = vst [vmem:[%s3689_s27 + $0x98] sm:$0xf] %v2608_v12 }
  0x5e   : > { %2611 = vst [vmem:[%s3689_s27 + $0xa4] sm:$0xf] %v2610_v13 }
  0x5f   : > { %2613 = vst [vmem:[%s3689_s27 + $0xb0] sm:$0xf] %v2612_v14 }
  0x60   : > { %2615 = vst [vmem:[%s3689_s27 + $0xbc] sm:$0xf] %v2614_v15 }
  0x61   : > { %2617 = vst [vmem:[%s3689_s27 + $0xc8] sm:$0xf] %v2616_v16 }
  0x62   : > { %2619 = vst [vmem:[%s3689_s27 + $0xd4] sm:$0xf] %v2618_v17 }
  0x63   : > { %2621 = vst [vmem:[%s3689_s27 + $0xe0] sm:$0xf] %v2620_v18 }
  0x64   : > { %2623 = vst [vmem:[%s3689_s27 + $0xec] sm:$0xf] %v2622_v19 }
  0x65   : > { %2625 = vst [vmem:[%s3689_s27 + $0xf8] sm:$0xf] %v2624_v20 }
  0x66   : > { %2627 = vst [vmem:[%s3689_s27 + $0x104] sm:$0xf] %v2626_v21 }
  0x67   : > { %2629 = vst [vmem:[%s3689_s27 + $0x110] sm:$0xf] %v2628_v22 }
  0x68   : > { %2631 = vst [vmem:[%s3689_s27 + $0x11c] sm:$0xf] %v2630_v23 }
  0x69   : > { %2633 = vst [vmem:[%s3689_s27 + $0x128] sm:$0xf] %v2632_v24 }
  0x6a   : > { %2635 = vst [vmem:[%s3689_s27 + $0x134] sm:$0xf] %v2634_v25 }
  0x6b   : > { %2637 = vst [vmem:[%s3689_s27 + $0x140] sm:$0xf] %v2636_v26 }
  0x6c   : > { %2639 = vst [vmem:[%s3689_s27 + $0x14c] sm:$0xf] %v2638_v27 }
  0x6d   : > { %2641 = vst [vmem:[%s3689_s27 + $0x158] sm:$0xf] %v2640_v28 }
  0x6e   : > { %2643 = vst [vmem:[%s3689_s27 + $0x164] sm:$0xf] %v2642_v29 }
  0x6f   : > { %2645 = vst [vmem:[%s3689_s27 + $0x170] sm:$0xf] %v2644_v30 }
  0x70   : > { %2647 = vst [vmem:[%s3689_s27 + $0x17c] sm:$0xf] %v2646_v31 }
  0x71   : > { %2649 = vst [vmem:[%s3689_s27 + $0x188] sm:$0xf] %v2648_v32 }
  0x72   : > { %2651 = vst [vmem:[%s3689_s27 + $0x194] sm:$0xf] %v2650_v33 }
  0x73   : > { %2653 = vst [vmem:[%s3689_s27 + $0x1a0] sm:$0xf] %v2652_v34 }
  0x74   : > { %2655 = vst [vmem:[%s3689_s27 + $0x1ac] sm:$0xf] %v2654_v35 }
  0x75   : > { %2657 = vst [vmem:[%s3689_s27 + $0x1b8] sm:$0xf] %v2656_v36 }
  0x76   : > { %2659 = vst [vmem:[%s3689_s27 + $0x1c4] sm:$0xf] %v2658_v37 }
  0x77   : > { %2661 = vst [vmem:[%s3689_s27 + $0x1d0] sm:$0xf] %v2660_v38 }
  0x78   : > { %2663 = vst [vmem:[%s3689_s27 + $0x1dc] sm:$0xf] %v2662_v39 }
  0x79   : > { %2665 = vst [vmem:[%s3689_s27 + $0x1e8] sm:$0xf] %v2664_v40 }
  0x7a   : > { %2667 = vst [vmem:[%s3689_s27 + $0x1f4] sm:$0xf] %v2666_v41 }
  0x7b   : > { %2669 = vst [vmem:[%s3689_s27 + $0x200] sm:$0xf] %v2668_v42 }
  0x7c   : > { %2671 = vst [vmem:[%s3689_s27 + $0x20c] sm:$0xf] %v2670_v43 }
  0x7d   : > { %2673 = vst [vmem:[%s3689_s27 + $0x218] sm:$0xf] %v2672_v44 }
  0x7e   : > { %2675 = vst [vmem:[%s3689_s27 + $0x224] sm:$0xf] %v2674_v45 }
  0x7f   : > { %2677 = vst [vmem:[%s3689_s27 + $0x230] sm:$0xf] %v2676_v46 }
  0x80   : > { %2679 = vst [vmem:[%s3689_s27 + $0x23c] sm:$0xf] %v2678_v47 }
  0x81   : > { %2681 = vst [vmem:[%s3689_s27 + $0x248] sm:$0xf] %v2680_v48 }
  0x82   : > { %2683 = vst [vmem:[%s3689_s27 + $0x254] sm:$0xf] %v2682_v49 }
  0x83   : > { %2685 = vst [vmem:[%s3689_s27 + $0x260] sm:$0xf] %v2684_v50 }
  0x84   : > { %2687 = vst [vmem:[%s3689_s27 + $0x26c] sm:$0xf] %v2686_v51 }
  0x85   : > { %2689 = vst [vmem:[%s3689_s27 + $0x278] sm:$0xf] %v2688_v52 }
  0x86   : > { %2691 = vst [vmem:[%s3689_s27 + $0x284] sm:$0xf] %v2690_v53 }
  0x87   : > { %2693 = vst [vmem:[%s3689_s27 + $0x290] sm:$0xf] %v2692_v54 }
  0x88   : > { %2695 = vst [vmem:[%s3689_s27 + $0x29c] sm:$0xf] %v2694_v55 }
  0x89   : > { %2697 = vst [vmem:[%s3689_s27 + $0x2a8] sm:$0xf] %v2696_v56 }
  0x8a   : > { %2699 = vst [vmem:[%s3689_s27 + $0x2b4] sm:$0xf] %v2698_v57 }
  0x8b   : > { %2701 = vst [vmem:[%s3689_s27 + $0x2c0] sm:$0xf] %v2700_v58 }
  0x8c   : > { %2703 = vst [vmem:[%s3689_s27 + $0x2cc] sm:$0xf] %v2702_v59 }
  0x8d   : > { %2705 = vst [vmem:[%s3689_s27 + $0x2d8] sm:$0xf] %v2704_v60 }
  0x8e   : > { %2707 = vst [vmem:[%s3689_s27 + $0x2e4] sm:$0xf] %v2706_v61 }
  0x8f   : > { %2709 = vst [vmem:[%s3689_s27 + $0x2f0] sm:$0xf] %v2708_v62 }
  0x90   : > { %2711 = vst [vmem:[%s3689_s27 + $0x2fc] sm:$0xf] %v2710_v63 }
  0x91 PF: > { %p2712_p6 = scmp.ge.s32.totalorder %s3618_s16, 1  ;;  %p470_p7 = scmp.lt.s32.totalorder %s3618_s16, 4 }
  0x93   : > { %p471_p8 = pnand %p2712_p6, %p470_p7 }
  0x94   : > { %s477_s28 = sand.u32 (!%p471_p8), 1, %s3602_s12   ;;  %s516_s29 = smul.u32 (!%p471_p8), 48, %s3610_s14 }
  0x95   : > { %474 = sbr.rel (%p471_p8) target bundleno = 817 (0x331), region = 54  ;;  %p2714_p10 = scmp.ne.s32.totalorder (!%p471_p8), %s3610_s14, 0 }
  0x96   : > { %s3537_s30 = smul.u32 (!%p471_p8), 768, %s477_s28  ;;  %p517_p9 = scmp.lt.s32.totalorder (!%p471_p8), %s516_s29, 143 }
  0x98   : > { %s3953_s8 = scalar_lea.vmem (!%p471_p8), [#allocation3], %s3537_s30 }
  0x9a   : > { %s4564_s29 = smov (!%p517_p9, %s516_s29), 143  ;;  %540 = sbr.rel (%p2714_p10) target bundleno = 224 (0xe0), region = 62 }
  0x9b   : > { %s2713_s4 = sshll.u32 %s4564_s29, 2 }
  0x9c   : > { %s3951_s7 = scalar_lea.vmem %s4554_s1, %s2713_s4 }
  0x9f   : > { %v3620_v0 = vmov 0.0  }
  0xa0   : > { %541 = vst [vmem:[#allocation2 + $0xb0] sm:$0xff] %v3620_v0 }
  0xa1   : > { %542 = vst [vmem:[#allocation2 + $0x1b0] sm:$0xff] %v3620_v0 }
  0xa2   : > { %543 = vst [vmem:[#allocation2 + $0xd8] sm:$0xff] %v3620_v0 }
  0xa3   : > { %544 = vst [vmem:[#allocation2 + $0x18] sm:$0xff] %v3620_v0 }
  0xa4   : > { %545 = vst [vmem:[#allocation2 + $0x50] sm:$0xff] %v3620_v0 }
  0xa5   : > { %546 = vst [vmem:[#allocation2 + $0x168] sm:$0xff] %v3620_v0 }
  0xa6   : > { %547 = vst [vmem:[#allocation2 + $0x130] sm:$0xff] %v3620_v0 }
  0xa7   : > { %548 = vst [vmem:[#allocation2 + $0x48] sm:$0xff] %v3620_v0 }
  0xa8   : > { %549 = vst [vmem:[#allocation2 + $0x180] sm:$0xff] %v3620_v0 }
  0xa9   : > { %550 = vst [vmem:[#allocation2 + $0x110] sm:$0xff] %v3620_v0 }
  0xaa   : > { %551 = vst [vmem:[#allocation2 + $0x118] sm:$0xff] %v3620_v0 }
  0xab   : > { %552 = vst [vmem:[#allocation2 + $0x98] sm:$0xff] %v3620_v0 }
  0xac   : > { %553 = vst [vmem:[#allocation2 + $0x120] sm:$0xff] %v3620_v0 }
  0xad   : > { %554 = vst [vmem:[#allocation2 + $0x150] sm:$0xff] %v3620_v0 }
  0xae   : > { %555 = vst [vmem:[#allocation2 + $0x108] sm:$0xff] %v3620_v0 }
  0xaf   : > { %556 = vst [vmem:[#allocation2 + $0x60] sm:$0xff] %v3620_v0 }
  0xb0   : > { %557 = vst [vmem:[#allocation2 + $0xe0] sm:$0xff] %v3620_v0 }
  0xb1   : > { %558 = vst [vmem:[#allocation2 + $0x188] sm:$0xff] %v3620_v0 }
  0xb2   : > { %559 = vst [vmem:[#allocation2 + $0x138] sm:$0xff] %v3620_v0 }
  0xb3   : > { %560 = vst [vmem:[#allocation2 + $0x140] sm:$0xff] %v3620_v0 }
  0xb4   : > { %561 = vst [vmem:[#allocation2 + $0x80] sm:$0xff] %v3620_v0 }
  0xb5   : > { %562 = vst [vmem:[#allocation2 + $0x1a8] sm:$0xff] %v3620_v0 }
  0xb6   : > { %563 = vst [vmem:[#allocation2 + $0x1b8] sm:$0xff] %v3620_v0 }
  0xb7   : > { %564 = vst [vmem:[#allocation2 + $0x28] sm:$0xff] %v3620_v0 }
  0xb8   : > { %565 = vst [vmem:[#allocation2 + $0x1e8] sm:$0xff] %v3620_v0 }
  0xb9   : > { %566 = vst [vmem:[#allocation2 + $0xf8] sm:$0xff] %v3620_v0 }
  0xba   : > { %567 = vst [vmem:[#allocation2 + $0x160] sm:$0xff] %v3620_v0 }
  0xbb   : > { %568 = vst [vmem:[#allocation2 + $0x30] sm:$0xff] %v3620_v0 }
  0xbc   : > { %569 = vst [vmem:[#allocation2 + $0x1e0] sm:$0xff] %v3620_v0 }
  0xbd   : > { %570 = vst [vmem:[#allocation2] sm:$0xff] %v3620_v0 }
  0xbe   : > { %571 = vst [vmem:[#allocation2 + $0xf0] sm:$0xff] %v3620_v0 }
  0xbf   : > { %572 = vst [vmem:[#allocation2 + $0x8] sm:$0xff] %v3620_v0 }
  0xc0   : > { %573 = vst [vmem:[#allocation2 + $0x148] sm:$0xff] %v3620_v0 }
  0xc1   : > { %574 = vst [vmem:[#allocation2 + $0x1d0] sm:$0xff] %v3620_v0 }
  0xc2   : > { %575 = vst [vmem:[#allocation2 + $0x100] sm:$0xff] %v3620_v0 }
  0xc3   : > { %576 = vst [vmem:[#allocation2 + $0xc8] sm:$0xff] %v3620_v0 }
  0xc4   : > { %577 = vst [vmem:[#allocation2 + $0x40] sm:$0xff] %v3620_v0 }
  0xc5   : > { %578 = vst [vmem:[#allocation2 + $0x1f8] sm:$0xff] %v3620_v0 }
  0xc6   : > { %579 = vst [vmem:[#allocation2 + $0x20] sm:$0xff] %v3620_v0 }
  0xc7   : > { %580 = vst [vmem:[#allocation2 + $0x128] sm:$0xff] %v3620_v0 }
  0xc8   : > { %581 = vst [vmem:[#allocation2 + $0x1a0] sm:$0xff] %v3620_v0 }
  0xc9   : > { %582 = vst [vmem:[#allocation2 + $0x1f0] sm:$0xff] %v3620_v0 }
  0xca   : > { %583 = vst [vmem:[#allocation2 + $0xe8] sm:$0xff] %v3620_v0 }
  0xcb   : > { %584 = vst [vmem:[#allocation2 + $0x78] sm:$0xff] %v3620_v0 }
  0xcc   : > { %585 = vst [vmem:[#allocation2 + $0x70] sm:$0xff] %v3620_v0 }
  0xcd   : > { %586 = vst [vmem:[#allocation2 + $0x90] sm:$0xff] %v3620_v0 }
  0xce   : > { %587 = vst [vmem:[#allocation2 + $0x1d8] sm:$0xff] %v3620_v0 }
  0xcf   : > { %588 = vst [vmem:[#allocation2 + $0xd0] sm:$0xff] %v3620_v0 }
  0xd0   : > { %589 = vst [vmem:[#allocation2 + $0xb8] sm:$0xff] %v3620_v0 }
  0xd1   : > { %590 = vst [vmem:[#allocation2 + $0x88] sm:$0xff] %v3620_v0 }
  0xd2   : > { %591 = vst [vmem:[#allocation2 + $0xa8] sm:$0xff] %v3620_v0 }
  0xd3   : > { %592 = vst [vmem:[#allocation2 + $0x1c8] sm:$0xff] %v3620_v0 }
  0xd4   : > { %593 = vst [vmem:[#allocation2 + $0x170] sm:$0xff] %v3620_v0 }
  0xd5   : > { %594 = vst [vmem:[#allocation2 + $0x178] sm:$0xff] %v3620_v0 }
  0xd6   : > { %595 = vst [vmem:[#allocation2 + $0x68] sm:$0xff] %v3620_v0 }
  0xd7   : > { %596 = vst [vmem:[#allocation2 + $0x190] sm:$0xff] %v3620_v0 }
  0xd8   : > { %597 = vst [vmem:[#allocation2 + $0x198] sm:$0xff] %v3620_v0 }
  0xd9   : > { %598 = vst [vmem:[#allocation2 + $0x38] sm:$0xff] %v3620_v0 }
  0xda   : > { %599 = vst [vmem:[#allocation2 + $0xc0] sm:$0xff] %v3620_v0 }
  0xdb   : > { %600 = vst [vmem:[#allocation2 + $0x1c0] sm:$0xff] %v3620_v0 }
  0xdc   : > { %601 = vst [vmem:[#allocation2 + $0x158] sm:$0xff] %v3620_v0 }
  0xdd   : > { %602 = vst [vmem:[#allocation2 + $0x10] sm:$0xff] %v3620_v0 }
  0xde   : > { %603 = vst [vmem:[#allocation2 + $0x58] sm:$0xff] %v3620_v0 }
  0xdf   : > { %604 = vst [vmem:[#allocation2 + $0xa0] sm:$0xff] %v3620_v0 }
  0xe0 PF: > { %v3304_v1 = vld [vmem:[%s3951_s7 + $0x38] sm:$0xff]  ;;  %v3303_v4 = vld [vmem:[%s3951_s7 + $0x30] sm:$0xff]  ;;  %v3302_v7 = vld [vmem:[%s3951_s7 + $0x28] sm:$0xff]  ;;  %p3195_p11 = scmp.ne.s32.totalorder %s3610_s14, 2 }
  0xe1   : > { %v4022_v2 = vld [vmem:[%s3951_s7 + $0x78] sm:$0xff]  ;;  %1501 = vmatpush.bf16.msra.mxu0 %v3304_v1  ;;  %3512 = vmatpush.bf16.msra.mxu3 %v3304_v1  ;;  %v4031_v5 = vld [vmem:[%s3951_s7 + $0x70] sm:$0xff]  ;;  %v3310_v8 = vld [vmem:[%s3951_s7 + $0x68] sm:$0xff] }
  0xe2   : > { %v4025_v3 = vld [vmem:[%s3951_s7 + $0xb8] sm:$0xff]  ;;  %1670 = vmatpush.bf16.msra.mxu1 %v4022_v2  ;;  %v4034_v6 = vld [vmem:[%s3951_s7 + $0xb0] sm:$0xff]  ;;  %v4041_v9 = vld [vmem:[%s3951_s7 + $0xa8] sm:$0xff] }
  0xe3   : > { %1839 = vmatpush.bf16.msra.mxu2 %v4025_v3  ;;  %v3301_v10 = vld [vmem:[%s3951_s7 + $0x20] sm:$0xff]  ;;  %v3300_v13 = vld [vmem:[%s3951_s7 + $0x18] sm:$0xff]  ;;  %v3299_v16 = vld [vmem:[%s3951_s7 + $0x10] sm:$0xff] }
  0xe4   : > { %v3309_v11 = vld [vmem:[%s3951_s7 + $0x60] sm:$0xff]  ;;  %v3308_v14 = vld [vmem:[%s3951_s7 + $0x58] sm:$0xff]  ;;  %v3307_v17 = vld [vmem:[%s3951_s7 + $0x50] sm:$0xff] }
  0xe5   : > { %1502 = vmatpush.bf16.msra.mxu0 %v3303_v4  ;;  %3513 = vmatpush.bf16.msra.mxu3 %v3303_v4  ;;  %v4047_v12 = vld [vmem:[%s3951_s7 + $0xa0] sm:$0xff]  ;;  %v4053_v15 = vld [vmem:[%s3951_s7 + $0x98] sm:$0xff]  ;;  %v4059_v18 = vld [vmem:[%s3951_s7 + $0x90] sm:$0xff] }
  0xe6   : > { %1671 = vmatpush.bf16.msra.mxu1 %v4031_v5  ;;  %v3298_v19 = vld [vmem:[%s3951_s7 + $0x8] sm:$0xff]  ;;  %v3297_v22 = vld [vmem:[%s3951_s7] sm:$0xff]  ;;  %v2719_v30 = vld [vmem:[%s3953_s8 + $0xc] sm:$0xf0] }
  0xe7   : > { %1840 = vmatpush.bf16.msra.mxu2 %v4034_v6  ;;  %v3306_v20 = vld [vmem:[%s3951_s7 + $0x48] sm:$0xff]  ;;  %v3305_v23 = vld [vmem:[%s3951_s7 + $0x40] sm:$0xff]  ;;  %v3203_v32 = vld [vmem:[%s3953_s8 + $0x10] sm:$0xf0] }
  0xe8   : > { %v4065_v21 = vld [vmem:[%s3951_s7 + $0x88] sm:$0xff]  ;;  %v4070_v24 = vld [vmem:[%s3951_s7 + $0x80] sm:$0xff]  ;;  %v2729_v37 = vld [vmem:[%s3953_s8 + $0x18] sm:$0xf] }
  0xe9   : > { %1503 = vmatpush.bf16.msra.mxu0 %v3302_v7  ;;  %3514 = vmatpush.bf16.msra.mxu3 %v3302_v7  ;;  %v2717_v25 = vld [vmem:[%s3953_s8] sm:$0xf]  ;;  %v3202_v26 = vld [vmem:[%s3953_s8 + $0x8] sm:$0xf0]  ;;  %v3201_v29 = vld [vmem:[%s3953_s8 + $0x4] sm:$0xf] }
  0xea   : > { %1672 = vmatpush.bf16.msra.mxu1 %v3310_v8  ;;  %v3005_v27 = vld [vmem:[%s3953_s8 + $0x240] sm:$0xf]  ;;  %v3274_v28 = vld [vmem:[%s3953_s8 + $0x248] sm:$0xf0]  ;;  %v2725_v31 = vld [vmem:[%s3953_s8 + $0x8] sm:$0xf]  ;;  %v2718_v33 = vor.u32 %v3202_v26, %v2717_v25  ;;  %v2722_v35 = vor.u32 %v3201_v29, %v2719_v30 }
  0xeb   : > { %1841 = vmatpush.bf16.msra.mxu2 %v4041_v9  ;;  %v3006_v34 = vor.u32 %v3274_v28, %v3005_v27  ;;  %v2726_v36 = vor.u32 %v3203_v32, %v2725_v31  ;;  %v3205_v38 = vld [vmem:[%s3953_s8 + $0x20] sm:$0xf0]  ;;  %v3017_v39 = vld [vmem:[%s3953_s8 + $0x258] sm:$0xf]  ;;  %v3204_v41 = vld [vmem:[%s3953_s8 + $0x1c] sm:$0xf] }
  0xec   : > { %v3277_v40 = vld [vmem:[%s3953_s8 + $0x260] sm:$0xf0]  ;;  %v2731_v42 = vld [vmem:[%s3953_s8 + $0x24] sm:$0xf0]  ;;  %v2737_v43 = vld [vmem:[%s3953_s8 + $0x20] sm:$0xf]  ;;  %v2730_v45 = vor.u32 %v3205_v38, %v2729_v37 }
  0xed   : > { %1504 = vmatpush.bf16.msra.mxu0 %v3301_v10  ;;  %3515 = vmatpush.bf16.msra.mxu3 %v3301_v10  ;;  %v3206_v44 = vld [vmem:[%s3953_s8 + $0x28] sm:$0xf0]  ;;  %v3018_v46 = vor.u32 %v3277_v40, %v3017_v39  ;;  %v2734_v47 = vor.u32 %v3204_v41, %v2731_v42  ;;  %v2741_v49 = vld [vmem:[%s3953_s8 + $0x30] sm:$0xf]  ;;  %v3208_v50 = vld [vmem:[%s3953_s8 + $0x38] sm:$0xf0] }
  0xee   : > { %1673 = vmatpush.bf16.msra.mxu1 %v3309_v11  ;;  %v2738_v48 = vor.u32 %v3206_v44, %v2737_v43  ;;  %v3029_v51 = vld [vmem:[%s3953_s8 + $0x270] sm:$0xf]  ;;  %v3280_v52 = vld [vmem:[%s3953_s8 + $0x278] sm:$0xf0]  ;;  %v3207_v53 = vld [vmem:[%s3953_s8 + $0x34] sm:$0xf]  ;;  %v2742_v57 = vor.u32 %v3208_v50, %v2741_v49 }
  0xef   : > { %1842 = vmatpush.bf16.msra.mxu2 %v4047_v12  ;;  %v2743_v54 = vld [vmem:[%s3953_s8 + $0x3c] sm:$0xf0]  ;;  %v2749_v55 = vld [vmem:[%s3953_s8 + $0x38] sm:$0xf]  ;;  %v3209_v56 = vld [vmem:[%s3953_s8 + $0x40] sm:$0xf0]  ;;  %v3030_v58 = vor.u32 %v3280_v52, %v3029_v51 }
  0xf0   : > { %v2746_v59 = vor.u32 %v3207_v53, %v2743_v54  ;;  %v2750_v60 = vor.u32 %v3209_v56, %v2749_v55  ;;  %v2753_v61 = vld [vmem:[%s3953_s8 + $0x48] sm:$0xf]  ;;  %v3211_v62 = vld [vmem:[%s3953_s8 + $0x50] sm:$0xf0]  ;;  %v3210_v1 = vld [vmem:[%s3953_s8 + $0x4c] sm:$0xf] }
  0xf1   : > { %1505 = vmatpush.bf16.msra.mxu0 %v3300_v13  ;;  %3516 = vmatpush.bf16.msra.mxu3 %v3300_v13  ;;  %v3041_v63 = vld [vmem:[%s3953_s8 + $0x288] sm:$0xf]  ;;  %v3283_v0 = vld [vmem:[%s3953_s8 + $0x290] sm:$0xf0]  ;;  %v3212_v4 = vld [vmem:[%s3953_s8 + $0x58] sm:$0xf0] }
  0xf2   : > { %1674 = vmatpush.bf16.msra.mxu1 %v3308_v14  ;;  %v3214_v10 = vld [vmem:[%s3953_s8 + $0x68] sm:$0xf0]  ;;  %v3213_v13 = vld [vmem:[%s3953_s8 + $0x64] sm:$0xf]  ;;  %v3216_v26 = vld [vmem:[%s3953_s8 + $0x7c] sm:$0xf] }
  0xf3   : > { %1843 = vmatpush.bf16.msra.mxu2 %v4053_v15  ;;  %v3289_v25 = vld [vmem:[%s3953_s8 + $0x2c0] sm:$0xf0]  ;;  %v2785_v27 = vld [vmem:[%s3953_s8 + $0x80] sm:$0xf]  ;;  %v3218_v28 = vld [vmem:[%s3953_s8 + $0x88] sm:$0xf0] }
  0xf4   : > { %v2786_v32 = vor.u32 %v3218_v28, %v2785_v27  ;;  %v3219_v37 = vld [vmem:[%s3953_s8 + $0x94] sm:$0xf]  ;;  %v2791_v38 = vld [vmem:[%s3953_s8 + $0x9c] sm:$0xf0]  ;;  %v2797_v39 = vld [vmem:[%s3953_s8 + $0x98] sm:$0xf] }
  0xf5   : > { %1506 = vmatpush.bf16.msra.mxu0 %v3299_v16  ;;  %3517 = vmatpush.bf16.msra.mxu3 %v3299_v16  ;;  %v3215_v16 = vld [vmem:[%s3953_s8 + $0x70] sm:$0xf0]  ;;  %v3221_v40 = vld [vmem:[%s3953_s8 + $0xa0] sm:$0xf0]  ;;  %v2794_v43 = vor.u32 %v3219_v37, %v2791_v38  ;;  %v3222_v49 = vld [vmem:[%s3953_s8 + $0xac] sm:$0xf] }
  0xf6   : > { %1675 = vmatpush.bf16.msra.mxu1 %v3307_v17  ;;  %v2798_v44 = vor.u32 %v3221_v40, %v2797_v39  ;;  %v2803_v50 = vld [vmem:[%s3953_s8 + $0xb4] sm:$0xf0]  ;;  %v2809_v51 = vld [vmem:[%s3953_s8 + $0xb0] sm:$0xf]  ;;  %v3224_v52 = vld [vmem:[%s3953_s8 + $0xb8] sm:$0xf0] }
  0xf7   : > { %1844 = vmatpush.bf16.msra.mxu2 %v4059_v18  ;;  %v2806_v55 = vor.u32 %v3222_v49, %v2803_v50  ;;  %v2810_v56 = vor.u32 %v3224_v52, %v2809_v51  ;;  %v607_v37 = vld [vmem:[#allocation2 + $0xd8] sm:$0xff]  ;;  %v3233_v50 = vld [vmem:[%s3953_s8 + $0x100] sm:$0xf0] }
  0xf8   : > { %v2845_v49 = vld [vmem:[%s3953_s8 + $0xf8] sm:$0xf] }
  0xf9   : > { %1507 = vmatpush.bf16.msra.mxu0 %v3298_v19  ;;  %3518 = vmatpush.bf16.msra.mxu3 %v3298_v19 }
  0xfa   : > { %1676 = vmatpush.bf16.msra.mxu1 %v3306_v20 }
  0xfb   : > { %1845 = vmatpush.bf16.msra.mxu2 %v4065_v21 }
  0xfd   : > { %1508 = vmatpush.bf16.msra.mxu0 %v3297_v22  ;;  %3519 = vmatpush.bf16.msra.mxu3 %v3297_v22  ;;  %v3217_v22 = vld [vmem:[%s3953_s8 + $0x80] sm:$0xf0] }
  0xfe   : > { %1677 = vmatpush.bf16.msra.mxu1 %v3305_v23 }
  0xff   : > { %1846 = vmatpush.bf16.msra.mxu2 %v4070_v24 }
 0x100   : > { %1509 = vmatmul.bf16.vlgmr.msra.gmra.mxu0 %v2718_v33  ;;  %1629 = vmatmul.bf16.vlgmr.msra.gmra.mxu3 %v3006_v34  ;;  %v2789_v33 = vld [vmem:[%s3953_s8 + $0x90] sm:$0xf]  ;;  %v3220_v34 = vld [vmem:[%s3953_s8 + $0x98] sm:$0xf0] }
 0x101   : > { %3520 = vmatpush.bf16.msrb.mxu3 %v4022_v2  ;;  %1678 = vmatmul.bf16.vlgmr.msra.gmra.mxu1 %v2722_v35  ;;  %v2755_v2 = vld [vmem:[%s3953_s8 + $0x54] sm:$0xf0]  ;;  %v3077_v35 = vld [vmem:[%s3953_s8 + $0x2d0] sm:$0xf]  ;;  %v2790_v41 = vor.u32 %v3220_v34, %v2789_v33 }
 0x102   : > { %1847 = vmatmul.bf16.vlgmr.msra.gmra.mxu2 %v2726_v36  ;;  %v2758_v7 = vor.u32 %v3210_v1, %v2755_v2  ;;  %v3292_v36 = vld [vmem:[%s3953_s8 + $0x2d8] sm:$0xf0] }
 0x103   : > { %v3078_v42 = vor.u32 %v3292_v36, %v3077_v35 }
 0x105   : > { %3521 = vmatpush.bf16.msrb.mxu3 %v4031_v5  ;;  %v2754_v5 = vor.u32 %v3211_v62, %v2753_v61  ;;  %v3007_v61 = vld [vmem:[%s3953_s8 + $0x24c] sm:$0xf0] }
 0x106   : > { %v2815_v62 = vld [vmem:[%s3953_s8 + $0xcc] sm:$0xf0] }
 0x109   : > { %3522 = vmatpush.bf16.msrb.mxu3 %v3310_v8 }
 0x10d   : > { %3523 = vmatpush.bf16.msrb.mxu3 %v3309_v11  ;;  %v3053_v11 = vld [vmem:[%s3953_s8 + $0x2a0] sm:$0xf] }
 0x110   : > { %1514 = vmatmul.bf16.gmra.mxu0 %v2730_v45  ;;  %1634 = vmatmul.bf16.gmra.mxu3 %v3018_v46  ;;  %v2801_v45 = vld [vmem:[%s3953_s8 + $0xa8] sm:$0xf]  ;;  %v3223_v46 = vld [vmem:[%s3953_s8 + $0xb0] sm:$0xf0] }
 0x111   : > { %3524 = vmatpush.bf16.msrb.mxu3 %v3308_v14  ;;  %1683 = vmatmul.bf16.gmra.mxu1 %v2734_v47  ;;  %v2767_v14 = vld [vmem:[%s3953_s8 + $0x6c] sm:$0xf0]  ;;  %v3089_v47 = vld [vmem:[%s3953_s8 + $0x2e8] sm:$0xf]  ;;  %v2802_v53 = vor.u32 %v3223_v46, %v2801_v45  ;;  %v3231_v45 = vld [vmem:[%s3953_s8 + $0xf4] sm:$0xf] }
 0x112   : > { %1852 = vmatmul.bf16.gmra.mxu2 %v2738_v48  ;;  %v2770_v19 = vor.u32 %v3213_v13, %v2767_v14  ;;  %v3295_v48 = vld [vmem:[%s3953_s8 + $0x2f0] sm:$0xf0] }
 0x113   : > { %v3090_v54 = vor.u32 %v3295_v48, %v3089_v47  ;;  %v3279_v46 = vld [vmem:[%s3953_s8 + $0x274] sm:$0xf]  ;;  %v3031_v47 = vld [vmem:[%s3953_s8 + $0x27c] sm:$0xf0] }
 0x114   : > { %v2839_v48 = vld [vmem:[%s3953_s8 + $0xfc] sm:$0xf0] }
 0x115   : > { %3525 = vmatpush.bf16.msrb.mxu3 %v3307_v17 }
 0x119   : > { %3526 = vmatpush.bf16.msrb.mxu3 %v3306_v20 }
 0x11d   : > { %3527 = vmatpush.bf16.msrb.mxu3 %v3305_v23  ;;  %v3065_v23 = vld [vmem:[%s3953_s8 + $0x2b8] sm:$0xf] }
 0x11e   : > { %v3066_v30 = vor.u32 %v3289_v25, %v3065_v23 }
 0x120   : > { %1519 = vmatmul.bf16.gmra.mxu0 %v2742_v57  ;;  %1639 = vmatmul.bf16.gmra.mxu3 %v3030_v58  ;;  %v2813_v57 = vld [vmem:[%s3953_s8 + $0xc0] sm:$0xf]  ;;  %v3226_v58 = vld [vmem:[%s3953_s8 + $0xc8] sm:$0xf0] }
 0x121   : > { %3528 = vmatpush.bf16.msra.mxu3 %v4025_v3  ;;  %1688 = vmatmul.bf16.gmra.mxu1 %v2746_v59  ;;  %v2761_v3 = vld [vmem:[%s3953_s8 + $0x50] sm:$0xf]  ;;  %v3225_v59 = vld [vmem:[%s3953_s8 + $0xc4] sm:$0xf]  ;;  %v2814_v1 = vor.u32 %v3226_v58, %v2813_v57 }
 0x122   : > { %1857 = vmatmul.bf16.gmra.mxu2 %v2750_v60  ;;  %v2762_v8 = vor.u32 %v3212_v4, %v2761_v3  ;;  %v3273_v60 = vld [vmem:[%s3953_s8 + $0x244] sm:$0xf]  ;;  %v2818_v4 = vor.u32 %v3225_v59, %v2815_v62  ;;  %v2842_v59 = vor.u32 %v3231_v45, %v2839_v48  ;;  %v3239_v45 = vld [vmem:[%s3953_s8 + $0x130] sm:$0xf0]  ;;  %v612_v48 = vld [vmem:[#allocation2 + $0x48] sm:$0xff] }
 0x123   : > { %v3010_v2 = vor.u32 %v3273_v60, %v3007_v61  ;;  %v2846_v60 = vor.u32 %v3233_v50, %v2845_v49 }
 0x125   : > { %3529 = vmatpush.bf16.msra.mxu3 %v4034_v6  ;;  %v3042_v6 = vor.u32 %v3283_v0, %v3041_v63  ;;  %v2821_v63 = vld [vmem:[%s3953_s8 + $0xc8] sm:$0xf]  ;;  %v3227_v0 = vld [vmem:[%s3953_s8 + $0xd0] sm:$0xf0] }
 0x129   : > { %3530 = vmatpush.bf16.msra.mxu3 %v4041_v9  ;;  %v2765_v9 = vld [vmem:[%s3953_s8 + $0x60] sm:$0xf] }
 0x12a   : > { %v2766_v17 = vor.u32 %v3214_v10, %v2765_v9  ;;  %v605_v9 = vld [vmem:[#allocation2 + $0xb0] sm:$0xff] }
 0x12d   : > { %3531 = vmatpush.bf16.msra.mxu3 %v4047_v12  ;;  %v3286_v12 = vld [vmem:[%s3953_s8 + $0x2a8] sm:$0xf0] }
 0x130   : > { %1524 = vmatmul.bf16.gmra.mxu0 %v2754_v5  ;;  %1644 = vmatmul.bf16.gmra.mxu3 %v3042_v6  ;;  %v2822_v5 = vor.u32 %v3227_v0, %v2821_v63 }
 0x131   : > { %3532 = vmatpush.bf16.msra.mxu3 %v4053_v15  ;;  %1693 = vmatmul.bf16.gmra.mxu1 %v2758_v7  ;;  %v2773_v15 = vld [vmem:[%s3953_s8 + $0x68] sm:$0xf] }
 0x132   : > { %1862 = vmatmul.bf16.gmra.mxu2 %v2762_v8  ;;  %v2774_v20 = vor.u32 %v3215_v16, %v2773_v15  ;;  %v2825_v15 = vld [vmem:[%s3953_s8 + $0xd8] sm:$0xf]  ;;  %v3229_v16 = vld [vmem:[%s3953_s8 + $0xe0] sm:$0xf0] }
 0x133   : > { %v2826_v27 = vor.u32 %v3229_v16, %v2825_v15  ;;  %v3236_v15 = vld [vmem:[%s3953_s8 + $0x118] sm:$0xf0] }
 0x135   : > { %3533 = vmatpush.bf16.msra.mxu3 %v4059_v18  ;;  %v3054_v18 = vor.u32 %v3286_v12, %v3053_v11 }
 0x139   : > { %3534 = vmatpush.bf16.msra.mxu3 %v4065_v21  ;;  %v2777_v21 = vld [vmem:[%s3953_s8 + $0x78] sm:$0xf] }
 0x13a   : > { %v2778_v29 = vor.u32 %v3217_v22, %v2777_v21  ;;  %v2833_v21 = vld [vmem:[%s3953_s8 + $0xe0] sm:$0xf]  ;;  %v3230_v22 = vld [vmem:[%s3953_s8 + $0xe8] sm:$0xf0] }
 0x13d   : > { %3535 = vmatpush.bf16.msra.mxu3 %v4070_v24  ;;  %v2779_v24 = vld [vmem:[%s3953_s8 + $0x84] sm:$0xf0] }
 0x13e   : > { %v2782_v31 = vor.u32 %v3216_v26, %v2779_v24  ;;  %v606_v26 = vld [vmem:[#allocation2 + $0x1b0] sm:$0xff] }
 0x140   : > { %1529 = vmatmul.bf16.gmra.mxu0 %v2766_v17  ;;  %1649 = vmatmul.bf16.gmra.mxu3 %v3054_v18  ;;  %v3228_v17 = vld [vmem:[%s3953_s8 + $0xdc] sm:$0xf] }
 0x141   : > { %1698 = vmatmul.bf16.gmra.mxu1 %v2770_v19  ;;  %v3276_v18 = vld [vmem:[%s3953_s8 + $0x25c] sm:$0xf]  ;;  %v3019_v19 = vld [vmem:[%s3953_s8 + $0x264] sm:$0xf0] }
 0x142   : > { %1867 = vmatmul.bf16.gmra.mxu2 %v2774_v20  ;;  %v2827_v20 = vld [vmem:[%s3953_s8 + $0xe4] sm:$0xf0]  ;;  %v3022_v28 = vor.u32 %v3276_v18, %v3019_v19 }
 0x143   : > { %v610_v18 = vld [vmem:[#allocation2 + $0x168] sm:$0xff] }
 0x150   : > { %1534 = vmatmul.bf16.gmra.mxu0 %v2778_v29  ;;  %1654 = vmatmul.bf16.gmra.mxu3 %v3066_v30 }
 0x151   : > { %1703 = vmatmul.bf16.gmra.mxu1 %v2782_v31  ;;  %v2830_v31 = vor.u32 %v3228_v17, %v2827_v20 }
 0x152   : > { %1872 = vmatmul.bf16.gmra.mxu2 %v2786_v32  ;;  %v2834_v32 = vor.u32 %v3230_v22, %v2833_v21 }
 0x160   : > { %1539 = vmatmul.bf16.gmra.mxu0 %v2790_v41  ;;  %1659 = vmatmul.bf16.gmra.mxu3 %v3078_v42 }
 0x161   : > { %1708 = vmatmul.bf16.gmra.mxu1 %v2794_v43  ;;  %v2837_v43 = vld [vmem:[%s3953_s8 + $0xf0] sm:$0xf] }
 0x162   : > { %1877 = vmatmul.bf16.gmra.mxu2 %v2798_v44  ;;  %v3232_v44 = vld [vmem:[%s3953_s8 + $0xf8] sm:$0xf0] }
 0x170   : > { %1544 = vmatmul.bf16.gmra.mxu0 %v2802_v53  ;;  %1664 = vmatmul.bf16.gmra.mxu3 %v3090_v54  ;;  %v608_v53 = vld [vmem:[#allocation2 + $0x18] sm:$0xff] }
 0x171   : > { %1713 = vmatmul.bf16.gmra.mxu1 %v2806_v55  ;;  %v2838_v55 = vor.u32 %v3232_v44, %v2837_v43  ;;  %v2863_v43 = vld [vmem:[%s3953_s8 + $0x12c] sm:$0xf0]  ;;  %v2869_v44 = vld [vmem:[%s3953_s8 + $0x128] sm:$0xf] }
 0x172   : > { %1882 = vmatmul.bf16.gmra.mxu2 %v2810_v56  ;;  %v3034_v56 = vor.u32 %v3279_v46, %v3031_v47 }
 0x17d   : > { %v1510_v3 = vpop.f32.mrf.mxu0 }
 0x17e   : > { %v1679_v6 = vpop.f32.mrf.mxu1 }
 0x17f   : > { %v1680_v7 = vadd.f32 %v1679_v6, %v1510_v3 }
 0x180   : > { %1549 = vmatmul.bf16.gmra.mxu0 %v2814_v1  ;;  %1798 = vmatmul.bf16.vlgmr.msrb.gmra.mxu3 %v3010_v2  ;;  %v609_v1 = vld [vmem:[#allocation2 + $0x50] sm:$0xff] }
 0x181   : > { %1718 = vmatmul.bf16.gmra.mxu1 %v2818_v4 }
 0x182   : > { %1887 = vmatmul.bf16.gmra.mxu2 %v2822_v5 }
 0x183   : > { %v4156_v8 = vpop.f32.mrf.mxu3 }
 0x185   : > { %v1848_v10 = vpop.f32.mrf.mxu2  ;;  %v1512_v12 = vpop.f32.mrf.mxu0 }
 0x186   : > { %v1849_v11 = vadd.f32 %v1848_v10, %v1680_v7  ;;  %v1681_v13 = vpop.f32.mrf.mxu1  ;;  %v2849_v7 = vld [vmem:[%s3953_s8 + $0x108] sm:$0xf]  ;;  %v3234_v10 = vld [vmem:[%s3953_s8 + $0x10c] sm:$0xf] }
 0x187   : > { %v1682_v23 = vadd.f32 %v1681_v13, %v1512_v12  ;;  %v3043_v12 = vld [vmem:[%s3953_s8 + $0x294] sm:$0xf0] }
 0x188   : > { %v2008_v14 = vadd.f32 %v1849_v11, %v605_v9  ;;  %v3235_v9 = vld [vmem:[%s3953_s8 + $0x110] sm:$0xf0]  ;;  %v3282_v11 = vld [vmem:[%s3953_s8 + $0x28c] sm:$0xf]  ;;  %v2851_v13 = vld [vmem:[%s3953_s8 + $0x114] sm:$0xf0] }
 0x189   : > { %v2850_v20 = vor.u32 %v3235_v9, %v2849_v7  ;;  %v3046_v21 = vor.u32 %v3282_v11, %v3043_v12  ;;  %v3288_v7 = vld [vmem:[%s3953_s8 + $0x2bc] sm:$0xf]  ;;  %v3067_v9 = vld [vmem:[%s3953_s8 + $0x2c4] sm:$0xf0]  ;;  %v2881_v11 = vld [vmem:[%s3953_s8 + $0x140] sm:$0xf] }
 0x18a   : > { %2072 = vst [vmem:[#allocation2 + $0xb0] sm:$0xff] %v2008_v14  ;;  %v2857_v14 = vld [vmem:[%s3953_s8 + $0x110] sm:$0xf]  ;;  %v3242_v12 = vld [vmem:[%s3953_s8 + $0x148] sm:$0xf0] }
 0x18b   : > { %v4166_v25 = vpop.f32.mrf.mxu3 }
 0x18d   : > { %v1850_v24 = vpop.f32.mrf.mxu2  ;;  %v1515_v30 = vpop.f32.mrf.mxu0 }
 0x18e   : > { %v1851_v29 = vadd.f32 %v1850_v24, %v1682_v23  ;;  %v1684_v33 = vpop.f32.mrf.mxu1  ;;  %v2858_v24 = vor.u32 %v3236_v15, %v2857_v14  ;;  %v614_v15 = vld [vmem:[#allocation2 + $0x110] sm:$0xff] }
 0x18f   : > { %v1685_v35 = vadd.f32 %v1684_v33, %v1515_v30 }
 0x190   : > { %v2009_v34 = vadd.f32 %v1851_v29, %v606_v26  ;;  %1554 = vmatmul.bf16.gmra.mxu0 %v2826_v27  ;;  %1803 = vmatmul.bf16.gmra.mxu3 %v3022_v28  ;;  %v2854_v26 = vor.u32 %v3234_v10, %v2851_v13  ;;  %v2875_v10 = vld [vmem:[%s3953_s8 + $0x144] sm:$0xf0] }
 0x191   : > { %1723 = vmatmul.bf16.gmra.mxu1 %v2830_v31  ;;  %v611_v31 = vld [vmem:[#allocation2 + $0x130] sm:$0xff] }
 0x192   : > { %2073 = vst [vmem:[#allocation2 + $0x1b0] sm:$0xff] %v2009_v34  ;;  %1892 = vmatmul.bf16.gmra.mxu2 %v2834_v32 }
 0x193   : > { %v4168_v36 = vpop.f32.mrf.mxu3 }
 0x195   : > { %v1853_v38 = vpop.f32.mrf.mxu2  ;;  %v1517_v40 = vpop.f32.mrf.mxu0 }
 0x196   : > { %v1854_v39 = vadd.f32 %v1853_v38, %v1685_v35  ;;  %v1686_v41 = vpop.f32.mrf.mxu1  ;;  %v2861_v38 = vld [vmem:[%s3953_s8 + $0x120] sm:$0xf] }
 0x197   : > { %v1687_v51 = vadd.f32 %v1686_v41, %v1517_v40  ;;  %v3237_v40 = vld [vmem:[%s3953_s8 + $0x124] sm:$0xf] }
 0x198   : > { %v2010_v42 = vadd.f32 %v1854_v39, %v607_v37  ;;  %v3238_v39 = vld [vmem:[%s3953_s8 + $0x128] sm:$0xf0]  ;;  %v3285_v41 = vld [vmem:[%s3953_s8 + $0x2a4] sm:$0xf] }
 0x199   : > { %v2862_v50 = vor.u32 %v3238_v39, %v2861_v38  ;;  %v3244_v38 = vld [vmem:[%s3953_s8 + $0x158] sm:$0xf0]  ;;  %v3243_v39 = vld [vmem:[%s3953_s8 + $0x154] sm:$0xf] }
 0x19a   : > { %2074 = vst [vmem:[#allocation2 + $0xd8] sm:$0xff] %v2010_v42  ;;  %v3055_v42 = vld [vmem:[%s3953_s8 + $0x2ac] sm:$0xf0] }
 0x19b   : > { %v4178_v52 = vpop.f32.mrf.mxu3 }
 0x19d   : > { %v1855_v54 = vpop.f32.mrf.mxu2  ;;  %v1520_v58 = vpop.f32.mrf.mxu0 }
 0x19e   : > { %v1856_v57 = vadd.f32 %v1855_v54, %v1687_v51  ;;  %v1689_v61 = vpop.f32.mrf.mxu1  ;;  %v3058_v51 = vor.u32 %v3285_v41, %v3055_v42  ;;  %v3079_v41 = vld [vmem:[%s3953_s8 + $0x2dc] sm:$0xf0] }
 0x19f   : > { %v1690_v63 = vadd.f32 %v1689_v61, %v1520_v58  ;;  %v613_v61 = vld [vmem:[#allocation2 + $0x180] sm:$0xff] }
 0x1a0   : > { %v2011_v62 = vadd.f32 %v1856_v57, %v608_v53  ;;  %1559 = vmatmul.bf16.gmra.mxu0 %v2838_v55  ;;  %1808 = vmatmul.bf16.gmra.mxu3 %v3034_v56  ;;  %v2866_v55 = vor.u32 %v3237_v40, %v2863_v43  ;;  %v2870_v56 = vor.u32 %v3239_v45, %v2869_v44  ;;  %v3291_v40 = vld [vmem:[%s3953_s8 + $0x2d4] sm:$0xf]  ;;  %v2887_v42 = vld [vmem:[%s3953_s8 + $0x15c] sm:$0xf0]  ;;  %v2893_v43 = vld [vmem:[%s3953_s8 + $0x158] sm:$0xf] }
 0x1a1   : > { %1728 = vmatmul.bf16.gmra.mxu1 %v2842_v59  ;;  %v3245_v44 = vld [vmem:[%s3953_s8 + $0x160] sm:$0xf0] }
 0x1a2   : > { %2075 = vst [vmem:[#allocation2 + $0x18] sm:$0xff] %v2011_v62  ;;  %1897 = vmatmul.bf16.gmra.mxu2 %v2846_v60 }
 0x1a3   : > { %v4180_v0 = vpop.f32.mrf.mxu3 }
 0x1a5   : > { %v1858_v2 = vpop.f32.mrf.mxu2  ;;  %v1522_v4 = vpop.f32.mrf.mxu0 }
 0x1a6   : > { %v1859_v3 = vadd.f32 %v1858_v2, %v1690_v63  ;;  %v1691_v5 = vpop.f32.mrf.mxu1 }
 0x1a7   : > { %v1692_v16 = vadd.f32 %v1691_v5, %v1522_v4  ;;  %v2873_v4 = vld [vmem:[%s3953_s8 + $0x138] sm:$0xf]  ;;  %v3241_v5 = vld [vmem:[%s3953_s8 + $0x140] sm:$0xf0] }
 0x1a8   : > { %v2012_v6 = vadd.f32 %v1859_v3, %v609_v1 }
 0x1aa   : > { %2076 = vst [vmem:[#allocation2 + $0x50] sm:$0xff] %v2012_v6  ;;  %v3240_v6 = vld [vmem:[%s3953_s8 + $0x13c] sm:$0xf] }
 0x1ab   : > { %v4190_v17 = vpop.f32.mrf.mxu3 }
 0x1ad   : > { %v1860_v19 = vpop.f32.mrf.mxu2  ;;  %v1525_v23 = vpop.f32.mrf.mxu0 }
 0x1ae   : > { %v1861_v22 = vadd.f32 %v1860_v19, %v1692_v16  ;;  %v1694_v27 = vpop.f32.mrf.mxu1  ;;  %v3070_v19 = vor.u32 %v3288_v7, %v3067_v9  ;;  %v3246_v7 = vld [vmem:[%s3953_s8 + $0x16c] sm:$0xf] }
 0x1af   : > { %v1695_v29 = vadd.f32 %v1694_v27, %v1525_v23  ;;  %v2882_v23 = vor.u32 %v3242_v12, %v2881_v11  ;;  %v3294_v9 = vld [vmem:[%s3953_s8 + $0x2ec] sm:$0xf]  ;;  %v2899_v11 = vld [vmem:[%s3953_s8 + $0x174] sm:$0xf0]  ;;  %v2905_v12 = vld [vmem:[%s3953_s8 + $0x170] sm:$0xf] }
 0x1b0   : > { %v2013_v28 = vadd.f32 %v1861_v22, %v610_v18  ;;  %1564 = vmatmul.bf16.gmra.mxu0 %v2850_v20  ;;  %1813 = vmatmul.bf16.gmra.mxu3 %v3046_v21  ;;  %v2874_v18 = vor.u32 %v3241_v5, %v2873_v4  ;;  %v2878_v22 = vor.u32 %v3240_v6, %v2875_v10  ;;  %v2897_v5 = vld [vmem:[%s3953_s8 + $0x168] sm:$0xf]  ;;  %v3247_v6 = vld [vmem:[%s3953_s8 + $0x170] sm:$0xf0]  ;;  %v3091_v10 = vld [vmem:[%s3953_s8 + $0x2f4] sm:$0xf0] }
 0x1b1   : > { %1733 = vmatmul.bf16.gmra.mxu1 %v2854_v26 }
 0x1b2   : > { %2077 = vst [vmem:[#allocation2 + $0x168] sm:$0xff] %v2013_v28  ;;  %1902 = vmatmul.bf16.gmra.mxu2 %v2858_v24 }
 0x1b3   : > { %v4192_v30 = vpop.f32.mrf.mxu3 }
 0x1b5   : > { %v1863_v32 = vpop.f32.mrf.mxu2  ;;  %v1527_v34 = vpop.f32.mrf.mxu0 }
 0x1b6   : > { %v1864_v33 = vadd.f32 %v1863_v32, %v1695_v29  ;;  %v1696_v35 = vpop.f32.mrf.mxu1  ;;  %v615_v29 = vld [vmem:[#allocation2 + $0x118] sm:$0xff] }
 0x1b7   : > { %v1697_v46 = vadd.f32 %v1696_v35, %v1527_v34 }
 0x1b8   : > { %v2014_v37 = vadd.f32 %v1864_v33, %v611_v31 }
 0x1ba   : > { %2078 = vst [vmem:[#allocation2 + $0x130] sm:$0xff] %v2014_v37  ;;  %v2885_v37 = vld [vmem:[%s3953_s8 + $0x150] sm:$0xf] }
 0x1bb   : > { %v4202_v47 = vpop.f32.mrf.mxu3 }
 0x1bd   : > { %v1865_v49 = vpop.f32.mrf.mxu2  ;;  %v1530_v54 = vpop.f32.mrf.mxu0 }
 0x1be   : > { %v1866_v53 = vadd.f32 %v1865_v49, %v1697_v46  ;;  %v1699_v57 = vpop.f32.mrf.mxu1 }
 0x1bf   : > { %v1700_v59 = vadd.f32 %v1699_v57, %v1530_v54 }
 0x1c0   : > { %v2015_v58 = vadd.f32 %v1866_v53, %v612_v48  ;;  %1569 = vmatmul.bf16.gmra.mxu0 %v2862_v50  ;;  %1818 = vmatmul.bf16.gmra.mxu3 %v3058_v51  ;;  %v616_v48 = vld [vmem:[#allocation2 + $0x98] sm:$0xff]  ;;  %v2886_v50 = vor.u32 %v3244_v38, %v2885_v37  ;;  %v3082_v51 = vor.u32 %v3291_v40, %v3079_v41  ;;  %v2909_v40 = vld [vmem:[%s3953_s8 + $0x180] sm:$0xf]  ;;  %v3250_v41 = vld [vmem:[%s3953_s8 + $0x188] sm:$0xf0] }
 0x1c1   : > { %1738 = vmatmul.bf16.gmra.mxu1 %v2866_v55  ;;  %v2890_v55 = vor.u32 %v3243_v39, %v2887_v42  ;;  %v3249_v42 = vld [vmem:[%s3953_s8 + $0x184] sm:$0xf] }
 0x1c2   : > { %2079 = vst [vmem:[#allocation2 + $0x48] sm:$0xff] %v2015_v58  ;;  %1907 = vmatmul.bf16.gmra.mxu2 %v2870_v56  ;;  %v2894_v56 = vor.u32 %v3245_v44, %v2893_v43  ;;  %v3013_v43 = vld [vmem:[%s3953_s8 + $0x248] sm:$0xf]  ;;  %v3275_v44 = vld [vmem:[%s3953_s8 + $0x250] sm:$0xf0] }
 0x1c3   : > { %v4204_v60 = vpop.f32.mrf.mxu3 }
 0x1c5   : > { %v1868_v62 = vpop.f32.mrf.mxu2  ;;  %v1532_v1 = vpop.f32.mrf.mxu0 }
 0x1c6   : > { %v1869_v63 = vadd.f32 %v1868_v62, %v1700_v59  ;;  %v1701_v2 = vpop.f32.mrf.mxu1  ;;  %v617_v62 = vld [vmem:[#allocation2 + $0x120] sm:$0xff] }
 0x1c7   : > { %v1702_v13 = vadd.f32 %v1701_v2, %v1532_v1 }
 0x1c8   : > { %v2016_v3 = vadd.f32 %v1869_v63, %v613_v61 }
 0x1ca   : > { %2080 = vst [vmem:[#allocation2 + $0x180] sm:$0xff] %v2016_v3 }
 0x1cb   : > { %v4214_v14 = vpop.f32.mrf.mxu3 }
 0x1cd   : > { %v1870_v16 = vpop.f32.mrf.mxu2  ;;  %v1535_v21 = vpop.f32.mrf.mxu0 }
 0x1ce   : > { %v1871_v20 = vadd.f32 %v1870_v16, %v1702_v13  ;;  %v1704_v26 = vpop.f32.mrf.mxu1  ;;  %v3248_v13 = vld [vmem:[%s3953_s8 + $0x178] sm:$0xf0] }
 0x1cf   : > { %v1705_v27 = vadd.f32 %v1704_v26, %v1535_v21  ;;  %v3094_v21 = vor.u32 %v3294_v9, %v3091_v10  ;;  %v2902_v26 = vor.u32 %v3246_v7, %v2899_v11  ;;  %v2921_v11 = vld [vmem:[%s3953_s8 + $0x198] sm:$0xf] }
 0x1d0   : > { %v2017_v24 = vadd.f32 %v1871_v20, %v614_v15  ;;  %1574 = vmatmul.bf16.gmra.mxu0 %v2874_v18  ;;  %1823 = vmatmul.bf16.gmra.mxu3 %v3070_v19  ;;  %v618_v18 = vld [vmem:[#allocation2 + $0x150] sm:$0xff]  ;;  %v2898_v20 = vor.u32 %v3247_v6, %v2897_v5 }
 0x1d1   : > { %1743 = vmatmul.bf16.gmra.mxu1 %v2878_v22 }
 0x1d2   : > { %2081 = vst [vmem:[#allocation2 + $0x110] sm:$0xff] %v2017_v24  ;;  %1912 = vmatmul.bf16.gmra.mxu2 %v2882_v23  ;;  %v2906_v24 = vor.u32 %v3248_v13, %v2905_v12  ;;  %v3253_v12 = vld [vmem:[%s3953_s8 + $0x1a0] sm:$0xf0]  ;;  %v3252_v13 = vld [vmem:[%s3953_s8 + $0x19c] sm:$0xf] }
 0x1d3   : > { %v4216_v28 = vpop.f32.mrf.mxu3 }
 0x1d5   : > { %v1873_v31 = vpop.f32.mrf.mxu2  ;;  %v1537_v33 = vpop.f32.mrf.mxu0 }
 0x1d6   : > { %v1874_v32 = vadd.f32 %v1873_v31, %v1705_v27  ;;  %v1706_v34 = vpop.f32.mrf.mxu1 }
 0x1d7   : > { %v1707_v45 = vadd.f32 %v1706_v34, %v1537_v33  ;;  %v619_v33 = vld [vmem:[#allocation2 + $0x108] sm:$0xff] }
 0x1d8   : > { %v2018_v35 = vadd.f32 %v1874_v32, %v615_v29 }
 0x1da   : > { %2082 = vst [vmem:[#allocation2 + $0x118] sm:$0xff] %v2018_v35 }
 0x1db   : > { %v4226_v46 = vpop.f32.mrf.mxu3 }
 0x1dd   : > { %v1875_v49 = vpop.f32.mrf.mxu2  ;;  %v1540_v54 = vpop.f32.mrf.mxu0 }
 0x1de   : > { %v1876_v53 = vadd.f32 %v1875_v49, %v1707_v45  ;;  %v1709_v57 = vpop.f32.mrf.mxu1  ;;  %v2911_v45 = vld [vmem:[%s3953_s8 + $0x18c] sm:$0xf0]  ;;  %v3251_v49 = vld [vmem:[%s3953_s8 + $0x190] sm:$0xf0] }
 0x1df   : > { %v1710_v59 = vadd.f32 %v1709_v57, %v1540_v54 }
 0x1e0   : > { %v2019_v58 = vadd.f32 %v1876_v53, %v616_v48  ;;  %1579 = vmatmul.bf16.gmra.mxu0 %v2886_v50  ;;  %1828 = vmatmul.bf16.gmra.mxu3 %v3082_v51  ;;  %v2917_v48 = vld [vmem:[%s3953_s8 + $0x188] sm:$0xf]  ;;  %v620_v53 = vld [vmem:[#allocation2 + $0x60] sm:$0xff] }
 0x1e1   : > { %1748 = vmatmul.bf16.gmra.mxu1 %v2890_v55  ;;  %v2910_v55 = vor.u32 %v3250_v41, %v2909_v40  ;;  %v623_v41 = vld [vmem:[#allocation2 + $0x138] sm:$0xff] }
 0x1e2   : > { %2083 = vst [vmem:[#allocation2 + $0x98] sm:$0xff] %v2019_v58  ;;  %1917 = vmatmul.bf16.gmra.mxu2 %v2894_v56  ;;  %v3014_v56 = vor.u32 %v3275_v44, %v3013_v43 }
 0x1e3   : > { %v4228_v61 = vpop.f32.mrf.mxu3 }
 0x1e5   : > { %v1878_v63 = vpop.f32.mrf.mxu2  ;;  %v1542_v2 = vpop.f32.mrf.mxu0 }
 0x1e6   : > { %v1879_v1 = vadd.f32 %v1878_v63, %v1710_v59  ;;  %v1711_v3 = vpop.f32.mrf.mxu1  ;;  %v2914_v59 = vor.u32 %v3249_v42, %v2911_v45 }
 0x1e7   : > { %v1712_v15 = vadd.f32 %v1711_v3, %v1542_v2 }
 0x1e8   : > { %v2020_v4 = vadd.f32 %v1879_v1, %v617_v62  ;;  %v2918_v62 = vor.u32 %v3251_v49, %v2917_v48  ;;  %v2933_v49 = vld [vmem:[%s3953_s8 + $0x1b0] sm:$0xf] }
 0x1ea   : > { %2084 = vst [vmem:[#allocation2 + $0x120] sm:$0xff] %v2020_v4  ;;  %v621_v4 = vld [vmem:[#allocation2 + $0xe0] sm:$0xff] }
 0x1eb   : > { %v4238_v16 = vpop.f32.mrf.mxu3 }
 0x1ed   : > { %v1880_v19 = vpop.f32.mrf.mxu2  ;;  %v1545_v23 = vpop.f32.mrf.mxu0 }
 0x1ee   : > { %v1881_v22 = vadd.f32 %v1880_v19, %v1712_v15  ;;  %v1714_v27 = vpop.f32.mrf.mxu1  ;;  %v3025_v15 = vld [vmem:[%s3953_s8 + $0x260] sm:$0xf]  ;;  %v2923_v19 = vld [vmem:[%s3953_s8 + $0x1a4] sm:$0xf0] }
 0x1ef   : > { %v1715_v31 = vadd.f32 %v1714_v27, %v1545_v23  ;;  %v2922_v27 = vor.u32 %v3253_v12, %v2921_v11 }
 0x1f0   : > { %v2021_v29 = vadd.f32 %v1881_v22, %v618_v18  ;;  %1584 = vmatmul.bf16.gmra.mxu0 %v2898_v20  ;;  %1833 = vmatmul.bf16.gmra.mxu3 %v3094_v21  ;;  %v3278_v18 = vld [vmem:[%s3953_s8 + $0x268] sm:$0xf0]  ;;  %v2929_v20 = vld [vmem:[%s3953_s8 + $0x1a0] sm:$0xf] }
 0x1f1   : > { %1753 = vmatmul.bf16.gmra.mxu1 %v2902_v26  ;;  %v3254_v21 = vld [vmem:[%s3953_s8 + $0x1a8] sm:$0xf0] }
 0x1f2   : > { %2085 = vst [vmem:[#allocation2 + $0x150] sm:$0xff] %v2021_v29  ;;  %1922 = vmatmul.bf16.gmra.mxu2 %v2906_v24  ;;  %v622_v26 = vld [vmem:[#allocation2 + $0x188] sm:$0xff]  ;;  %v3026_v29 = vor.u32 %v3278_v18, %v3025_v15  ;;  %v625_v15 = vld [vmem:[#allocation2 + $0x80] sm:$0xff] }
 0x1f3   : > { %v4240_v32 = vpop.f32.mrf.mxu3 }
 0x1f5   : > { %v1883_v34 = vpop.f32.mrf.mxu2  ;;  %v1547_v37 = vpop.f32.mrf.mxu0 }
 0x1f6   : > { %v1884_v35 = vadd.f32 %v1883_v34, %v1715_v31  ;;  %v1716_v38 = vpop.f32.mrf.mxu1  ;;  %v2926_v34 = vor.u32 %v3252_v13, %v2923_v19 }
 0x1f7   : > { %v1717_v50 = vadd.f32 %v1716_v38, %v1547_v37 }
 0x1f8   : > { %v2022_v39 = vadd.f32 %v1884_v35, %v619_v33  ;;  %v2930_v35 = vor.u32 %v3254_v21, %v2929_v20 }
 0x1fa   : > { %2086 = vst [vmem:[#allocation2 + $0x108] sm:$0xff] %v2022_v39 }
 0x1fb   : > { %v4250_v51 = vpop.f32.mrf.mxu3 }
 0x1fd   : > { %v1885_v54 = vpop.f32.mrf.mxu2  ;;  %v1550_v58 = vpop.f32.mrf.mxu0 }
 0x1fe   : > { %v1886_v57 = vadd.f32 %v1885_v54, %v1717_v50  ;;  %v1719_v63 = vpop.f32.mrf.mxu1  ;;  %v3256_v50 = vld [vmem:[%s3953_s8 + $0x1b8] sm:$0xf0]  ;;  %v3037_v54 = vld [vmem:[%s3953_s8 + $0x278] sm:$0xf] }
 0x1ff   : > { %v1720_v2 = vadd.f32 %v1719_v63, %v1550_v58  ;;  %v3257_v58 = vld [vmem:[%s3953_s8 + $0x1c0] sm:$0xf0] }
 0x200   : > { %v2023_v1 = vadd.f32 %v1886_v57, %v620_v53  ;;  %1589 = vmatmul.bf16.gmra.mxu0 %v2910_v55  ;;  %1967 = vmatmul.bf16.vlgmr.msra.gmra.mxu3 %v3014_v56  ;;  %v3255_v53 = vld [vmem:[%s3953_s8 + $0x1b4] sm:$0xf]  ;;  %v3281_v55 = vld [vmem:[%s3953_s8 + $0x280] sm:$0xf0]  ;;  %v2935_v56 = vld [vmem:[%s3953_s8 + $0x1bc] sm:$0xf0] }
 0x201   : > { %1758 = vmatmul.bf16.gmra.mxu1 %v2914_v59  ;;  %v2941_v57 = vld [vmem:[%s3953_s8 + $0x1b8] sm:$0xf]  ;;  %v624_v63 = vld [vmem:[#allocation2 + $0x140] sm:$0xff] }
 0x202   : > { %2087 = vst [vmem:[#allocation2 + $0x60] sm:$0xff] %v2023_v1  ;;  %1927 = vmatmul.bf16.gmra.mxu2 %v2918_v62 }
 0x203   : > { %v4252_v3 = vpop.f32.mrf.mxu3 }
 0x205   : > { %v1888_v5 = vpop.f32.mrf.mxu2  ;;  %v1552_v7 = vpop.f32.mrf.mxu0 }
 0x206   : > { %v1889_v6 = vadd.f32 %v1888_v5, %v1720_v2  ;;  %v1721_v9 = vpop.f32.mrf.mxu1  ;;  %v2934_v2 = vor.u32 %v3256_v50, %v2933_v49 }
 0x207   : > { %v1722_v22 = vadd.f32 %v1721_v9, %v1552_v7  ;;  %v2938_v7 = vor.u32 %v3255_v53, %v2935_v56  ;;  %v2942_v9 = vor.u32 %v3257_v58, %v2941_v57  ;;  %v627_v56 = vld [vmem:[#allocation2 + $0x1b8] sm:$0xff] }
 0x208   : > { %v2024_v10 = vadd.f32 %v1889_v6, %v621_v4  ;;  %v3038_v4 = vor.u32 %v3281_v55, %v3037_v54 }
 0x20a   : > { %2088 = vst [vmem:[#allocation2 + $0xe0] sm:$0xff] %v2024_v10 }
 0x20b   : > { %v4262_v23 = vpop.f32.mrf.mxu3 }
 0x20d   : > { %v1890_v24 = vpop.f32.mrf.mxu2  ;;  %v1555_v33 = vpop.f32.mrf.mxu0 }
 0x20e   : > { %v1891_v31 = vadd.f32 %v1890_v24, %v1722_v22  ;;  %v1724_v37 = vpop.f32.mrf.mxu1  ;;  %v3259_v24 = vld [vmem:[%s3953_s8 + $0x1d0] sm:$0xf0] }
 0x20f   : > { %v1725_v39 = vadd.f32 %v1724_v37, %v1555_v33  ;;  %v2947_v33 = vld [vmem:[%s3953_s8 + $0x1d4] sm:$0xf0] }
 0x210   : > { %v2025_v38 = vadd.f32 %v1891_v31, %v622_v26  ;;  %1594 = vmatmul.bf16.gmra.mxu0 %v2922_v27  ;;  %1972 = vmatmul.bf16.gmra.mxu3 %v3026_v29  ;;  %v2945_v26 = vld [vmem:[%s3953_s8 + $0x1c8] sm:$0xf]  ;;  %v3258_v27 = vld [vmem:[%s3953_s8 + $0x1cc] sm:$0xf]  ;;  %v3049_v29 = vld [vmem:[%s3953_s8 + $0x290] sm:$0xf] }
 0x211   : > { %1763 = vmatmul.bf16.gmra.mxu1 %v2926_v34  ;;  %v3284_v31 = vld [vmem:[%s3953_s8 + $0x298] sm:$0xf0]  ;;  %v2953_v34 = vld [vmem:[%s3953_s8 + $0x1d0] sm:$0xf] }
 0x212   : > { %2089 = vst [vmem:[#allocation2 + $0x188] sm:$0xff] %v2025_v38  ;;  %1932 = vmatmul.bf16.gmra.mxu2 %v2930_v35  ;;  %v3260_v35 = vld [vmem:[%s3953_s8 + $0x1d8] sm:$0xf0] }
 0x213   : > { %v4264_v40 = vpop.f32.mrf.mxu3  ;;  %v2954_v49 = vor.u32 %v3260_v35, %v2953_v34  ;;  %v629_v35 = vld [vmem:[#allocation2 + $0x1e8] sm:$0xff] }
 0x215   : > { %v1893_v42 = vpop.f32.mrf.mxu2  ;;  %v1557_v44 = vpop.f32.mrf.mxu0 }
 0x216   : > { %v1894_v43 = vadd.f32 %v1893_v42, %v1725_v39  ;;  %v1726_v45 = vpop.f32.mrf.mxu1  ;;  %v626_v39 = vld [vmem:[#allocation2 + $0x1a8] sm:$0xff]  ;;  %v2946_v42 = vor.u32 %v3259_v24, %v2945_v26 }
 0x217   : > { %v1727_v59 = vadd.f32 %v1726_v45, %v1557_v44 }
 0x218   : > { %v2026_v48 = vadd.f32 %v1894_v43, %v623_v41  ;;  %v3050_v43 = vor.u32 %v3284_v31, %v3049_v29 }
 0x21a   : > { %2090 = vst [vmem:[#allocation2 + $0x138] sm:$0xff] %v2026_v48  ;;  %v2950_v48 = vor.u32 %v3258_v27, %v2947_v33 }
 0x21b   : > { %v4274_v62 = vpop.f32.mrf.mxu3 }
 0x21d   : > { %v1895_v1 = vpop.f32.mrf.mxu2  ;;  %v1560_v6 = vpop.f32.mrf.mxu0 }
 0x21e   : > { %v1896_v5 = vadd.f32 %v1895_v1, %v1727_v59  ;;  %v1729_v10 = vpop.f32.mrf.mxu1 }
 0x21f   : > { %v1730_v12 = vadd.f32 %v1729_v10, %v1560_v6  ;;  %v3061_v6 = vld [vmem:[%s3953_s8 + $0x2a8] sm:$0xf] }
 0x220   : > { %v2027_v11 = vadd.f32 %v1896_v5, %v624_v63  ;;  %1599 = vmatmul.bf16.gmra.mxu0 %v2934_v2  ;;  %1977 = vmatmul.bf16.gmra.mxu3 %v3038_v4  ;;  %v2957_v2 = vld [vmem:[%s3953_s8 + $0x1e0] sm:$0xf]  ;;  %v3262_v4 = vld [vmem:[%s3953_s8 + $0x1e8] sm:$0xf0]  ;;  %v3261_v5 = vld [vmem:[%s3953_s8 + $0x1e4] sm:$0xf] }
 0x221   : > { %1768 = vmatmul.bf16.gmra.mxu1 %v2938_v7  ;;  %v3287_v7 = vld [vmem:[%s3953_s8 + $0x2b0] sm:$0xf0]  ;;  %v2965_v10 = vld [vmem:[%s3953_s8 + $0x1e8] sm:$0xf] }
 0x222   : > { %2091 = vst [vmem:[#allocation2 + $0x140] sm:$0xff] %v2027_v11  ;;  %1937 = vmatmul.bf16.gmra.mxu2 %v2942_v9  ;;  %v2959_v9 = vld [vmem:[%s3953_s8 + $0x1ec] sm:$0xf0]  ;;  %v3263_v11 = vld [vmem:[%s3953_s8 + $0x1f0] sm:$0xf0] }
 0x223   : > { %v4276_v13 = vpop.f32.mrf.mxu3  ;;  %v2962_v24 = vor.u32 %v3261_v5, %v2959_v9  ;;  %v2966_v27 = vor.u32 %v3263_v11, %v2965_v10 }
 0x225   : > { %v1898_v18 = vpop.f32.mrf.mxu2  ;;  %v1562_v20 = vpop.f32.mrf.mxu0 }
 0x226   : > { %v1899_v19 = vadd.f32 %v1898_v18, %v1730_v12  ;;  %v1731_v21 = vpop.f32.mrf.mxu1  ;;  %v628_v18 = vld [vmem:[#allocation2 + $0x28] sm:$0xff] }
 0x227   : > { %v1732_v37 = vadd.f32 %v1731_v21, %v1562_v20  ;;  %v2958_v20 = vor.u32 %v3262_v4, %v2957_v2  ;;  %v3062_v21 = vor.u32 %v3287_v7, %v3061_v6 }
 0x228   : > { %v2028_v22 = vadd.f32 %v1899_v19, %v625_v15 }
 0x22a   : > { %2092 = vst [vmem:[#allocation2 + $0x80] sm:$0xff] %v2028_v22 }
 0x22b   : > { %v4286_v38 = vpop.f32.mrf.mxu3 }
 0x22d   : > { %v1900_v41 = vpop.f32.mrf.mxu2  ;;  %v1565_v45 = vpop.f32.mrf.mxu0 }
 0x22e   : > { %v1901_v44 = vadd.f32 %v1900_v41, %v1732_v37  ;;  %v1734_v50 = vpop.f32.mrf.mxu1 }
 0x22f   : > { %v1735_v54 = vadd.f32 %v1734_v50, %v1565_v45  ;;  %v3265_v45 = vld [vmem:[%s3953_s8 + $0x200] sm:$0xf0]  ;;  %v3290_v50 = vld [vmem:[%s3953_s8 + $0x2c8] sm:$0xf0] }
 0x230   : > { %v2029_v53 = vadd.f32 %v1901_v44, %v626_v39  ;;  %1604 = vmatmul.bf16.gmra.mxu0 %v2946_v42  ;;  %1982 = vmatmul.bf16.gmra.mxu3 %v3050_v43  ;;  %v2969_v44 = vld [vmem:[%s3953_s8 + $0x1f8] sm:$0xf] }
 0x231   : > { %1773 = vmatmul.bf16.gmra.mxu1 %v2950_v48  ;;  %v3264_v48 = vld [vmem:[%s3953_s8 + $0x1fc] sm:$0xf] }
 0x232   : > { %2093 = vst [vmem:[#allocation2 + $0x1a8] sm:$0xff] %v2029_v53  ;;  %1942 = vmatmul.bf16.gmra.mxu2 %v2954_v49  ;;  %v3073_v49 = vld [vmem:[%s3953_s8 + $0x2c0] sm:$0xf]  ;;  %v2971_v53 = vld [vmem:[%s3953_s8 + $0x204] sm:$0xf0] }
 0x233   : > { %v4288_v55 = vpop.f32.mrf.mxu3  ;;  %v3074_v2 = vor.u32 %v3290_v50, %v3073_v49  ;;  %v2974_v6 = vor.u32 %v3264_v48, %v2971_v53 }
 0x235   : > { %v1903_v57 = vpop.f32.mrf.mxu2  ;;  %v1567_v59 = vpop.f32.mrf.mxu0 }
 0x236   : > { %v1904_v58 = vadd.f32 %v1903_v57, %v1735_v54  ;;  %v1736_v63 = vpop.f32.mrf.mxu1  ;;  %v2977_v54 = vld [vmem:[%s3953_s8 + $0x200] sm:$0xf] }
 0x237   : > { %v1737_v12 = vadd.f32 %v1736_v63, %v1567_v59  ;;  %v630_v59 = vld [vmem:[#allocation2 + $0xf8] sm:$0xff] }
 0x238   : > { %v2030_v1 = vadd.f32 %v1904_v58, %v627_v56  ;;  %v3266_v56 = vld [vmem:[%s3953_s8 + $0x208] sm:$0xf0] }
 0x239   : > { %v2978_v7 = vor.u32 %v3266_v56, %v2977_v54 }
 0x23a   : > { %2094 = vst [vmem:[#allocation2 + $0x1b8] sm:$0xff] %v2030_v1  ;;  %v2970_v1 = vor.u32 %v3265_v45, %v2969_v44 }
 0x23b   : > { %v4298_v15 = vpop.f32.mrf.mxu3 }
 0x23d   : > { %v1905_v19 = vpop.f32.mrf.mxu2  ;;  %v1570_v26 = vpop.f32.mrf.mxu0 }
 0x23e   : > { %v1906_v22 = vadd.f32 %v1905_v19, %v1737_v12  ;;  %v1739_v29 = vpop.f32.mrf.mxu1 }
 0x23f   : > { %v1740_v33 = vadd.f32 %v1739_v29, %v1570_v26  ;;  %v3267_v29 = vld [vmem:[%s3953_s8 + $0x214] sm:$0xf] }
 0x240   : > { %v2031_v31 = vadd.f32 %v1906_v22, %v628_v18  ;;  %1609 = vmatmul.bf16.gmra.mxu0 %v2958_v20  ;;  %1987 = vmatmul.bf16.gmra.mxu3 %v3062_v21  ;;  %v631_v18 = vld [vmem:[#allocation2 + $0x160] sm:$0xff] }
 0x241   : > { %1778 = vmatmul.bf16.gmra.mxu1 %v2962_v24  ;;  %v2981_v24 = vld [vmem:[%s3953_s8 + $0x210] sm:$0xf] }
 0x242   : > { %2095 = vst [vmem:[#allocation2 + $0x28] sm:$0xff] %v2031_v31  ;;  %1947 = vmatmul.bf16.gmra.mxu2 %v2966_v27  ;;  %v3268_v27 = vld [vmem:[%s3953_s8 + $0x218] sm:$0xf0]  ;;  %v3085_v31 = vld [vmem:[%s3953_s8 + $0x2d8] sm:$0xf] }
 0x243   : > { %v4300_v34 = vpop.f32.mrf.mxu3  ;;  %v2982_v45 = vor.u32 %v3268_v27, %v2981_v24  ;;  %v634_v27 = vld [vmem:[#allocation2] sm:$0xff] }
 0x245   : > { %v1908_v37 = vpop.f32.mrf.mxu2  ;;  %v1572_v41 = vpop.f32.mrf.mxu0 }
 0x246   : > { %v1909_v39 = vadd.f32 %v1908_v37, %v1740_v33  ;;  %v1741_v42 = vpop.f32.mrf.mxu1  ;;  %v3293_v33 = vld [vmem:[%s3953_s8 + $0x2e0] sm:$0xf0]  ;;  %v2989_v37 = vld [vmem:[%s3953_s8 + $0x218] sm:$0xf] }
 0x247   : > { %v1742_v57 = vadd.f32 %v1741_v42, %v1572_v41  ;;  %v3086_v48 = vor.u32 %v3293_v33, %v3085_v31 }
 0x248   : > { %v2032_v43 = vadd.f32 %v1909_v39, %v629_v35  ;;  %v2983_v35 = vld [vmem:[%s3953_s8 + $0x21c] sm:$0xf0]  ;;  %v3269_v39 = vld [vmem:[%s3953_s8 + $0x220] sm:$0xf0] }
 0x249   : > { %v2986_v53 = vor.u32 %v3267_v29, %v2983_v35  ;;  %v2990_v54 = vor.u32 %v3269_v39, %v2989_v37 }
 0x24a   : > { %2096 = vst [vmem:[#allocation2 + $0x1e8] sm:$0xff] %v2032_v43  ;;  %v632_v43 = vld [vmem:[#allocation2 + $0x30] sm:$0xff] }
 0x24b   : > { %v4310_v58 = vpop.f32.mrf.mxu3 }
 0x24d   : > { %v1910_v63 = vpop.f32.mrf.mxu2  ;;  %v1575_v5 = vpop.f32.mrf.mxu0 }
 0x24e   : > { %v1911_v4 = vadd.f32 %v1910_v63, %v1742_v57  ;;  %v1744_v9 = vpop.f32.mrf.mxu1 }
 0x24f   : > { %v1745_v11 = vadd.f32 %v1744_v9, %v1575_v5  ;;  %v2993_v9 = vld [vmem:[%s3953_s8 + $0x228] sm:$0xf] }
 0x250   : > { %v2033_v10 = vadd.f32 %v1911_v4, %v630_v59  ;;  %1614 = vmatmul.bf16.gmra.mxu0 %v2970_v1  ;;  %1992 = vmatmul.bf16.gmra.mxu3 %v3074_v2  ;;  %v633_v1 = vld [vmem:[#allocation2 + $0x1e0] sm:$0xff] }
 0x251   : > { %1783 = vmatmul.bf16.gmra.mxu1 %v2974_v6 }
 0x252   : > { %2097 = vst [vmem:[#allocation2 + $0xf8] sm:$0xff] %v2033_v10  ;;  %1952 = vmatmul.bf16.gmra.mxu2 %v2978_v7  ;;  %v3271_v10 = vld [vmem:[%s3953_s8 + $0x230] sm:$0xf0] }
 0x253   : > { %v4312_v12 = vpop.f32.mrf.mxu3  ;;  %v2994_v31 = vor.u32 %v3271_v10, %v2993_v9 }
 0x255   : > { %v1913_v19 = vpop.f32.mrf.mxu2  ;;  %v1577_v21 = vpop.f32.mrf.mxu0 }
 0x256   : > { %v1914_v20 = vadd.f32 %v1913_v19, %v1745_v11  ;;  %v1746_v22 = vpop.f32.mrf.mxu1  ;;  %v3270_v11 = vld [vmem:[%s3953_s8 + $0x22c] sm:$0xf]  ;;  %v3296_v19 = vld [vmem:[%s3953_s8 + $0x2f8] sm:$0xf0] }
 0x257   : > { %v1747_v41 = vadd.f32 %v1746_v22, %v1577_v21  ;;  %v3001_v21 = vld [vmem:[%s3953_s8 + $0x230] sm:$0xf]  ;;  %v3272_v22 = vld [vmem:[%s3953_s8 + $0x238] sm:$0xf0] }
 0x258   : > { %v2034_v26 = vadd.f32 %v1914_v20, %v631_v18  ;;  %v3097_v18 = vld [vmem:[%s3953_s8 + $0x2f0] sm:$0xf]  ;;  %v2995_v20 = vld [vmem:[%s3953_s8 + $0x234] sm:$0xf0] }
 0x259   : > { %v3098_v33 = vor.u32 %v3296_v19, %v3097_v18  ;;  %v2998_v39 = vor.u32 %v3270_v11, %v2995_v20  ;;  %v1800_v11 = vadd.f32 %v4252_v3, %v4156_v8  ;;  %v653_v18 = vld [vmem:[#allocation2 + $0xb8] sm:$0xff]  ;;  %v637_v20 = vld [vmem:[#allocation2 + $0x148] sm:$0xff] }
 0x25a   : > { %2098 = vst [vmem:[#allocation2 + $0x160] sm:$0xff] %v2034_v26 }
 0x25b   : > { %v4322_v42 = vpop.f32.mrf.mxu3 }
 0x25d   : > { %v1915_v44 = vpop.f32.mrf.mxu2  ;;  %v1580_v50 = vpop.f32.mrf.mxu0 }
 0x25e   : > { %v1916_v49 = vadd.f32 %v1915_v44, %v1747_v41  ;;  %v1749_v56 = vpop.f32.mrf.mxu1  ;;  %v3002_v41 = vor.u32 %v3272_v22, %v3001_v21 }
 0x25f   : > { %v1750_v59 = vadd.f32 %v1749_v56, %v1580_v50 }
 0x260   : > { %v2035_v57 = vadd.f32 %v1916_v49, %v632_v43  ;;  %1619 = vmatmul.bf16.gmra.mxu0 %v2982_v45  ;;  %1997 = vmatmul.bf16.gmra.mxu3 %v3086_v48  ;;  %v635_v49 = vld [vmem:[#allocation2 + $0xf0] sm:$0xff] }
 0x261   : > { %1788 = vmatmul.bf16.gmra.mxu1 %v2986_v53 }
 0x262   : > { %2099 = vst [vmem:[#allocation2 + $0x30] sm:$0xff] %v2035_v57  ;;  %1957 = vmatmul.bf16.gmra.mxu2 %v2990_v54 }
 0x263   : > { %v4324_v63 = vpop.f32.mrf.mxu3 }
 0x265   : > { %v1918_v2 = vpop.f32.mrf.mxu2  ;;  %v1582_v5 = vpop.f32.mrf.mxu0 }
 0x266   : > { %v1919_v4 = vadd.f32 %v1918_v2, %v1750_v59  ;;  %v1751_v6 = vpop.f32.mrf.mxu1  ;;  %v636_v2 = vld [vmem:[#allocation2 + $0x8] sm:$0xff] }
 0x267   : > { %v1752_v26 = vadd.f32 %v1751_v6, %v1582_v5 }
 0x268   : > { %v2036_v7 = vadd.f32 %v1919_v4, %v633_v1 }
 0x26a   : > { %2100 = vst [vmem:[#allocation2 + $0x1e0] sm:$0xff] %v2036_v7 }
 0x26b   : > { %v4334_v24 = vpop.f32.mrf.mxu3 }
 0x26d   : > { %v1920_v29 = vpop.f32.mrf.mxu2  ;;  %v1585_v37 = vpop.f32.mrf.mxu0 }
 0x26e   : > { %v1921_v35 = vadd.f32 %v1920_v29, %v1752_v26  ;;  %v1754_v43 = vpop.f32.mrf.mxu1 }
 0x26f   : > { %v1755_v45 = vadd.f32 %v1754_v43, %v1585_v37  ;;  %v638_v43 = vld [vmem:[#allocation2 + $0x1d0] sm:$0xff] }
 0x270   : > { %v2037_v44 = vadd.f32 %v1921_v35, %v634_v27  ;;  %1624 = vmatmul.bf16.gmra.mxu0 %v2994_v31  ;;  %2002 = vmatmul.bf16.gmra.mxu3 %v3098_v33  ;;  %v1802_v35 = vadd.f32 %v4262_v23, %v4166_v25  ;;  %v639_v25 = vld [vmem:[#allocation2 + $0x100] sm:$0xff] }
 0x271   : > { %1793 = vmatmul.bf16.gmra.mxu1 %v2998_v39  ;;  %v654_v39 = vld [vmem:[#allocation2 + $0x88] sm:$0xff] }
 0x272   : > { %2101 = vst [vmem:[#allocation2] sm:$0xff] %v2037_v44  ;;  %1962 = vmatmul.bf16.gmra.mxu2 %v3002_v41 }
 0x273   : > { %v4336_v48 = vpop.f32.mrf.mxu3 }
 0x275   : > { %v1923_v50 = vpop.f32.mrf.mxu2  ;;  %v1587_v54 = vpop.f32.mrf.mxu0 }
 0x276   : > { %v1924_v53 = vadd.f32 %v1923_v50, %v1755_v45  ;;  %v1756_v56 = vpop.f32.mrf.mxu1 }
 0x277   : > { %v1757_v59 = vadd.f32 %v1756_v56, %v1587_v54  ;;  %v1805_v56 = vadd.f32 %v4264_v40, %v4168_v36 }
 0x278   : > { %v2038_v57 = vadd.f32 %v1924_v53, %v635_v49 }
 0x27a   : > { %2102 = vst [vmem:[#allocation2 + $0xf0] sm:$0xff] %v2038_v57  ;;  %v655_v57 = vld [vmem:[#allocation2 + $0xa8] sm:$0xff] }
 0x27b   : > { %v4338_v1 = vpop.f32.mrf.mxu3 }
 0x27d   : > { %v1925_v4 = vpop.f32.mrf.mxu2  ;;  %v1590_v6 = vpop.f32.mrf.mxu0 }
 0x27e   : > { %v1926_v5 = vadd.f32 %v1925_v4, %v1757_v59  ;;  %v1759_v7 = vpop.f32.mrf.mxu1 }
 0x27f   : > { %v1760_v10 = vadd.f32 %v1759_v7, %v1590_v6 }
 0x280   : > { %v2039_v9 = vadd.f32 %v1926_v5, %v636_v2 }
 0x282   : > { %2103 = vst [vmem:[#allocation2 + $0x8] sm:$0xff] %v2039_v9 }
 0x283   : > { %v1968_v19 = vpop.f32.mrf.mxu3 }
 0x284   : > { %v1969_v22 = vadd.f32 %v1968_v19, %v1800_v11 }
 0x285   : > { %v1928_v21 = vpop.f32.mrf.mxu2  ;;  %v1592_v27 = vpop.f32.mrf.mxu0 }
 0x286   : > { %v1929_v26 = vadd.f32 %v1928_v21, %v1760_v10  ;;  %v2056_v29 = vadd.f32 %v1969_v22, %v653_v18  ;;  %v1761_v31 = vpop.f32.mrf.mxu1  ;;  %v1807_v10 = vadd.f32 %v4274_v62, %v4178_v52  ;;  %v656_v18 = vld [vmem:[#allocation2 + $0x1c8] sm:$0xff]  ;;  %v641_v52 = vld [vmem:[#allocation2 + $0x40] sm:$0xff] }
 0x287   : > { %v1762_v37 = vadd.f32 %v1761_v31, %v1592_v27 }
 0x288   : > { %v2040_v33 = vadd.f32 %v1929_v26, %v637_v20  ;;  %2120 = vst [vmem:[#allocation2 + $0xb8] sm:$0xff] %v2056_v29  ;;  %v640_v20 = vld [vmem:[#allocation2 + $0xc8] sm:$0xff] }
 0x28a   : > { %2104 = vst [vmem:[#allocation2 + $0x148] sm:$0xff] %v2040_v33  ;;  %v1810_v33 = vadd.f32 %v4276_v13, %v4180_v0 }
 0x28b   : > { %v1970_v41 = vpop.f32.mrf.mxu3 }
 0x28c   : > { %v1971_v3 = vadd.f32 %v1970_v41, %v1802_v35  ;;  %v657_v35 = vld [vmem:[#allocation2 + $0x170] sm:$0xff] }
 0x28d   : > { %v1930_v8 = vpop.f32.mrf.mxu2  ;;  %v1595_v45 = vpop.f32.mrf.mxu0 }
 0x28e   : > { %v1931_v44 = vadd.f32 %v1930_v8, %v1762_v37  ;;  %v2057_v49 = vadd.f32 %v1971_v3, %v654_v39  ;;  %v1764_v50 = vpop.f32.mrf.mxu1 }
 0x28f   : > { %v1765_v54 = vadd.f32 %v1764_v50, %v1595_v45  ;;  %v1812_v45 = vadd.f32 %v4286_v38, %v4190_v17  ;;  %v658_v50 = vld [vmem:[#allocation2 + $0x178] sm:$0xff]  ;;  %v643_v17 = vld [vmem:[#allocation2 + $0x20] sm:$0xff] }
 0x290   : > { %v2041_v53 = vadd.f32 %v1931_v44, %v638_v43  ;;  %2121 = vst [vmem:[#allocation2 + $0x88] sm:$0xff] %v2057_v49 }
 0x292   : > { %2105 = vst [vmem:[#allocation2 + $0x1d0] sm:$0xff] %v2041_v53 }
 0x293   : > { %v1973_v59 = vpop.f32.mrf.mxu3 }
 0x294   : > { %v1974_v2 = vadd.f32 %v1973_v59, %v1805_v56 }
 0x295   : > { %v1933_v23 = vpop.f32.mrf.mxu2  ;;  %v1597_v5 = vpop.f32.mrf.mxu0 }
 0x296   : > { %v1934_v4 = vadd.f32 %v1933_v23, %v1765_v54  ;;  %v2058_v6 = vadd.f32 %v1974_v2, %v655_v57  ;;  %v1766_v7 = vpop.f32.mrf.mxu1  ;;  %v642_v54 = vld [vmem:[#allocation2 + $0x1f8] sm:$0xff] }
 0x297   : > { %v1767_v11 = vadd.f32 %v1766_v7, %v1597_v5  ;;  %v659_v5 = vld [vmem:[#allocation2 + $0x68] sm:$0xff] }
 0x298   : > { %v2042_v9 = vadd.f32 %v1934_v4, %v639_v25  ;;  %2122 = vst [vmem:[#allocation2 + $0xa8] sm:$0xff] %v2058_v6  ;;  %v1815_v4 = vadd.f32 %v4288_v55, %v4192_v30 }
 0x29a   : > { %2106 = vst [vmem:[#allocation2 + $0x100] sm:$0xff] %v2042_v9 }
 0x29b   : > { %v1975_v19 = vpop.f32.mrf.mxu3 }
 0x29c   : > { %v1976_v40 = vadd.f32 %v1975_v19, %v1807_v10 }
 0x29d   : > { %v1935_v36 = vpop.f32.mrf.mxu2  ;;  %v1600_v22 = vpop.f32.mrf.mxu0 }
 0x29e   : > { %v1936_v21 = vadd.f32 %v1935_v36, %v1767_v11  ;;  %v2059_v26 = vadd.f32 %v1976_v40, %v656_v18  ;;  %v1769_v27 = vpop.f32.mrf.mxu1  ;;  %v660_v40 = vld [vmem:[#allocation2 + $0x190] sm:$0xff] }
 0x29f   : > { %v1770_v31 = vadd.f32 %v1769_v27, %v1600_v22  ;;  %v644_v22 = vld [vmem:[#allocation2 + $0x128] sm:$0xff] }
 0x2a0   : > { %v2043_v29 = vadd.f32 %v1936_v21, %v640_v20  ;;  %2123 = vst [vmem:[#allocation2 + $0x1c8] sm:$0xff] %v2059_v26  ;;  %v1817_v20 = vadd.f32 %v4298_v15, %v4202_v47  ;;  %v645_v47 = vld [vmem:[#allocation2 + $0x1a0] sm:$0xff] }
 0x2a2   : > { %2107 = vst [vmem:[#allocation2 + $0xc8] sm:$0xff] %v2043_v29 }
 0x2a3   : > { %v1978_v37 = vpop.f32.mrf.mxu3 }
 0x2a4   : > { %v1979_v39 = vadd.f32 %v1978_v37, %v1810_v33  ;;  %v1820_v37 = vadd.f32 %v4300_v34, %v4204_v60 }
 0x2a5   : > { %v1938_v62 = vpop.f32.mrf.mxu2  ;;  %v1602_v43 = vpop.f32.mrf.mxu0 }
 0x2a6   : > { %v1939_v41 = vadd.f32 %v1938_v62, %v1770_v31  ;;  %v2060_v8 = vadd.f32 %v1979_v39, %v657_v35  ;;  %v1771_v3 = vpop.f32.mrf.mxu1 }
 0x2a7   : > { %v1772_v49 = vadd.f32 %v1771_v3, %v1602_v43 }
 0x2a8   : > { %v2044_v44 = vadd.f32 %v1939_v41, %v641_v52  ;;  %2124 = vst [vmem:[#allocation2 + $0x170] sm:$0xff] %v2060_v8  ;;  %v661_v52 = vld [vmem:[#allocation2 + $0x198] sm:$0xff] }
 0x2aa   : > { %2108 = vst [vmem:[#allocation2 + $0x40] sm:$0xff] %v2044_v44 }
 0x2ab   : > { %v1980_v53 = vpop.f32.mrf.mxu3 }
 0x2ac   : > { %v1981_v13 = vadd.f32 %v1980_v53, %v1812_v45  ;;  %v1822_v45 = vadd.f32 %v4310_v58, %v4214_v14  ;;  %v647_v14 = vld [vmem:[#allocation2 + $0xe8] sm:$0xff] }
 0x2ad   : > { %v1940_v0 = vpop.f32.mrf.mxu2  ;;  %v1605_v57 = vpop.f32.mrf.mxu0 }
 0x2ae   : > { %v1941_v56 = vadd.f32 %v1940_v0, %v1772_v49  ;;  %v2061_v59 = vadd.f32 %v1981_v13, %v658_v50  ;;  %v1774_v25 = vpop.f32.mrf.mxu1  ;;  %v662_v50 = vld [vmem:[#allocation2 + $0x38] sm:$0xff] }
 0x2af   : > { %v1775_v2 = vadd.f32 %v1774_v25, %v1605_v57 }
 0x2b0   : > { %v2045_v23 = vadd.f32 %v1941_v56, %v642_v54  ;;  %2125 = vst [vmem:[#allocation2 + $0x178] sm:$0xff] %v2061_v59  ;;  %v646_v54 = vld [vmem:[#allocation2 + $0x1f0] sm:$0xff] }
 0x2b2   : > { %2109 = vst [vmem:[#allocation2 + $0x1f8] sm:$0xff] %v2045_v23  ;;  %v1825_v23 = vadd.f32 %v4312_v12, %v4216_v28 }
 0x2b3   : > { %v1983_v6 = vpop.f32.mrf.mxu3 }
 0x2b4   : > { %v1984_v7 = vadd.f32 %v1983_v6, %v1815_v4 }
 0x2b5   : > { %v1943_v38 = vpop.f32.mrf.mxu2  ;;  %v1607_v10 = vpop.f32.mrf.mxu0 }
 0x2b6   : > { %v1944_v9 = vadd.f32 %v1943_v38, %v1775_v2  ;;  %v2062_v11 = vadd.f32 %v1984_v7, %v659_v5  ;;  %v1776_v18 = vpop.f32.mrf.mxu1  ;;  %v663_v2 = vld [vmem:[#allocation2 + $0xc0] sm:$0xff] }
 0x2b7   : > { %v1777_v36 = vadd.f32 %v1776_v18, %v1607_v10  ;;  %v1827_v10 = vadd.f32 %v4322_v42, %v4226_v46  ;;  %v664_v18 = vld [vmem:[#allocation2 + $0x1c0] sm:$0xff]  ;;  %v649_v46 = vld [vmem:[#allocation2 + $0x70] sm:$0xff] }
 0x2b8   : > { %v2046_v19 = vadd.f32 %v1944_v9, %v643_v17  ;;  %2126 = vst [vmem:[#allocation2 + $0x68] sm:$0xff] %v2062_v11 }
 0x2ba   : > { %2110 = vst [vmem:[#allocation2 + $0x20] sm:$0xff] %v2046_v19 }
 0x2bb   : > { %v1985_v21 = vpop.f32.mrf.mxu3 }
 0x2bc   : > { %v1986_v55 = vadd.f32 %v1985_v21, %v1817_v20  ;;  %v648_v20 = vld [vmem:[#allocation2 + $0x78] sm:$0xff] }
 0x2bd   : > { %v1945_v30 = vpop.f32.mrf.mxu2  ;;  %v1610_v27 = vpop.f32.mrf.mxu0 }
 0x2be   : > { %v1946_v26 = vadd.f32 %v1945_v30, %v1777_v36  ;;  %v2063_v29 = vadd.f32 %v1986_v55, %v660_v40  ;;  %v1779_v31 = vpop.f32.mrf.mxu1 }
 0x2bf   : > { %v1780_v35 = vadd.f32 %v1779_v31, %v1610_v27  ;;  %v665_v27 = vld [vmem:[#allocation2 + $0x158] sm:$0xff] }
 0x2c0   : > { %v2047_v33 = vadd.f32 %v1946_v26, %v644_v22  ;;  %2127 = vst [vmem:[#allocation2 + $0x190] sm:$0xff] %v2063_v29  ;;  %v1830_v26 = vadd.f32 %v4324_v63, %v4228_v61 }
 0x2c2   : > { %2111 = vst [vmem:[#allocation2 + $0x128] sm:$0xff] %v2047_v33 }
 0x2c3   : > { %v1988_v62 = vpop.f32.mrf.mxu3 }
 0x2c4   : > { %v1989_v39 = vadd.f32 %v1988_v62, %v1820_v37 }
 0x2c5   : > { %v1948_v15 = vpop.f32.mrf.mxu2  ;;  %v1612_v43 = vpop.f32.mrf.mxu0 }
 0x2c6   : > { %v1949_v41 = vadd.f32 %v1948_v15, %v1780_v35  ;;  %v2064_v8 = vadd.f32 %v1989_v39, %v661_v52  ;;  %v1781_v3 = vpop.f32.mrf.mxu1  ;;  %v666_v39 = vld [vmem:[#allocation2 + $0x10] sm:$0xff] }
 0x2c7   : > { %v1782_v49 = vadd.f32 %v1781_v3, %v1612_v43  ;;  %v650_v43 = vld [vmem:[#allocation2 + $0x90] sm:$0xff] }
 0x2c8   : > { %v2048_v44 = vadd.f32 %v1949_v41, %v645_v47  ;;  %2128 = vst [vmem:[#allocation2 + $0x198] sm:$0xff] %v2064_v8  ;;  %v1832_v47 = vadd.f32 %v4334_v24, %v4238_v16  ;;  %v651_v16 = vld [vmem:[#allocation2 + $0x1d8] sm:$0xff] }
 0x2ca   : > { %2112 = vst [vmem:[#allocation2 + $0x1a0] sm:$0xff] %v2048_v44 }
 0x2cb   : > { %v1990_v53 = vpop.f32.mrf.mxu3 }
 0x2cc   : > { %v1991_v34 = vadd.f32 %v1990_v53, %v1822_v45  ;;  %v1835_v53 = vadd.f32 %v4336_v48, %v4240_v32 }
 0x2cd   : > { %v1950_v60 = vpop.f32.mrf.mxu2  ;;  %v1615_v13 = vpop.f32.mrf.mxu0 }
 0x2ce   : > { %v1951_v0 = vadd.f32 %v1950_v60, %v1782_v49  ;;  %v2065_v56 = vadd.f32 %v1991_v34, %v662_v50  ;;  %v1784_v57 = vpop.f32.mrf.mxu1 }
 0x2cf   : > { %v1785_v25 = vadd.f32 %v1784_v57, %v1615_v13 }
 0x2d0   : > { %v2049_v59 = vadd.f32 %v1951_v0, %v646_v54  ;;  %2129 = vst [vmem:[#allocation2 + $0x38] sm:$0xff] %v2065_v56  ;;  %v667_v54 = vld [vmem:[#allocation2 + $0x58] sm:$0xff] }
 0x2d2   : > { %2113 = vst [vmem:[#allocation2 + $0x1f0] sm:$0xff] %v2049_v59 }
 0x2d3   : > { %v1993_v4 = vpop.f32.mrf.mxu3 }
 0x2d4   : > { %v1994_v5 = vadd.f32 %v1993_v4, %v1825_v23 }
 0x2d5   : > { %v1953_v58 = vpop.f32.mrf.mxu2  ;;  %v1617_v17 = vpop.f32.mrf.mxu0 }
 0x2d6   : > { %v1954_v6 = vadd.f32 %v1953_v58, %v1785_v25  ;;  %v2066_v38 = vadd.f32 %v1994_v5, %v663_v2  ;;  %v1786_v7 = vpop.f32.mrf.mxu1  ;;  %v1837_v25 = vadd.f32 %v4338_v1, %v4250_v51  ;;  %v668_v2 = vld [vmem:[#allocation2 + $0xa0] sm:$0xff] }
 0x2d7   : > { %v1787_v11 = vadd.f32 %v1786_v7, %v1617_v17 }
 0x2d8   : > { %v2050_v9 = vadd.f32 %v1954_v6, %v647_v14  ;;  %2130 = vst [vmem:[#allocation2 + $0xc0] sm:$0xff] %v2066_v38  ;;  %v652_v14 = vld [vmem:[#allocation2 + $0xd0] sm:$0xff] }
 0x2da   : > { %2114 = vst [vmem:[#allocation2 + $0xe8] sm:$0xff] %v2050_v9 }
 0x2db   : > { %v1995_v19 = vpop.f32.mrf.mxu3 }
 0x2dc   : > { %v1996_v12 = vadd.f32 %v1995_v19, %v1827_v10 }
 0x2dd   : > { %v1955_v28 = vpop.f32.mrf.mxu2  ;;  %v1620_v40 = vpop.f32.mrf.mxu0 }
 0x2de   : > { %v1956_v36 = vadd.f32 %v1955_v28, %v1787_v11  ;;  %v2067_v21 = vadd.f32 %v1996_v12, %v664_v18  ;;  %v1789_v22 = vpop.f32.mrf.mxu1 }
 0x2df   : > { %v1790_v55 = vadd.f32 %v1789_v22, %v1620_v40 }
 0x2e0   : > { %v2051_v30 = vadd.f32 %v1956_v36, %v648_v20  ;;  %2131 = vst [vmem:[#allocation2 + $0x1c0] sm:$0xff] %v2067_v21 }
 0x2e2   : > { %2115 = vst [vmem:[#allocation2 + $0x78] sm:$0xff] %v2051_v30 }
 0x2e3   : > { %v1998_v29 = vpop.f32.mrf.mxu3 }
 0x2e4   : > { %v1999_v31 = vadd.f32 %v1998_v29, %v1830_v26 }
 0x2e5   : > { %v1958_v42 = vpop.f32.mrf.mxu2  ;;  %v1622_v35 = vpop.f32.mrf.mxu0 }
 0x2e6   : > { %v1959_v33 = vadd.f32 %v1958_v42, %v1790_v55  ;;  %v2068_v37 = vadd.f32 %v1999_v31, %v665_v27  ;;  %v1791_v52 = vpop.f32.mrf.mxu1 }
 0x2e7   : > { %v1792_v15 = vadd.f32 %v1791_v52, %v1622_v35 }
 0x2e8   : > { %v2052_v62 = vadd.f32 %v1959_v33, %v649_v46  ;;  %2132 = vst [vmem:[#allocation2 + $0x158] sm:$0xff] %v2068_v37 }
 0x2ea   : > { %2116 = vst [vmem:[#allocation2 + $0x70] sm:$0xff] %v2052_v62 }
 0x2eb   : > { %v2000_v41 = vpop.f32.mrf.mxu3 }
 0x2ec   : > { %v2001_v63 = vadd.f32 %v2000_v41, %v1832_v47 }
 0x2ed   : > { %v1960_v61 = vpop.f32.mrf.mxu2  ;;  %v1625_v44 = vpop.f32.mrf.mxu0 }
 0x2ee   : > { %v1961_v8 = vadd.f32 %v1960_v61, %v1792_v15  ;;  %v2069_v3 = vadd.f32 %v2001_v63, %v666_v39  ;;  %v1794_v45 = vpop.f32.mrf.mxu1 }
 0x2ef   : > { %v1795_v50 = vadd.f32 %v1794_v45, %v1625_v44 }
 0x2f0   : > { %v2053_v49 = vadd.f32 %v1961_v8, %v650_v43  ;;  %2133 = vst [vmem:[#allocation2 + $0x10] sm:$0xff] %v2069_v3 }
 0x2f2   : > { %2117 = vst [vmem:[#allocation2 + $0x90] sm:$0xff] %v2053_v49 }
 0x2f3   : > { %v2003_v60 = vpop.f32.mrf.mxu3 }
 0x2f4   : > { %v2004_v34 = vadd.f32 %v2003_v60, %v1835_v53 }
 0x2f5   : > { %v1963_v24 = vpop.f32.mrf.mxu2  ;;  %v1627_v57 = vpop.f32.mrf.mxu0 }
 0x2f6   : > { %v1964_v0 = vadd.f32 %v1963_v24, %v1795_v50  ;;  %v2070_v13 = vadd.f32 %v2004_v34, %v667_v54  ;;  %v1796_v59 = vpop.f32.mrf.mxu1 }
 0x2f7   : > { %v1797_v23 = vadd.f32 %v1796_v59, %v1627_v57 }
 0x2f8   : > { %v2054_v56 = vadd.f32 %v1964_v0, %v651_v16  ;;  %2134 = vst [vmem:[#allocation2 + $0x58] sm:$0xff] %v2070_v13 }
 0x2fa   : > { %2118 = vst [vmem:[#allocation2 + $0x1d8] sm:$0xff] %v2054_v56 }
 0x2fb   : > { %v2005_v4 = vpop.f32.mrf.mxu3 }
 0x2fc   : > { %v2006_v48 = vadd.f32 %v2005_v4, %v1837_v25 }
 0x2fd   : > { %v1965_v32 = vpop.f32.mrf.mxu2 }
 0x2fe   : > { %v1966_v58 = vadd.f32 %v1965_v32, %v1797_v23  ;;  %v2071_v5 = vadd.f32 %v2006_v48, %v668_v2  ;;  %2139 = sbr.rel (%p3195_p11) target bundleno = 817 (0x331), region = 66 }
 0x300   : > { %v2055_v6 = vadd.f32 %v1966_v58, %v652_v14  ;;  %2135 = vst [vmem:[#allocation2 + $0xa0] sm:$0xff] %v2071_v5 }
 0x302   : > { %2119 = vst [vmem:[#allocation2 + $0xd0] sm:$0xff] %v2055_v6 }
 0x303   : > { %v2140_v17 = vld [vmem:[#allocation2 + $0xb0] sm:$0xff]  ;;  %v4376_v51 = vld [vmem:[%s4555_s2] ss:$0 sm:$0xff]  ;;  %v2142_v1 = vld [vmem:[#allocation2 + $0xd8] sm:$0xff] }
 0x304   : > { %v2141_v38 = vld [vmem:[#allocation2 + $0x1b0] sm:$0xff]  ;;  %v2143_v7 = vld [vmem:[#allocation2 + $0x18] sm:$0xff]  ;;  %v2145_v10 = vld [vmem:[#allocation2 + $0x168] sm:$0xff]  ;;  %v2208_v18 = vadd.f32 %v4376_v51, %v2140_v17  ;;  %v2210_v20 = vadd.f32 %v4376_v51, %v2142_v1 }
 0x305   : > { %v2144_v9 = vld [vmem:[#allocation2 + $0x50] sm:$0xff]  ;;  %v2209_v19 = vadd.f32 %v4376_v51, %v2141_v38  ;;  %v2211_v28 = vadd.f32 %v4376_v51, %v2143_v7  ;;  %v2147_v12 = vld [vmem:[#allocation2 + $0x48] sm:$0xff]  ;;  %v2213_v40 = vadd.f32 %v4376_v51, %v2145_v10  ;;  %v2148_v30 = vld [vmem:[#allocation2 + $0x180] sm:$0xff] }
 0x306   : > { %v2146_v11 = vld [vmem:[#allocation2 + $0x130] sm:$0xff]  ;;  %v2212_v36 = vadd.f32 %v4376_v51, %v2144_v9  ;;  %v2215_v22 = vadd.f32 %v4376_v51, %v2147_v12  ;;  %v2272_v26 = vmax.f32 %v2208_v18, 0.0  ;;  %v2274_v29 = vmax.f32 %v2210_v20, 0.0  ;;  %v2150_v42 = vld [vmem:[#allocation2 + $0x118] sm:$0xff]  ;;  %v2152_v62 = vld [vmem:[#allocation2 + $0x120] sm:$0xff] }
 0x307   : > { %v2214_v21 = vadd.f32 %v4376_v51, %v2146_v11  ;;  %v2149_v55 = vld [vmem:[#allocation2 + $0x110] sm:$0xff]  ;;  %v2273_v27 = vmax.f32 %v2209_v19, 0.0  ;;  %v2275_v46 = vmax.f32 %v2211_v28, 0.0  ;;  %v2151_v31 = vld [vmem:[#allocation2 + $0x98] sm:$0xff]  ;;  %v2277_v35 = vmax.f32 %v2213_v40, 0.0  ;;  %v2154_v61 = vld [vmem:[#allocation2 + $0x108] sm:$0xff] }
 0x308   : > { %v2276_v33 = vmax.f32 %v2212_v36, 0.0  ;;  %v2279_v52 = vmax.f32 %v2215_v22, 0.0  ;;  %v2153_v47 = vld [vmem:[#allocation2 + $0x150] sm:$0xff]  ;;  %v2216_v41 = vadd.f32 %v4376_v51, %v2148_v30  ;;  %v2217_v43 = vadd.f32 %v4376_v51, %v2149_v55  ;;  %v2155_v63 = vld [vmem:[#allocation2 + $0x60] sm:$0xff]  ;;  %v2157_v16 = vld [vmem:[#allocation2 + $0x188] sm:$0xff] }
 0x309   : > { %v2278_v37 = vmax.f32 %v2214_v21, 0.0  ;;  %v3324_v15 = vpack.c.bf16 %v2273_v27, %v2272_v26  ;;  %v3329_v39 = vpack.c.bf16 %v2275_v46, %v2274_v29  ;;  %v2218_v44 = vadd.f32 %v4376_v51, %v2150_v42  ;;  %v2156_v49 = vld [vmem:[#allocation2 + $0xe0] sm:$0xff]  ;;  %v2158_v56 = vld [vmem:[#allocation2 + $0x138] sm:$0xff]  ;;  %v2161_v14 = vld [vmem:[#allocation2 + $0x1a8] sm:$0xff] }
 0x30a   : > { %v3334_v8 = vpack.c.bf16 %v2277_v35, %v2276_v33  ;;  %v2219_v45 = vadd.f32 %v4376_v51, %v2151_v31  ;;  %v2280_v50 = vmax.f32 %v2216_v41, 0.0  ;;  %v2281_v53 = vmax.f32 %v2217_v43, 0.0  ;;  %v2159_v57 = vld [vmem:[#allocation2 + $0x140] sm:$0xff]  ;;  %v2162_v6 = vld [vmem:[#allocation2 + $0x1b8] sm:$0xff]  ;;  %v2163_v17 = vld [vmem:[#allocation2 + $0x28] sm:$0xff] }
 0x30b   : > { %v3339_v3 = vpack.c.bf16 %v2279_v52, %v2278_v37  ;;  %3325 = vst [vmem:[%s4556_s3] sm:$0xff] %v3324_v15   ;;  %v2220_v54 = vadd.f32 %v4376_v51, %v2152_v62  ;;  %v2221_v60 = vadd.f32 %v4376_v51, %v2153_v47  ;;  %v2282_v24 = vmax.f32 %v2218_v44, 0.0  ;;  %v2160_v4 = vld [vmem:[#allocation2 + $0x80] sm:$0xff]  ;;  %v2164_v10 = vld [vmem:[#allocation2 + $0x1e8] sm:$0xff]  ;;  %v2165_v28 = vld [vmem:[#allocation2 + $0xf8] sm:$0xff] }
 0x30c   : > { %3481 = vst [vmem:[%s4556_s3 + $0x8] sm:$0xff] %v3329_v39   ;;  %v2283_v34 = vmax.f32 %v2219_v45, 0.0  ;;  %v2222_v0 = vadd.f32 %v4376_v51, %v2154_v61  ;;  %v2223_v13 = vadd.f32 %v4376_v51, %v2155_v63  ;;  %v3344_v59 = vpack.c.bf16 %v2281_v53, %v2280_v50  ;;  %v2166_v22 = vld [vmem:[#allocation2 + $0x160] sm:$0xff]  ;;  %v2167_v30 = vld [vmem:[#allocation2 + $0x30] sm:$0xff]  ;;  %v2171_v62 = vld [vmem:[#allocation2 + $0x8] sm:$0xff] }
 0x30d   : > { %3482 = vst [vmem:[%s4556_s3 + $0x10] sm:$0xff] %v3334_v8   ;;  %v2284_v25 = vmax.f32 %v2220_v54, 0.0  ;;  %v2285_v23 = vmax.f32 %v2221_v60, 0.0  ;;  %v2224_v2 = vadd.f32 %v4376_v51, %v2156_v49  ;;  %v2225_v5 = vadd.f32 %v4376_v51, %v2157_v16  ;;  %v2168_v46 = vld [vmem:[#allocation2 + $0x1e0] sm:$0xff]  ;;  %v2170_v52 = vld [vmem:[#allocation2 + $0xf0] sm:$0xff]  ;;  %v2172_v43 = vld [vmem:[#allocation2 + $0x148] sm:$0xff] }
 0x30e   : > { %3483 = vst [vmem:[%s4556_s3 + $0x18] sm:$0xff] %v3339_v3   ;;  %v3349_v32 = vpack.c.bf16 %v2283_v34, %v2282_v24  ;;  %v2286_v48 = vmax.f32 %v2222_v0, 0.0  ;;  %v2287_v58 = vmax.f32 %v2223_v13, 0.0  ;;  %v2226_v7 = vadd.f32 %v4376_v51, %v2158_v56  ;;  %v2169_v42 = vld [vmem:[#allocation2] sm:$0xff]  ;;  %v2173_v44 = vld [vmem:[#allocation2 + $0x1d0] sm:$0xff]  ;;  %v2175_v60 = vld [vmem:[#allocation2 + $0xc8] sm:$0xff] }
 0x30f   : > { %3484 = vst [vmem:[%s4556_s3 + $0x20] sm:$0xff] %v3344_v59   ;;  %v3354_v38 = vpack.c.bf16 %v2285_v23, %v2284_v25  ;;  %v2288_v1 = vmax.f32 %v2224_v2, 0.0  ;;  %v2227_v9 = vadd.f32 %v4376_v51, %v2159_v57  ;;  %v2289_v18 = vmax.f32 %v2225_v5, 0.0  ;;  %v2174_v54 = vld [vmem:[#allocation2 + $0x100] sm:$0xff]  ;;  %v2177_v56 = vld [vmem:[#allocation2 + $0x1f8] sm:$0xff] }
 0x310   : > { %3485 = vst [vmem:[%s4556_s3 + $0x28] sm:$0xff] %v3349_v32   ;;  %v3359_v11 = vpack.c.bf16 %v2287_v58, %v2286_v48  ;;  %v2228_v19 = vadd.f32 %v4376_v51, %v2160_v4  ;;  %v2229_v20 = vadd.f32 %v4376_v51, %v2161_v14  ;;  %v2290_v12 = vmax.f32 %v2226_v7, 0.0  ;;  %v2176_v13 = vld [vmem:[#allocation2 + $0x40] sm:$0xff]  ;;  %v2179_v4 = vld [vmem:[#allocation2 + $0x128] sm:$0xff]  ;;  %v2181_v7 = vld [vmem:[#allocation2 + $0x1f0] sm:$0xff] }
 0x311   : > { %3486 = vst [vmem:[%s4556_s3 + $0x30] sm:$0xff] %v3354_v38   ;;  %v2291_v36 = vmax.f32 %v2227_v9, 0.0  ;;  %v2230_v40 = vadd.f32 %v4376_v51, %v2162_v6  ;;  %v2231_v21 = vadd.f32 %v4376_v51, %v2163_v17  ;;  %v3364_v55 = vpack.c.bf16 %v2289_v18, %v2288_v1  ;;  %v2178_v2 = vld [vmem:[#allocation2 + $0x20] sm:$0xff] }
 0x312   : > { %3487 = vst [vmem:[%s4556_s3 + $0x38] sm:$0xff] %v3359_v11   ;;  %v2292_v26 = vmax.f32 %v2228_v19, 0.0  ;;  %v2293_v27 = vmax.f32 %v2229_v20, 0.0  ;;  %v2232_v29 = vadd.f32 %v4376_v51, %v2164_v10  ;;  %v2233_v37 = vadd.f32 %v4376_v51, %v2165_v28  ;;  %v2180_v5 = vld [vmem:[#allocation2 + $0x1a0] sm:$0xff]  ;;  %v2182_v19 = vld [vmem:[#allocation2 + $0xe8] sm:$0xff]  ;;  %v2183_v20 = vld [vmem:[#allocation2 + $0x78] sm:$0xff] }
 0x313   : > { %v3369_v31 = vpack.c.bf16 %v2291_v36, %v2290_v12  ;;  %v2294_v33 = vmax.f32 %v2230_v40, 0.0  ;;  %v2295_v35 = vmax.f32 %v2231_v21, 0.0  ;;  %3488 = vst [vmem:[%s4556_s3 + $0x40] sm:$0xff] %v3364_v55   ;;  %v2234_v39 = vadd.f32 %v4376_v51, %v2166_v22  ;;  %v2184_v21 = vld [vmem:[#allocation2 + $0x70] sm:$0xff] }
 0x314   : > { %v3374_v47 = vpack.c.bf16 %v2293_v27, %v2292_v26  ;;  %v2296_v15 = vmax.f32 %v2232_v29, 0.0  ;;  %v2235_v41 = vadd.f32 %v4376_v51, %v2167_v30  ;;  %v2297_v63 = vmax.f32 %v2233_v37, 0.0  ;;  %v2185_v22 = vld [vmem:[#allocation2 + $0x90] sm:$0xff]  ;;  %v2186_v29 = vld [vmem:[#allocation2 + $0x1d8] sm:$0xff] }
 0x315   : > { %3489 = vst [vmem:[%s4556_s3 + $0x48] sm:$0xff] %v3369_v31   ;;  %v3379_v61 = vpack.c.bf16 %v2295_v35, %v2294_v33  ;;  %v2236_v8 = vadd.f32 %v4376_v51, %v2168_v46  ;;  %v2237_v3 = vadd.f32 %v4376_v51, %v2169_v42  ;;  %v2298_v45 = vmax.f32 %v2234_v39, 0.0  ;;  %v2187_v46 = vld [vmem:[#allocation2 + $0xd0] sm:$0xff]  ;;  %v2188_v37 = vld [vmem:[#allocation2 + $0xb8] sm:$0xff]  ;;  %v2189_v39 = vld [vmem:[#allocation2 + $0x88] sm:$0xff] }
 0x316   : > { %3490 = vst [vmem:[%s4556_s3 + $0x50] sm:$0xff] %v3374_v47   ;;  %v2299_v49 = vmax.f32 %v2235_v41, 0.0  ;;  %v2238_v50 = vadd.f32 %v4376_v51, %v2170_v52  ;;  %v2239_v53 = vadd.f32 %v4376_v51, %v2171_v62  ;;  %v3384_v16 = vpack.c.bf16 %v2297_v63, %v2296_v15 }
 0x317   : > { %3491 = vst [vmem:[%s4556_s3 + $0x58] sm:$0xff] %v3379_v61   ;;  %v2300_v24 = vmax.f32 %v2236_v8, 0.0  ;;  %v2301_v34 = vmax.f32 %v2237_v3, 0.0  ;;  %v2240_v0 = vadd.f32 %v4376_v51, %v2172_v43  ;;  %v2241_v23 = vadd.f32 %v4376_v51, %v2173_v44  ;;  %v2190_v8 = vld [vmem:[#allocation2 + $0xa8] sm:$0xff] }
 0x318   : > { %v3389_v57 = vpack.c.bf16 %v2299_v49, %v2298_v45  ;;  %v2302_v59 = vmax.f32 %v2238_v50, 0.0  ;;  %v2303_v25 = vmax.f32 %v2239_v53, 0.0  ;;  %3492 = vst [vmem:[%s4556_s3 + $0x60] sm:$0xff] %v3384_v16   ;;  %v2242_v48 = vadd.f32 %v4376_v51, %v2174_v54  ;;  %v2191_v3 = vld [vmem:[#allocation2 + $0x1c8] sm:$0xff]  ;;  %v2192_v53 = vld [vmem:[#allocation2 + $0x170] sm:$0xff]  ;;  %v2193_v54 = vld [vmem:[#allocation2 + $0x178] sm:$0xff] }
 0x319   : > { %v3394_v14 = vpack.c.bf16 %v2301_v34, %v2300_v24  ;;  %v2304_v32 = vmax.f32 %v2240_v0, 0.0  ;;  %v2243_v58 = vadd.f32 %v4376_v51, %v2175_v60  ;;  %v2305_v17 = vmax.f32 %v2241_v23, 0.0  ;;  %v2194_v0 = vld [vmem:[#allocation2 + $0x68] sm:$0xff]  ;;  %v2196_v23 = vld [vmem:[#allocation2 + $0x198] sm:$0xff] }
 0x31a   : > { %3493 = vst [vmem:[%s4556_s3 + $0x68] sm:$0xff] %v3389_v57   ;;  %v3399_v6 = vpack.c.bf16 %v2303_v25, %v2302_v59  ;;  %v2244_v38 = vadd.f32 %v4376_v51, %v2176_v13  ;;  %v2245_v1 = vadd.f32 %v4376_v51, %v2177_v56  ;;  %v2306_v9 = vmax.f32 %v2242_v48, 0.0  ;;  %v2195_v13 = vld [vmem:[#allocation2 + $0x190] sm:$0xff]  ;;  %v2197_v48 = vld [vmem:[#allocation2 + $0x38] sm:$0xff] }
 0x31b   : > { %3494 = vst [vmem:[%s4556_s3 + $0x70] sm:$0xff] %v3394_v14   ;;  %v2307_v10 = vmax.f32 %v2243_v58, 0.0  ;;  %v2246_v11 = vadd.f32 %v4376_v51, %v2178_v2  ;;  %v2247_v18 = vadd.f32 %v4376_v51, %v2179_v4  ;;  %v3404_v28 = vpack.c.bf16 %v2305_v17, %v2304_v32 }
 0x31c   : > { %3495 = vst [vmem:[%s4556_s3 + $0x78] sm:$0xff] %v3399_v6   ;;  %v2308_v12 = vmax.f32 %v2244_v38, 0.0  ;;  %v2309_v36 = vmax.f32 %v2245_v1, 0.0  ;;  %v2248_v40 = vadd.f32 %v4376_v51, %v2180_v5  ;;  %v2249_v27 = vadd.f32 %v4376_v51, %v2181_v7  ;;  %v2198_v38 = vld [vmem:[#allocation2 + $0xc0] sm:$0xff] }
 0x31d   : > { %v3409_v30 = vpack.c.bf16 %v2307_v10, %v2306_v9  ;;  %v2310_v55 = vmax.f32 %v2246_v11, 0.0  ;;  %v2311_v26 = vmax.f32 %v2247_v18, 0.0  ;;  %3496 = vst [vmem:[%s4556_s3 + $0x80] sm:$0xff] %v3404_v28   ;;  %v2250_v33 = vadd.f32 %v4376_v51, %v2182_v19  ;;  %v2199_v1 = vld [vmem:[#allocation2 + $0x1c0] sm:$0xff]  ;;  %v2200_v18 = vld [vmem:[#allocation2 + $0x158] sm:$0xff]  ;;  %v2201_v19 = vld [vmem:[#allocation2 + $0x10] sm:$0xff] }
 0x31e   : > { %v3414_v42 = vpack.c.bf16 %v2309_v36, %v2308_v12  ;;  %v2312_v31 = vmax.f32 %v2248_v40, 0.0  ;;  %v2251_v35 = vadd.f32 %v4376_v51, %v2183_v20  ;;  %v2313_v62 = vmax.f32 %v2249_v27, 0.0  ;;  %v2202_v40 = vld [vmem:[#allocation2 + $0x58] sm:$0xff] }
 0x31f   : > { %3497 = vst [vmem:[%s4556_s3 + $0x88] sm:$0xff] %v3409_v30   ;;  %v3419_v52 = vpack.c.bf16 %v2311_v26, %v2310_v55  ;;  %v2252_v47 = vadd.f32 %v4376_v51, %v2184_v21  ;;  %v2253_v15 = vadd.f32 %v4376_v51, %v2185_v22  ;;  %v2314_v41 = vmax.f32 %v2250_v33, 0.0  ;;  %v2203_v21 = vld [vmem:[#allocation2 + $0xa0] sm:$0xff] }
 0x320   : > { %3498 = vst [vmem:[%s4556_s3 + $0x90] sm:$0xff] %v3414_v42   ;;  %v2315_v43 = vmax.f32 %v2251_v35, 0.0  ;;  %v2254_v61 = vadd.f32 %v4376_v51, %v2186_v29  ;;  %v2255_v63 = vadd.f32 %v4376_v51, %v2187_v46  ;;  %v3424_v44 = vpack.c.bf16 %v2313_v62, %v2312_v31 }
 0x321   : > { %3499 = vst [vmem:[%s4556_s3 + $0x98] sm:$0xff] %v3419_v52   ;;  %v2316_v45 = vmax.f32 %v2252_v47, 0.0  ;;  %v2317_v49 = vmax.f32 %v2253_v15, 0.0  ;;  %v2256_v50 = vadd.f32 %v4376_v51, %v2188_v37  ;;  %v2257_v34 = vadd.f32 %v4376_v51, %v2189_v39 }
 0x322   : > { %v3429_v60 = vpack.c.bf16 %v2315_v43, %v2314_v41  ;;  %v2318_v16 = vmax.f32 %v2254_v61, 0.0  ;;  %v2319_v24 = vmax.f32 %v2255_v63, 0.0  ;;  %3500 = vst [vmem:[%s4556_s3 + $0xa0] sm:$0xff] %v3424_v44   ;;  %v2258_v59 = vadd.f32 %v4376_v51, %v2190_v8 }
 0x323   : > { %v3434_v56 = vpack.c.bf16 %v2317_v49, %v2316_v45  ;;  %v2320_v57 = vmax.f32 %v2256_v50, 0.0  ;;  %v2259_v25 = vadd.f32 %v4376_v51, %v2191_v3  ;;  %v2321_v4 = vmax.f32 %v2257_v34, 0.0 }
 0x324   : > { %3501 = vst [vmem:[%s4556_s3 + $0xa8] sm:$0xff] %v3429_v60   ;;  %v3439_v2 = vpack.c.bf16 %v2319_v24, %v2318_v16  ;;  %v2260_v14 = vadd.f32 %v4376_v51, %v2192_v53  ;;  %v2261_v32 = vadd.f32 %v4376_v51, %v2193_v54  ;;  %v2322_v58 = vmax.f32 %v2258_v59, 0.0 }
 0x325   : > { %3502 = vst [vmem:[%s4556_s3 + $0xb0] sm:$0xff] %v3434_v56   ;;  %v2323_v5 = vmax.f32 %v2259_v25, 0.0  ;;  %v2262_v6 = vadd.f32 %v4376_v51, %v2194_v0  ;;  %v2263_v17 = vadd.f32 %v4376_v51, %v2195_v13  ;;  %v3444_v7 = vpack.c.bf16 %v2321_v4, %v2320_v57 }
 0x326   : > { %3503 = vst [vmem:[%s4556_s3 + $0xb8] sm:$0xff] %v3439_v2   ;;  %v2324_v9 = vmax.f32 %v2260_v14, 0.0  ;;  %v2325_v10 = vmax.f32 %v2261_v32, 0.0  ;;  %v2264_v11 = vadd.f32 %v4376_v51, %v2196_v23  ;;  %v2265_v36 = vadd.f32 %v4376_v51, %v2197_v48 }
 0x327   : > { %v3449_v20 = vpack.c.bf16 %v2323_v5, %v2322_v58  ;;  %v2326_v28 = vmax.f32 %v2262_v6, 0.0  ;;  %v2327_v12 = vmax.f32 %v2263_v17, 0.0  ;;  %3504 = vst [vmem:[%s4556_s3 + $0xc0] sm:$0xff] %v3444_v7   ;;  %v2266_v55 = vadd.f32 %v4376_v51, %v2198_v38 }
 0x328   : > { %v3454_v22 = vpack.c.bf16 %v2325_v10, %v2324_v9  ;;  %v2328_v30 = vmax.f32 %v2264_v11, 0.0  ;;  %v2267_v26 = vadd.f32 %v4376_v51, %v2199_v1  ;;  %v2329_v29 = vmax.f32 %v2265_v36, 0.0 }
 0x329   : > { %3505 = vst [vmem:[%s4556_s3 + $0xc8] sm:$0xff] %v3449_v20   ;;  %v3459_v27 = vpack.c.bf16 %v2327_v12, %v2326_v28  ;;  %v2268_v46 = vadd.f32 %v4376_v51, %v2200_v18  ;;  %v2269_v42 = vadd.f32 %v4376_v51, %v2201_v19  ;;  %v2330_v31 = vmax.f32 %v2266_v55, 0.0 }
 0x32a   : > { %3506 = vst [vmem:[%s4556_s3 + $0xd0] sm:$0xff] %v3454_v22   ;;  %v2331_v33 = vmax.f32 %v2267_v26, 0.0  ;;  %v2270_v35 = vadd.f32 %v4376_v51, %v2202_v40  ;;  %v2271_v37 = vadd.f32 %v4376_v51, %v2203_v21  ;;  %v3464_v52 = vpack.c.bf16 %v2329_v29, %v2328_v30 }
 0x32b   : > { %3507 = vst [vmem:[%s4556_s3 + $0xd8] sm:$0xff] %v3459_v27   ;;  %v2332_v62 = vmax.f32 %v2268_v46, 0.0  ;;  %v2333_v47 = vmax.f32 %v2269_v42, 0.0 }
 0x32c   : > { %v3469_v15 = vpack.c.bf16 %v2331_v33, %v2330_v31  ;;  %v2334_v39 = vmax.f32 %v2270_v35, 0.0  ;;  %v2335_v41 = vmax.f32 %v2271_v37, 0.0  ;;  %3508 = vst [vmem:[%s4556_s3 + $0xe0] sm:$0xff] %v3464_v52  }
 0x32d   : > { %v3474_v43 = vpack.c.bf16 %v2333_v47, %v2332_v62 }
 0x32e   : > { %3509 = vst [vmem:[%s4556_s3 + $0xe8] sm:$0xff] %v3469_v15   ;;  %v3479_v51 = vpack.c.bf16 %v2335_v41, %v2334_v39 }
 0x32f   : > { %3510 = vst [vmem:[%s4556_s3 + $0xf0] sm:$0xff] %v3474_v43  }
 0x330   : > { %3511 = vst [vmem:[%s4556_s3 + $0xf8] sm:$0xff] %v3479_v51  }
 0x331 PF: > { %s13_s16 = sadd.s32 1, %s3618_s16   ;;  %s4557_s12 = smov %s3606_s13 }
 0x332   : > { %p10_p12 = scmp.ge.s32.totalorder %s13_s16, 5   ;;  %s4558_s13 = smov %s3676_s20 }
 0x333   : > { %s4559_s14 = smov %s3614_s15  ;;  %s4560_s15 = smov %s4562_s17 }
 0x334   :  { %12 = sbr.rel (!%p10_p12) target bundleno = 3 (0x3), region = 113 }

// kernel: allconv_forward.12
= control target key start
LH: loop header
LB: loop body
LE: loop exit
PB: predicated region body
PF: predicated region fallthrough
CT: control target
= control target key end

     0   :  { %s1577_s12 = smov 0   ;;  %s1579_s13 = smov 0   ;;  %s1867_s0 = inlined_call_operand.vmem [shape: bf16[128,1152], index: 0, kind: input, shape index: {}]   ;;  %s1868_s1 = inlined_call_operand.vmem [shape: bf16[1152,128], index: 1, kind: input, shape index: {}]   ;;  %s1869_s2 = inlined_call_operand.vmem [shape: f32[1,128], index: 2, kind: input, shape index: {}]   ;;  %s1870_s3 = inlined_call_operand.vmem [shape: bf16[128,128], index: 3, kind: output, shape index: {}]  }
   0x1   :  { %s1581_s14 = smov 0   ;;  %s1583_s15 = smov 0  }
   0x2   :  { %s1585_s16 = smov 0  }
   0x3 LB: > { %s25_s17 = sadd.s32 1, %s1550_s15  ;;  %p48_p1 = scmp.ne.s32.totalorder %s1542_s13, %s1538_s12  ;;  %s1554_s16 = sphi %s1585_s16, %s13_s16   ;;  %s1550_s15 = sphi %s1583_s15, %s1874_s15   ;;  %s1546_s14 = sphi %s1581_s14, %s1873_s14   ;;  %s1542_s13 = sphi %s1579_s13, %s1872_s13   ;;  %s1538_s12 = sphi %s1577_s12, %s1871_s12  }
   0x4   : > { %p26_p0 = scmp.ge.s32.totalorder %s25_s17, 3  ;;  %p49_p2 = scmp.eq.s32.totalorder %s1554_s16, 0 }
   0x5   : > { %s41_s19 = sadd.s32 1, %s1542_s13  ;;  %p1118_p5 = scmp.ge.s32.totalorder %s1554_s16, 3 }
   0x6   : > { %s1876_s17 = smov (%p26_p0, %s25_s17), 0  ;;  %p50_p3 = por %p49_p2, %p48_p1 }
   0x7   : > { %s37_s18 = ssub.s32 %s1550_s15, %s1876_s17  ;;  %162 = sbr.rel (%p1118_p5) target bundleno = 49 (0x31), region = 20 }
   0x8   : > { %p39_p4 = scmp.eq.s32.totalorder %s37_s18, 0 }
   0xa   : > { %s1612_s20 = scalar_select %p39_p4, %s1542_s13, %s41_s19  }
   0xc   : > { %165 = sbr.rel (!%p50_p3) target bundleno = 49 (0x31), region = 24  ;;  %s167_s21 = sand.u32 (%p50_p3), 1, %s1542_s13  }
   0xd   : > { %s1352_s22 = smul.u32 (%p50_p3), 12, %s1550_s15 }
   0xe   : > { %s1472_s23 = smul.u32 (%p50_p3), 192, %s167_s21 }
   0xf   : > { %s1620_s26 = scalar_lea.vmem (%p50_p3), %s1867_s0, %s1352_s22 }
  0x10   : > { %v190_v0 = vld [vmem:[%s1620_s26] sm:$0xff] (%p50_p3)  ;;  %v194_v2 = vld [vmem:[%s1620_s26 + $0x48] sm:$0xff] (%p50_p3)  ;;  %s1625_s27 = scalar_lea.vmem (%p50_p3), [#allocation3], %s1472_s23  ;;  %v198_v4 = vld [vmem:[%s1620_s26 + $0x90] sm:$0xff] (%p50_p3) }
  0x11   : > { %v192_v1 = vld [vmem:[%s1620_s26 + $0x24] sm:$0xff]  ;;  %191 = vst [vmem:[%s1625_s27] sm:$0xff] %v190_v0  ;;  %v196_v3 = vld [vmem:[%s1620_s26 + $0x6c] sm:$0xff]  ;;  %v200_v5 = vld [vmem:[%s1620_s26 + $0xb4] sm:$0xff] }
  0x12   : > { %193 = vst [vmem:[%s1625_s27 + $0xc] sm:$0xff] %v192_v1  ;;  %v202_v6 = vld [vmem:[%s1620_s26 + $0xd8] sm:$0xff]  ;;  %v206_v8 = vld [vmem:[%s1620_s26 + $0x120] sm:$0xff]  ;;  %v210_v10 = vld [vmem:[%s1620_s26 + $0x168] sm:$0xff] }
  0x13   : > { %195 = vst [vmem:[%s1625_s27 + $0x18] sm:$0xff] %v194_v2  ;;  %v204_v7 = vld [vmem:[%s1620_s26 + $0xfc] sm:$0xff]  ;;  %v208_v9 = vld [vmem:[%s1620_s26 + $0x144] sm:$0xff]  ;;  %v212_v11 = vld [vmem:[%s1620_s26 + $0x18c] sm:$0xff] }
  0x14   : > { %197 = vst [vmem:[%s1625_s27 + $0x24] sm:$0xff] %v196_v3  ;;  %v214_v12 = vld [vmem:[%s1620_s26 + $0x1b0] sm:$0xff]  ;;  %v218_v14 = vld [vmem:[%s1620_s26 + $0x1f8] sm:$0xff]  ;;  %v1120_v16 = vld [vmem:[%s1620_s26 + $0x8] sm:$0xf] }
  0x15   : > { %199 = vst [vmem:[%s1625_s27 + $0x30] sm:$0xff] %v198_v4  ;;  %v216_v13 = vld [vmem:[%s1620_s26 + $0x1d4] sm:$0xff]  ;;  %v220_v15 = vld [vmem:[%s1620_s26 + $0x21c] sm:$0xff]  ;;  %v1122_v17 = vld [vmem:[%s1620_s26 + $0x2c] sm:$0xf] }
  0x16   : > { %201 = vst [vmem:[%s1625_s27 + $0x3c] sm:$0xff] %v200_v5  ;;  %v1124_v18 = vld [vmem:[%s1620_s26 + $0x50] sm:$0xf]  ;;  %v1126_v19 = vld [vmem:[%s1620_s26 + $0x74] sm:$0xf] }
  0x17   : > { %203 = vst [vmem:[%s1625_s27 + $0x48] sm:$0xff] %v202_v6  ;;  %v1128_v20 = vld [vmem:[%s1620_s26 + $0x98] sm:$0xf]  ;;  %v1130_v21 = vld [vmem:[%s1620_s26 + $0xbc] sm:$0xf] }
  0x18   : > { %205 = vst [vmem:[%s1625_s27 + $0x54] sm:$0xff] %v204_v7  ;;  %v1132_v22 = vld [vmem:[%s1620_s26 + $0xe0] sm:$0xf]  ;;  %v1134_v23 = vld [vmem:[%s1620_s26 + $0x104] sm:$0xf] }
  0x19   : > { %207 = vst [vmem:[%s1625_s27 + $0x60] sm:$0xff] %v206_v8  ;;  %v1136_v24 = vld [vmem:[%s1620_s26 + $0x128] sm:$0xf]  ;;  %v1138_v25 = vld [vmem:[%s1620_s26 + $0x14c] sm:$0xf] }
  0x1a   : > { %209 = vst [vmem:[%s1625_s27 + $0x6c] sm:$0xff] %v208_v9  ;;  %v1140_v26 = vld [vmem:[%s1620_s26 + $0x170] sm:$0xf]  ;;  %v1142_v27 = vld [vmem:[%s1620_s26 + $0x194] sm:$0xf] }
  0x1b   : > { %211 = vst [vmem:[%s1625_s27 + $0x78] sm:$0xff] %v210_v10  ;;  %v1144_v28 = vld [vmem:[%s1620_s26 + $0x1b8] sm:$0xf]  ;;  %v1146_v29 = vld [vmem:[%s1620_s26 + $0x1dc] sm:$0xf] }
  0x1c   : > { %213 = vst [vmem:[%s1625_s27 + $0x84] sm:$0xff] %v212_v11  ;;  %v1148_v30 = vld [vmem:[%s1620_s26 + $0x200] sm:$0xf]  ;;  %v1150_v31 = vld [vmem:[%s1620_s26 + $0x224] sm:$0xf] }
  0x1d   : > { %215 = vst [vmem:[%s1625_s27 + $0x90] sm:$0xff] %v214_v12 }
  0x1e   : > { %217 = vst [vmem:[%s1625_s27 + $0x9c] sm:$0xff] %v216_v13 }
  0x1f   : > { %219 = vst [vmem:[%s1625_s27 + $0xa8] sm:$0xff] %v218_v14 }
  0x20   : > { %221 = vst [vmem:[%s1625_s27 + $0xb4] sm:$0xff] %v220_v15 }
  0x21   : > { %1121 = vst [vmem:[%s1625_s27 + $0x8] sm:$0xf] %v1120_v16 }
  0x22   : > { %1123 = vst [vmem:[%s1625_s27 + $0x14] sm:$0xf] %v1122_v17 }
  0x23   : > { %1125 = vst [vmem:[%s1625_s27 + $0x20] sm:$0xf] %v1124_v18 }
  0x24   : > { %1127 = vst [vmem:[%s1625_s27 + $0x2c] sm:$0xf] %v1126_v19 }
  0x25   : > { %1129 = vst [vmem:[%s1625_s27 + $0x38] sm:$0xf] %v1128_v20 }
  0x26   : > { %1131 = vst [vmem:[%s1625_s27 + $0x44] sm:$0xf] %v1130_v21 }
  0x27   : > { %1133 = vst [vmem:[%s1625_s27 + $0x50] sm:$0xf] %v1132_v22 }
  0x28   : > { %1135 = vst [vmem:[%s1625_s27 + $0x5c] sm:$0xf] %v1134_v23 }
  0x29   : > { %1137 = vst [vmem:[%s1625_s27 + $0x68] sm:$0xf] %v1136_v24 }
  0x2a   : > { %1139 = vst [vmem:[%s1625_s27 + $0x74] sm:$0xf] %v1138_v25 }
  0x2b   : > { %1141 = vst [vmem:[%s1625_s27 + $0x80] sm:$0xf] %v1140_v26 }
  0x2c   : > { %1143 = vst [vmem:[%s1625_s27 + $0x8c] sm:$0xf] %v1142_v27 }
  0x2d   : > { %1145 = vst [vmem:[%s1625_s27 + $0x98] sm:$0xf] %v1144_v28 }
  0x2e   : > { %1147 = vst [vmem:[%s1625_s27 + $0xa4] sm:$0xf] %v1146_v29 }
  0x2f   : > { %1149 = vst [vmem:[%s1625_s27 + $0xb0] sm:$0xf] %v1148_v30 }
  0x30   : > { %1151 = vst [vmem:[%s1625_s27 + $0xbc] sm:$0xf] %v1150_v31 }
  0x31 PF: > { %p1152_p6 = scmp.ge.s32.totalorder %s1554_s16, 1  ;;  %p278_p7 = scmp.lt.s32.totalorder %s1554_s16, 4 }
  0x33   : > { %p279_p8 = pnand %p1152_p6, %p278_p7 }
  0x34   : > { %s285_s28 = sand.u32 (!%p279_p8), 1, %s1538_s12   ;;  %s324_s29 = smul.u32 (!%p279_p8), 48, %s1546_s14 }
  0x35   : > { %282 = sbr.rel (%p279_p8) target bundleno = 355 (0x163), region = 54  ;;  %p1154_p10 = scmp.ne.s32.totalorder (!%p279_p8), %s1546_s14, 0 }
  0x36   : > { %s1473_s30 = smul.u32 (!%p279_p8), 192, %s285_s28  ;;  %p325_p9 = scmp.lt.s32.totalorder (!%p279_p8), %s324_s29, 143 }
  0x38   : > { %s1697_s8 = scalar_lea.vmem (!%p279_p8), [#allocation3], %s1473_s30 }
  0x3a   : > { %s1878_s29 = smov (!%p325_p9, %s324_s29), 143  ;;  %348 = sbr.rel (%p1154_p10) target bundleno = 80 (0x50), region = 62 }
  0x3b   : > { %s1153_s4 = sshll.u32 %s1878_s29, 2 }
  0x3c   : > { %s1695_s7 = scalar_lea.vmem %s1868_s1, %s1153_s4 }
  0x3f   : > { %v1556_v32 = vmov 0.0  }
  0x40   : > { %349 = vst [vmem:[#allocation2 + $0x30] sm:$0xff] %v1556_v32 }
  0x41   : > { %350 = vst [vmem:[#allocation2] sm:$0xff] %v1556_v32 }
  0x42   : > { %351 = vst [vmem:[#allocation2 + $0x58] sm:$0xff] %v1556_v32 }
  0x43   : > { %352 = vst [vmem:[#allocation2 + $0x18] sm:$0xff] %v1556_v32 }
  0x44   : > { %353 = vst [vmem:[#allocation2 + $0x50] sm:$0xff] %v1556_v32 }
  0x45   : > { %354 = vst [vmem:[#allocation2 + $0x68] sm:$0xff] %v1556_v32 }
  0x46   : > { %355 = vst [vmem:[#allocation2 + $0x8] sm:$0xff] %v1556_v32 }
  0x47   : > { %356 = vst [vmem:[#allocation2 + $0x48] sm:$0xff] %v1556_v32 }
  0x48   : > { %357 = vst [vmem:[#allocation2 + $0x40] sm:$0xff] %v1556_v32 }
  0x49   : > { %358 = vst [vmem:[#allocation2 + $0x20] sm:$0xff] %v1556_v32 }
  0x4a   : > { %359 = vst [vmem:[#allocation2 + $0x10] sm:$0xff] %v1556_v32 }
  0x4b   : > { %360 = vst [vmem:[#allocation2 + $0x38] sm:$0xff] %v1556_v32 }
  0x4c   : > { %361 = vst [vmem:[#allocation2 + $0x60] sm:$0xff] %v1556_v32 }
  0x4d   : > { %362 = vst [vmem:[#allocation2 + $0x70] sm:$0xff] %v1556_v32 }
  0x4e   : > { %363 = vst [vmem:[#allocation2 + $0x78] sm:$0xff] %v1556_v32 }
  0x4f   : > { %364 = vst [vmem:[#allocation2 + $0x28] sm:$0xff] %v1556_v32 }
  0x50 PF: > { %v1384_v33 = vld [vmem:[%s1695_s7 + $0x38] sm:$0xff]  ;;  %v1383_v36 = vld [vmem:[%s1695_s7 + $0x30] sm:$0xff]  ;;  %v1382_v39 = vld [vmem:[%s1695_s7 + $0x28] sm:$0xff]  ;;  %p1347_p11 = scmp.ne.s32.totalorder %s1546_s14, 2 }
  0x51   : > { %v1702_v34 = vld [vmem:[%s1695_s7 + $0x78] sm:$0xff]  ;;  %733 = vmatpush.bf16.msra.mxu0 %v1384_v33  ;;  %1448 = vmatpush.bf16.msra.mxu3 %v1384_v33  ;;  %v1711_v37 = vld [vmem:[%s1695_s7 + $0x70] sm:$0xff]  ;;  %v1390_v40 = vld [vmem:[%s1695_s7 + $0x68] sm:$0xff] }
  0x52   : > { %v1705_v35 = vld [vmem:[%s1695_s7 + $0xb8] sm:$0xff]  ;;  %782 = vmatpush.bf16.msra.mxu1 %v1702_v34  ;;  %v1714_v38 = vld [vmem:[%s1695_s7 + $0xb0] sm:$0xff]  ;;  %v1721_v41 = vld [vmem:[%s1695_s7 + $0xa8] sm:$0xff] }
  0x53   : > { %831 = vmatpush.bf16.msra.mxu2 %v1705_v35  ;;  %v1381_v42 = vld [vmem:[%s1695_s7 + $0x20] sm:$0xff]  ;;  %v1380_v45 = vld [vmem:[%s1695_s7 + $0x18] sm:$0xff]  ;;  %v1379_v48 = vld [vmem:[%s1695_s7 + $0x10] sm:$0xff] }
  0x54   : > { %v1389_v43 = vld [vmem:[%s1695_s7 + $0x60] sm:$0xff]  ;;  %v1388_v46 = vld [vmem:[%s1695_s7 + $0x58] sm:$0xff]  ;;  %v1387_v49 = vld [vmem:[%s1695_s7 + $0x50] sm:$0xff] }
  0x55   : > { %734 = vmatpush.bf16.msra.mxu0 %v1383_v36  ;;  %1449 = vmatpush.bf16.msra.mxu3 %v1383_v36  ;;  %v1727_v44 = vld [vmem:[%s1695_s7 + $0xa0] sm:$0xff]  ;;  %v1733_v47 = vld [vmem:[%s1695_s7 + $0x98] sm:$0xff]  ;;  %v1739_v50 = vld [vmem:[%s1695_s7 + $0x90] sm:$0xff] }
  0x56   : > { %783 = vmatpush.bf16.msra.mxu1 %v1711_v37  ;;  %v1378_v51 = vld [vmem:[%s1695_s7 + $0x8] sm:$0xff]  ;;  %v1377_v54 = vld [vmem:[%s1695_s7] sm:$0xff]  ;;  %v1229_v59 = vld [vmem:[%s1697_s8 + $0x90] sm:$0xf] }
  0x57   : > { %832 = vmatpush.bf16.msra.mxu2 %v1714_v38  ;;  %v1386_v52 = vld [vmem:[%s1695_s7 + $0x48] sm:$0xff]  ;;  %v1385_v55 = vld [vmem:[%s1695_s7 + $0x40] sm:$0xff]  ;;  %v1372_v60 = vld [vmem:[%s1697_s8 + $0x98] sm:$0xf0] }
  0x58   : > { %v1745_v53 = vld [vmem:[%s1695_s7 + $0x88] sm:$0xff]  ;;  %v1750_v56 = vld [vmem:[%s1695_s7 + $0x80] sm:$0xff]  ;;  %v1159_v62 = vld [vmem:[%s1697_s8 + $0xc] sm:$0xf0]  ;;  %v1230_v2 = vor.u32 %v1372_v60, %v1229_v59 }
  0x59   : > { %735 = vmatpush.bf16.msra.mxu0 %v1382_v39  ;;  %1450 = vmatpush.bf16.msra.mxu3 %v1382_v39  ;;  %v1157_v57 = vld [vmem:[%s1697_s8] sm:$0xf]  ;;  %v1354_v58 = vld [vmem:[%s1697_s8 + $0x8] sm:$0xf0]  ;;  %v1353_v61 = vld [vmem:[%s1697_s8 + $0x4] sm:$0xf] }
  0x5a   : > { %784 = vmatpush.bf16.msra.mxu1 %v1390_v40  ;;  %v1165_v63 = vld [vmem:[%s1697_s8 + $0x8] sm:$0xf]  ;;  %v1355_v0 = vld [vmem:[%s1697_s8 + $0x10] sm:$0xf0]  ;;  %v1158_v1 = vor.u32 %v1354_v58, %v1157_v57  ;;  %v1162_v3 = vor.u32 %v1353_v61, %v1159_v62  ;;  %v1169_v5 = vld [vmem:[%s1697_s8 + $0x18] sm:$0xf] }
  0x5b   : > { %833 = vmatpush.bf16.msra.mxu2 %v1721_v41  ;;  %v1166_v4 = vor.u32 %v1355_v0, %v1165_v63  ;;  %v1357_v6 = vld [vmem:[%s1697_s8 + $0x20] sm:$0xf0]  ;;  %v1241_v7 = vld [vmem:[%s1697_s8 + $0xa8] sm:$0xf]  ;;  %v1375_v8 = vld [vmem:[%s1697_s8 + $0xb0] sm:$0xf0] }
  0x5c   : > { %v1356_v9 = vld [vmem:[%s1697_s8 + $0x1c] sm:$0xf]  ;;  %v1171_v10 = vld [vmem:[%s1697_s8 + $0x24] sm:$0xf0]  ;;  %v1177_v11 = vld [vmem:[%s1697_s8 + $0x20] sm:$0xf]  ;;  %v1170_v13 = vor.u32 %v1357_v6, %v1169_v5  ;;  %v1242_v14 = vor.u32 %v1375_v8, %v1241_v7 }
  0x5d   : > { %736 = vmatpush.bf16.msra.mxu0 %v1381_v42  ;;  %1451 = vmatpush.bf16.msra.mxu3 %v1381_v42  ;;  %v1358_v12 = vld [vmem:[%s1697_s8 + $0x28] sm:$0xf0]  ;;  %v1174_v15 = vor.u32 %v1356_v9, %v1171_v10  ;;  %v1181_v17 = vld [vmem:[%s1697_s8 + $0x30] sm:$0xf]  ;;  %v1360_v18 = vld [vmem:[%s1697_s8 + $0x38] sm:$0xf0] }
  0x5e   : > { %785 = vmatpush.bf16.msra.mxu1 %v1389_v43  ;;  %v1178_v16 = vor.u32 %v1358_v12, %v1177_v11  ;;  %v1359_v19 = vld [vmem:[%s1697_s8 + $0x34] sm:$0xf]  ;;  %v1231_v21 = vld [vmem:[%s1697_s8 + $0x9c] sm:$0xf0]  ;;  %v1189_v23 = vld [vmem:[%s1697_s8 + $0x38] sm:$0xf]  ;;  %v1182_v25 = vor.u32 %v1360_v18, %v1181_v17 }
  0x5f   : > { %834 = vmatpush.bf16.msra.mxu2 %v1727_v44  ;;  %v1371_v20 = vld [vmem:[%s1697_s8 + $0x94] sm:$0xf]  ;;  %v1183_v22 = vld [vmem:[%s1697_s8 + $0x3c] sm:$0xf0]  ;;  %v1361_v24 = vld [vmem:[%s1697_s8 + $0x40] sm:$0xf0] }
  0x60   : > { %v1234_v26 = vor.u32 %v1371_v20, %v1231_v21  ;;  %v1186_v27 = vor.u32 %v1359_v19, %v1183_v22  ;;  %v1190_v28 = vor.u32 %v1361_v24, %v1189_v23  ;;  %v1193_v29 = vld [vmem:[%s1697_s8 + $0x48] sm:$0xf]  ;;  %v1363_v30 = vld [vmem:[%s1697_s8 + $0x50] sm:$0xf0]  ;;  %v1362_v31 = vld [vmem:[%s1697_s8 + $0x4c] sm:$0xf] }
  0x61   : > { %737 = vmatpush.bf16.msra.mxu0 %v1380_v45  ;;  %1452 = vmatpush.bf16.msra.mxu3 %v1380_v45  ;;  %v1374_v32 = vld [vmem:[%s1697_s8 + $0xac] sm:$0xf]  ;;  %v1243_v33 = vld [vmem:[%s1697_s8 + $0xb4] sm:$0xf0]  ;;  %v1364_v36 = vld [vmem:[%s1697_s8 + $0x58] sm:$0xf0] }
  0x62   : > { %786 = vmatpush.bf16.msra.mxu1 %v1388_v46  ;;  %v1246_v39 = vor.u32 %v1374_v32, %v1243_v33  ;;  %v1366_v42 = vld [vmem:[%s1697_s8 + $0x68] sm:$0xf0]  ;;  %v1373_v45 = vld [vmem:[%s1697_s8 + $0xa0] sm:$0xf0]  ;;  %v1249_v57 = vld [vmem:[%s1697_s8 + $0xb0] sm:$0xf] }
  0x63   : > { %835 = vmatpush.bf16.msra.mxu2 %v1733_v47  ;;  %v1219_v58 = vld [vmem:[%s1697_s8 + $0x84] sm:$0xf0]  ;;  %v1225_v59 = vld [vmem:[%s1697_s8 + $0x80] sm:$0xf]  ;;  %v1370_v60 = vld [vmem:[%s1697_s8 + $0x88] sm:$0xf0] }
  0x64   : > { %v1226_v0 = vor.u32 %v1370_v60, %v1225_v59  ;;  %v365_v5 = vld [vmem:[#allocation2 + $0x30] sm:$0xff]  ;;  %v367_v21 = vld [vmem:[#allocation2 + $0x58] sm:$0xff] }
  0x65   : > { %738 = vmatpush.bf16.msra.mxu0 %v1379_v48  ;;  %1453 = vmatpush.bf16.msra.mxu3 %v1379_v48  ;;  %v1367_v48 = vld [vmem:[%s1697_s8 + $0x70] sm:$0xf0] }
  0x66   : > { %787 = vmatpush.bf16.msra.mxu1 %v1387_v49 }
  0x67   : > { %836 = vmatpush.bf16.msra.mxu2 %v1739_v50 }
  0x69   : > { %739 = vmatpush.bf16.msra.mxu0 %v1378_v51  ;;  %1454 = vmatpush.bf16.msra.mxu3 %v1378_v51 }
  0x6a   : > { %788 = vmatpush.bf16.msra.mxu1 %v1386_v52 }
  0x6b   : > { %837 = vmatpush.bf16.msra.mxu2 %v1745_v53 }
  0x6d   : > { %740 = vmatpush.bf16.msra.mxu0 %v1377_v54  ;;  %1455 = vmatpush.bf16.msra.mxu3 %v1377_v54  ;;  %v1369_v54 = vld [vmem:[%s1697_s8 + $0x80] sm:$0xf0] }
  0x6e   : > { %789 = vmatpush.bf16.msra.mxu1 %v1385_v55 }
  0x6f   : > { %838 = vmatpush.bf16.msra.mxu2 %v1750_v56 }
  0x70   : > { %741 = vmatmul.bf16.vlgmr.msra.gmra.mxu0 %v1158_v1  ;;  %771 = vmatmul.bf16.vlgmr.msra.gmra.mxu3 %v1230_v2 }
  0x71   : > { %1456 = vmatpush.bf16.msrb.mxu3 %v1702_v34  ;;  %790 = vmatmul.bf16.vlgmr.msra.gmra.mxu1 %v1162_v3  ;;  %v1195_v34 = vld [vmem:[%s1697_s8 + $0x54] sm:$0xf0] }
  0x72   : > { %839 = vmatmul.bf16.vlgmr.msra.gmra.mxu2 %v1166_v4 }
  0x75   : > { %1457 = vmatpush.bf16.msrb.mxu3 %v1711_v37  ;;  %v1194_v37 = vor.u32 %v1363_v30, %v1193_v29  ;;  %v368_v29 = vld [vmem:[#allocation2 + $0x18] sm:$0xff] }
  0x79   : > { %1458 = vmatpush.bf16.msrb.mxu3 %v1390_v40 }
  0x7d   : > { %1459 = vmatpush.bf16.msrb.mxu3 %v1389_v43  ;;  %v1365_v43 = vld [vmem:[%s1697_s8 + $0x64] sm:$0xf] }
  0x80   : > { %746 = vmatmul.bf16.gmra.mxu0 %v1170_v13  ;;  %776 = vmatmul.bf16.gmra.mxu3 %v1242_v14  ;;  %v366_v13 = vld [vmem:[#allocation2] sm:$0xff] }
  0x81   : > { %1460 = vmatpush.bf16.msrb.mxu3 %v1388_v46  ;;  %795 = vmatmul.bf16.gmra.mxu1 %v1174_v15  ;;  %v1207_v46 = vld [vmem:[%s1697_s8 + $0x6c] sm:$0xf0] }
  0x82   : > { %844 = vmatmul.bf16.gmra.mxu2 %v1178_v16  ;;  %v1210_v51 = vor.u32 %v1365_v43, %v1207_v46 }
  0x85   : > { %1461 = vmatpush.bf16.msrb.mxu3 %v1387_v49 }
  0x89   : > { %1462 = vmatpush.bf16.msrb.mxu3 %v1386_v52 }
  0x8d   : > { %1463 = vmatpush.bf16.msrb.mxu3 %v1385_v55  ;;  %v1368_v55 = vld [vmem:[%s1697_s8 + $0x7c] sm:$0xf] }
  0x8e   : > { %v1222_v63 = vor.u32 %v1368_v55, %v1219_v58 }
  0x90   : > { %751 = vmatmul.bf16.gmra.mxu0 %v1182_v25  ;;  %820 = vmatmul.bf16.vlgmr.msrb.gmra.mxu3 %v1234_v26 }
  0x91   : > { %1464 = vmatpush.bf16.msra.mxu3 %v1705_v35  ;;  %800 = vmatmul.bf16.gmra.mxu1 %v1186_v27  ;;  %v1201_v35 = vld [vmem:[%s1697_s8 + $0x50] sm:$0xf] }
  0x92   : > { %849 = vmatmul.bf16.gmra.mxu2 %v1190_v28  ;;  %v1202_v40 = vor.u32 %v1364_v36, %v1201_v35 }
  0x95   : > { %1465 = vmatpush.bf16.msra.mxu3 %v1714_v38  ;;  %v1198_v38 = vor.u32 %v1362_v31, %v1195_v34 }
  0x99   : > { %1466 = vmatpush.bf16.msra.mxu3 %v1721_v41  ;;  %v1205_v41 = vld [vmem:[%s1697_s8 + $0x60] sm:$0xf] }
  0x9a   : > { %v1206_v49 = vor.u32 %v1366_v42, %v1205_v41 }
  0x9d   : > { %1467 = vmatpush.bf16.msra.mxu3 %v1727_v44  ;;  %v1237_v44 = vld [vmem:[%s1697_s8 + $0x98] sm:$0xf] }
  0xa0   : > { %756 = vmatmul.bf16.gmra.mxu0 %v1194_v37  ;;  %825 = vmatmul.bf16.gmra.mxu3 %v1246_v39  ;;  %v369_v37 = vld [vmem:[#allocation2 + $0x50] sm:$0xff] }
  0xa1   : > { %1468 = vmatpush.bf16.msra.mxu3 %v1733_v47  ;;  %805 = vmatmul.bf16.gmra.mxu1 %v1198_v38  ;;  %v1213_v47 = vld [vmem:[%s1697_s8 + $0x68] sm:$0xf] }
  0xa2   : > { %854 = vmatmul.bf16.gmra.mxu2 %v1202_v40  ;;  %v1214_v52 = vor.u32 %v1367_v48, %v1213_v47 }
  0xa5   : > { %1469 = vmatpush.bf16.msra.mxu3 %v1739_v50  ;;  %v1238_v50 = vor.u32 %v1373_v45, %v1237_v44  ;;  %v370_v45 = vld [vmem:[#allocation2 + $0x68] sm:$0xff] }
  0xa9   : > { %1470 = vmatpush.bf16.msra.mxu3 %v1745_v53  ;;  %v1217_v53 = vld [vmem:[%s1697_s8 + $0x78] sm:$0xf] }
  0xaa   : > { %v1218_v61 = vor.u32 %v1369_v54, %v1217_v53  ;;  %v371_v53 = vld [vmem:[#allocation2 + $0x8] sm:$0xff] }
  0xad   : > { %1471 = vmatpush.bf16.msra.mxu3 %v1750_v56  ;;  %v1376_v56 = vld [vmem:[%s1697_s8 + $0xb8] sm:$0xf0] }
  0xae   : > { %v1250_v62 = vor.u32 %v1376_v56, %v1249_v57 }
  0xb0   : > { %761 = vmatmul.bf16.gmra.mxu0 %v1206_v49  ;;  %869 = vmatmul.bf16.vlgmr.msra.gmra.mxu3 %v1238_v50 }
  0xb1   : > { %810 = vmatmul.bf16.gmra.mxu1 %v1210_v51 }
  0xb2   : > { %859 = vmatmul.bf16.gmra.mxu2 %v1214_v52 }
  0xc0   : > { %766 = vmatmul.bf16.gmra.mxu0 %v1218_v61  ;;  %874 = vmatmul.bf16.gmra.mxu3 %v1250_v62  ;;  %v372_v61 = vld [vmem:[#allocation2 + $0x48] sm:$0xff] }
  0xc1   : > { %815 = vmatmul.bf16.gmra.mxu1 %v1222_v63 }
  0xc2   : > { %864 = vmatmul.bf16.gmra.mxu2 %v1226_v0 }
  0xed   : > { %v742_v1 = vpop.f32.mrf.mxu0 }
  0xee   : > { %v791_v2 = vpop.f32.mrf.mxu1 }
  0xef   : > { %v792_v3 = vadd.f32 %v791_v2, %v742_v1 }
  0xf3   : > { %v1812_v4 = vpop.f32.mrf.mxu3 }
  0xf5   : > { %v840_v6 = vpop.f32.mrf.mxu2  ;;  %v744_v8 = vpop.f32.mrf.mxu0 }
  0xf6   : > { %v841_v7 = vadd.f32 %v840_v6, %v792_v3  ;;  %v793_v9 = vpop.f32.mrf.mxu1  ;;  %v377_v6 = vld [vmem:[#allocation2 + $0x60] sm:$0xff] }
  0xf7   : > { %v794_v11 = vadd.f32 %v793_v9, %v744_v8  ;;  %v373_v8 = vld [vmem:[#allocation2 + $0x40] sm:$0xff] }
  0xf8   : > { %v880_v10 = vadd.f32 %v841_v7, %v365_v5 }
  0xfa   : > { %896 = vst [vmem:[#allocation2 + $0x30] sm:$0xff] %v880_v10 }
  0xfb   : > { %v1814_v12 = vpop.f32.mrf.mxu3 }
  0xfd   : > { %v842_v14 = vpop.f32.mrf.mxu2  ;;  %v747_v16 = vpop.f32.mrf.mxu0 }
  0xfe   : > { %v843_v15 = vadd.f32 %v842_v14, %v794_v11  ;;  %v796_v17 = vpop.f32.mrf.mxu1 }
  0xff   : > { %v797_v19 = vadd.f32 %v796_v17, %v747_v16 }
 0x100   : > { %v881_v18 = vadd.f32 %v843_v15, %v366_v13 }
 0x102   : > { %897 = vst [vmem:[#allocation2] sm:$0xff] %v881_v18 }
 0x103   : > { %v1816_v20 = vpop.f32.mrf.mxu3 }
 0x105   : > { %v845_v22 = vpop.f32.mrf.mxu2  ;;  %v749_v24 = vpop.f32.mrf.mxu0 }
 0x106   : > { %v846_v23 = vadd.f32 %v845_v22, %v797_v19  ;;  %v798_v25 = vpop.f32.mrf.mxu1  ;;  %v378_v19 = vld [vmem:[#allocation2 + $0x70] sm:$0xff]  ;;  %v374_v22 = vld [vmem:[#allocation2 + $0x20] sm:$0xff] }
 0x107   : > { %v799_v27 = vadd.f32 %v798_v25, %v749_v24 }
 0x108   : > { %v882_v26 = vadd.f32 %v846_v23, %v367_v21 }
 0x10a   : > { %898 = vst [vmem:[#allocation2 + $0x58] sm:$0xff] %v882_v26 }
 0x10b   : > { %v1818_v28 = vpop.f32.mrf.mxu3 }
 0x10d   : > { %v847_v30 = vpop.f32.mrf.mxu2  ;;  %v752_v32 = vpop.f32.mrf.mxu0 }
 0x10e   : > { %v848_v31 = vadd.f32 %v847_v30, %v799_v27  ;;  %v801_v33 = vpop.f32.mrf.mxu1 }
 0x10f   : > { %v802_v35 = vadd.f32 %v801_v33, %v752_v32  ;;  %v379_v32 = vld [vmem:[#allocation2 + $0x78] sm:$0xff] }
 0x110   : > { %v883_v34 = vadd.f32 %v848_v31, %v368_v29 }
 0x112   : > { %899 = vst [vmem:[#allocation2 + $0x18] sm:$0xff] %v883_v34  ;;  %v375_v34 = vld [vmem:[#allocation2 + $0x10] sm:$0xff] }
 0x113   : > { %v821_v36 = vpop.f32.mrf.mxu3 }
 0x114   : > { %v822_v5 = vadd.f32 %v821_v36, %v1812_v4 }
 0x115   : > { %v850_v39 = vpop.f32.mrf.mxu2  ;;  %v754_v40 = vpop.f32.mrf.mxu0 }
 0x116   : > { %v851_v38 = vadd.f32 %v850_v39, %v802_v35  ;;  %v803_v41 = vpop.f32.mrf.mxu1 }
 0x117   : > { %v804_v43 = vadd.f32 %v803_v41, %v754_v40 }
 0x118   : > { %v884_v42 = vadd.f32 %v851_v38, %v369_v37 }
 0x11a   : > { %900 = vst [vmem:[#allocation2 + $0x50] sm:$0xff] %v884_v42 }
 0x11b   : > { %v823_v44 = vpop.f32.mrf.mxu3 }
 0x11c   : > { %v824_v17 = vadd.f32 %v823_v44, %v1814_v12 }
 0x11d   : > { %v852_v46 = vpop.f32.mrf.mxu2  ;;  %v757_v48 = vpop.f32.mrf.mxu0 }
 0x11e   : > { %v853_v47 = vadd.f32 %v852_v46, %v804_v43  ;;  %v806_v49 = vpop.f32.mrf.mxu1  ;;  %v380_v43 = vld [vmem:[#allocation2 + $0x28] sm:$0xff] }
 0x11f   : > { %v807_v51 = vadd.f32 %v806_v49, %v757_v48 }
 0x120   : > { %v885_v50 = vadd.f32 %v853_v47, %v370_v45  ;;  %v376_v45 = vld [vmem:[#allocation2 + $0x38] sm:$0xff] }
 0x122   : > { %901 = vst [vmem:[#allocation2 + $0x68] sm:$0xff] %v885_v50 }
 0x123   : > { %v826_v52 = vpop.f32.mrf.mxu3 }
 0x124   : > { %v827_v31 = vadd.f32 %v826_v52, %v1816_v20 }
 0x125   : > { %v855_v54 = vpop.f32.mrf.mxu2  ;;  %v759_v57 = vpop.f32.mrf.mxu0 }
 0x126   : > { %v856_v55 = vadd.f32 %v855_v54, %v807_v51  ;;  %v808_v56 = vpop.f32.mrf.mxu1 }
 0x127   : > { %v809_v59 = vadd.f32 %v808_v56, %v759_v57 }
 0x128   : > { %v886_v58 = vadd.f32 %v856_v55, %v371_v53 }
 0x12a   : > { %902 = vst [vmem:[#allocation2 + $0x8] sm:$0xff] %v886_v58 }
 0x12b   : > { %v828_v60 = vpop.f32.mrf.mxu3 }
 0x12c   : > { %v829_v41 = vadd.f32 %v828_v60, %v1818_v28 }
 0x12d   : > { %v857_v62 = vpop.f32.mrf.mxu2  ;;  %v762_v0 = vpop.f32.mrf.mxu0 }
 0x12e   : > { %v858_v63 = vadd.f32 %v857_v62, %v809_v59  ;;  %v811_v1 = vpop.f32.mrf.mxu1 }
 0x12f   : > { %v812_v3 = vadd.f32 %v811_v1, %v762_v0 }
 0x130   : > { %v887_v2 = vadd.f32 %v858_v63, %v372_v61 }
 0x132   : > { %903 = vst [vmem:[#allocation2 + $0x48] sm:$0xff] %v887_v2 }
 0x133   : > { %v870_v7 = vpop.f32.mrf.mxu3 }
 0x134   : > { %v871_v10 = vadd.f32 %v870_v7, %v822_v5 }
 0x135   : > { %v860_v9 = vpop.f32.mrf.mxu2  ;;  %v764_v13 = vpop.f32.mrf.mxu0 }
 0x136   : > { %v861_v11 = vadd.f32 %v860_v9, %v812_v3  ;;  %v892_v14 = vadd.f32 %v871_v10, %v377_v6  ;;  %v813_v15 = vpop.f32.mrf.mxu1 }
 0x137   : > { %v814_v18 = vadd.f32 %v813_v15, %v764_v13 }
 0x138   : > { %v888_v16 = vadd.f32 %v861_v11, %v373_v8  ;;  %908 = vst [vmem:[#allocation2 + $0x60] sm:$0xff] %v892_v14 }
 0x13a   : > { %904 = vst [vmem:[#allocation2 + $0x40] sm:$0xff] %v888_v16 }
 0x13b   : > { %v872_v21 = vpop.f32.mrf.mxu3 }
 0x13c   : > { %v873_v4 = vadd.f32 %v872_v21, %v824_v17 }
 0x13d   : > { %v862_v23 = vpop.f32.mrf.mxu2  ;;  %v767_v26 = vpop.f32.mrf.mxu0 }
 0x13e   : > { %v863_v24 = vadd.f32 %v862_v23, %v814_v18  ;;  %v893_v25 = vadd.f32 %v873_v4, %v378_v19  ;;  %v816_v27 = vpop.f32.mrf.mxu1 }
 0x13f   : > { %v817_v30 = vadd.f32 %v816_v27, %v767_v26 }
 0x140   : > { %v889_v29 = vadd.f32 %v863_v24, %v374_v22  ;;  %909 = vst [vmem:[#allocation2 + $0x70] sm:$0xff] %v893_v25 }
 0x142   : > { %905 = vst [vmem:[#allocation2 + $0x20] sm:$0xff] %v889_v29 }
 0x143   : > { %v875_v33 = vpop.f32.mrf.mxu3 }
 0x144   : > { %v876_v35 = vadd.f32 %v875_v33, %v827_v31 }
 0x145   : > { %v865_v12 = vpop.f32.mrf.mxu2  ;;  %v769_v38 = vpop.f32.mrf.mxu0 }
 0x146   : > { %v866_v36 = vadd.f32 %v865_v12, %v817_v30  ;;  %v894_v37 = vadd.f32 %v876_v35, %v379_v32  ;;  %v818_v40 = vpop.f32.mrf.mxu1 }
 0x147   : > { %v819_v42 = vadd.f32 %v818_v40, %v769_v38 }
 0x148   : > { %v890_v39 = vadd.f32 %v866_v36, %v375_v34  ;;  %910 = vst [vmem:[#allocation2 + $0x78] sm:$0xff] %v894_v37 }
 0x14a   : > { %906 = vst [vmem:[#allocation2 + $0x10] sm:$0xff] %v890_v39 }
 0x14b   : > { %v877_v44 = vpop.f32.mrf.mxu3 }
 0x14c   : > { %v878_v20 = vadd.f32 %v877_v44, %v829_v41 }
 0x14d   : > { %v867_v46 = vpop.f32.mrf.mxu2 }
 0x14e   : > { %v868_v47 = vadd.f32 %v867_v46, %v819_v42  ;;  %v895_v48 = vadd.f32 %v878_v20, %v380_v43  ;;  %915 = sbr.rel (%p1347_p11) target bundleno = 355 (0x163), region = 66 }
 0x150   : > { %v891_v49 = vadd.f32 %v868_v47, %v376_v45  ;;  %911 = vst [vmem:[#allocation2 + $0x28] sm:$0xff] %v895_v48 }
 0x152   : > { %907 = vst [vmem:[#allocation2 + $0x38] sm:$0xff] %v891_v49 }
 0x153   : > { %v916_v50 = vld [vmem:[#allocation2 + $0x30] sm:$0xff]  ;;  %v917_v51 = vld [vmem:[#allocation2] sm:$0xff]  ;;  %v918_v52 = vld [vmem:[#allocation2 + $0x58] sm:$0xff] }
 0x154   : > { %v1515_v28 = vld [vmem:[%s1869_s2] ss:$0 sm:$0xff]  ;;  %v919_v53 = vld [vmem:[#allocation2 + $0x18] sm:$0xff]  ;;  %v920_v54 = vld [vmem:[#allocation2 + $0x50] sm:$0xff] }
 0x155   : > { %v921_v55 = vld [vmem:[#allocation2 + $0x68] sm:$0xff]  ;;  %v936_v56 = vadd.f32 %v1515_v28, %v916_v50  ;;  %v937_v58 = vadd.f32 %v1515_v28, %v917_v51  ;;  %v938_v59 = vadd.f32 %v1515_v28, %v918_v52  ;;  %v939_v60 = vadd.f32 %v1515_v28, %v919_v53  ;;  %v924_v2 = vld [vmem:[#allocation2 + $0x40] sm:$0xff]  ;;  %v926_v9 = vld [vmem:[#allocation2 + $0x10] sm:$0xff] }
 0x156   : > { %v922_v57 = vld [vmem:[#allocation2 + $0x8] sm:$0xff]  ;;  %v940_v62 = vadd.f32 %v1515_v28, %v920_v54  ;;  %v941_v63 = vadd.f32 %v1515_v28, %v921_v55  ;;  %v925_v3 = vld [vmem:[#allocation2 + $0x20] sm:$0xff]  ;;  %v929_v17 = vld [vmem:[#allocation2 + $0x70] sm:$0xff]  ;;  %v944_v21 = vadd.f32 %v1515_v28, %v924_v2  ;;  %v946_v26 = vadd.f32 %v1515_v28, %v926_v9 }
 0x157   : > { %v923_v61 = vld [vmem:[#allocation2 + $0x48] sm:$0xff]  ;;  %v942_v0 = vadd.f32 %v1515_v28, %v922_v57  ;;  %v952_v5 = vmax.f32 %v936_v56, 0.0  ;;  %v953_v6 = vmax.f32 %v937_v58, 0.0  ;;  %v954_v7 = vmax.f32 %v938_v59, 0.0  ;;  %v928_v16 = vld [vmem:[#allocation2 + $0x60] sm:$0xff]  ;;  %v930_v23 = vld [vmem:[#allocation2 + $0x78] sm:$0xff] }
 0x158   : > { %v943_v1 = vadd.f32 %v1515_v28, %v923_v61  ;;  %v955_v8 = vmax.f32 %v939_v60, 0.0  ;;  %v956_v11 = vmax.f32 %v940_v62, 0.0  ;;  %v957_v13 = vmax.f32 %v941_v63, 0.0  ;;  %v931_v4 = vld [vmem:[#allocation2 + $0x28] sm:$0xff] }
 0x159   : > { %v927_v10 = vld [vmem:[#allocation2 + $0x38] sm:$0xff]  ;;  %v958_v14 = vmax.f32 %v942_v0, 0.0  ;;  %v1404_v18 = vpack.c.bf16 %v953_v6, %v952_v5  ;;  %v945_v22 = vadd.f32 %v1515_v28, %v925_v3  ;;  %v960_v29 = vmax.f32 %v944_v21, 0.0 }
 0x15a   : > { %v959_v15 = vmax.f32 %v943_v1, 0.0  ;;  %v1409_v19 = vpack.c.bf16 %v955_v8, %v954_v7  ;;  %v1414_v24 = vpack.c.bf16 %v957_v13, %v956_v11  ;;  %v947_v27 = vadd.f32 %v1515_v28, %v927_v10 }
 0x15b   : > { %1405 = vst [vmem:[%s1870_s3] sm:$0xff] %v1404_v18   ;;  %v961_v30 = vmax.f32 %v945_v22, 0.0  ;;  %v948_v31 = vadd.f32 %v1515_v28, %v928_v16  ;;  %v949_v32 = vadd.f32 %v1515_v28, %v929_v17  ;;  %v962_v33 = vmax.f32 %v946_v26, 0.0 }
 0x15c   : > { %v1419_v25 = vpack.c.bf16 %v959_v15, %v958_v14  ;;  %1441 = vst [vmem:[%s1870_s3 + $0x8] sm:$0xff] %v1409_v19   ;;  %v963_v34 = vmax.f32 %v947_v27, 0.0  ;;  %v950_v12 = vadd.f32 %v1515_v28, %v930_v23  ;;  %v951_v35 = vadd.f32 %v1515_v28, %v931_v4 }
 0x15d   : > { %1442 = vst [vmem:[%s1870_s3 + $0x10] sm:$0xff] %v1414_v24   ;;  %v1424_v36 = vpack.c.bf16 %v961_v30, %v960_v29  ;;  %v964_v37 = vmax.f32 %v948_v31, 0.0  ;;  %v965_v39 = vmax.f32 %v949_v32, 0.0 }
 0x15e   : > { %1443 = vst [vmem:[%s1870_s3 + $0x18] sm:$0xff] %v1419_v25   ;;  %v1429_v38 = vpack.c.bf16 %v963_v34, %v962_v33  ;;  %v966_v40 = vmax.f32 %v950_v12, 0.0  ;;  %v967_v41 = vmax.f32 %v951_v35, 0.0 }
 0x15f   : > { %1444 = vst [vmem:[%s1870_s3 + $0x20] sm:$0xff] %v1424_v36   ;;  %v1434_v42 = vpack.c.bf16 %v965_v39, %v964_v37 }
 0x160   : > { %1445 = vst [vmem:[%s1870_s3 + $0x28] sm:$0xff] %v1429_v38   ;;  %v1439_v43 = vpack.c.bf16 %v967_v41, %v966_v40 }
 0x161   : > { %1446 = vst [vmem:[%s1870_s3 + $0x30] sm:$0xff] %v1434_v42  }
 0x162   : > { %1447 = vst [vmem:[%s1870_s3 + $0x38] sm:$0xff] %v1439_v43  }
 0x163 PF: > { %s13_s16 = sadd.s32 1, %s1554_s16   ;;  %s1871_s12 = smov %s1542_s13 }
 0x164   : > { %p10_p12 = scmp.ge.s32.totalorder %s13_s16, 5   ;;  %s1872_s13 = smov %s1612_s20 }
 0x165   : > { %s1873_s14 = smov %s1550_s15  ;;  %s1874_s15 = smov %s1876_s17 }
 0x166   :  { %12 = sbr.rel (!%p10_p12) target bundleno = 3 (0x3), region = 113 }

// kernel: allconv_forward.13
= control target key start
LH: loop header
LB: loop body
LE: loop exit
PB: predicated region body
PF: predicated region fallthrough
CT: control target
= control target key end

     0   :  { %s2035_s12 = smov 0   ;;  %s2037_s13 = smov 0   ;;  %s2595_s0 = inlined_call_operand.vmem [shape: bf16[128,1152], index: 0, kind: input, shape index: {}]   ;;  %s2596_s1 = inlined_call_operand.vmem [shape: bf16[1152,192], index: 1, kind: input, shape index: {}]   ;;  %s2597_s2 = inlined_call_operand.vmem [shape: f32[1,192], index: 2, kind: input, shape index: {}]   ;;  %s2598_s3 = inlined_call_operand.vmem [shape: bf16[128,192], index: 3, kind: output, shape index: {}]  }
   0x1   :  { %s2039_s14 = smov 0   ;;  %s2041_s15 = smov 0  }
   0x2   :  { %s2043_s16 = smov 0  }
   0x3 LB: > { %s25_s17 = sadd.s32 1, %s2008_s15  ;;  %p48_p1 = scmp.ne.s32.totalorder %s2000_s13, %s1996_s12  ;;  %s2012_s16 = sphi %s2043_s16, %s13_s16   ;;  %s2008_s15 = sphi %s2041_s15, %s2604_s15   ;;  %s2004_s14 = sphi %s2039_s14, %s2603_s14   ;;  %s2000_s13 = sphi %s2037_s13, %s2602_s13   ;;  %s1996_s12 = sphi %s2035_s12, %s2601_s12  }
   0x4   : > { %p26_p0 = scmp.ge.s32.totalorder %s25_s17, 3  ;;  %p49_p2 = scmp.eq.s32.totalorder %s2012_s16, 0 }
   0x5   : > { %s41_s19 = sadd.s32 1, %s2000_s13  ;;  %p1510_p5 = scmp.ge.s32.totalorder %s2012_s16, 3 }
   0x6   : > { %s2606_s17 = smov (%p26_p0, %s25_s17), 0  ;;  %p50_p3 = por %p49_p2, %p48_p1 }
   0x7   : > { %s37_s18 = ssub.s32 %s2008_s15, %s2606_s17  ;;  %164 = sbr.rel (%p1510_p5) target bundleno = 49 (0x31), region = 20 }
   0x8   : > { %p39_p4 = scmp.eq.s32.totalorder %s37_s18, 0 }
   0xa   : > { %s2070_s20 = scalar_select %p39_p4, %s2000_s13, %s41_s19  }
   0xc   : > { %167 = sbr.rel (!%p50_p3) target bundleno = 49 (0x31), region = 24  ;;  %s169_s21 = sand.u32 (%p50_p3), 1, %s2000_s13  }
   0xd   : > { %s1841_s22 = smul.u32 (%p50_p3), 12, %s2008_s15 }
   0xe   : > { %s1931_s23 = smul.u32 (%p50_p3), 192, %s169_s21 }
   0xf   : > { %s2078_s26 = scalar_lea.vmem (%p50_p3), %s2595_s0, %s1841_s22 }
  0x10   : > { %v192_v0 = vld [vmem:[%s2078_s26] sm:$0xff] (%p50_p3)  ;;  %v196_v2 = vld [vmem:[%s2078_s26 + $0x48] sm:$0xff] (%p50_p3)  ;;  %s2083_s27 = scalar_lea.vmem (%p50_p3), [#allocation3], %s1931_s23  ;;  %v200_v4 = vld [vmem:[%s2078_s26 + $0x90] sm:$0xff] (%p50_p3) }
  0x11   : > { %v194_v1 = vld [vmem:[%s2078_s26 + $0x24] sm:$0xff]  ;;  %193 = vst [vmem:[%s2083_s27] sm:$0xff] %v192_v0  ;;  %v198_v3 = vld [vmem:[%s2078_s26 + $0x6c] sm:$0xff]  ;;  %v202_v5 = vld [vmem:[%s2078_s26 + $0xb4] sm:$0xff] }
  0x12   : > { %195 = vst [vmem:[%s2083_s27 + $0xc] sm:$0xff] %v194_v1  ;;  %v204_v6 = vld [vmem:[%s2078_s26 + $0xd8] sm:$0xff]  ;;  %v208_v8 = vld [vmem:[%s2078_s26 + $0x120] sm:$0xff]  ;;  %v212_v10 = vld [vmem:[%s2078_s26 + $0x168] sm:$0xff] }
  0x13   : > { %197 = vst [vmem:[%s2083_s27 + $0x18] sm:$0xff] %v196_v2  ;;  %v206_v7 = vld [vmem:[%s2078_s26 + $0xfc] sm:$0xff]  ;;  %v210_v9 = vld [vmem:[%s2078_s26 + $0x144] sm:$0xff]  ;;  %v214_v11 = vld [vmem:[%s2078_s26 + $0x18c] sm:$0xff] }
  0x14   : > { %199 = vst [vmem:[%s2083_s27 + $0x24] sm:$0xff] %v198_v3  ;;  %v216_v12 = vld [vmem:[%s2078_s26 + $0x1b0] sm:$0xff]  ;;  %v220_v14 = vld [vmem:[%s2078_s26 + $0x1f8] sm:$0xff]  ;;  %v1512_v16 = vld [vmem:[%s2078_s26 + $0x8] sm:$0xf] }
  0x15   : > { %201 = vst [vmem:[%s2083_s27 + $0x30] sm:$0xff] %v200_v4  ;;  %v218_v13 = vld [vmem:[%s2078_s26 + $0x1d4] sm:$0xff]  ;;  %v222_v15 = vld [vmem:[%s2078_s26 + $0x21c] sm:$0xff]  ;;  %v1514_v17 = vld [vmem:[%s2078_s26 + $0x2c] sm:$0xf] }
  0x16   : > { %203 = vst [vmem:[%s2083_s27 + $0x3c] sm:$0xff] %v202_v5  ;;  %v1516_v18 = vld [vmem:[%s2078_s26 + $0x50] sm:$0xf]  ;;  %v1518_v19 = vld [vmem:[%s2078_s26 + $0x74] sm:$0xf] }
  0x17   : > { %205 = vst [vmem:[%s2083_s27 + $0x48] sm:$0xff] %v204_v6  ;;  %v1520_v20 = vld [vmem:[%s2078_s26 + $0x98] sm:$0xf]  ;;  %v1522_v21 = vld [vmem:[%s2078_s26 + $0xbc] sm:$0xf] }
  0x18   : > { %207 = vst [vmem:[%s2083_s27 + $0x54] sm:$0xff] %v206_v7  ;;  %v1524_v22 = vld [vmem:[%s2078_s26 + $0xe0] sm:$0xf]  ;;  %v1526_v23 = vld [vmem:[%s2078_s26 + $0x104] sm:$0xf] }
  0x19   : > { %209 = vst [vmem:[%s2083_s27 + $0x60] sm:$0xff] %v208_v8  ;;  %v1528_v24 = vld [vmem:[%s2078_s26 + $0x128] sm:$0xf]  ;;  %v1530_v25 = vld [vmem:[%s2078_s26 + $0x14c] sm:$0xf] }
  0x1a   : > { %211 = vst [vmem:[%s2083_s27 + $0x6c] sm:$0xff] %v210_v9  ;;  %v1532_v26 = vld [vmem:[%s2078_s26 + $0x170] sm:$0xf]  ;;  %v1534_v27 = vld [vmem:[%s2078_s26 + $0x194] sm:$0xf] }
  0x1b   : > { %213 = vst [vmem:[%s2083_s27 + $0x78] sm:$0xff] %v212_v10  ;;  %v1536_v28 = vld [vmem:[%s2078_s26 + $0x1b8] sm:$0xf]  ;;  %v1538_v29 = vld [vmem:[%s2078_s26 + $0x1dc] sm:$0xf] }
  0x1c   : > { %215 = vst [vmem:[%s2083_s27 + $0x84] sm:$0xff] %v214_v11  ;;  %v1540_v30 = vld [vmem:[%s2078_s26 + $0x200] sm:$0xf]  ;;  %v1542_v31 = vld [vmem:[%s2078_s26 + $0x224] sm:$0xf] }
  0x1d   : > { %217 = vst [vmem:[%s2083_s27 + $0x90] sm:$0xff] %v216_v12 }
  0x1e   : > { %219 = vst [vmem:[%s2083_s27 + $0x9c] sm:$0xff] %v218_v13 }
  0x1f   : > { %221 = vst [vmem:[%s2083_s27 + $0xa8] sm:$0xff] %v220_v14 }
  0x20   : > { %223 = vst [vmem:[%s2083_s27 + $0xb4] sm:$0xff] %v222_v15 }
  0x21   : > { %1513 = vst [vmem:[%s2083_s27 + $0x8] sm:$0xf] %v1512_v16 }
  0x22   : > { %1515 = vst [vmem:[%s2083_s27 + $0x14] sm:$0xf] %v1514_v17 }
  0x23   : > { %1517 = vst [vmem:[%s2083_s27 + $0x20] sm:$0xf] %v1516_v18 }
  0x24   : > { %1519 = vst [vmem:[%s2083_s27 + $0x2c] sm:$0xf] %v1518_v19 }
  0x25   : > { %1521 = vst [vmem:[%s2083_s27 + $0x38] sm:$0xf] %v1520_v20 }
  0x26   : > { %1523 = vst [vmem:[%s2083_s27 + $0x44] sm:$0xf] %v1522_v21 }
  0x27   : > { %1525 = vst [vmem:[%s2083_s27 + $0x50] sm:$0xf] %v1524_v22 }
  0x28   : > { %1527 = vst [vmem:[%s2083_s27 + $0x5c] sm:$0xf] %v1526_v23 }
  0x29   : > { %1529 = vst [vmem:[%s2083_s27 + $0x68] sm:$0xf] %v1528_v24 }
  0x2a   : > { %1531 = vst [vmem:[%s2083_s27 + $0x74] sm:$0xf] %v1530_v25 }
  0x2b   : > { %1533 = vst [vmem:[%s2083_s27 + $0x80] sm:$0xf] %v1532_v26 }
  0x2c   : > { %1535 = vst [vmem:[%s2083_s27 + $0x8c] sm:$0xf] %v1534_v27 }
  0x2d   : > { %1537 = vst [vmem:[%s2083_s27 + $0x98] sm:$0xf] %v1536_v28 }
  0x2e   : > { %1539 = vst [vmem:[%s2083_s27 + $0xa4] sm:$0xf] %v1538_v29 }
  0x2f   : > { %1541 = vst [vmem:[%s2083_s27 + $0xb0] sm:$0xf] %v1540_v30 }
  0x30   : > { %1543 = vst [vmem:[%s2083_s27 + $0xbc] sm:$0xf] %v1542_v31 }
  0x31 PF: > { %p1544_p6 = scmp.ge.s32.totalorder %s2012_s16, 1  ;;  %p283_p7 = scmp.lt.s32.totalorder %s2012_s16, 4 }
  0x33   : > { %p284_p8 = pnand %p1544_p6, %p283_p7 }
  0x34   : > { %s290_s28 = sand.u32 (!%p284_p8), 1, %s1996_s12   ;;  %s334_s29 = smul.u32 (!%p284_p8), 48, %s2004_s14 }
  0x35   : > { %287 = sbr.rel (%p284_p8) target bundleno = 484 (0x1e4), region = 54  ;;  %p1547_p10 = scmp.ne.s32.totalorder (!%p284_p8), %s2004_s14, 0 }
  0x36   : > { %s1932_s30 = smul.u32 (!%p284_p8), 192, %s290_s28  ;;  %p336_p9 = scmp.lt.s32.totalorder (!%p284_p8), %s334_s29, 143 }
  0x38   : > { %s2155_s8 = scalar_lea.vmem (!%p284_p8), [#allocation3], %s1932_s30 }
  0x3a   : > { %s2608_s29 = smov (!%p336_p9, %s334_s29), 143  ;;  %366 = sbr.rel (%p1547_p10) target bundleno = 96 (0x60), region = 62 }
  0x3b   : > { %s1842_s4 = sshll.u32 %s2608_s29, 3 }
  0x3c   : > { %s2153_s7 = scalar_lea.vmem %s2596_s1, %s1842_s4 }
  0x3f   : > { %v2014_v32 = vmov 0.0   ;;  %vm368_vm0 = vcmask 523264  }
  0x40   : > { %367 = vst [vmem:[#allocation2] sm:$0xff] %v2014_v32 }
  0x41   : > { %370 = vst [vmem:[#allocation2 + $0x10] sm:$0xff] %v2014_v32 }
  0x42   : > { %372 = vst [vmem:[#allocation2 + $0x20] sm:$0xff] %v2014_v32 }
  0x43   : > { %374 = vst [vmem:[#allocation2 + $0x30] sm:$0xff] %v2014_v32 }
  0x44   : > { %376 = vst [vmem:[#allocation2 + $0x40] sm:$0xff] %v2014_v32 }
  0x45   : > { %378 = vst [vmem:[#allocation2 + $0x50] sm:$0xff] %v2014_v32 }
  0x46   : > { %380 = vst [vmem:[#allocation2 + $0x60] sm:$0xff] %v2014_v32 }
  0x47   : > { %382 = vst [vmem:[#allocation2 + $0x70] sm:$0xff] %v2014_v32 }
  0x48   : > { %384 = vst [vmem:[#allocation2 + $0x80] sm:$0xff] %v2014_v32 }
  0x49   : > { %386 = vst [vmem:[#allocation2 + $0x90] sm:$0xff] %v2014_v32 }
  0x4a   : > { %388 = vst [vmem:[#allocation2 + $0xa0] sm:$0xff] %v2014_v32 }
  0x4b   : > { %390 = vst [vmem:[#allocation2 + $0xb0] sm:$0xff] %v2014_v32 }
  0x4c   : > { %392 = vst [vmem:[#allocation2 + $0xc0] sm:$0xff] %v2014_v32 }
  0x4d   : > { %394 = vst [vmem:[#allocation2 + $0xd0] sm:$0xff] %v2014_v32 }
  0x4e   : > { %396 = vst [vmem:[#allocation2 + $0xe0] sm:$0xff] %v2014_v32 }
  0x4f   : > { %398 = vst [vmem:[#allocation2 + $0xf0] sm:$0xff] %v2014_v32 }
  0x50   : > { %369 = vst.msk [vmem:[#allocation2 + $0x8] sm:$0xff] %vm368_vm0, %v2014_v32 }
  0x51   : > { %371 = vst.msk [vmem:[#allocation2 + $0x18] sm:$0xff] %vm368_vm0, %v2014_v32 }
  0x52   : > { %373 = vst.msk [vmem:[#allocation2 + $0x28] sm:$0xff] %vm368_vm0, %v2014_v32 }
  0x53   : > { %375 = vst.msk [vmem:[#allocation2 + $0x38] sm:$0xff] %vm368_vm0, %v2014_v32 }
  0x54   : > { %377 = vst.msk [vmem:[#allocation2 + $0x48] sm:$0xff] %vm368_vm0, %v2014_v32 }
  0x55   : > { %379 = vst.msk [vmem:[#allocation2 + $0x58] sm:$0xff] %vm368_vm0, %v2014_v32 }
  0x56   : > { %381 = vst.msk [vmem:[#allocation2 + $0x68] sm:$0xff] %vm368_vm0, %v2014_v32 }
  0x57   : > { %383 = vst.msk [vmem:[#allocation2 + $0x78] sm:$0xff] %vm368_vm0, %v2014_v32 }
  0x58   : > { %385 = vst.msk [vmem:[#allocation2 + $0x88] sm:$0xff] %vm368_vm0, %v2014_v32 }
  0x59   : > { %387 = vst.msk [vmem:[#allocation2 + $0x98] sm:$0xff] %vm368_vm0, %v2014_v32 }
  0x5a   : > { %389 = vst.msk [vmem:[#allocation2 + $0xa8] sm:$0xff] %vm368_vm0, %v2014_v32 }
  0x5b   : > { %391 = vst.msk [vmem:[#allocation2 + $0xb8] sm:$0xff] %vm368_vm0, %v2014_v32 }
  0x5c   : > { %393 = vst.msk [vmem:[#allocation2 + $0xc8] sm:$0xff] %vm368_vm0, %v2014_v32 }
  0x5d   : > { %395 = vst.msk [vmem:[#allocation2 + $0xd8] sm:$0xff] %vm368_vm0, %v2014_v32 }
  0x5e   : > { %397 = vst.msk [vmem:[#allocation2 + $0xe8] sm:$0xff] %vm368_vm0, %v2014_v32 }
  0x5f   : > { %399 = vst.msk [vmem:[#allocation2 + $0xf8] sm:$0xff] %vm368_vm0, %v2014_v32 }
  0x60 PF: > { %v1702_v33 = vld [vmem:[%s2153_s7 + $0x70] sm:$0xf]  ;;  %v1882_v34 = vld [vmem:[%s2153_s7 + $0x74] sm:$0xf0]  ;;  %v1694_v38 = vld [vmem:[%s2153_s7 + $0x60] sm:$0xf] }
  0x61   : > { %v1766_v35 = vld [vmem:[%s2153_s7 + $0xf0] sm:$0xf]  ;;  %v1703_v36 = vor.u32 %v1882_v34, %v1702_v33  ;;  %v1898_v37 = vld [vmem:[%s2153_s7 + $0xf4] sm:$0xf0]  ;;  %v1880_v39 = vld [vmem:[%s2153_s7 + $0x64] sm:$0xf0] }
  0x62   : > { %v1767_v40 = vor.u32 %v1898_v37, %v1766_v35  ;;  %v1758_v41 = vld [vmem:[%s2153_s7 + $0xe0] sm:$0xf]  ;;  %v1896_v42 = vld [vmem:[%s2153_s7 + $0xe4] sm:$0xf0]  ;;  %v1695_v43 = vor.u32 %v1880_v39, %v1694_v38  ;;  %v1686_v45 = vld [vmem:[%s2153_s7 + $0x50] sm:$0xf] }
  0x63   : > { %880 = vmatpush.bf16.msra.mxu0 %v1703_v36  ;;  %1915 = vmatpush.bf16.msra.mxu2 %v1703_v36  ;;  %v1759_v44 = vor.u32 %v1896_v42, %v1758_v41  ;;  %v1878_v46 = vld [vmem:[%s2153_s7 + $0x54] sm:$0xf0]  ;;  %v1750_v47 = vld [vmem:[%s2153_s7 + $0xd0] sm:$0xf]  ;;  %v1678_v51 = vld [vmem:[%s2153_s7 + $0x40] sm:$0xf] }
  0x64   : > { %929 = vmatpush.bf16.msra.mxu1 %v1767_v40  ;;  %1923 = vmatpush.bf16.msra.mxu3 %v1767_v40  ;;  %v1894_v48 = vld [vmem:[%s2153_s7 + $0xd4] sm:$0xf0]  ;;  %v1687_v49 = vor.u32 %v1878_v46, %v1686_v45  ;;  %v1876_v52 = vld [vmem:[%s2153_s7 + $0x44] sm:$0xf0]  ;;  %v1742_v53 = vld [vmem:[%s2153_s7 + $0xc0] sm:$0xf] }
  0x65   : > { %v1751_v50 = vor.u32 %v1894_v48, %v1750_v47  ;;  %v1892_v54 = vld [vmem:[%s2153_s7 + $0xc4] sm:$0xf0]  ;;  %v1679_v55 = vor.u32 %v1876_v52, %v1678_v51  ;;  %v1670_v57 = vld [vmem:[%s2153_s7 + $0x30] sm:$0xf]  ;;  %v1874_v58 = vld [vmem:[%s2153_s7 + $0x34] sm:$0xf0] }
  0x66   : > { %v1743_v56 = vor.u32 %v1892_v54, %v1742_v53  ;;  %v1734_v59 = vld [vmem:[%s2153_s7 + $0xb0] sm:$0xf]  ;;  %v1890_v60 = vld [vmem:[%s2153_s7 + $0xb4] sm:$0xf0]  ;;  %v1671_v61 = vor.u32 %v1874_v58, %v1670_v57  ;;  %v1662_v63 = vld [vmem:[%s2153_s7 + $0x20] sm:$0xf] }
  0x67   : > { %881 = vmatpush.bf16.msra.mxu0 %v1695_v43  ;;  %1916 = vmatpush.bf16.msra.mxu2 %v1695_v43  ;;  %v1735_v62 = vor.u32 %v1890_v60, %v1734_v59  ;;  %v1872_v0 = vld [vmem:[%s2153_s7 + $0x24] sm:$0xf0]  ;;  %v1726_v1 = vld [vmem:[%s2153_s7 + $0xa0] sm:$0xf]  ;;  %v1654_v5 = vld [vmem:[%s2153_s7 + $0x10] sm:$0xf] }
  0x68   : > { %930 = vmatpush.bf16.msra.mxu1 %v1759_v44  ;;  %1924 = vmatpush.bf16.msra.mxu3 %v1759_v44  ;;  %v1888_v2 = vld [vmem:[%s2153_s7 + $0xa4] sm:$0xf0]  ;;  %v1663_v3 = vor.u32 %v1872_v0, %v1662_v63  ;;  %v1870_v6 = vld [vmem:[%s2153_s7 + $0x14] sm:$0xf0]  ;;  %v1718_v7 = vld [vmem:[%s2153_s7 + $0x90] sm:$0xf] }
  0x69   : > { %v1727_v4 = vor.u32 %v1888_v2, %v1726_v1  ;;  %v1886_v8 = vld [vmem:[%s2153_s7 + $0x94] sm:$0xf0]  ;;  %v1655_v9 = vor.u32 %v1870_v6, %v1654_v5  ;;  %v1646_v10 = vld [vmem:[%s2153_s7] sm:$0xf]  ;;  %v1868_v12 = vld [vmem:[%s2153_s7 + $0x4] sm:$0xf0] }
  0x6a   : > { %v1719_v11 = vor.u32 %v1886_v8, %v1718_v7  ;;  %v1710_v13 = vld [vmem:[%s2153_s7 + $0x80] sm:$0xf]  ;;  %v1884_v14 = vld [vmem:[%s2153_s7 + $0x84] sm:$0xf0]  ;;  %v1844_v16 = vld [vmem:[%s2155_s8 + $0x8] sm:$0xf0]  ;;  %v1647_v23 = vor.u32 %v1868_v12, %v1646_v10 }
  0x6b   : > { %882 = vmatpush.bf16.msra.mxu0 %v1687_v49  ;;  %1917 = vmatpush.bf16.msra.mxu2 %v1687_v49  ;;  %v1550_v15 = vld [vmem:[%s2155_s8] sm:$0xf]  ;;  %v1856_v18 = vld [vmem:[%s2155_s8 + $0x68] sm:$0xf0]  ;;  %v1881_v19 = vld [vmem:[%s2153_s7 + $0x74] sm:$0xf]  ;;  %v1711_v27 = vor.u32 %v1884_v14, %v1710_v13 }
  0x6c   : > { %931 = vmatpush.bf16.msra.mxu1 %v1751_v50  ;;  %1925 = vmatpush.bf16.msra.mxu3 %v1751_v50  ;;  %v1598_v17 = vld [vmem:[%s2155_s8 + $0x60] sm:$0xf]  ;;  %v1704_v20 = vld [vmem:[%s2153_s7 + $0x78] sm:$0xf0]  ;;  %v1830_v21 = vld [vmem:[%s2153_s7 + $0x170] sm:$0xf]  ;;  %v2223_v36 = vor.u32 %v1844_v16, %v1550_v15 }
  0x6d   : > { %v1914_v22 = vld [vmem:[%s2153_s7 + $0x174] sm:$0xf0]  ;;  %v1843_v24 = vld [vmem:[%s2155_s8 + $0x4] sm:$0xf]  ;;  %v1552_v25 = vld [vmem:[%s2155_s8 + $0xc] sm:$0xf0]  ;;  %v1707_v31 = vor.u32 %v1881_v19, %v1704_v20  ;;  %v2225_v37 = vor.u32 %v1856_v18, %v1598_v17 }
  0x6e   : > { %v1855_v26 = vld [vmem:[%s2155_s8 + $0x64] sm:$0xf]  ;;  %v1600_v28 = vld [vmem:[%s2155_s8 + $0x6c] sm:$0xf0]  ;;  %v1897_v29 = vld [vmem:[%s2153_s7 + $0xf4] sm:$0xf]  ;;  %v1831_v32 = vor.u32 %v1914_v22, %v1830_v21  ;;  %v2230_v41 = vor.u32 %v1843_v24, %v1552_v25 }
  0x6f   : > { %883 = vmatpush.bf16.msra.mxu0 %v1679_v55  ;;  %1918 = vmatpush.bf16.msra.mxu2 %v1679_v55  ;;  %v1768_v30 = vld [vmem:[%s2153_s7 + $0xf8] sm:$0xf0]  ;;  %v1879_v33 = vld [vmem:[%s2153_s7 + $0x64] sm:$0xf]  ;;  %v1913_v34 = vld [vmem:[%s2153_s7 + $0x174] sm:$0xf]  ;;  %v2232_v42 = vor.u32 %v1855_v26, %v1600_v28 }
  0x70   : > { %932 = vmatpush.bf16.msra.mxu1 %v1743_v56  ;;  %1926 = vmatpush.bf16.msra.mxu3 %v1743_v56  ;;  %v1832_v35 = vld [vmem:[%s2153_s7 + $0x178] sm:$0xf0]  ;;  %v1696_v38 = vld [vmem:[%s2153_s7 + $0x68] sm:$0xf0]  ;;  %v1822_v39 = vld [vmem:[%s2153_s7 + $0x160] sm:$0xf]  ;;  %v1771_v43 = vor.u32 %v1897_v29, %v1768_v30 }
  0x71   : > { %v1912_v40 = vld [vmem:[%s2153_s7 + $0x164] sm:$0xf0]  ;;  %v1835_v44 = vor.u32 %v1913_v34, %v1832_v35  ;;  %v1895_v45 = vld [vmem:[%s2153_s7 + $0xe4] sm:$0xf]  ;;  %v1760_v46 = vld [vmem:[%s2153_s7 + $0xe8] sm:$0xf0]  ;;  %v1699_v47 = vor.u32 %v1879_v33, %v1696_v38 }
  0x72   : > { %v1823_v48 = vor.u32 %v1912_v40, %v1822_v39  ;;  %v1877_v49 = vld [vmem:[%s2153_s7 + $0x54] sm:$0xf]  ;;  %v1911_v50 = vld [vmem:[%s2153_s7 + $0x164] sm:$0xf]  ;;  %v1824_v51 = vld [vmem:[%s2153_s7 + $0x168] sm:$0xf0]  ;;  %v1763_v55 = vor.u32 %v1895_v45, %v1760_v46 }
  0x73   : > { %884 = vmatpush.bf16.msra.mxu0 %v1671_v61  ;;  %1919 = vmatpush.bf16.msra.mxu2 %v1671_v61  ;;  %v1688_v52 = vld [vmem:[%s2153_s7 + $0x58] sm:$0xf0]  ;;  %v1814_v53 = vld [vmem:[%s2153_s7 + $0x150] sm:$0xf]  ;;  %v1910_v54 = vld [vmem:[%s2153_s7 + $0x154] sm:$0xf0]  ;;  %v1827_v56 = vor.u32 %v1911_v50, %v1824_v51 }
  0x74   : > { %933 = vmatpush.bf16.msra.mxu1 %v1735_v62  ;;  %1927 = vmatpush.bf16.msra.mxu3 %v1735_v62  ;;  %v1893_v57 = vld [vmem:[%s2153_s7 + $0xd4] sm:$0xf]  ;;  %v1752_v58 = vld [vmem:[%s2153_s7 + $0xd8] sm:$0xf0]  ;;  %v1691_v59 = vor.u32 %v1877_v49, %v1688_v52  ;;  %v1815_v60 = vor.u32 %v1910_v54, %v1814_v53  ;;  %v1875_v61 = vld [vmem:[%s2153_s7 + $0x44] sm:$0xf] }
  0x75   : > { %v1909_v62 = vld [vmem:[%s2153_s7 + $0x154] sm:$0xf]  ;;  %v1816_v63 = vld [vmem:[%s2153_s7 + $0x158] sm:$0xf0]  ;;  %v1680_v0 = vld [vmem:[%s2153_s7 + $0x48] sm:$0xf0] }
  0x76   : > { %v1806_v1 = vld [vmem:[%s2153_s7 + $0x140] sm:$0xf]  ;;  %v1908_v2 = vld [vmem:[%s2153_s7 + $0x144] sm:$0xf0]  ;;  %v1891_v5 = vld [vmem:[%s2153_s7 + $0xc4] sm:$0xf] }
  0x77   : > { %885 = vmatpush.bf16.msra.mxu0 %v1663_v3  ;;  %1920 = vmatpush.bf16.msra.mxu2 %v1663_v3  ;;  %v1755_v3 = vor.u32 %v1893_v57, %v1752_v58  ;;  %v1744_v6 = vld [vmem:[%s2153_s7 + $0xc8] sm:$0xf0]  ;;  %v1562_v7 = vld [vmem:[%s2155_s8 + $0x18] sm:$0xf]  ;;  %v1847_v8 = vld [vmem:[%s2155_s8 + $0x20] sm:$0xf0]  ;;  %v1807_v12 = vor.u32 %v1908_v2, %v1806_v1 }
  0x78   : > { %934 = vmatpush.bf16.msra.mxu1 %v1727_v4  ;;  %1928 = vmatpush.bf16.msra.mxu3 %v1727_v4  ;;  %v1819_v4 = vor.u32 %v1909_v62, %v1816_v63  ;;  %v1859_v10 = vld [vmem:[%s2155_s8 + $0x80] sm:$0xf0]  ;;  %v1873_v13 = vld [vmem:[%s2153_s7 + $0x34] sm:$0xf]  ;;  %v1808_v15 = vld [vmem:[%s2153_s7 + $0x148] sm:$0xf0] }
  0x79   : > { %v1907_v14 = vld [vmem:[%s2153_s7 + $0x144] sm:$0xf]  ;;  %v1672_v16 = vld [vmem:[%s2153_s7 + $0x38] sm:$0xf0]  ;;  %v1798_v17 = vld [vmem:[%s2153_s7 + $0x130] sm:$0xf] }
  0x7a   : > { %v1906_v18 = vld [vmem:[%s2153_s7 + $0x134] sm:$0xf0]  ;;  %v1846_v19 = vld [vmem:[%s2155_s8 + $0x1c] sm:$0xf]  ;;  %v1564_v20 = vld [vmem:[%s2155_s8 + $0x24] sm:$0xf0]  ;;  %v1811_v24 = vor.u32 %v1907_v14, %v1808_v15 }
  0x7b   : > { %886 = vmatpush.bf16.msra.mxu0 %v1655_v9  ;;  %1921 = vmatpush.bf16.msra.mxu2 %v1655_v9  ;;  %v1610_v9 = vld [vmem:[%s2155_s8 + $0x78] sm:$0xf]  ;;  %v1858_v21 = vld [vmem:[%s2155_s8 + $0x7c] sm:$0xf]  ;;  %v1612_v22 = vld [vmem:[%s2155_s8 + $0x84] sm:$0xf0]  ;;  %v1799_v28 = vor.u32 %v1906_v18, %v1798_v17  ;;  %v2282_v39 = vor.u32 %v1846_v19, %v1564_v20 }
  0x7c   : > { %935 = vmatpush.bf16.msra.mxu1 %v1719_v11  ;;  %1929 = vmatpush.bf16.msra.mxu3 %v1719_v11  ;;  %v1683_v11 = vor.u32 %v1875_v61, %v1680_v0  ;;  %v1889_v25 = vld [vmem:[%s2153_s7 + $0xb4] sm:$0xf]  ;;  %v1736_v26 = vld [vmem:[%s2153_s7 + $0xb8] sm:$0xf0]  ;;  %v1871_v29 = vld [vmem:[%s2153_s7 + $0x24] sm:$0xf]  ;;  %v2277_v33 = vor.u32 %v1859_v10, %v1610_v9  ;;  %v2284_v40 = vor.u32 %v1858_v21, %v1612_v22 }
  0x7d   : > { %v1905_v30 = vld [vmem:[%s2153_s7 + $0x134] sm:$0xf]  ;;  %v1664_v34 = vld [vmem:[%s2153_s7 + $0x28] sm:$0xf0]  ;;  %v1790_v35 = vld [vmem:[%s2153_s7 + $0x120] sm:$0xf] }
  0x7e   : > { %v1904_v38 = vld [vmem:[%s2153_s7 + $0x124] sm:$0xf0]  ;;  %v1667_v45 = vor.u32 %v1871_v29, %v1664_v34  ;;  %v1869_v49 = vld [vmem:[%s2153_s7 + $0x14] sm:$0xf]  ;;  %v1656_v50 = vld [vmem:[%s2153_s7 + $0x18] sm:$0xf0] }
  0x7f   : > { %887 = vmatpush.bf16.msra.mxu0 %v1647_v23  ;;  %1922 = vmatpush.bf16.msra.mxu2 %v1647_v23  ;;  %v1747_v23 = vor.u32 %v1891_v5, %v1744_v6  ;;  %v1791_v46 = vor.u32 %v1904_v38, %v1790_v35  ;;  %v1903_v51 = vld [vmem:[%s2153_s7 + $0x124] sm:$0xf]  ;;  %v1792_v53 = vld [vmem:[%s2153_s7 + $0x128] sm:$0xf0]  ;;  %v1782_v54 = vld [vmem:[%s2153_s7 + $0x110] sm:$0xf] }
  0x80   : > { %936 = vmatpush.bf16.msra.mxu1 %v1711_v27  ;;  %1930 = vmatpush.bf16.msra.mxu3 %v1711_v27  ;;  %v1675_v27 = vor.u32 %v1873_v13, %v1672_v16  ;;  %v1795_v57 = vor.u32 %v1903_v51, %v1792_v53  ;;  %v1867_v61 = vld [vmem:[%s2153_s7 + $0x4] sm:$0xf]  ;;  %v1648_v62 = vld [vmem:[%s2153_s7 + $0x8] sm:$0xf0]  ;;  %v1901_v63 = vld [vmem:[%s2153_s7 + $0x114] sm:$0xf] }
  0x81   : > { %v1784_v0 = vld [vmem:[%s2153_s7 + $0x118] sm:$0xf0]  ;;  %v1774_v1 = vld [vmem:[%s2153_s7 + $0x100] sm:$0xf]  ;;  %v1900_v2 = vld [vmem:[%s2153_s7 + $0x104] sm:$0xf0]  ;;  %v1651_v6 = vor.u32 %v1867_v61, %v1648_v62 }
  0x82   : > { %888 = vmatmul.bf16.vlgmr.msra.gmra.mxu0 %v2223_v36  ;;  %908 = vmatmul.bf16.vlgmr.msra.gmra.mxu2 %v2225_v37  ;;  %v1883_v5 = vld [vmem:[%s2153_s7 + $0x84] sm:$0xf]  ;;  %v1776_v10 = vld [vmem:[%s2153_s7 + $0x108] sm:$0xf0]  ;;  %v1622_v13 = vld [vmem:[%s2155_s8 + $0x90] sm:$0xf] }
  0x83   : > { %978 = vmatpush.bf16.msrb.mxu2 %v1831_v32  ;;  %937 = vmatmul.bf16.vlgmr.msra.gmra.mxu1 %v2230_v41  ;;  %v2275_v32 = vor.u32 %v1847_v8, %v1562_v7  ;;  %v1775_v7 = vor.u32 %v1900_v2, %v1774_v1  ;;  %v1712_v8 = vld [vmem:[%s2153_s7 + $0x88] sm:$0xf0]  ;;  %v1899_v9 = vld [vmem:[%s2153_s7 + $0x104] sm:$0xf]  ;;  %v1862_v14 = vld [vmem:[%s2155_s8 + $0x98] sm:$0xf0] }
  0x84   : > { %1027 = vmatpush.bf16.msrb.mxu3 %v1707_v31  ;;  %1076 = vmatpush.bf16.msrb.mxu0 %v1771_v43  ;;  %v1800_v31 = vld [vmem:[%s2153_s7 + $0x138] sm:$0xf0]  ;;  %v1739_v43 = vor.u32 %v1889_v25, %v1736_v26  ;;  %v1849_v15 = vld [vmem:[%s2155_s8 + $0x34] sm:$0xf]  ;;  %v1576_v16 = vld [vmem:[%s2155_s8 + $0x3c] sm:$0xf0]  ;;  %v1715_v19 = vor.u32 %v1883_v5, %v1712_v8  ;;  %v1779_v20 = vor.u32 %v1899_v9, %v1776_v10 }
  0x85   : > { %957 = vmatmul.bf16.vlgmr.msra.gmra.mxu3 %v2232_v42  ;;  %1125 = vmatpush.bf16.msrb.mxu1 %v1835_v44  ;;  %v1803_v44 = vor.u32 %v1905_v30, %v1800_v31  ;;  %v1861_v17 = vld [vmem:[%s2155_s8 + $0x94] sm:$0xf]  ;;  %v1624_v18 = vld [vmem:[%s2155_s8 + $0x9c] sm:$0xf0]  ;;  %v2318_v22 = vor.u32 %v1862_v14, %v1622_v13  ;;  %v1586_v25 = vld [vmem:[%s2155_s8 + $0x48] sm:$0xf] }
  0x86   : > { %v1853_v26 = vld [vmem:[%s2155_s8 + $0x50] sm:$0xf0]  ;;  %v1852_v29 = vld [vmem:[%s2155_s8 + $0x4c] sm:$0xf]  ;;  %v1588_v30 = vld [vmem:[%s2155_s8 + $0x54] sm:$0xf0] }
  0x87   : > { %979 = vmatpush.bf16.msrb.mxu2 %v1823_v48  ;;  %v1728_v48 = vld [vmem:[%s2153_s7 + $0xa8] sm:$0xf0]  ;;  %v1636_v34 = vld [vmem:[%s2155_s8 + $0xb4] sm:$0xf0]  ;;  %v1587_v35 = vor.u32 %v1853_v26, %v1586_v25  ;;  %vm1207_vm1 = vcmask 523264   ;;  %p1836_p11 = scmp.ne.s32.totalorder %s2004_s14, 2 }
  0x88   : > { %1028 = vmatpush.bf16.msrb.mxu3 %v1699_v47  ;;  %1077 = vmatpush.bf16.msrb.mxu0 %v1763_v55  ;;  %v1887_v47 = vld [vmem:[%s2153_s7 + $0xa4] sm:$0xf]  ;;  %v1902_v55 = vld [vmem:[%s2153_s7 + $0x114] sm:$0xf0]  ;;  %v1864_v31 = vld [vmem:[%s2155_s8 + $0xac] sm:$0xf] }
  0x89   : > { %1126 = vmatpush.bf16.msrb.mxu1 %v1827_v56  ;;  %v1731_v52 = vor.u32 %v1887_v47, %v1728_v48  ;;  %v1659_v56 = vor.u32 %v1869_v49, %v1656_v50  ;;  %v1783_v58 = vor.u32 %v1902_v55, %v1782_v54  ;;  %v1570_v48 = vld [vmem:[%s2155_s8 + $0x20] sm:$0xf]  ;;  %v1848_v49 = vld [vmem:[%s2155_s8 + $0x28] sm:$0xf0]  ;;  %v1582_v51 = vld [vmem:[%s2155_s8 + $0x38] sm:$0xf] }
  0x8a   : > { %v1571_v50 = vor.u32 %v1848_v49, %v1570_v48  ;;  %v1630_v10 = vld [vmem:[%s2155_s8 + $0x98] sm:$0xf]  ;;  %v400_v49 = vld [vmem:[#allocation2] sm:$0xff] }
  0x8b   : > { %980 = vmatpush.bf16.msrb.mxu2 %v1815_v60  ;;  %v1720_v60 = vld [vmem:[%s2153_s7 + $0x98] sm:$0xf0] }
  0x8c   : > { %1029 = vmatpush.bf16.msrb.mxu3 %v1691_v59  ;;  %1078 = vmatpush.bf16.msrb.mxu0 %v1755_v3  ;;  %v1885_v59 = vld [vmem:[%s2153_s7 + $0x94] sm:$0xf] }
  0x8d   : > { %1127 = vmatpush.bf16.msrb.mxu1 %v1819_v4  ;;  %v1723_v3 = vor.u32 %v1885_v59, %v1720_v60  ;;  %v1787_v4 = vor.u32 %v1901_v63, %v1784_v0  ;;  %v1618_v63 = vld [vmem:[%s2155_s8 + $0x80] sm:$0xf]  ;;  %v1860_v0 = vld [vmem:[%s2155_s8 + $0x88] sm:$0xf0] }
  0x8f   : > { %981 = vmatpush.bf16.msrb.mxu2 %v1807_v12  ;;  %v1850_v12 = vld [vmem:[%s2155_s8 + $0x38] sm:$0xf0] }
  0x90   : > { %1030 = vmatpush.bf16.msrb.mxu3 %v1683_v11  ;;  %1079 = vmatpush.bf16.msrb.mxu0 %v1747_v23  ;;  %v1574_v11 = vld [vmem:[%s2155_s8 + $0x30] sm:$0xf]  ;;  %v1579_v23 = vor.u32 %v1849_v15, %v1576_v16 }
  0x91   : > { %1128 = vmatpush.bf16.msrb.mxu1 %v1811_v24  ;;  %v1575_v21 = vor.u32 %v1850_v12, %v1574_v11  ;;  %v2320_v24 = vor.u32 %v1861_v17, %v1624_v18  ;;  %v1863_v11 = vld [vmem:[%s2155_s8 + $0xa0] sm:$0xf0] }
  0x92   : > { %893 = vmatmul.bf16.gmra.mxu0 %v2275_v32  ;;  %913 = vmatmul.bf16.gmra.mxu2 %v2277_v33  ;;  %v1631_v14 = vor.u32 %v1863_v11, %v1630_v10 }
  0x93   : > { %982 = vmatpush.bf16.msrb.mxu2 %v1799_v28  ;;  %942 = vmatmul.bf16.gmra.mxu1 %v2282_v39  ;;  %v1865_v28 = vld [vmem:[%s2155_s8 + $0xb0] sm:$0xf0] }
  0x94   : > { %1031 = vmatpush.bf16.msrb.mxu3 %v1675_v27  ;;  %1080 = vmatpush.bf16.msrb.mxu0 %v1739_v43  ;;  %v1634_v27 = vld [vmem:[%s2155_s8 + $0xa8] sm:$0xf]  ;;  %v1591_v43 = vor.u32 %v1852_v29, %v1588_v30 }
  0x95   : > { %962 = vmatmul.bf16.gmra.mxu3 %v2284_v40  ;;  %1129 = vmatpush.bf16.msrb.mxu1 %v1803_v44  ;;  %v2332_v38 = vor.u32 %v1865_v28, %v1634_v27  ;;  %v2334_v44 = vor.u32 %v1864_v31, %v1636_v34 }
  0x97   : > { %983 = vmatpush.bf16.msrb.mxu2 %v1791_v46  ;;  %v1845_v46 = vld [vmem:[%s2155_s8 + $0x10] sm:$0xf0] }
  0x98   : > { %1032 = vmatpush.bf16.msrb.mxu3 %v1667_v45  ;;  %1081 = vmatpush.bf16.msrb.mxu0 %v1731_v52  ;;  %v1558_v45 = vld [vmem:[%s2155_s8 + $0x8] sm:$0xf]  ;;  %v1851_v52 = vld [vmem:[%s2155_s8 + $0x40] sm:$0xf0] }
  0x99   : > { %1130 = vmatpush.bf16.msrb.mxu1 %v1795_v57  ;;  %v1559_v47 = vor.u32 %v1845_v46, %v1558_v45  ;;  %v1583_v53 = vor.u32 %v1851_v52, %v1582_v51 }
  0x9b   : > { %984 = vmatpush.bf16.msrb.mxu2 %v1783_v58 }
  0x9c   : > { %1033 = vmatpush.bf16.msrb.mxu3 %v1659_v56  ;;  %1082 = vmatpush.bf16.msrb.mxu0 %v1723_v3  ;;  %v1619_v3 = vor.u32 %v1860_v0, %v1618_v63 }
  0x9d   : > { %1131 = vmatpush.bf16.msrb.mxu1 %v1787_v4 }
  0x9f   : > { %985 = vmatpush.bf16.msrb.mxu2 %v1775_v7 }
  0xa0   : > { %1034 = vmatpush.bf16.msrb.mxu3 %v1651_v6  ;;  %1083 = vmatpush.bf16.msrb.mxu0 %v1715_v19 }
  0xa1   : > { %1132 = vmatpush.bf16.msrb.mxu1 %v1779_v20 }
  0xa2   : > { %898 = vmatmul.bf16.gmra.mxu0 %v1575_v21  ;;  %918 = vmatmul.bf16.gmra.mxu2 %v2318_v22 }
  0xa3   : > { %947 = vmatmul.bf16.gmra.mxu1 %v1579_v23 }
  0xa5   : > { %967 = vmatmul.bf16.gmra.mxu3 %v2320_v24 }
  0xb2   : > { %903 = vmatmul.bf16.gmra.mxu0 %v1587_v35  ;;  %923 = vmatmul.bf16.gmra.mxu2 %v2332_v38 }
  0xb3   : > { %952 = vmatmul.bf16.gmra.mxu1 %v1591_v43 }
  0xb5   : > { %972 = vmatmul.bf16.gmra.mxu3 %v2334_v44 }
  0xc2   : > { %986 = vmatmul.bf16.vlgmr.msrb.gmra.mxu2 %v1559_v47  ;;  %1084 = vmatmul.bf16.vlgmr.msrb.gmra.mxu0 %v2230_v41  ;;  %v1854_v41 = vld [vmem:[%s2155_s8 + $0x58] sm:$0xf0] }
  0xc3   : > { %1133 = vmatmul.bf16.vlgmr.msrb.gmra.mxu1 %v1559_v47 }
  0xc5   : > { %1035 = vmatmul.bf16.vlgmr.msrb.gmra.mxu3 %v2223_v36  ;;  %v1594_v36 = vld [vmem:[%s2155_s8 + $0x50] sm:$0xf] }
  0xc6   : > { %v1595_v54 = vor.u32 %v1854_v41, %v1594_v36  ;;  %v401_v41 = vld [vmem:[#allocation2 + $0x8] sm:$0xff] }
  0xd2   : > { %991 = vmatmul.bf16.gmra.mxu2 %v1571_v50  ;;  %1089 = vmatmul.bf16.gmra.mxu0 %v2282_v39  ;;  %v1857_v39 = vld [vmem:[%s2155_s8 + $0x70] sm:$0xf0] }
  0xd3   : > { %1138 = vmatmul.bf16.gmra.mxu1 %v1571_v50 }
  0xd5   : > { %1040 = vmatmul.bf16.gmra.mxu3 %v2275_v32  ;;  %v1606_v32 = vld [vmem:[%s2155_s8 + $0x68] sm:$0xf] }
  0xd6   : > { %v1607_v55 = vor.u32 %v1857_v39, %v1606_v32 }
  0xe2   : > { %996 = vmatmul.bf16.gmra.mxu2 %v1583_v53  ;;  %1094 = vmatmul.bf16.gmra.mxu0 %v1579_v23  ;;  %v1866_v23 = vld [vmem:[%s2155_s8 + $0xb8] sm:$0xf0] }
  0xe3   : > { %1143 = vmatmul.bf16.gmra.mxu1 %v1583_v53 }
  0xe5   : > { %1045 = vmatmul.bf16.gmra.mxu3 %v1575_v21  ;;  %v1642_v21 = vld [vmem:[%s2155_s8 + $0xb0] sm:$0xf] }
  0xe6   : > { %v1643_v27 = vor.u32 %v1866_v23, %v1642_v21 }
  0xf2   : > { %1001 = vmatmul.bf16.gmra.mxu2 %v1595_v54  ;;  %1099 = vmatmul.bf16.gmra.mxu0 %v1591_v43 }
  0xf3   : > { %1148 = vmatmul.bf16.gmra.mxu1 %v1595_v54 }
  0xf5   : > { %1050 = vmatmul.bf16.gmra.mxu3 %v1587_v35 }
  0xff   : > { %v2352_v56 = vpop.f32.mrf.mxu0 }
 0x100   : > { %v2354_v57 = vpop.f32.mrf.mxu1 }
 0x102   : > { %1006 = vmatmul.bf16.gmra.mxu2 %v1607_v55  ;;  %1104 = vmatmul.bf16.gmra.mxu0 %v2232_v42 }
 0x103   : > { %1153 = vmatmul.bf16.gmra.mxu1 %v1607_v55 }
 0x105   : > { %1055 = vmatmul.bf16.gmra.mxu3 %v2225_v37  ;;  %v909_v58 = vpop.f32.mrf.mxu2 }
 0x107   : > { %v2360_v61 = vpop.f32.mrf.mxu0 }
 0x108   : > { %v958_v59 = vpop.f32.mrf.mxu3  ;;  %v2362_v62 = vpop.f32.mrf.mxu1 }
 0x109   : > { %v2358_v60 = vadd.f32 %v958_v59, %v909_v58  ;;  %v941_v55 = vadd.f32 %v2362_v62, %v2360_v61  ;;  %v402_v58 = vld [vmem:[#allocation2 + $0x10] sm:$0xff]  ;;  %v404_v61 = vld [vmem:[#allocation2 + $0x20] sm:$0xff] }
 0x10d   : > { %v911_v1 = vpop.f32.mrf.mxu2 }
 0x10f   : > { %v2368_v42 = vpop.f32.mrf.mxu0 }
 0x110   : > { %v960_v2 = vpop.f32.mrf.mxu3  ;;  %v2370_v37 = vpop.f32.mrf.mxu1 }
 0x111   : > { %v2366_v4 = vadd.f32 %v960_v2, %v911_v1  ;;  %v403_v2 = vld [vmem:[#allocation2 + $0x18] sm:$0xff]  ;;  %v944_v10 = vadd.f32 %v2370_v37, %v2368_v42  ;;  %v406_v42 = vld [vmem:[#allocation2 + $0x30] sm:$0xff] }
 0x112   : > { %1011 = vmatmul.bf16.gmra.mxu2 %v1619_v3  ;;  %1109 = vmatmul.bf16.gmra.mxu0 %v2284_v40 }
 0x113   : > { %1158 = vmatmul.bf16.gmra.mxu1 %v1619_v3 }
 0x115   : > { %1060 = vmatmul.bf16.gmra.mxu3 %v2277_v33  ;;  %v914_v5 = vpop.f32.mrf.mxu2 }
 0x117   : > { %v2376_v8 = vpop.f32.mrf.mxu0 }
 0x118   : > { %v963_v6 = vpop.f32.mrf.mxu3  ;;  %v2378_v9 = vpop.f32.mrf.mxu1 }
 0x119   : > { %v2374_v7 = vadd.f32 %v963_v6, %v914_v5 }
 0x11d   : > { %v916_v12 = vpop.f32.mrf.mxu2 }
 0x11f   : > { %v2384_v40 = vpop.f32.mrf.mxu0 }
 0x120   : > { %v965_v13 = vpop.f32.mrf.mxu3  ;;  %v2386_v33 = vpop.f32.mrf.mxu1 }
 0x121   : > { %v2382_v15 = vadd.f32 %v965_v13, %v916_v12 }
 0x122   : > { %1016 = vmatmul.bf16.gmra.mxu2 %v1631_v14  ;;  %1114 = vmatmul.bf16.gmra.mxu0 %v2320_v24 }
 0x123   : > { %1163 = vmatmul.bf16.gmra.mxu1 %v1631_v14 }
 0x125   : > { %1065 = vmatmul.bf16.gmra.mxu3 %v2318_v22  ;;  %v919_v16 = vpop.f32.mrf.mxu2 }
 0x127   : > { %v2392_v19 = vpop.f32.mrf.mxu0 }
 0x128   : > { %v968_v17 = vpop.f32.mrf.mxu3  ;;  %v2394_v20 = vpop.f32.mrf.mxu1 }
 0x129   : > { %v2390_v18 = vadd.f32 %v968_v17, %v919_v16  ;;  %v405_v17 = vld [vmem:[#allocation2 + $0x28] sm:$0xff] }
 0x12d   : > { %v921_v25 = vpop.f32.mrf.mxu2 }
 0x12f   : > { %v2400_v29 = vpop.f32.mrf.mxu0 }
 0x130   : > { %v970_v26 = vpop.f32.mrf.mxu3  ;;  %v2402_v24 = vpop.f32.mrf.mxu1 }
 0x131   : > { %v2398_v28 = vadd.f32 %v970_v26, %v921_v25  ;;  %v946_v26 = vadd.f32 %v2378_v9, %v2376_v8  ;;  %v408_v8 = vld [vmem:[#allocation2 + $0x40] sm:$0xff] }
 0x132   : > { %1021 = vmatmul.bf16.gmra.mxu2 %v1643_v27  ;;  %1119 = vmatmul.bf16.gmra.mxu0 %v2334_v44  ;;  %v939_v44 = vadd.f32 %v2354_v57, %v2352_v56 }
 0x133   : > { %1168 = vmatmul.bf16.gmra.mxu1 %v1643_v27 }
 0x135   : > { %1070 = vmatmul.bf16.gmra.mxu3 %v2332_v38  ;;  %v924_v22 = vpop.f32.mrf.mxu2 }
 0x137   : > { %v2408_v34 = vpop.f32.mrf.mxu0 }
 0x138   : > { %v973_v30 = vpop.f32.mrf.mxu3  ;;  %v2410_v35 = vpop.f32.mrf.mxu1 }
 0x139   : > { %v2406_v31 = vadd.f32 %v973_v30, %v924_v22 }
 0x13d   : > { %v926_v43 = vpop.f32.mrf.mxu2 }
 0x13f   : > { %v1085_v47 = vpop.f32.mrf.mxu0 }
 0x140   : > { %v975_v45 = vpop.f32.mrf.mxu3  ;;  %v1134_v48 = vpop.f32.mrf.mxu1 }
 0x141   : > { %v2412_v46 = vadd.f32 %v975_v45, %v926_v43 }
 0x145   : > { %v987_v38 = vpop.f32.mrf.mxu2 }
 0x146   : > { %v988_v50 = vadd.f32 %v987_v38, %v939_v44  ;;  %v949_v38 = vadd.f32 %v2386_v33, %v2384_v40  ;;  %v410_v40 = vld [vmem:[#allocation2 + $0x50] sm:$0xff] }
 0x147   : > { %v1087_v53 = vpop.f32.mrf.mxu0 }
 0x148   : > { %v1036_v51 = vpop.f32.mrf.mxu3  ;;  %v1174_v36 = vadd.f32 %v988_v50, %v400_v49  ;;  %v1136_v54 = vpop.f32.mrf.mxu1 }
 0x149   : > { %v1086_v52 = vadd.f32 %v1085_v47, %v1036_v51  ;;  %v407_v47 = vld [vmem:[#allocation2 + $0x38] sm:$0xff] }
 0x14a   : > { %1206 = vst [vmem:[#allocation2] sm:$0xff] %v1174_v36 }
 0x14b   : > { %v1135_v32 = vadd.f32 %v1134_v48, %v1086_v52 }
 0x14d   : > { %v1175_v39 = vadd.f32 %v1135_v32, %v401_v41  ;;  %v989_v56 = vpop.f32.mrf.mxu2  ;;  %v409_v41 = vld [vmem:[#allocation2 + $0x48] sm:$0xff] }
 0x14e   : > { %v990_v57 = vadd.f32 %v989_v56, %v941_v55  ;;  %v951_v55 = vadd.f32 %v2394_v20, %v2392_v19  ;;  %v412_v19 = vld [vmem:[#allocation2 + $0x60] sm:$0xff] }
 0x14f   : > { %1208 = vst.msk [vmem:[#allocation2 + $0x8] sm:$0xff] %vm1207_vm1, %v1175_v39  ;;  %v1090_v0 = vpop.f32.mrf.mxu0 }
 0x150   : > { %v1038_v59 = vpop.f32.mrf.mxu3  ;;  %v1176_v1 = vadd.f32 %v990_v57, %v402_v58  ;;  %v1139_v3 = vpop.f32.mrf.mxu1 }
 0x151   : > { %v1088_v63 = vadd.f32 %v1087_v53, %v1038_v59 }
 0x152   : > { %1209 = vst [vmem:[#allocation2 + $0x10] sm:$0xff] %v1176_v1 }
 0x153   : > { %v1137_v5 = vadd.f32 %v1136_v54, %v1088_v63 }
 0x155   : > { %v1177_v6 = vadd.f32 %v1137_v5, %v403_v2  ;;  %v992_v62 = vpop.f32.mrf.mxu2  ;;  %v954_v5 = vadd.f32 %v2402_v24, %v2400_v29  ;;  %v414_v29 = vld [vmem:[#allocation2 + $0x70] sm:$0xff] }
 0x156   : > { %v993_v11 = vadd.f32 %v992_v62, %v944_v10 }
 0x157   : > { %1210 = vst.msk [vmem:[#allocation2 + $0x18] sm:$0xff] %vm1207_vm1, %v1177_v6  ;;  %v1092_v14 = vpop.f32.mrf.mxu0 }
 0x158   : > { %v1041_v12 = vpop.f32.mrf.mxu3  ;;  %v1178_v16 = vadd.f32 %v993_v11, %v404_v61  ;;  %v1141_v21 = vpop.f32.mrf.mxu1 }
 0x159   : > { %v1091_v13 = vadd.f32 %v1090_v0, %v1041_v12  ;;  %v411_v0 = vld [vmem:[#allocation2 + $0x58] sm:$0xff]  ;;  %v413_v12 = vld [vmem:[#allocation2 + $0x68] sm:$0xff] }
 0x15a   : > { %1211 = vst [vmem:[#allocation2 + $0x20] sm:$0xff] %v1178_v16 }
 0x15b   : > { %v1140_v23 = vadd.f32 %v1139_v3, %v1091_v13 }
 0x15d   : > { %v1179_v25 = vadd.f32 %v1140_v23, %v405_v17  ;;  %v994_v37 = vpop.f32.mrf.mxu2  ;;  %v956_v17 = vadd.f32 %v2410_v35, %v2408_v34 }
 0x15e   : > { %v995_v27 = vadd.f32 %v994_v37, %v946_v26  ;;  %v415_v37 = vld [vmem:[#allocation2 + $0x78] sm:$0xff] }
 0x15f   : > { %1212 = vst.msk [vmem:[#allocation2 + $0x28] sm:$0xff] %vm1207_vm1, %v1179_v25  ;;  %v1095_v43 = vpop.f32.mrf.mxu0 }
 0x160   : > { %v1043_v22 = vpop.f32.mrf.mxu3  ;;  %v1180_v45 = vadd.f32 %v995_v27, %v406_v42  ;;  %v1144_v48 = vpop.f32.mrf.mxu1 }
 0x161   : > { %v1093_v30 = vadd.f32 %v1092_v14, %v1043_v22 }
 0x162   : > { %1213 = vst [vmem:[#allocation2 + $0x30] sm:$0xff] %v1180_v45 }
 0x163   : > { %v1142_v44 = vadd.f32 %v1141_v21, %v1093_v30 }
 0x165   : > { %v1181_v49 = vadd.f32 %v1142_v44, %v407_v47  ;;  %v997_v9 = vpop.f32.mrf.mxu2 }
 0x166   : > { %v998_v50 = vadd.f32 %v997_v9, %v949_v38 }
 0x167   : > { %1214 = vst.msk [vmem:[#allocation2 + $0x38] sm:$0xff] %vm1207_vm1, %v1181_v49  ;;  %v1097_v53 = vpop.f32.mrf.mxu0  ;;  %v417_v49 = vld [vmem:[#allocation2 + $0x88] sm:$0xff] }
 0x168   : > { %v1046_v51 = vpop.f32.mrf.mxu3  ;;  %v1182_v36 = vadd.f32 %v998_v50, %v408_v8  ;;  %v1146_v54 = vpop.f32.mrf.mxu1  ;;  %v418_v50 = vld [vmem:[#allocation2 + $0x90] sm:$0xff] }
 0x169   : > { %v1096_v52 = vadd.f32 %v1095_v43, %v1046_v51  ;;  %v416_v43 = vld [vmem:[#allocation2 + $0x80] sm:$0xff] }
 0x16a   : > { %1215 = vst [vmem:[#allocation2 + $0x40] sm:$0xff] %v1182_v36 }
 0x16b   : > { %v1145_v32 = vadd.f32 %v1144_v48, %v1096_v52 }
 0x16d   : > { %v1183_v39 = vadd.f32 %v1145_v32, %v409_v41  ;;  %v999_v33 = vpop.f32.mrf.mxu2 }
 0x16e   : > { %v1000_v58 = vadd.f32 %v999_v33, %v951_v55 }
 0x16f   : > { %1216 = vst.msk [vmem:[#allocation2 + $0x48] sm:$0xff] %vm1207_vm1, %v1183_v39  ;;  %v1100_v59 = vpop.f32.mrf.mxu0 }
 0x170   : > { %v1048_v56 = vpop.f32.mrf.mxu3  ;;  %v1184_v63 = vadd.f32 %v1000_v58, %v410_v40  ;;  %v1149_v1 = vpop.f32.mrf.mxu1  ;;  %v420_v40 = vld [vmem:[#allocation2 + $0xa0] sm:$0xff] }
 0x171   : > { %v1098_v57 = vadd.f32 %v1097_v53, %v1048_v56 }
 0x172   : > { %1217 = vst [vmem:[#allocation2 + $0x50] sm:$0xff] %v1184_v63 }
 0x173   : > { %v1147_v2 = vadd.f32 %v1146_v54, %v1098_v57 }
 0x175   : > { %v1185_v3 = vadd.f32 %v1147_v2, %v411_v0  ;;  %v1002_v20 = vpop.f32.mrf.mxu2 }
 0x176   : > { %v1003_v6 = vadd.f32 %v1002_v20, %v954_v5 }
 0x177   : > { %1218 = vst.msk [vmem:[#allocation2 + $0x58] sm:$0xff] %vm1207_vm1, %v1185_v3  ;;  %v1102_v62 = vpop.f32.mrf.mxu0  ;;  %v422_v3 = vld [vmem:[#allocation2 + $0xb0] sm:$0xff] }
 0x178   : > { %v1051_v10 = vpop.f32.mrf.mxu3  ;;  %v1186_v11 = vadd.f32 %v1003_v6, %v412_v19  ;;  %v1151_v13 = vpop.f32.mrf.mxu1 }
 0x179   : > { %v1101_v61 = vadd.f32 %v1100_v59, %v1051_v10 }
 0x17a   : > { %1219 = vst [vmem:[#allocation2 + $0x60] sm:$0xff] %v1186_v11 }
 0x17b   : > { %v1150_v14 = vadd.f32 %v1149_v1, %v1101_v61  ;;  %v423_v61 = vld [vmem:[#allocation2 + $0xb8] sm:$0xff] }
 0x17d   : > { %v1187_v16 = vadd.f32 %v1150_v14, %v413_v12  ;;  %v1004_v24 = vpop.f32.mrf.mxu2 }
 0x17e   : > { %v1005_v21 = vadd.f32 %v1004_v24, %v956_v17 }
 0x17f   : > { %1220 = vst.msk [vmem:[#allocation2 + $0x68] sm:$0xff] %vm1207_vm1, %v1187_v16  ;;  %v1105_v26 = vpop.f32.mrf.mxu0 }
 0x180   : > { %v1053_v23 = vpop.f32.mrf.mxu3  ;;  %v1188_v42 = vadd.f32 %v1005_v21, %v414_v29  ;;  %v1154_v27 = vpop.f32.mrf.mxu1  ;;  %v425_v21 = vld [vmem:[#allocation2 + $0xc8] sm:$0xff] }
 0x181   : > { %v1103_v25 = vadd.f32 %v1102_v62, %v1053_v23 }
 0x182   : > { %1221 = vst [vmem:[#allocation2 + $0x70] sm:$0xff] %v1188_v42  ;;  %v426_v42 = vld [vmem:[#allocation2 + $0xd0] sm:$0xff] }
 0x183   : > { %v1152_v22 = vadd.f32 %v1151_v13, %v1103_v25  ;;  %v424_v13 = vld [vmem:[#allocation2 + $0xc0] sm:$0xff] }
 0x185   : > { %v1189_v30 = vadd.f32 %v1152_v22, %v415_v37  ;;  %v1007_v45 = vpop.f32.mrf.mxu2 }
 0x186   : > { %v1008_v34 = vadd.f32 %v1007_v45, %v2358_v60  ;;  %v419_v60 = vld [vmem:[#allocation2 + $0x98] sm:$0xff] }
 0x187   : > { %1222 = vst.msk [vmem:[#allocation2 + $0x78] sm:$0xff] %vm1207_vm1, %v1189_v30  ;;  %v1107_v48 = vpop.f32.mrf.mxu0  ;;  %v427_v45 = vld [vmem:[#allocation2 + $0xd8] sm:$0xff] }
 0x188   : > { %v1056_v35 = vpop.f32.mrf.mxu3  ;;  %v1190_v44 = vadd.f32 %v1008_v34, %v416_v43  ;;  %v1156_v38 = vpop.f32.mrf.mxu1 }
 0x189   : > { %v1106_v47 = vadd.f32 %v1105_v26, %v1056_v35 }
 0x18a   : > { %1223 = vst [vmem:[#allocation2 + $0x80] sm:$0xff] %v1190_v44 }
 0x18b   : > { %v1155_v8 = vadd.f32 %v1154_v27, %v1106_v47  ;;  %v428_v47 = vld [vmem:[#allocation2 + $0xe0] sm:$0xff] }
 0x18d   : > { %v1191_v9 = vadd.f32 %v1155_v8, %v417_v49  ;;  %v1009_v51 = vpop.f32.mrf.mxu2 }
 0x18e   : > { %v1010_v52 = vadd.f32 %v1009_v51, %v2366_v4  ;;  %v421_v4 = vld [vmem:[#allocation2 + $0xa8] sm:$0xff] }
 0x18f   : > { %1224 = vst.msk [vmem:[#allocation2 + $0x88] sm:$0xff] %vm1207_vm1, %v1191_v9  ;;  %v1110_v41 = vpop.f32.mrf.mxu0 }
 0x190   : > { %v1058_v53 = vpop.f32.mrf.mxu3  ;;  %v1192_v54 = vadd.f32 %v1010_v52, %v418_v50  ;;  %v1159_v32 = vpop.f32.mrf.mxu1  ;;  %v429_v50 = vld [vmem:[#allocation2 + $0xe8] sm:$0xff]  ;;  %v430_v52 = vld [vmem:[#allocation2 + $0xf0] sm:$0xff] }
 0x191   : > { %v1108_v36 = vadd.f32 %v1107_v48, %v1058_v53 }
 0x192   : > { %1225 = vst [vmem:[#allocation2 + $0x90] sm:$0xff] %v1192_v54 }
 0x193   : > { %v1157_v39 = vadd.f32 %v1156_v38, %v1108_v36 }
 0x195   : > { %v1193_v55 = vadd.f32 %v1157_v39, %v419_v60  ;;  %v1012_v33 = vpop.f32.mrf.mxu2 }
 0x196   : > { %v1013_v58 = vadd.f32 %v1012_v33, %v2374_v7 }
 0x197   : > { %1226 = vst.msk [vmem:[#allocation2 + $0x98] sm:$0xff] %vm1207_vm1, %v1193_v55  ;;  %v1112_v59 = vpop.f32.mrf.mxu0  ;;  %v431_v55 = vld [vmem:[#allocation2 + $0xf8] sm:$0xff] }
 0x198   : > { %v1061_v56 = vpop.f32.mrf.mxu3  ;;  %v1194_v63 = vadd.f32 %v1013_v58, %v420_v40  ;;  %v1161_v0 = vpop.f32.mrf.mxu1 }
 0x199   : > { %v1111_v57 = vadd.f32 %v1110_v41, %v1061_v56 }
 0x19a   : > { %1227 = vst [vmem:[#allocation2 + $0xa0] sm:$0xff] %v1194_v63 }
 0x19b   : > { %v1160_v1 = vadd.f32 %v1159_v32, %v1111_v57 }
 0x19d   : > { %v1195_v2 = vadd.f32 %v1160_v1, %v421_v4  ;;  %v1014_v5 = vpop.f32.mrf.mxu2 }
 0x19e   : > { %v1015_v19 = vadd.f32 %v1014_v5, %v2382_v15 }
 0x19f   : > { %1228 = vst.msk [vmem:[#allocation2 + $0xa8] sm:$0xff] %vm1207_vm1, %v1195_v2  ;;  %v1115_v7 = vpop.f32.mrf.mxu0 }
 0x1a0   : > { %v1063_v20 = vpop.f32.mrf.mxu3  ;;  %v1196_v10 = vadd.f32 %v1015_v19, %v422_v3  ;;  %v1164_v11 = vpop.f32.mrf.mxu1 }
 0x1a1   : > { %v1113_v6 = vadd.f32 %v1112_v59, %v1063_v20 }
 0x1a2   : > { %1229 = vst [vmem:[#allocation2 + $0xb0] sm:$0xff] %v1196_v10 }
 0x1a3   : > { %v1162_v62 = vadd.f32 %v1161_v0, %v1113_v6 }
 0x1a5   : > { %v1197_v12 = vadd.f32 %v1162_v62, %v423_v61  ;;  %v1017_v14 = vpop.f32.mrf.mxu2 }
 0x1a6   : > { %v1018_v16 = vadd.f32 %v1017_v14, %v2390_v18 }
 0x1a7   : > { %1230 = vst.msk [vmem:[#allocation2 + $0xb8] sm:$0xff] %vm1207_vm1, %v1197_v12  ;;  %v1117_v23 = vpop.f32.mrf.mxu0 }
 0x1a8   : > { %v1066_v17 = vpop.f32.mrf.mxu3  ;;  %v1198_v24 = vadd.f32 %v1018_v16, %v424_v13  ;;  %v1166_v26 = vpop.f32.mrf.mxu1 }
 0x1a9   : > { %v1116_v29 = vadd.f32 %v1115_v7, %v1066_v17 }
 0x1aa   : > { %1231 = vst [vmem:[#allocation2 + $0xc0] sm:$0xff] %v1198_v24 }
 0x1ab   : > { %v1165_v15 = vadd.f32 %v1164_v11, %v1116_v29 }
 0x1ad   : > { %v1199_v25 = vadd.f32 %v1165_v15, %v425_v21  ;;  %v1019_v37 = vpop.f32.mrf.mxu2 }
 0x1ae   : > { %v1020_v27 = vadd.f32 %v1019_v37, %v2398_v28 }
 0x1af   : > { %1232 = vst.msk [vmem:[#allocation2 + $0xc8] sm:$0xff] %vm1207_vm1, %v1199_v25  ;;  %v1120_v35 = vpop.f32.mrf.mxu0 }
 0x1b0   : > { %v1068_v22 = vpop.f32.mrf.mxu3  ;;  %v1200_v43 = vadd.f32 %v1020_v27, %v426_v42  ;;  %v1169_v44 = vpop.f32.mrf.mxu1 }
 0x1b1   : > { %v1118_v30 = vadd.f32 %v1117_v23, %v1068_v22 }
 0x1b2   : > { %1233 = vst [vmem:[#allocation2 + $0xd0] sm:$0xff] %v1200_v43 }
 0x1b3   : > { %v1167_v18 = vadd.f32 %v1166_v26, %v1118_v30 }
 0x1b5   : > { %v1201_v34 = vadd.f32 %v1167_v18, %v427_v45  ;;  %v1022_v48 = vpop.f32.mrf.mxu2 }
 0x1b6   : > { %v1023_v49 = vadd.f32 %v1022_v48, %v2406_v31 }
 0x1b7   : > { %1234 = vst.msk [vmem:[#allocation2 + $0xd8] sm:$0xff] %vm1207_vm1, %v1201_v34  ;;  %v1122_v36 = vpop.f32.mrf.mxu0 }
 0x1b8   : > { %v1071_v38 = vpop.f32.mrf.mxu3  ;;  %v1202_v9 = vadd.f32 %v1023_v49, %v428_v47  ;;  %v1171_v32 = vpop.f32.mrf.mxu1 }
 0x1b9   : > { %v1121_v8 = vadd.f32 %v1120_v35, %v1071_v38 }
 0x1ba   : > { %1235 = vst [vmem:[#allocation2 + $0xe0] sm:$0xff] %v1202_v9 }
 0x1bb   : > { %v1170_v28 = vadd.f32 %v1169_v44, %v1121_v8 }
 0x1bd   : > { %v1203_v51 = vadd.f32 %v1170_v28, %v429_v50  ;;  %v1024_v53 = vpop.f32.mrf.mxu2 }
 0x1be   : > { %v1025_v41 = vadd.f32 %v1024_v53, %v2412_v46 }
 0x1bf   : > { %1236 = vst.msk [vmem:[#allocation2 + $0xe8] sm:$0xff] %vm1207_vm1, %v1203_v51 }
 0x1c0   : > { %v1073_v54 = vpop.f32.mrf.mxu3  ;;  %v1204_v39 = vadd.f32 %v1025_v41, %v430_v52 }
 0x1c1   : > { %v1123_v60 = vadd.f32 %v1122_v36, %v1073_v54 }
 0x1c2   : > { %1237 = vst [vmem:[#allocation2 + $0xf0] sm:$0xff] %v1204_v39 }
 0x1c3   : > { %v1172_v31 = vadd.f32 %v1171_v32, %v1123_v60  ;;  %1242 = sbr.rel (%p1836_p11) target bundleno = 484 (0x1e4), region = 66 }
 0x1c5   : > { %v1205_v40 = vadd.f32 %v1172_v31, %v431_v55 }
 0x1c7   : > { %1238 = vst.msk [vmem:[#allocation2 + $0xf8] sm:$0xff] %vm1207_vm1, %v1205_v40 }
 0x1c8   : > { %v1243_v33 = vld [vmem:[#allocation2] sm:$0xff]  ;;  %v1244_v58 = vld [vmem:[#allocation2 + $0x8] sm:$0xff]  ;;  %v1245_v59 = vld [vmem:[#allocation2 + $0x10] sm:$0xff]  ;;  %vm1361_vm2 = vcmask 1043456   ;;  %vm1362_vm3 = vcmask 523268  }
 0x1c9   : > { %v1275_v56 = vld [vmem:[%s2597_s2] sm:$0x3]  ;;  %v1246_v63 = vld [vmem:[#allocation2 + $0x18] sm:$0xff]  ;;  %v1248_v0 = vld [vmem:[#allocation2 + $0x28] sm:$0xff] }
 0x1ca   : > { %v2458_v46 = vperm.slane %v1275_v56, 0  ;;  %v2460_v57 = vperm.slane %v1275_v56, 1  ;;  %v1247_v4 = vld [vmem:[#allocation2 + $0x20] sm:$0xff]  ;;  %v1249_v1 = vld [vmem:[#allocation2 + $0x30] sm:$0xff]  ;;  %v1250_v20 = vld [vmem:[#allocation2 + $0x38] sm:$0xff] }
 0x1cb   : > { %v1251_v62 = vld [vmem:[#allocation2 + $0x40] sm:$0xff]  ;;  %v1252_v11 = vld [vmem:[#allocation2 + $0x48] sm:$0xff]  ;;  %v1253_v17 = vld [vmem:[#allocation2 + $0x50] sm:$0xff] }
 0x1cc   : > { %v1281_v2 = vadd.f32 %v2458_v46, %v1243_v33  ;;  %v1282_v3 = vadd.f32 %v2460_v57, %v1244_v58  ;;  %v1283_v5 = vadd.f32 %v2458_v46, %v1245_v59  ;;  %v1284_v19 = vadd.f32 %v2460_v57, %v1246_v63  ;;  %v1254_v29 = vld [vmem:[#allocation2 + $0x58] sm:$0xff]  ;;  %vm2472_vm4 = vmor %vm1362_vm3, %vm1361_vm2  ;;  %v1255_v26 = vld [vmem:[#allocation2 + $0x60] sm:$0xff] }
 0x1cd   : > { %v1285_v6 = vadd.f32 %v2458_v46, %v1247_v4  ;;  %v1286_v10 = vadd.f32 %v2460_v57, %v1248_v0  ;;  %v1287_v61 = vadd.f32 %v2458_v46, %v1249_v1  ;;  %v1288_v7 = vadd.f32 %v2460_v57, %v1250_v20  ;;  %v1256_v42 = vld [vmem:[#allocation2 + $0x68] sm:$0xff]  ;;  %v1257_v43 = vld [vmem:[#allocation2 + $0x70] sm:$0xff]  ;;  %v1258_v45 = vld [vmem:[#allocation2 + $0x78] sm:$0xff] }
 0x1ce   : > { %v1313_v12 = vmax.f32 %v1281_v2, 0.0  ;;  %v1314_v13 = vmax.f32 %v1282_v3, 0.0  ;;  %v1315_v14 = vmax.f32 %v1283_v5, 0.0  ;;  %v1316_v16 = vmax.f32 %v1284_v19, 0.0  ;;  %v1259_v48 = vld [vmem:[#allocation2 + $0x80] sm:$0xff]  ;;  %v1260_v9 = vld [vmem:[#allocation2 + $0x88] sm:$0xff] }
 0x1cf   : > { %v1317_v21 = vmax.f32 %v1285_v6, 0.0  ;;  %v1318_v15 = vmax.f32 %v1286_v10, 0.0  ;;  %v1319_v23 = vmax.f32 %v1287_v61, 0.0  ;;  %v1320_v25 = vmax.f32 %v1288_v7, 0.0  ;;  %v1261_v53 = vld [vmem:[#allocation2 + $0x90] sm:$0xff]  ;;  %v1262_v36 = vld [vmem:[#allocation2 + $0x98] sm:$0xff] }
 0x1d0   : > { %v1345_v37 = vpack.c.bf16 %v1314_v13, %v1313_v12  ;;  %v1346_v27 = vpack.c.bf16 %v1316_v16, %v1315_v14  ;;  %v1289_v22 = vadd.f32 %v2458_v46, %v1251_v62  ;;  %v1290_v30 = vadd.f32 %v2460_v57, %v1252_v11  ;;  %v1263_v39 = vld [vmem:[#allocation2 + $0xa0] sm:$0xff]  ;;  %v1264_v55 = vld [vmem:[#allocation2 + $0xa8] sm:$0xff]  ;;  %v1265_v56 = vld [vmem:[#allocation2 + $0xb0] sm:$0xff] }
 0x1d1   : > { %v1347_v18 = vpack.c.bf16 %v1318_v15, %v1317_v21  ;;  %v1348_v34 = vpack.c.bf16 %v1320_v25, %v1319_v23  ;;  %v1291_v35 = vadd.f32 %v2458_v46, %v1253_v17  ;;  %v1292_v47 = vadd.f32 %v2460_v57, %v1254_v29  ;;  %v1266_v59 = vld [vmem:[#allocation2 + $0xb8] sm:$0xff]  ;;  %v1267_v2 = vld [vmem:[#allocation2 + $0xc0] sm:$0xff]  ;;  %v1268_v6 = vld [vmem:[#allocation2 + $0xc8] sm:$0xff] }
 0x1d2   : > { %1364 = vst.msk [vmem:[%s2598_s3] sm:$0xff] %vm2472_vm4, %v1345_v37  ;;  %v1321_v44 = vmax.f32 %v1289_v22, 0.0  ;;  %v1322_v49 = vmax.f32 %v1290_v30, 0.0  ;;  %v1293_v38 = vadd.f32 %v2458_v46, %v1255_v26  ;;  %v1294_v8 = vadd.f32 %v2460_v57, %v1256_v42  ;;  %v1269_v11 = vld [vmem:[#allocation2 + $0xd0] sm:$0xff]  ;;  %v1270_v12 = vld [vmem:[#allocation2 + $0xd8] sm:$0xff]  ;;  %v1271_v29 = vld [vmem:[#allocation2 + $0xe0] sm:$0xff] }
 0x1d3   : > { %1365 = vst.msk [vmem:[%s2598_s3 + $0x8] sm:$0xff] %vm2472_vm4, %v1346_v27  ;;  %v1323_v50 = vmax.f32 %v1291_v35, 0.0  ;;  %v1324_v28 = vmax.f32 %v1292_v47, 0.0  ;;  %v1295_v51 = vadd.f32 %v2458_v46, %v1257_v43  ;;  %v1296_v52 = vadd.f32 %v2460_v57, %v1258_v45  ;;  %v1272_v21 = vld [vmem:[#allocation2 + $0xe8] sm:$0xff]  ;;  %v1273_v42 = vld [vmem:[#allocation2 + $0xf0] sm:$0xff]  ;;  %v1274_v37 = vld [vmem:[#allocation2 + $0xf8] sm:$0xff] }
 0x1d4   : > { %1366 = vst.msk [vmem:[%s2598_s3 + $0x10] sm:$0xff] %vm2472_vm4, %v1347_v18  ;;  %v1349_v41 = vpack.c.bf16 %v1322_v49, %v1321_v44  ;;  %v1325_v54 = vmax.f32 %v1293_v38, 0.0  ;;  %v1326_v60 = vmax.f32 %v1294_v8, 0.0  ;;  %v1297_v32 = vadd.f32 %v2458_v46, %v1259_v48 }
 0x1d5   : > { %1367 = vst.msk [vmem:[%s2598_s3 + $0x18] sm:$0xff] %vm2472_vm4, %v1348_v34  ;;  %v1350_v31 = vpack.c.bf16 %v1324_v28, %v1323_v50  ;;  %v1327_v40 = vmax.f32 %v1295_v51, 0.0  ;;  %v1328_v33 = vmax.f32 %v1296_v52, 0.0  ;;  %v1298_v58 = vadd.f32 %v2460_v57, %v1260_v9 }
 0x1d6   : > { %1368 = vst.msk [vmem:[%s2598_s3 + $0x20] sm:$0xff] %vm2472_vm4, %v1349_v41  ;;  %v1351_v63 = vpack.c.bf16 %v1326_v60, %v1325_v54  ;;  %v1329_v4 = vmax.f32 %v1297_v32, 0.0  ;;  %v1299_v0 = vadd.f32 %v2458_v46, %v1261_v53  ;;  %v1300_v1 = vadd.f32 %v2460_v57, %v1262_v36 }
 0x1d7   : > { %1369 = vst.msk [vmem:[%s2598_s3 + $0x28] sm:$0xff] %vm2472_vm4, %v1350_v31  ;;  %v1352_v3 = vpack.c.bf16 %v1328_v33, %v1327_v40  ;;  %v1330_v5 = vmax.f32 %v1298_v58, 0.0  ;;  %v1301_v19 = vadd.f32 %v2458_v46, %v1263_v39  ;;  %v1302_v20 = vadd.f32 %v2460_v57, %v1264_v55 }
 0x1d8   : > { %1370 = vst.msk [vmem:[%s2598_s3 + $0x30] sm:$0xff] %vm2472_vm4, %v1351_v63  ;;  %v1331_v10 = vmax.f32 %v1299_v0, 0.0  ;;  %v1332_v61 = vmax.f32 %v1300_v1, 0.0  ;;  %v1303_v7 = vadd.f32 %v2458_v46, %v1265_v56  ;;  %v1304_v62 = vadd.f32 %v2460_v57, %v1266_v59 }
 0x1d9   : > { %1371 = vst.msk [vmem:[%s2598_s3 + $0x38] sm:$0xff] %vm2472_vm4, %v1352_v3  ;;  %v1353_v13 = vpack.c.bf16 %v1330_v5, %v1329_v4  ;;  %v1333_v14 = vmax.f32 %v1301_v19, 0.0  ;;  %v1334_v16 = vmax.f32 %v1302_v20, 0.0  ;;  %v1305_v17 = vadd.f32 %v2458_v46, %v1267_v2 }
 0x1da   : > { %v1354_v15 = vpack.c.bf16 %v1332_v61, %v1331_v10  ;;  %v1335_v23 = vmax.f32 %v1303_v7, 0.0  ;;  %v1336_v25 = vmax.f32 %v1304_v62, 0.0  ;;  %v1306_v26 = vadd.f32 %v2460_v57, %v1268_v6 }
 0x1db   : > { %1372 = vst.msk [vmem:[%s2598_s3 + $0x40] sm:$0xff] %vm2472_vm4, %v1353_v13  ;;  %v1355_v27 = vpack.c.bf16 %v1334_v16, %v1333_v14  ;;  %v1337_v22 = vmax.f32 %v1305_v17, 0.0  ;;  %v1307_v30 = vadd.f32 %v2458_v46, %v1269_v11  ;;  %v1308_v43 = vadd.f32 %v2460_v57, %v1270_v12 }
 0x1dc   : > { %1373 = vst.msk [vmem:[%s2598_s3 + $0x48] sm:$0xff] %vm2472_vm4, %v1354_v15  ;;  %v1356_v45 = vpack.c.bf16 %v1336_v25, %v1335_v23  ;;  %v1338_v18 = vmax.f32 %v1306_v26, 0.0  ;;  %v1309_v34 = vadd.f32 %v2458_v46, %v1271_v29  ;;  %v1310_v35 = vadd.f32 %v2460_v57, %v1272_v21 }
 0x1dd   : > { %1374 = vst.msk [vmem:[%s2598_s3 + $0x50] sm:$0xff] %vm2472_vm4, %v1355_v27  ;;  %v1339_v47 = vmax.f32 %v1307_v30, 0.0  ;;  %v1340_v48 = vmax.f32 %v1308_v43, 0.0  ;;  %v1311_v44 = vadd.f32 %v2458_v46, %v1273_v42  ;;  %v1312_v49 = vadd.f32 %v2460_v57, %v1274_v37 }
 0x1de   : > { %1375 = vst.msk [vmem:[%s2598_s3 + $0x58] sm:$0xff] %vm2472_vm4, %v1356_v45  ;;  %v1357_v38 = vpack.c.bf16 %v1338_v18, %v1337_v22  ;;  %v1341_v8 = vmax.f32 %v1309_v34, 0.0  ;;  %v1342_v9 = vmax.f32 %v1310_v35, 0.0 }
 0x1df   : > { %v1358_v50 = vpack.c.bf16 %v1340_v48, %v1339_v47  ;;  %v1343_v28 = vmax.f32 %v1311_v44, 0.0  ;;  %v1344_v51 = vmax.f32 %v1312_v49, 0.0 }
 0x1e0   : > { %1376 = vst.msk [vmem:[%s2598_s3 + $0x60] sm:$0xff] %vm2472_vm4, %v1357_v38  ;;  %v1359_v46 = vpack.c.bf16 %v1342_v9, %v1341_v8 }
 0x1e1   : > { %1377 = vst.msk [vmem:[%s2598_s3 + $0x68] sm:$0xff] %vm2472_vm4, %v1358_v50  ;;  %v1360_v57 = vpack.c.bf16 %v1344_v51, %v1343_v28 }
 0x1e2   : > { %1378 = vst.msk [vmem:[%s2598_s3 + $0x70] sm:$0xff] %vm2472_vm4, %v1359_v46 }
 0x1e3   : > { %1379 = vst.msk [vmem:[%s2598_s3 + $0x78] sm:$0xff] %vm2472_vm4, %v1360_v57 }
 0x1e4 PF: > { %s13_s16 = sadd.s32 1, %s2012_s16   ;;  %s2601_s12 = smov %s2000_s13 }
 0x1e5   : > { %p10_p12 = scmp.ge.s32.totalorder %s13_s16, 5   ;;  %s2602_s13 = smov %s2070_s20 }
 0x1e6   : > { %s2603_s14 = smov %s2008_s15  ;;  %s2604_s15 = smov %s2606_s17 }
 0x1e7   :  { %12 = sbr.rel (!%p10_p12) target bundleno = 3 (0x3), region = 113 }

// kernel: allconv_forward.14
= control target key start
LH: loop header
LB: loop body
LE: loop exit
PB: predicated region body
PF: predicated region fallthrough
CT: control target
= control target key end

     0   :  { %s1611_s12 = smov 0   ;;  %s1613_s13 = smov 0   ;;  %s1953_s0 = inlined_call_operand.vmem [shape: bf16[128,1792], index: 0, kind: input, shape index: {}]   ;;  %s1954_s1 = inlined_call_operand.vmem [shape: bf16[1792,192], index: 1, kind: input, shape index: {}]   ;;  %s1955_s2 = inlined_call_operand.vmem [shape: f32[1,192], index: 2, kind: input, shape index: {}]   ;;  %s1956_s3 = inlined_call_operand.vmem [shape: bf16[128,192], index: 3, kind: output, shape index: {}]  }
   0x1   :  { %s1615_s14 = smov 0   ;;  %s1617_s15 = smov 0  }
   0x2   :  { %s1619_s16 = smov 0  }
   0x3 LB: > { %s25_s17 = sadd.s32 1, %s1584_s15  ;;  %p48_p1 = scmp.ne.s32.totalorder %s1576_s13, %s1572_s12  ;;  %s1588_s16 = sphi %s1619_s16, %s13_s16   ;;  %s1584_s15 = sphi %s1617_s15, %s1962_s15   ;;  %s1580_s14 = sphi %s1615_s14, %s1961_s14   ;;  %s1576_s13 = sphi %s1613_s13, %s1960_s13   ;;  %s1572_s12 = sphi %s1611_s12, %s1959_s12  }
   0x4   : > { %p26_p0 = scmp.ge.s32.totalorder %s25_s17, 7  ;;  %p49_p2 = scmp.eq.s32.totalorder %s1588_s16, 0 }
   0x5   : > { %s41_s19 = sadd.s32 1, %s1576_s13  ;;  %p1252_p5 = scmp.ge.s32.totalorder %s1588_s16, 7 }
   0x6   : > { %s1964_s17 = smov (%p26_p0, %s25_s17), 0  ;;  %p50_p3 = por %p49_p2, %p48_p1 }
   0x7   : > { %s37_s18 = ssub.s32 %s1584_s15, %s1964_s17  ;;  %164 = sbr.rel (%p1252_p5) target bundleno = 32 (0x20), region = 20 }
   0x8   : > { %p39_p4 = scmp.eq.s32.totalorder %s37_s18, 0 }
   0xa   : > { %s1646_s20 = scalar_select %p39_p4, %s1576_s13, %s41_s19  }
   0xc   : > { %167 = sbr.rel (!%p50_p3) target bundleno = 32 (0x20), region = 24  ;;  %s169_s21 = sand.u32 (%p50_p3), 1, %s1576_s13  }
   0xd   : > { %s1459_s22 = sshll.u32 (%p50_p3), %s1584_s15, 3  ;;  %s1253_s23 = sshll.u32 (%p50_p3), %s169_s21, 7 }
   0xe   : > { %s1654_s26 = scalar_lea.vmem (%p50_p3), %s1953_s0, %s1459_s22  ;;  %s171_s27 = scalar_lea.vmem (%p50_p3), [#allocation3], %s1253_s23 }
   0xf   : > { %v236_v0 = vld [vmem:[%s1654_s26] sm:$0xff] (%p50_p3)  ;;  %v238_v1 = vld [vmem:[%s1654_s26 + $0x38] sm:$0xff] (%p50_p3)  ;;  %v240_v2 = vld [vmem:[%s1654_s26 + $0x70] sm:$0xff] (%p50_p3) }
  0x10   : > { %237 = vst [vmem:[%s171_s27] sm:$0xff] (%p50_p3), %v236_v0  ;;  %v242_v3 = vld [vmem:[%s1654_s26 + $0xa8] sm:$0xff] (%p50_p3)  ;;  %v244_v4 = vld [vmem:[%s1654_s26 + $0xe0] sm:$0xff] (%p50_p3)  ;;  %v246_v5 = vld [vmem:[%s1654_s26 + $0x118] sm:$0xff] (%p50_p3) }
  0x11   : > { %239 = vst [vmem:[%s171_s27 + $0x8] sm:$0xff] %v238_v1  ;;  %v248_v6 = vld [vmem:[%s1654_s26 + $0x150] sm:$0xff]  ;;  %v250_v7 = vld [vmem:[%s1654_s26 + $0x188] sm:$0xff]  ;;  %v252_v8 = vld [vmem:[%s1654_s26 + $0x1c0] sm:$0xff] }
  0x12   : > { %241 = vst [vmem:[%s171_s27 + $0x10] sm:$0xff] %v240_v2  ;;  %v254_v9 = vld [vmem:[%s1654_s26 + $0x1f8] sm:$0xff]  ;;  %v256_v10 = vld [vmem:[%s1654_s26 + $0x230] sm:$0xff]  ;;  %v258_v11 = vld [vmem:[%s1654_s26 + $0x268] sm:$0xff] }
  0x13   : > { %243 = vst [vmem:[%s171_s27 + $0x18] sm:$0xff] %v242_v3  ;;  %v260_v12 = vld [vmem:[%s1654_s26 + $0x2a0] sm:$0xff]  ;;  %v262_v13 = vld [vmem:[%s1654_s26 + $0x2d8] sm:$0xff]  ;;  %v264_v14 = vld [vmem:[%s1654_s26 + $0x310] sm:$0xff] }
  0x14   : > { %245 = vst [vmem:[%s171_s27 + $0x20] sm:$0xff] %v244_v4  ;;  %v266_v15 = vld [vmem:[%s1654_s26 + $0x348] sm:$0xff] }
  0x15   : > { %247 = vst [vmem:[%s171_s27 + $0x28] sm:$0xff] %v246_v5 }
  0x16   : > { %249 = vst [vmem:[%s171_s27 + $0x30] sm:$0xff] %v248_v6 }
  0x17   : > { %251 = vst [vmem:[%s171_s27 + $0x38] sm:$0xff] %v250_v7 }
  0x18   : > { %253 = vst [vmem:[%s171_s27 + $0x40] sm:$0xff] %v252_v8 }
  0x19   : > { %255 = vst [vmem:[%s171_s27 + $0x48] sm:$0xff] %v254_v9 }
  0x1a   : > { %257 = vst [vmem:[%s171_s27 + $0x50] sm:$0xff] %v256_v10 }
  0x1b   : > { %259 = vst [vmem:[%s171_s27 + $0x58] sm:$0xff] %v258_v11 }
  0x1c   : > { %261 = vst [vmem:[%s171_s27 + $0x60] sm:$0xff] %v260_v12 }
  0x1d   : > { %263 = vst [vmem:[%s171_s27 + $0x68] sm:$0xff] %v262_v13 }
  0x1e   : > { %265 = vst [vmem:[%s171_s27 + $0x70] sm:$0xff] %v264_v14 }
  0x1f   : > { %267 = vst [vmem:[%s171_s27 + $0x78] sm:$0xff] %v266_v15 }
  0x20 PF: > { %p1256_p6 = scmp.ge.s32.totalorder %s1588_s16, 1  ;;  %p287_p7 = scmp.lt.s32.totalorder %s1588_s16, 8 }
  0x22   : > { %p288_p8 = pnand %p1256_p6, %p287_p7 }
  0x23   : > { %s294_s28 = sand.u32 (!%p288_p8), 1, %s1572_s12   ;;  %s1258_s29 = sshll.u32 (!%p288_p8), %s1580_s14, 5 }
  0x24   : > { %291 = sbr.rel (%p288_p8) target bundleno = 400 (0x190), region = 66  ;;  %s1257_s30 = sshll.u32 (!%p288_p8), %s294_s28, 7 }
  0x25   : > { %p340_p9 = scmp.lt.s32.totalorder (!%p288_p8), %s1258_s29, 223  ;;  %s1681_s8 = scalar_lea.vmem (!%p288_p8), [#allocation3], %s1257_s30 }
  0x26   : > { %p1261_p10 = scmp.ne.s32.totalorder (!%p288_p8), %s1580_s14, 0 }
  0x29   : > { %s1966_s29 = smov (!%p340_p9, %s1258_s29), 223  ;;  %370 = sbr.rel (%p1261_p10) target bundleno = 79 (0x4f), region = 74 }
  0x2a   : > { %s1460_s4 = sshll.u32 %s1966_s29, 3 }
  0x2b   : > { %s1679_s7 = scalar_lea.vmem %s1954_s1, %s1460_s4 }
  0x2e   : > { %v1590_v16 = vmov 0.0   ;;  %vm372_vm0 = vcmask 523264  }
  0x2f   : > { %371 = vst [vmem:[#allocation2] sm:$0xff] %v1590_v16 }
  0x30   : > { %374 = vst [vmem:[#allocation2 + $0x10] sm:$0xff] %v1590_v16 }
  0x31   : > { %376 = vst [vmem:[#allocation2 + $0x20] sm:$0xff] %v1590_v16 }
  0x32   : > { %378 = vst [vmem:[#allocation2 + $0x30] sm:$0xff] %v1590_v16 }
  0x33   : > { %380 = vst [vmem:[#allocation2 + $0x40] sm:$0xff] %v1590_v16 }
  0x34   : > { %382 = vst [vmem:[#allocation2 + $0x50] sm:$0xff] %v1590_v16 }
  0x35   : > { %384 = vst [vmem:[#allocation2 + $0x60] sm:$0xff] %v1590_v16 }
  0x36   : > { %386 = vst [vmem:[#allocation2 + $0x70] sm:$0xff] %v1590_v16 }
  0x37   : > { %388 = vst [vmem:[#allocation2 + $0x80] sm:$0xff] %v1590_v16 }
  0x38   : > { %390 = vst [vmem:[#allocation2 + $0x90] sm:$0xff] %v1590_v16 }
  0x39   : > { %392 = vst [vmem:[#allocation2 + $0xa0] sm:$0xff] %v1590_v16 }
  0x3a   : > { %394 = vst [vmem:[#allocation2 + $0xb0] sm:$0xff] %v1590_v16 }
  0x3b   : > { %396 = vst [vmem:[#allocation2 + $0xc0] sm:$0xff] %v1590_v16 }
  0x3c   : > { %398 = vst [vmem:[#allocation2 + $0xd0] sm:$0xff] %v1590_v16 }
  0x3d   : > { %400 = vst [vmem:[#allocation2 + $0xe0] sm:$0xff] %v1590_v16 }
  0x3e   : > { %402 = vst [vmem:[#allocation2 + $0xf0] sm:$0xff] %v1590_v16 }
  0x3f   : > { %373 = vst.msk [vmem:[#allocation2 + $0x8] sm:$0xff] %vm372_vm0, %v1590_v16 }
  0x40   : > { %375 = vst.msk [vmem:[#allocation2 + $0x18] sm:$0xff] %vm372_vm0, %v1590_v16 }
  0x41   : > { %377 = vst.msk [vmem:[#allocation2 + $0x28] sm:$0xff] %vm372_vm0, %v1590_v16 }
  0x42   : > { %379 = vst.msk [vmem:[#allocation2 + $0x38] sm:$0xff] %vm372_vm0, %v1590_v16 }
  0x43   : > { %381 = vst.msk [vmem:[#allocation2 + $0x48] sm:$0xff] %vm372_vm0, %v1590_v16 }
  0x44   : > { %383 = vst.msk [vmem:[#allocation2 + $0x58] sm:$0xff] %vm372_vm0, %v1590_v16 }
  0x45   : > { %385 = vst.msk [vmem:[#allocation2 + $0x68] sm:$0xff] %vm372_vm0, %v1590_v16 }
  0x46   : > { %387 = vst.msk [vmem:[#allocation2 + $0x78] sm:$0xff] %vm372_vm0, %v1590_v16 }
  0x47   : > { %389 = vst.msk [vmem:[#allocation2 + $0x88] sm:$0xff] %vm372_vm0, %v1590_v16 }
  0x48   : > { %391 = vst.msk [vmem:[#allocation2 + $0x98] sm:$0xff] %vm372_vm0, %v1590_v16 }
  0x49   : > { %393 = vst.msk [vmem:[#allocation2 + $0xa8] sm:$0xff] %vm372_vm0, %v1590_v16 }
  0x4a   : > { %395 = vst.msk [vmem:[#allocation2 + $0xb8] sm:$0xff] %vm372_vm0, %v1590_v16 }
  0x4b   : > { %397 = vst.msk [vmem:[#allocation2 + $0xc8] sm:$0xff] %vm372_vm0, %v1590_v16 }
  0x4c   : > { %399 = vst.msk [vmem:[#allocation2 + $0xd8] sm:$0xff] %vm372_vm0, %v1590_v16 }
  0x4d   : > { %401 = vst.msk [vmem:[#allocation2 + $0xe8] sm:$0xff] %vm372_vm0, %v1590_v16 }
  0x4e   : > { %403 = vst.msk [vmem:[#allocation2 + $0xf8] sm:$0xff] %vm372_vm0, %v1590_v16 }
  0x4f PF: > { %v1384_v17 = vld [vmem:[%s1679_s7 + $0x70] sm:$0xf]  ;;  %v1492_v18 = vld [vmem:[%s1679_s7 + $0x74] sm:$0xf0]  ;;  %v1491_v22 = vld [vmem:[%s1679_s7 + $0x74] sm:$0xf] }
  0x50   : > { %v1448_v19 = vld [vmem:[%s1679_s7 + $0xf0] sm:$0xf]  ;;  %v1385_v20 = vor.u32 %v1492_v18, %v1384_v17  ;;  %v1508_v21 = vld [vmem:[%s1679_s7 + $0xf4] sm:$0xf0]  ;;  %v1386_v23 = vld [vmem:[%s1679_s7 + $0x78] sm:$0xf0] }
  0x51   : > { %v1449_v24 = vor.u32 %v1508_v21, %v1448_v19  ;;  %v1389_v25 = vor.u32 %v1491_v22, %v1386_v23  ;;  %v1507_v26 = vld [vmem:[%s1679_s7 + $0xf4] sm:$0xf]  ;;  %v1450_v27 = vld [vmem:[%s1679_s7 + $0xf8] sm:$0xf0]  ;;  %v1376_v28 = vld [vmem:[%s1679_s7 + $0x60] sm:$0xf] }
  0x52   : > { %724 = vmatpush.bf16.msra.mxu0 %v1385_v20  ;;  %v1453_v29 = vor.u32 %v1507_v26, %v1450_v27  ;;  %v1490_v30 = vld [vmem:[%s1679_s7 + $0x64] sm:$0xf0]  ;;  %v1440_v31 = vld [vmem:[%s1679_s7 + $0xe0] sm:$0xf]  ;;  %v1489_v35 = vld [vmem:[%s1679_s7 + $0x64] sm:$0xf] }
  0x53   : > { %v1506_v32 = vld [vmem:[%s1679_s7 + $0xe4] sm:$0xf0]  ;;  %773 = vmatpush.bf16.msra.mxu1 %v1449_v24  ;;  %822 = vmatpush.bf16.msra.mxu2 %v1389_v25  ;;  %v1377_v33 = vor.u32 %v1490_v30, %v1376_v28  ;;  %v1378_v36 = vld [vmem:[%s1679_s7 + $0x68] sm:$0xf0]  ;;  %v1505_v37 = vld [vmem:[%s1679_s7 + $0xe4] sm:$0xf] }
  0x54   : > { %v1441_v34 = vor.u32 %v1506_v32, %v1440_v31  ;;  %871 = vmatpush.bf16.msra.mxu3 %v1453_v29  ;;  %v1381_v38 = vor.u32 %v1489_v35, %v1378_v36  ;;  %v1442_v39 = vld [vmem:[%s1679_s7 + $0xe8] sm:$0xf0]  ;;  %v1368_v40 = vld [vmem:[%s1679_s7 + $0x50] sm:$0xf]  ;;  %v1488_v41 = vld [vmem:[%s1679_s7 + $0x54] sm:$0xf0] }
  0x55   : > { %v1445_v42 = vor.u32 %v1505_v37, %v1442_v39  ;;  %v1432_v43 = vld [vmem:[%s1679_s7 + $0xd0] sm:$0xf]  ;;  %v1504_v44 = vld [vmem:[%s1679_s7 + $0xd4] sm:$0xf0]  ;;  %v1487_v45 = vld [vmem:[%s1679_s7 + $0x54] sm:$0xf]  ;;  %v1369_v46 = vor.u32 %v1488_v41, %v1368_v40 }
  0x56   : > { %725 = vmatpush.bf16.msra.mxu0 %v1377_v33  ;;  %v1370_v47 = vld [vmem:[%s1679_s7 + $0x58] sm:$0xf0]  ;;  %v1503_v48 = vld [vmem:[%s1679_s7 + $0xd4] sm:$0xf]  ;;  %v1433_v50 = vor.u32 %v1504_v44, %v1432_v43  ;;  %v1360_v52 = vld [vmem:[%s1679_s7 + $0x40] sm:$0xf] }
  0x57   : > { %v1434_v49 = vld [vmem:[%s1679_s7 + $0xd8] sm:$0xf0]  ;;  %774 = vmatpush.bf16.msra.mxu1 %v1441_v34  ;;  %823 = vmatpush.bf16.msra.mxu2 %v1381_v38  ;;  %v1373_v51 = vor.u32 %v1487_v45, %v1370_v47  ;;  %v1486_v53 = vld [vmem:[%s1679_s7 + $0x44] sm:$0xf0]  ;;  %v1424_v54 = vld [vmem:[%s1679_s7 + $0xc0] sm:$0xf] }
  0x58   : > { %872 = vmatpush.bf16.msra.mxu3 %v1445_v42  ;;  %v1437_v55 = vor.u32 %v1503_v48, %v1434_v49  ;;  %v1502_v56 = vld [vmem:[%s1679_s7 + $0xc4] sm:$0xf0]  ;;  %v1485_v57 = vld [vmem:[%s1679_s7 + $0x44] sm:$0xf]  ;;  %v1362_v58 = vld [vmem:[%s1679_s7 + $0x48] sm:$0xf0]  ;;  %v1361_v61 = vor.u32 %v1486_v53, %v1360_v52 }
  0x59   : > { %v1501_v59 = vld [vmem:[%s1679_s7 + $0xc4] sm:$0xf]  ;;  %v1426_v60 = vld [vmem:[%s1679_s7 + $0xc8] sm:$0xf0]  ;;  %v1425_v62 = vor.u32 %v1502_v56, %v1424_v54  ;;  %v1365_v63 = vor.u32 %v1485_v57, %v1362_v58  ;;  %v1352_v0 = vld [vmem:[%s1679_s7 + $0x30] sm:$0xf] }
  0x5a   : > { %726 = vmatpush.bf16.msra.mxu0 %v1369_v46  ;;  %v1484_v1 = vld [vmem:[%s1679_s7 + $0x34] sm:$0xf0]  ;;  %v1416_v2 = vld [vmem:[%s1679_s7 + $0xb0] sm:$0xf]  ;;  %v1429_v3 = vor.u32 %v1501_v59, %v1426_v60  ;;  %v1483_v5 = vld [vmem:[%s1679_s7 + $0x34] sm:$0xf] }
  0x5b   : > { %775 = vmatpush.bf16.msra.mxu1 %v1433_v50  ;;  %824 = vmatpush.bf16.msra.mxu2 %v1373_v51  ;;  %v1500_v4 = vld [vmem:[%s1679_s7 + $0xb4] sm:$0xf0]  ;;  %v1354_v6 = vld [vmem:[%s1679_s7 + $0x38] sm:$0xf0]  ;;  %v1499_v7 = vld [vmem:[%s1679_s7 + $0xb4] sm:$0xf]  ;;  %v1353_v9 = vor.u32 %v1484_v1, %v1352_v0 }
  0x5c   : > { %873 = vmatpush.bf16.msra.mxu3 %v1437_v55  ;;  %v1418_v8 = vld [vmem:[%s1679_s7 + $0xb8] sm:$0xf0]  ;;  %v1417_v10 = vor.u32 %v1500_v4, %v1416_v2  ;;  %v1357_v11 = vor.u32 %v1483_v5, %v1354_v6  ;;  %v1344_v12 = vld [vmem:[%s1679_s7 + $0x20] sm:$0xf]  ;;  %v1482_v13 = vld [vmem:[%s1679_s7 + $0x24] sm:$0xf0] }
  0x5d   : > { %v1408_v14 = vld [vmem:[%s1679_s7 + $0xa0] sm:$0xf]  ;;  %v1421_v15 = vor.u32 %v1499_v7, %v1418_v8  ;;  %v1498_v16 = vld [vmem:[%s1679_s7 + $0xa4] sm:$0xf0]  ;;  %v1481_v17 = vld [vmem:[%s1679_s7 + $0x24] sm:$0xf]  ;;  %v1345_v21 = vor.u32 %v1482_v13, %v1344_v12 }
  0x5e   : > { %727 = vmatpush.bf16.msra.mxu0 %v1361_v61  ;;  %v1346_v18 = vld [vmem:[%s1679_s7 + $0x28] sm:$0xf0]  ;;  %v1497_v19 = vld [vmem:[%s1679_s7 + $0xa4] sm:$0xf]  ;;  %v1409_v22 = vor.u32 %v1498_v16, %v1408_v14  ;;  %v1336_v24 = vld [vmem:[%s1679_s7 + $0x10] sm:$0xf] }
  0x5f   : > { %776 = vmatpush.bf16.msra.mxu1 %v1425_v62  ;;  %825 = vmatpush.bf16.msra.mxu2 %v1365_v63  ;;  %v1410_v20 = vld [vmem:[%s1679_s7 + $0xa8] sm:$0xf0]  ;;  %v1349_v23 = vor.u32 %v1481_v17, %v1346_v18  ;;  %v1480_v25 = vld [vmem:[%s1679_s7 + $0x14] sm:$0xf0]  ;;  %v1400_v26 = vld [vmem:[%s1679_s7 + $0x90] sm:$0xf] }
  0x60   : > { %874 = vmatpush.bf16.msra.mxu3 %v1429_v3  ;;  %v1413_v27 = vor.u32 %v1497_v19, %v1410_v20  ;;  %v1496_v28 = vld [vmem:[%s1679_s7 + $0x94] sm:$0xf0]  ;;  %v1479_v29 = vld [vmem:[%s1679_s7 + $0x14] sm:$0xf]  ;;  %v1338_v30 = vld [vmem:[%s1679_s7 + $0x18] sm:$0xf0]  ;;  %v1337_v33 = vor.u32 %v1480_v25, %v1336_v24 }
  0x61   : > { %v1495_v31 = vld [vmem:[%s1679_s7 + $0x94] sm:$0xf]  ;;  %v1402_v32 = vld [vmem:[%s1679_s7 + $0x98] sm:$0xf0]  ;;  %v1401_v34 = vor.u32 %v1496_v28, %v1400_v26  ;;  %v1341_v35 = vor.u32 %v1479_v29, %v1338_v30  ;;  %v1328_v36 = vld [vmem:[%s1679_s7] sm:$0xf] }
  0x62   : > { %728 = vmatpush.bf16.msra.mxu0 %v1353_v9  ;;  %v1478_v37 = vld [vmem:[%s1679_s7 + $0x4] sm:$0xf0]  ;;  %v1392_v38 = vld [vmem:[%s1679_s7 + $0x80] sm:$0xf]  ;;  %v1405_v39 = vor.u32 %v1495_v31, %v1402_v32  ;;  %v1477_v41 = vld [vmem:[%s1679_s7 + $0x4] sm:$0xf] }
  0x63   : > { %777 = vmatpush.bf16.msra.mxu1 %v1417_v10  ;;  %826 = vmatpush.bf16.msra.mxu2 %v1357_v11  ;;  %v1494_v40 = vld [vmem:[%s1679_s7 + $0x84] sm:$0xf0]  ;;  %v1330_v42 = vld [vmem:[%s1679_s7 + $0x8] sm:$0xf0]  ;;  %v1493_v43 = vld [vmem:[%s1679_s7 + $0x84] sm:$0xf]  ;;  %v1329_v45 = vor.u32 %v1478_v37, %v1328_v36 }
  0x64   : > { %875 = vmatpush.bf16.msra.mxu3 %v1421_v15  ;;  %v1394_v44 = vld [vmem:[%s1679_s7 + $0x88] sm:$0xf0]  ;;  %v1264_v46 = vld [vmem:[%s1681_s8] sm:$0xf]  ;;  %v1462_v47 = vld [vmem:[%s1681_s8 + $0x4] sm:$0xf0]  ;;  %v1393_v48 = vor.u32 %v1494_v40, %v1392_v38  ;;  %v1333_v49 = vor.u32 %v1477_v41, %v1330_v42 }
  0x65   : > { %v1461_v50 = vld [vmem:[%s1681_s8 + $0x4] sm:$0xf]  ;;  %v1266_v51 = vld [vmem:[%s1681_s8 + $0x8] sm:$0xf0]  ;;  %v1397_v52 = vor.u32 %v1493_v43, %v1394_v44  ;;  %v1265_v53 = vor.u32 %v1462_v47, %v1264_v46  ;;  %v1272_v55 = vld [vmem:[%s1681_s8 + $0x10] sm:$0xf] }
  0x66   : > { %729 = vmatpush.bf16.msra.mxu0 %v1345_v21  ;;  %v1269_v54 = vor.u32 %v1461_v50, %v1266_v51  ;;  %v1464_v56 = vld [vmem:[%s1681_s8 + $0x14] sm:$0xf0]  ;;  %v1463_v57 = vld [vmem:[%s1681_s8 + $0x14] sm:$0xf]  ;;  %v1274_v58 = vld [vmem:[%s1681_s8 + $0x18] sm:$0xf0] }
  0x67   : > { %778 = vmatpush.bf16.msra.mxu1 %v1409_v22  ;;  %827 = vmatpush.bf16.msra.mxu2 %v1349_v23  ;;  %v1273_v59 = vor.u32 %v1464_v56, %v1272_v55  ;;  %v1277_v60 = vor.u32 %v1463_v57, %v1274_v58  ;;  %v1280_v61 = vld [vmem:[%s1681_s8 + $0x20] sm:$0xf]  ;;  %v1466_v62 = vld [vmem:[%s1681_s8 + $0x24] sm:$0xf0]  ;;  %v1465_v63 = vld [vmem:[%s1681_s8 + $0x24] sm:$0xf] }
  0x68   : > { %876 = vmatpush.bf16.msra.mxu3 %v1413_v27  ;;  %v1282_v0 = vld [vmem:[%s1681_s8 + $0x28] sm:$0xf0]  ;;  %v1281_v1 = vor.u32 %v1466_v62, %v1280_v61  ;;  %v1288_v3 = vld [vmem:[%s1681_s8 + $0x30] sm:$0xf]  ;;  %v1468_v4 = vld [vmem:[%s1681_s8 + $0x34] sm:$0xf0] }
  0x69   : > { %v1285_v2 = vor.u32 %v1465_v63, %v1282_v0  ;;  %v1467_v5 = vld [vmem:[%s1681_s8 + $0x34] sm:$0xf]  ;;  %v1290_v6 = vld [vmem:[%s1681_s8 + $0x38] sm:$0xf0]  ;;  %v1289_v7 = vor.u32 %v1468_v4, %v1288_v3  ;;  %v1296_v9 = vld [vmem:[%s1681_s8 + $0x40] sm:$0xf] }
  0x6a   : > { %730 = vmatpush.bf16.msra.mxu0 %v1337_v33  ;;  %v1293_v8 = vor.u32 %v1467_v5, %v1290_v6  ;;  %v1470_v10 = vld [vmem:[%s1681_s8 + $0x44] sm:$0xf0]  ;;  %v1469_v11 = vld [vmem:[%s1681_s8 + $0x44] sm:$0xf]  ;;  %v1298_v12 = vld [vmem:[%s1681_s8 + $0x48] sm:$0xf0] }
  0x6b   : > { %779 = vmatpush.bf16.msra.mxu1 %v1401_v34  ;;  %828 = vmatpush.bf16.msra.mxu2 %v1341_v35  ;;  %v1297_v13 = vor.u32 %v1470_v10, %v1296_v9  ;;  %v1301_v14 = vor.u32 %v1469_v11, %v1298_v12  ;;  %v1304_v15 = vld [vmem:[%s1681_s8 + $0x50] sm:$0xf]  ;;  %v1472_v16 = vld [vmem:[%s1681_s8 + $0x54] sm:$0xf0]  ;;  %v1471_v17 = vld [vmem:[%s1681_s8 + $0x54] sm:$0xf] }
  0x6c   : > { %877 = vmatpush.bf16.msra.mxu3 %v1405_v39  ;;  %v1306_v18 = vld [vmem:[%s1681_s8 + $0x58] sm:$0xf0]  ;;  %v1305_v19 = vor.u32 %v1472_v16, %v1304_v15  ;;  %v1312_v21 = vld [vmem:[%s1681_s8 + $0x60] sm:$0xf]  ;;  %v1474_v22 = vld [vmem:[%s1681_s8 + $0x64] sm:$0xf0] }
  0x6d   : > { %v1309_v20 = vor.u32 %v1471_v17, %v1306_v18  ;;  %v1473_v23 = vld [vmem:[%s1681_s8 + $0x64] sm:$0xf]  ;;  %v1314_v24 = vld [vmem:[%s1681_s8 + $0x68] sm:$0xf0]  ;;  %v1313_v25 = vor.u32 %v1474_v22, %v1312_v21  ;;  %v1320_v27 = vld [vmem:[%s1681_s8 + $0x70] sm:$0xf] }
  0x6e   : > { %731 = vmatpush.bf16.msra.mxu0 %v1329_v45  ;;  %v1317_v26 = vor.u32 %v1473_v23, %v1314_v24  ;;  %v1476_v28 = vld [vmem:[%s1681_s8 + $0x74] sm:$0xf0]  ;;  %v1475_v29 = vld [vmem:[%s1681_s8 + $0x74] sm:$0xf]  ;;  %v1322_v30 = vld [vmem:[%s1681_s8 + $0x78] sm:$0xf0] }
  0x6f   : > { %780 = vmatpush.bf16.msra.mxu1 %v1393_v48  ;;  %829 = vmatpush.bf16.msra.mxu2 %v1333_v49  ;;  %v1321_v31 = vor.u32 %v1476_v28, %v1320_v27  ;;  %v1325_v32 = vor.u32 %v1475_v29, %v1322_v30  ;;  %v404_v34 = vld [vmem:[#allocation2] sm:$0xff]  ;;  %v405_v39 = vld [vmem:[#allocation2 + $0x8] sm:$0xff]  ;;  %v406_v43 = vld [vmem:[#allocation2 + $0x10] sm:$0xff]  ;;  %vm953_vm1 = vcmask 523264   ;;  %p1454_p11 = scmp.ne.s32.totalorder %s1580_s14, 6 }
  0x70   : > { %878 = vmatpush.bf16.msra.mxu3 %v1397_v52  ;;  %v407_v49 = vld [vmem:[#allocation2 + $0x18] sm:$0xff]  ;;  %v410_v63 = vld [vmem:[#allocation2 + $0x30] sm:$0xff]  ;;  %v412_v9 = vld [vmem:[#allocation2 + $0x40] sm:$0xff] }
  0x71   : > { %732 = vmatmul.bf16.vlgmr.msra.gmra.mxu0 %v1265_v53  ;;  %v411_v5 = vld [vmem:[#allocation2 + $0x38] sm:$0xff]  ;;  %v413_v15 = vld [vmem:[#allocation2 + $0x48] sm:$0xff]  ;;  %v416_v29 = vld [vmem:[#allocation2 + $0x60] sm:$0xff] }
  0x72   : > { %781 = vmatmul.bf16.vlgmr.msra.gmra.mxu1 %v1269_v54  ;;  %830 = vmatmul.bf16.vlgmr.msra.gmra.mxu2 %v1265_v53  ;;  %v408_v53 = vld [vmem:[#allocation2 + $0x20] sm:$0xff] }
  0x73   : > { %879 = vmatmul.bf16.vlgmr.msra.gmra.mxu3 %v1269_v54 }
  0x81   : > { %737 = vmatmul.bf16.gmra.mxu0 %v1273_v59 }
  0x82   : > { %786 = vmatmul.bf16.gmra.mxu1 %v1277_v60  ;;  %835 = vmatmul.bf16.gmra.mxu2 %v1273_v59  ;;  %v409_v59 = vld [vmem:[#allocation2 + $0x28] sm:$0xff] }
  0x83   : > { %884 = vmatmul.bf16.gmra.mxu3 %v1277_v60 }
  0x91   : > { %742 = vmatmul.bf16.gmra.mxu0 %v1281_v1 }
  0x92   : > { %791 = vmatmul.bf16.gmra.mxu1 %v1285_v2  ;;  %840 = vmatmul.bf16.gmra.mxu2 %v1281_v1 }
  0x93   : > { %889 = vmatmul.bf16.gmra.mxu3 %v1285_v2 }
  0xa1   : > { %747 = vmatmul.bf16.gmra.mxu0 %v1289_v7 }
  0xa2   : > { %796 = vmatmul.bf16.gmra.mxu1 %v1293_v8  ;;  %845 = vmatmul.bf16.gmra.mxu2 %v1289_v7 }
  0xa3   : > { %894 = vmatmul.bf16.gmra.mxu3 %v1293_v8 }
  0xb1   : > { %752 = vmatmul.bf16.gmra.mxu0 %v1297_v13 }
  0xb2   : > { %801 = vmatmul.bf16.gmra.mxu1 %v1301_v14  ;;  %850 = vmatmul.bf16.gmra.mxu2 %v1297_v13 }
  0xb3   : > { %899 = vmatmul.bf16.gmra.mxu3 %v1301_v14 }
  0xc1   : > { %757 = vmatmul.bf16.gmra.mxu0 %v1305_v19 }
  0xc2   : > { %806 = vmatmul.bf16.gmra.mxu1 %v1309_v20  ;;  %855 = vmatmul.bf16.gmra.mxu2 %v1305_v19  ;;  %v414_v19 = vld [vmem:[#allocation2 + $0x50] sm:$0xff] }
  0xc3   : > { %904 = vmatmul.bf16.gmra.mxu3 %v1309_v20 }
  0xd1   : > { %762 = vmatmul.bf16.gmra.mxu0 %v1313_v25 }
  0xd2   : > { %811 = vmatmul.bf16.gmra.mxu1 %v1317_v26  ;;  %860 = vmatmul.bf16.gmra.mxu2 %v1313_v25  ;;  %v415_v25 = vld [vmem:[#allocation2 + $0x58] sm:$0xff] }
  0xd3   : > { %909 = vmatmul.bf16.gmra.mxu3 %v1317_v26 }
  0xe1   : > { %767 = vmatmul.bf16.gmra.mxu0 %v1321_v31 }
  0xe2   : > { %816 = vmatmul.bf16.gmra.mxu1 %v1325_v32  ;;  %865 = vmatmul.bf16.gmra.mxu2 %v1321_v31 }
  0xe3   : > { %914 = vmatmul.bf16.gmra.mxu3 %v1325_v32 }
  0xee   : > { %v733_v33 = vpop.f32.mrf.mxu0 }
  0xef   : > { %v782_v35 = vpop.f32.mrf.mxu1 }
  0xf0   : > { %v783_v36 = vadd.f32 %v782_v35, %v733_v33  ;;  %v417_v35 = vld [vmem:[#allocation2 + $0x68] sm:$0xff] }
  0xf2   : > { %v920_v37 = vadd.f32 %v783_v36, %v404_v34 }
  0xf4   : > { %952 = vst [vmem:[#allocation2] sm:$0xff] %v920_v37 }
  0xf5   : > { %v831_v38 = vpop.f32.mrf.mxu2 }
  0xf6   : > { %v880_v40 = vpop.f32.mrf.mxu3  ;;  %v735_v41 = vpop.f32.mrf.mxu0 }
  0xf7   : > { %v881_v42 = vadd.f32 %v880_v40, %v831_v38  ;;  %v784_v44 = vpop.f32.mrf.mxu1 }
  0xf8   : > { %v785_v45 = vadd.f32 %v784_v44, %v735_v41 }
  0xf9   : > { %v921_v46 = vadd.f32 %v881_v42, %v405_v39  ;;  %v418_v39 = vld [vmem:[#allocation2 + $0x70] sm:$0xff] }
  0xfa   : > { %v922_v47 = vadd.f32 %v785_v45, %v406_v43  ;;  %v419_v45 = vld [vmem:[#allocation2 + $0x78] sm:$0xff] }
  0xfb   : > { %954 = vst.msk [vmem:[#allocation2 + $0x8] sm:$0xff] %vm953_vm1, %v921_v46 }
  0xfc   : > { %955 = vst [vmem:[#allocation2 + $0x10] sm:$0xff] %v922_v47 }
  0xfd   : > { %v833_v48 = vpop.f32.mrf.mxu2 }
  0xfe   : > { %v882_v50 = vpop.f32.mrf.mxu3  ;;  %v738_v51 = vpop.f32.mrf.mxu0 }
  0xff   : > { %v883_v52 = vadd.f32 %v882_v50, %v833_v48  ;;  %v787_v54 = vpop.f32.mrf.mxu1 }
 0x100   : > { %v788_v55 = vadd.f32 %v787_v54, %v738_v51 }
 0x101   : > { %v923_v56 = vadd.f32 %v883_v52, %v407_v49  ;;  %v420_v49 = vld [vmem:[#allocation2 + $0x80] sm:$0xff] }
 0x102   : > { %v924_v57 = vadd.f32 %v788_v55, %v408_v53  ;;  %v421_v55 = vld [vmem:[#allocation2 + $0x88] sm:$0xff] }
 0x103   : > { %956 = vst.msk [vmem:[#allocation2 + $0x18] sm:$0xff] %vm953_vm1, %v923_v56 }
 0x104   : > { %957 = vst [vmem:[#allocation2 + $0x20] sm:$0xff] %v924_v57 }
 0x105   : > { %v836_v58 = vpop.f32.mrf.mxu2 }
 0x106   : > { %v885_v60 = vpop.f32.mrf.mxu3  ;;  %v740_v61 = vpop.f32.mrf.mxu0 }
 0x107   : > { %v886_v62 = vadd.f32 %v885_v60, %v836_v58  ;;  %v789_v0 = vpop.f32.mrf.mxu1 }
 0x108   : > { %v790_v1 = vadd.f32 %v789_v0, %v740_v61 }
 0x109   : > { %v925_v2 = vadd.f32 %v886_v62, %v409_v59  ;;  %v422_v59 = vld [vmem:[#allocation2 + $0x90] sm:$0xff] }
 0x10a   : > { %v926_v3 = vadd.f32 %v790_v1, %v410_v63  ;;  %v423_v1 = vld [vmem:[#allocation2 + $0x98] sm:$0xff] }
 0x10b   : > { %958 = vst.msk [vmem:[#allocation2 + $0x28] sm:$0xff] %vm953_vm1, %v925_v2 }
 0x10c   : > { %959 = vst [vmem:[#allocation2 + $0x30] sm:$0xff] %v926_v3 }
 0x10d   : > { %v838_v4 = vpop.f32.mrf.mxu2 }
 0x10e   : > { %v887_v6 = vpop.f32.mrf.mxu3  ;;  %v743_v7 = vpop.f32.mrf.mxu0 }
 0x10f   : > { %v888_v8 = vadd.f32 %v887_v6, %v838_v4  ;;  %v792_v10 = vpop.f32.mrf.mxu1 }
 0x110   : > { %v793_v11 = vadd.f32 %v792_v10, %v743_v7 }
 0x111   : > { %v927_v12 = vadd.f32 %v888_v8, %v411_v5  ;;  %v424_v5 = vld [vmem:[#allocation2 + $0xa0] sm:$0xff] }
 0x112   : > { %v928_v13 = vadd.f32 %v793_v11, %v412_v9  ;;  %v425_v11 = vld [vmem:[#allocation2 + $0xa8] sm:$0xff] }
 0x113   : > { %960 = vst.msk [vmem:[#allocation2 + $0x38] sm:$0xff] %vm953_vm1, %v927_v12 }
 0x114   : > { %961 = vst [vmem:[#allocation2 + $0x40] sm:$0xff] %v928_v13 }
 0x115   : > { %v841_v14 = vpop.f32.mrf.mxu2 }
 0x116   : > { %v890_v16 = vpop.f32.mrf.mxu3  ;;  %v745_v17 = vpop.f32.mrf.mxu0 }
 0x117   : > { %v891_v18 = vadd.f32 %v890_v16, %v841_v14  ;;  %v794_v20 = vpop.f32.mrf.mxu1 }
 0x118   : > { %v795_v21 = vadd.f32 %v794_v20, %v745_v17 }
 0x119   : > { %v929_v22 = vadd.f32 %v891_v18, %v413_v15  ;;  %v426_v15 = vld [vmem:[#allocation2 + $0xb0] sm:$0xff] }
 0x11a   : > { %v930_v23 = vadd.f32 %v795_v21, %v414_v19  ;;  %v427_v21 = vld [vmem:[#allocation2 + $0xb8] sm:$0xff] }
 0x11b   : > { %962 = vst.msk [vmem:[#allocation2 + $0x48] sm:$0xff] %vm953_vm1, %v929_v22 }
 0x11c   : > { %963 = vst [vmem:[#allocation2 + $0x50] sm:$0xff] %v930_v23 }
 0x11d   : > { %v843_v24 = vpop.f32.mrf.mxu2 }
 0x11e   : > { %v892_v26 = vpop.f32.mrf.mxu3  ;;  %v748_v27 = vpop.f32.mrf.mxu0 }
 0x11f   : > { %v893_v28 = vadd.f32 %v892_v26, %v843_v24  ;;  %v797_v30 = vpop.f32.mrf.mxu1 }
 0x120   : > { %v798_v31 = vadd.f32 %v797_v30, %v748_v27 }
 0x121   : > { %v931_v32 = vadd.f32 %v893_v28, %v415_v25  ;;  %v428_v25 = vld [vmem:[#allocation2 + $0xc0] sm:$0xff] }
 0x122   : > { %v932_v33 = vadd.f32 %v798_v31, %v416_v29  ;;  %v429_v31 = vld [vmem:[#allocation2 + $0xc8] sm:$0xff] }
 0x123   : > { %964 = vst.msk [vmem:[#allocation2 + $0x58] sm:$0xff] %vm953_vm1, %v931_v32 }
 0x124   : > { %965 = vst [vmem:[#allocation2 + $0x60] sm:$0xff] %v932_v33 }
 0x125   : > { %v846_v34 = vpop.f32.mrf.mxu2 }
 0x126   : > { %v895_v36 = vpop.f32.mrf.mxu3  ;;  %v750_v37 = vpop.f32.mrf.mxu0 }
 0x127   : > { %v896_v38 = vadd.f32 %v895_v36, %v846_v34  ;;  %v799_v40 = vpop.f32.mrf.mxu1 }
 0x128   : > { %v800_v41 = vadd.f32 %v799_v40, %v750_v37 }
 0x129   : > { %v933_v42 = vadd.f32 %v896_v38, %v417_v35  ;;  %v430_v35 = vld [vmem:[#allocation2 + $0xd0] sm:$0xff] }
 0x12a   : > { %v934_v43 = vadd.f32 %v800_v41, %v418_v39  ;;  %v431_v41 = vld [vmem:[#allocation2 + $0xd8] sm:$0xff] }
 0x12b   : > { %966 = vst.msk [vmem:[#allocation2 + $0x68] sm:$0xff] %vm953_vm1, %v933_v42 }
 0x12c   : > { %967 = vst [vmem:[#allocation2 + $0x70] sm:$0xff] %v934_v43 }
 0x12d   : > { %v848_v44 = vpop.f32.mrf.mxu2 }
 0x12e   : > { %v897_v46 = vpop.f32.mrf.mxu3  ;;  %v753_v47 = vpop.f32.mrf.mxu0 }
 0x12f   : > { %v898_v48 = vadd.f32 %v897_v46, %v848_v44  ;;  %v802_v50 = vpop.f32.mrf.mxu1 }
 0x130   : > { %v803_v51 = vadd.f32 %v802_v50, %v753_v47 }
 0x131   : > { %v935_v52 = vadd.f32 %v898_v48, %v419_v45  ;;  %v432_v45 = vld [vmem:[#allocation2 + $0xe0] sm:$0xff] }
 0x132   : > { %v936_v53 = vadd.f32 %v803_v51, %v420_v49  ;;  %v433_v51 = vld [vmem:[#allocation2 + $0xe8] sm:$0xff] }
 0x133   : > { %968 = vst.msk [vmem:[#allocation2 + $0x78] sm:$0xff] %vm953_vm1, %v935_v52 }
 0x134   : > { %969 = vst [vmem:[#allocation2 + $0x80] sm:$0xff] %v936_v53 }
 0x135   : > { %v851_v54 = vpop.f32.mrf.mxu2 }
 0x136   : > { %v900_v56 = vpop.f32.mrf.mxu3  ;;  %v755_v57 = vpop.f32.mrf.mxu0 }
 0x137   : > { %v901_v58 = vadd.f32 %v900_v56, %v851_v54  ;;  %v804_v60 = vpop.f32.mrf.mxu1 }
 0x138   : > { %v805_v61 = vadd.f32 %v804_v60, %v755_v57 }
 0x139   : > { %v937_v62 = vadd.f32 %v901_v58, %v421_v55  ;;  %v434_v55 = vld [vmem:[#allocation2 + $0xf0] sm:$0xff] }
 0x13a   : > { %v938_v63 = vadd.f32 %v805_v61, %v422_v59  ;;  %v435_v61 = vld [vmem:[#allocation2 + $0xf8] sm:$0xff] }
 0x13b   : > { %970 = vst.msk [vmem:[#allocation2 + $0x88] sm:$0xff] %vm953_vm1, %v937_v62 }
 0x13c   : > { %971 = vst [vmem:[#allocation2 + $0x90] sm:$0xff] %v938_v63 }
 0x13d   : > { %v853_v0 = vpop.f32.mrf.mxu2 }
 0x13e   : > { %v902_v2 = vpop.f32.mrf.mxu3  ;;  %v758_v3 = vpop.f32.mrf.mxu0 }
 0x13f   : > { %v903_v4 = vadd.f32 %v902_v2, %v853_v0  ;;  %v807_v6 = vpop.f32.mrf.mxu1 }
 0x140   : > { %v808_v7 = vadd.f32 %v807_v6, %v758_v3 }
 0x141   : > { %v939_v8 = vadd.f32 %v903_v4, %v423_v1 }
 0x142   : > { %v940_v9 = vadd.f32 %v808_v7, %v424_v5 }
 0x143   : > { %972 = vst.msk [vmem:[#allocation2 + $0x98] sm:$0xff] %vm953_vm1, %v939_v8 }
 0x144   : > { %973 = vst [vmem:[#allocation2 + $0xa0] sm:$0xff] %v940_v9 }
 0x145   : > { %v856_v10 = vpop.f32.mrf.mxu2 }
 0x146   : > { %v905_v12 = vpop.f32.mrf.mxu3  ;;  %v760_v13 = vpop.f32.mrf.mxu0 }
 0x147   : > { %v906_v14 = vadd.f32 %v905_v12, %v856_v10  ;;  %v809_v16 = vpop.f32.mrf.mxu1 }
 0x148   : > { %v810_v17 = vadd.f32 %v809_v16, %v760_v13 }
 0x149   : > { %v941_v18 = vadd.f32 %v906_v14, %v425_v11 }
 0x14a   : > { %v942_v19 = vadd.f32 %v810_v17, %v426_v15 }
 0x14b   : > { %974 = vst.msk [vmem:[#allocation2 + $0xa8] sm:$0xff] %vm953_vm1, %v941_v18 }
 0x14c   : > { %975 = vst [vmem:[#allocation2 + $0xb0] sm:$0xff] %v942_v19 }
 0x14d   : > { %v858_v20 = vpop.f32.mrf.mxu2 }
 0x14e   : > { %v907_v22 = vpop.f32.mrf.mxu3  ;;  %v763_v23 = vpop.f32.mrf.mxu0 }
 0x14f   : > { %v908_v24 = vadd.f32 %v907_v22, %v858_v20  ;;  %v812_v26 = vpop.f32.mrf.mxu1 }
 0x150   : > { %v813_v27 = vadd.f32 %v812_v26, %v763_v23 }
 0x151   : > { %v943_v28 = vadd.f32 %v908_v24, %v427_v21 }
 0x152   : > { %v944_v29 = vadd.f32 %v813_v27, %v428_v25 }
 0x153   : > { %976 = vst.msk [vmem:[#allocation2 + $0xb8] sm:$0xff] %vm953_vm1, %v943_v28 }
 0x154   : > { %977 = vst [vmem:[#allocation2 + $0xc0] sm:$0xff] %v944_v29 }
 0x155   : > { %v861_v30 = vpop.f32.mrf.mxu2 }
 0x156   : > { %v910_v32 = vpop.f32.mrf.mxu3  ;;  %v765_v33 = vpop.f32.mrf.mxu0 }
 0x157   : > { %v911_v34 = vadd.f32 %v910_v32, %v861_v30  ;;  %v814_v36 = vpop.f32.mrf.mxu1 }
 0x158   : > { %v815_v37 = vadd.f32 %v814_v36, %v765_v33 }
 0x159   : > { %v945_v38 = vadd.f32 %v911_v34, %v429_v31 }
 0x15a   : > { %v946_v39 = vadd.f32 %v815_v37, %v430_v35 }
 0x15b   : > { %978 = vst.msk [vmem:[#allocation2 + $0xc8] sm:$0xff] %vm953_vm1, %v945_v38 }
 0x15c   : > { %979 = vst [vmem:[#allocation2 + $0xd0] sm:$0xff] %v946_v39 }
 0x15d   : > { %v863_v40 = vpop.f32.mrf.mxu2 }
 0x15e   : > { %v912_v42 = vpop.f32.mrf.mxu3  ;;  %v768_v43 = vpop.f32.mrf.mxu0 }
 0x15f   : > { %v913_v44 = vadd.f32 %v912_v42, %v863_v40  ;;  %v817_v46 = vpop.f32.mrf.mxu1 }
 0x160   : > { %v818_v47 = vadd.f32 %v817_v46, %v768_v43 }
 0x161   : > { %v947_v48 = vadd.f32 %v913_v44, %v431_v41 }
 0x162   : > { %v948_v49 = vadd.f32 %v818_v47, %v432_v45 }
 0x163   : > { %980 = vst.msk [vmem:[#allocation2 + $0xd8] sm:$0xff] %vm953_vm1, %v947_v48 }
 0x164   : > { %981 = vst [vmem:[#allocation2 + $0xe0] sm:$0xff] %v948_v49 }
 0x165   : > { %v866_v50 = vpop.f32.mrf.mxu2 }
 0x166   : > { %v915_v52 = vpop.f32.mrf.mxu3  ;;  %v770_v53 = vpop.f32.mrf.mxu0 }
 0x167   : > { %v916_v54 = vadd.f32 %v915_v52, %v866_v50  ;;  %v819_v56 = vpop.f32.mrf.mxu1 }
 0x168   : > { %v820_v57 = vadd.f32 %v819_v56, %v770_v53 }
 0x169   : > { %v949_v58 = vadd.f32 %v916_v54, %v433_v51 }
 0x16a   : > { %v950_v59 = vadd.f32 %v820_v57, %v434_v55 }
 0x16b   : > { %982 = vst.msk [vmem:[#allocation2 + $0xe8] sm:$0xff] %vm953_vm1, %v949_v58 }
 0x16c   : > { %983 = vst [vmem:[#allocation2 + $0xf0] sm:$0xff] %v950_v59 }
 0x16d   : > { %v868_v60 = vpop.f32.mrf.mxu2 }
 0x16e   : > { %v917_v62 = vpop.f32.mrf.mxu3 }
 0x16f   : > { %v918_v63 = vadd.f32 %v917_v62, %v868_v60  ;;  %988 = sbr.rel (%p1454_p11) target bundleno = 400 (0x190), region = 78 }
 0x171   : > { %v951_v0 = vadd.f32 %v918_v63, %v435_v61 }
 0x173   : > { %984 = vst.msk [vmem:[#allocation2 + $0xf8] sm:$0xff] %vm953_vm1, %v951_v0 }
 0x174   : > { %v989_v1 = vld [vmem:[#allocation2] sm:$0xff]  ;;  %v990_v2 = vld [vmem:[#allocation2 + $0x8] sm:$0xff]  ;;  %v991_v6 = vld [vmem:[#allocation2 + $0x10] sm:$0xff]  ;;  %vm1107_vm2 = vcmask 1043456   ;;  %vm1108_vm3 = vcmask 523268  }
 0x175   : > { %v1021_v3 = vld [vmem:[%s1955_s2] sm:$0x3]  ;;  %v992_v7 = vld [vmem:[#allocation2 + $0x18] sm:$0xff]  ;;  %v994_v9 = vld [vmem:[#allocation2 + $0x28] sm:$0xff] }
 0x176   : > { %v1816_v4 = vperm.slane %v1021_v3, 0  ;;  %v1818_v5 = vperm.slane %v1021_v3, 1  ;;  %v993_v8 = vld [vmem:[#allocation2 + $0x20] sm:$0xff]  ;;  %v995_v10 = vld [vmem:[#allocation2 + $0x30] sm:$0xff]  ;;  %v996_v15 = vld [vmem:[#allocation2 + $0x38] sm:$0xff] }
 0x177   : > { %v997_v20 = vld [vmem:[#allocation2 + $0x40] sm:$0xff]  ;;  %v998_v21 = vld [vmem:[#allocation2 + $0x48] sm:$0xff]  ;;  %v999_v26 = vld [vmem:[#allocation2 + $0x50] sm:$0xff] }
 0x178   : > { %v1027_v11 = vadd.f32 %v1816_v4, %v989_v1  ;;  %v1028_v12 = vadd.f32 %v1818_v5, %v990_v2  ;;  %v1029_v13 = vadd.f32 %v1816_v4, %v991_v6  ;;  %v1030_v14 = vadd.f32 %v1818_v5, %v992_v7  ;;  %v1000_v27 = vld [vmem:[#allocation2 + $0x58] sm:$0xff]  ;;  %vm1830_vm4 = vmor %vm1108_vm3, %vm1107_vm2  ;;  %v1001_v33 = vld [vmem:[#allocation2 + $0x60] sm:$0xff] }
 0x179   : > { %v1031_v16 = vadd.f32 %v1816_v4, %v993_v8  ;;  %v1032_v17 = vadd.f32 %v1818_v5, %v994_v9  ;;  %v1033_v18 = vadd.f32 %v1816_v4, %v995_v10  ;;  %v1034_v19 = vadd.f32 %v1818_v5, %v996_v15  ;;  %v1002_v34 = vld [vmem:[#allocation2 + $0x68] sm:$0xff]  ;;  %v1003_v39 = vld [vmem:[#allocation2 + $0x70] sm:$0xff]  ;;  %v1004_v40 = vld [vmem:[#allocation2 + $0x78] sm:$0xff] }
 0x17a   : > { %v1059_v22 = vmax.f32 %v1027_v11, 0.0  ;;  %v1060_v23 = vmax.f32 %v1028_v12, 0.0  ;;  %v1061_v24 = vmax.f32 %v1029_v13, 0.0  ;;  %v1062_v25 = vmax.f32 %v1030_v14, 0.0  ;;  %v1005_v45 = vld [vmem:[#allocation2 + $0x80] sm:$0xff]  ;;  %v1006_v50 = vld [vmem:[#allocation2 + $0x88] sm:$0xff] }
 0x17b   : > { %v1063_v29 = vmax.f32 %v1031_v16, 0.0  ;;  %v1064_v30 = vmax.f32 %v1032_v17, 0.0  ;;  %v1065_v31 = vmax.f32 %v1033_v18, 0.0  ;;  %v1066_v32 = vmax.f32 %v1034_v19, 0.0  ;;  %v1007_v55 = vld [vmem:[#allocation2 + $0x90] sm:$0xff]  ;;  %v1008_v56 = vld [vmem:[#allocation2 + $0x98] sm:$0xff] }
 0x17c   : > { %v1091_v35 = vpack.c.bf16 %v1060_v23, %v1059_v22  ;;  %v1092_v36 = vpack.c.bf16 %v1062_v25, %v1061_v24  ;;  %v1035_v37 = vadd.f32 %v1816_v4, %v997_v20  ;;  %v1036_v38 = vadd.f32 %v1818_v5, %v998_v21  ;;  %v1009_v61 = vld [vmem:[#allocation2 + $0xa0] sm:$0xff]  ;;  %v1010_v62 = vld [vmem:[#allocation2 + $0xa8] sm:$0xff]  ;;  %v1011_v3 = vld [vmem:[#allocation2 + $0xb0] sm:$0xff] }
 0x17d   : > { %v1093_v41 = vpack.c.bf16 %v1064_v30, %v1063_v29  ;;  %v1094_v42 = vpack.c.bf16 %v1066_v32, %v1065_v31  ;;  %v1037_v43 = vadd.f32 %v1816_v4, %v999_v26  ;;  %v1038_v44 = vadd.f32 %v1818_v5, %v1000_v27  ;;  %v1012_v6 = vld [vmem:[#allocation2 + $0xb8] sm:$0xff]  ;;  %v1013_v11 = vld [vmem:[#allocation2 + $0xc0] sm:$0xff]  ;;  %v1014_v16 = vld [vmem:[#allocation2 + $0xc8] sm:$0xff] }
 0x17e   : > { %1110 = vst.msk [vmem:[%s1956_s3] sm:$0xff] %vm1830_vm4, %v1091_v35  ;;  %v1067_v46 = vmax.f32 %v1035_v37, 0.0  ;;  %v1068_v47 = vmax.f32 %v1036_v38, 0.0  ;;  %v1039_v48 = vadd.f32 %v1816_v4, %v1001_v33  ;;  %v1040_v49 = vadd.f32 %v1818_v5, %v1002_v34  ;;  %v1015_v21 = vld [vmem:[#allocation2 + $0xd0] sm:$0xff]  ;;  %v1016_v22 = vld [vmem:[#allocation2 + $0xd8] sm:$0xff]  ;;  %v1017_v27 = vld [vmem:[#allocation2 + $0xe0] sm:$0xff] }
 0x17f   : > { %1111 = vst.msk [vmem:[%s1956_s3 + $0x8] sm:$0xff] %vm1830_vm4, %v1092_v36  ;;  %v1069_v51 = vmax.f32 %v1037_v43, 0.0  ;;  %v1070_v52 = vmax.f32 %v1038_v44, 0.0  ;;  %v1041_v53 = vadd.f32 %v1816_v4, %v1003_v39  ;;  %v1042_v54 = vadd.f32 %v1818_v5, %v1004_v40  ;;  %v1018_v29 = vld [vmem:[#allocation2 + $0xe8] sm:$0xff]  ;;  %v1019_v34 = vld [vmem:[#allocation2 + $0xf0] sm:$0xff]  ;;  %v1020_v35 = vld [vmem:[#allocation2 + $0xf8] sm:$0xff] }
 0x180   : > { %1112 = vst.msk [vmem:[%s1956_s3 + $0x10] sm:$0xff] %vm1830_vm4, %v1093_v41  ;;  %v1095_v57 = vpack.c.bf16 %v1068_v47, %v1067_v46  ;;  %v1071_v58 = vmax.f32 %v1039_v48, 0.0  ;;  %v1072_v59 = vmax.f32 %v1040_v49, 0.0  ;;  %v1043_v60 = vadd.f32 %v1816_v4, %v1005_v45 }
 0x181   : > { %1113 = vst.msk [vmem:[%s1956_s3 + $0x18] sm:$0xff] %vm1830_vm4, %v1094_v42  ;;  %v1096_v63 = vpack.c.bf16 %v1070_v52, %v1069_v51  ;;  %v1073_v0 = vmax.f32 %v1041_v53, 0.0  ;;  %v1074_v1 = vmax.f32 %v1042_v54, 0.0  ;;  %v1044_v2 = vadd.f32 %v1818_v5, %v1006_v50 }
 0x182   : > { %1114 = vst.msk [vmem:[%s1956_s3 + $0x20] sm:$0xff] %vm1830_vm4, %v1095_v57  ;;  %v1097_v7 = vpack.c.bf16 %v1072_v59, %v1071_v58  ;;  %v1075_v8 = vmax.f32 %v1043_v60, 0.0  ;;  %v1045_v9 = vadd.f32 %v1816_v4, %v1007_v55  ;;  %v1046_v10 = vadd.f32 %v1818_v5, %v1008_v56 }
 0x183   : > { %1115 = vst.msk [vmem:[%s1956_s3 + $0x28] sm:$0xff] %vm1830_vm4, %v1096_v63  ;;  %v1098_v12 = vpack.c.bf16 %v1074_v1, %v1073_v0  ;;  %v1076_v13 = vmax.f32 %v1044_v2, 0.0  ;;  %v1047_v14 = vadd.f32 %v1816_v4, %v1009_v61  ;;  %v1048_v15 = vadd.f32 %v1818_v5, %v1010_v62 }
 0x184   : > { %1116 = vst.msk [vmem:[%s1956_s3 + $0x30] sm:$0xff] %vm1830_vm4, %v1097_v7  ;;  %v1077_v17 = vmax.f32 %v1045_v9, 0.0  ;;  %v1078_v18 = vmax.f32 %v1046_v10, 0.0  ;;  %v1049_v19 = vadd.f32 %v1816_v4, %v1011_v3  ;;  %v1050_v20 = vadd.f32 %v1818_v5, %v1012_v6 }
 0x185   : > { %1117 = vst.msk [vmem:[%s1956_s3 + $0x38] sm:$0xff] %vm1830_vm4, %v1098_v12  ;;  %v1099_v23 = vpack.c.bf16 %v1076_v13, %v1075_v8  ;;  %v1079_v24 = vmax.f32 %v1047_v14, 0.0  ;;  %v1080_v25 = vmax.f32 %v1048_v15, 0.0  ;;  %v1051_v26 = vadd.f32 %v1816_v4, %v1013_v11 }
 0x186   : > { %v1100_v30 = vpack.c.bf16 %v1078_v18, %v1077_v17  ;;  %v1081_v31 = vmax.f32 %v1049_v19, 0.0  ;;  %v1082_v32 = vmax.f32 %v1050_v20, 0.0  ;;  %v1052_v33 = vadd.f32 %v1818_v5, %v1014_v16 }
 0x187   : > { %1118 = vst.msk [vmem:[%s1956_s3 + $0x40] sm:$0xff] %vm1830_vm4, %v1099_v23  ;;  %v1101_v36 = vpack.c.bf16 %v1080_v25, %v1079_v24  ;;  %v1083_v37 = vmax.f32 %v1051_v26, 0.0  ;;  %v1053_v38 = vadd.f32 %v1816_v4, %v1015_v21  ;;  %v1054_v39 = vadd.f32 %v1818_v5, %v1016_v22 }
 0x188   : > { %1119 = vst.msk [vmem:[%s1956_s3 + $0x48] sm:$0xff] %vm1830_vm4, %v1100_v30  ;;  %v1102_v40 = vpack.c.bf16 %v1082_v32, %v1081_v31  ;;  %v1084_v41 = vmax.f32 %v1052_v33, 0.0  ;;  %v1055_v42 = vadd.f32 %v1816_v4, %v1017_v27  ;;  %v1056_v43 = vadd.f32 %v1818_v5, %v1018_v29 }
 0x189   : > { %1120 = vst.msk [vmem:[%s1956_s3 + $0x50] sm:$0xff] %vm1830_vm4, %v1101_v36  ;;  %v1085_v44 = vmax.f32 %v1053_v38, 0.0  ;;  %v1086_v45 = vmax.f32 %v1054_v39, 0.0  ;;  %v1057_v46 = vadd.f32 %v1816_v4, %v1019_v34  ;;  %v1058_v47 = vadd.f32 %v1818_v5, %v1020_v35 }
 0x18a   : > { %1121 = vst.msk [vmem:[%s1956_s3 + $0x58] sm:$0xff] %vm1830_vm4, %v1102_v40  ;;  %v1103_v48 = vpack.c.bf16 %v1084_v41, %v1083_v37  ;;  %v1087_v49 = vmax.f32 %v1055_v42, 0.0  ;;  %v1088_v50 = vmax.f32 %v1056_v43, 0.0 }
 0x18b   : > { %v1104_v51 = vpack.c.bf16 %v1086_v45, %v1085_v44  ;;  %v1089_v52 = vmax.f32 %v1057_v46, 0.0  ;;  %v1090_v53 = vmax.f32 %v1058_v47, 0.0 }
 0x18c   : > { %1122 = vst.msk [vmem:[%s1956_s3 + $0x60] sm:$0xff] %vm1830_vm4, %v1103_v48  ;;  %v1105_v4 = vpack.c.bf16 %v1088_v50, %v1087_v49 }
 0x18d   : > { %1123 = vst.msk [vmem:[%s1956_s3 + $0x68] sm:$0xff] %vm1830_vm4, %v1104_v51  ;;  %v1106_v5 = vpack.c.bf16 %v1090_v53, %v1089_v52 }
 0x18e   : > { %1124 = vst.msk [vmem:[%s1956_s3 + $0x70] sm:$0xff] %vm1830_vm4, %v1105_v4 }
 0x18f   : > { %1125 = vst.msk [vmem:[%s1956_s3 + $0x78] sm:$0xff] %vm1830_vm4, %v1106_v5 }
 0x190 PF: > { %s13_s16 = sadd.s32 1, %s1588_s16   ;;  %s1959_s12 = smov %s1576_s13 }
 0x191   : > { %p10_p12 = scmp.ge.s32.totalorder %s13_s16, 9   ;;  %s1960_s13 = smov %s1646_s20 }
 0x192   : > { %s1961_s14 = smov %s1584_s15  ;;  %s1962_s15 = smov %s1964_s17 }
 0x193   :  { %12 = sbr.rel (!%p10_p12) target bundleno = 3 (0x3), region = 119 }

// kernel: allconv_forward.15
= control target key start
LH: loop header
LB: loop body
LE: loop exit
PB: predicated region body
PF: predicated region fallthrough
CT: control target
= control target key end

     0   :  { %s1119_s12 = smov 0   ;;  %s1121_s13 = smov 0   ;;  %s1283_s0 = inlined_call_operand.vmem [shape: bf16[32,1792], index: 0, kind: input, shape index: {}]   ;;  %s1284_s1 = inlined_call_operand.vmem [shape: bf16[1792,192], index: 1, kind: input, shape index: {}]   ;;  %s1285_s2 = inlined_call_operand.vmem [shape: f32[1,192], index: 2, kind: input, shape index: {}]   ;;  %s1286_s3 = inlined_call_operand.vmem [shape: bf16[32,192], index: 3, kind: output, shape index: {}]  }
   0x1   :  { %s1123_s14 = smov 0   ;;  %s1125_s15 = smov 0  }
   0x2   :  { %s1127_s16 = smov 0  }
   0x3 LB: > { %s25_s17 = sadd.s32 1, %s1092_s15  ;;  %p48_p1 = scmp.ne.s32.totalorder %s1084_s13, %s1080_s12  ;;  %s1096_s16 = sphi %s1127_s16, %s13_s16   ;;  %s1092_s15 = sphi %s1125_s15, %s1290_s15   ;;  %s1088_s14 = sphi %s1123_s14, %s1289_s14   ;;  %s1084_s13 = sphi %s1121_s13, %s1288_s13   ;;  %s1080_s12 = sphi %s1119_s12, %s1287_s12  }
   0x4   : > { %p26_p0 = scmp.ge.s32.totalorder %s25_s17, 7  ;;  %p49_p2 = scmp.eq.s32.totalorder %s1096_s16, 0 }
   0x5   : > { %s41_s19 = sadd.s32 1, %s1084_s13  ;;  %p820_p5 = scmp.ge.s32.totalorder %s1096_s16, 7 }
   0x6   : > { %s1292_s17 = smov (%p26_p0, %s25_s17), 0  ;;  %p50_p3 = por %p49_p2, %p48_p1 }
   0x7   : > { %s37_s18 = ssub.s32 %s1092_s15, %s1292_s17  ;;  %164 = sbr.rel (%p820_p5) target bundleno = 20 (0x14), region = 20 }
   0x8   : > { %p39_p4 = scmp.eq.s32.totalorder %s37_s18, 0 }
   0xa   : > { %s1154_s20 = scalar_select %p39_p4, %s1084_s13, %s41_s19  }
   0xc   : > { %167 = sbr.rel (!%p50_p3) target bundleno = 20 (0x14), region = 24  ;;  %s169_s21 = sand.u32 (%p50_p3), 1, %s1084_s13  }
   0xd   : > { %s979_s22 = sshll.u32 (%p50_p3), %s1092_s15, 3  ;;  %s821_s23 = sshll.u32 (%p50_p3), %s169_s21, 5 }
   0xe   : > { %s177_s26 = scalar_lea.vmem (%p50_p3), %s1283_s0, %s979_s22  ;;  %s171_s27 = scalar_lea.vmem (%p50_p3), [#allocation3], %s821_s23 }
   0xf   : > { %v212_v0 = vld [vmem:[%s177_s26] sm:$0xff] (%p50_p3)  ;;  %v214_v1 = vld [vmem:[%s177_s26 + $0x38] sm:$0xff] (%p50_p3)  ;;  %v216_v2 = vld [vmem:[%s177_s26 + $0x70] sm:$0xff] (%p50_p3) }
  0x10   : > { %213 = vst [vmem:[%s171_s27] sm:$0xff] (%p50_p3), %v212_v0  ;;  %v218_v3 = vld [vmem:[%s177_s26 + $0xa8] sm:$0xff] (%p50_p3) }
  0x11   : > { %215 = vst [vmem:[%s171_s27 + $0x8] sm:$0xff] %v214_v1 }
  0x12   : > { %217 = vst [vmem:[%s171_s27 + $0x10] sm:$0xff] %v216_v2 }
  0x13   : > { %219 = vst [vmem:[%s171_s27 + $0x18] sm:$0xff] %v218_v3 }
  0x14 PF: > { %p824_p6 = scmp.ge.s32.totalorder %s1096_s16, 1  ;;  %p239_p7 = scmp.lt.s32.totalorder %s1096_s16, 8 }
  0x16   : > { %p240_p8 = pnand %p824_p6, %p239_p7 }
  0x17   : > { %s246_s28 = sand.u32 (!%p240_p8), 1, %s1080_s12   ;;  %s826_s29 = sshll.u32 (!%p240_p8), %s1088_s14, 5 }
  0x18   : > { %243 = sbr.rel (%p240_p8) target bundleno = 254 (0xfe), region = 66  ;;  %s825_s30 = sshll.u32 (!%p240_p8), %s246_s28, 5 }
  0x19   : > { %p292_p9 = scmp.lt.s32.totalorder (!%p240_p8), %s826_s29, 223  ;;  %s1171_s8 = scalar_lea.vmem (!%p240_p8), [#allocation3], %s825_s30 }
  0x1a   : > { %p829_p10 = scmp.ne.s32.totalorder (!%p240_p8), %s1088_s14, 0 }
  0x1d   : > { %s1294_s29 = smov (!%p292_p9, %s826_s29), 223  ;;  %322 = sbr.rel (%p829_p10) target bundleno = 43 (0x2b), region = 74 }
  0x1e   : > { %s980_s4 = sshll.u32 %s1294_s29, 3 }
  0x1f   : > { %s1169_s7 = scalar_lea.vmem %s1284_s1, %s980_s4 }
  0x22   : > { %v1098_v4 = vmov 0.0   ;;  %vm324_vm0 = vcmask 523264  }
  0x23   : > { %323 = vst [vmem:[#allocation2] sm:$0xff] %v1098_v4 }
  0x24   : > { %326 = vst [vmem:[#allocation2 + $0x10] sm:$0xff] %v1098_v4 }
  0x25   : > { %328 = vst [vmem:[#allocation2 + $0x20] sm:$0xff] %v1098_v4 }
  0x26   : > { %330 = vst [vmem:[#allocation2 + $0x30] sm:$0xff] %v1098_v4 }
  0x27   : > { %325 = vst.msk [vmem:[#allocation2 + $0x8] sm:$0xff] %vm324_vm0, %v1098_v4 }
  0x28   : > { %327 = vst.msk [vmem:[#allocation2 + $0x18] sm:$0xff] %vm324_vm0, %v1098_v4 }
  0x29   : > { %329 = vst.msk [vmem:[#allocation2 + $0x28] sm:$0xff] %vm324_vm0, %v1098_v4 }
  0x2a   : > { %331 = vst.msk [vmem:[#allocation2 + $0x38] sm:$0xff] %vm324_vm0, %v1098_v4 }
  0x2b PF: > { %v904_v5 = vld [vmem:[%s1169_s7 + $0x70] sm:$0xf]  ;;  %v1000_v6 = vld [vmem:[%s1169_s7 + $0x74] sm:$0xf0]  ;;  %v999_v10 = vld [vmem:[%s1169_s7 + $0x74] sm:$0xf] }
  0x2c   : > { %v968_v7 = vld [vmem:[%s1169_s7 + $0xf0] sm:$0xf]  ;;  %v905_v8 = vor.u32 %v1000_v6, %v904_v5  ;;  %v1016_v9 = vld [vmem:[%s1169_s7 + $0xf4] sm:$0xf0]  ;;  %v906_v11 = vld [vmem:[%s1169_s7 + $0x78] sm:$0xf0] }
  0x2d   : > { %v969_v12 = vor.u32 %v1016_v9, %v968_v7  ;;  %v909_v13 = vor.u32 %v999_v10, %v906_v11  ;;  %v1015_v14 = vld [vmem:[%s1169_s7 + $0xf4] sm:$0xf]  ;;  %v970_v15 = vld [vmem:[%s1169_s7 + $0xf8] sm:$0xf0]  ;;  %v896_v16 = vld [vmem:[%s1169_s7 + $0x60] sm:$0xf] }
  0x2e   : > { %556 = vmatpush.bf16.msra.mxu0 %v905_v8  ;;  %v973_v17 = vor.u32 %v1015_v14, %v970_v15  ;;  %v998_v18 = vld [vmem:[%s1169_s7 + $0x64] sm:$0xf0]  ;;  %v960_v19 = vld [vmem:[%s1169_s7 + $0xe0] sm:$0xf]  ;;  %v997_v23 = vld [vmem:[%s1169_s7 + $0x64] sm:$0xf] }
  0x2f   : > { %v1014_v20 = vld [vmem:[%s1169_s7 + $0xe4] sm:$0xf0]  ;;  %575 = vmatpush.bf16.msra.mxu1 %v969_v12  ;;  %594 = vmatpush.bf16.msra.mxu2 %v909_v13  ;;  %v897_v21 = vor.u32 %v998_v18, %v896_v16  ;;  %v898_v24 = vld [vmem:[%s1169_s7 + $0x68] sm:$0xf0]  ;;  %v1013_v25 = vld [vmem:[%s1169_s7 + $0xe4] sm:$0xf] }
  0x30   : > { %v961_v22 = vor.u32 %v1014_v20, %v960_v19  ;;  %613 = vmatpush.bf16.msra.mxu3 %v973_v17  ;;  %v901_v26 = vor.u32 %v997_v23, %v898_v24  ;;  %v962_v27 = vld [vmem:[%s1169_s7 + $0xe8] sm:$0xf0]  ;;  %v888_v28 = vld [vmem:[%s1169_s7 + $0x50] sm:$0xf]  ;;  %v996_v29 = vld [vmem:[%s1169_s7 + $0x54] sm:$0xf0] }
  0x31   : > { %v965_v30 = vor.u32 %v1013_v25, %v962_v27  ;;  %v952_v31 = vld [vmem:[%s1169_s7 + $0xd0] sm:$0xf]  ;;  %v1012_v32 = vld [vmem:[%s1169_s7 + $0xd4] sm:$0xf0]  ;;  %v995_v33 = vld [vmem:[%s1169_s7 + $0x54] sm:$0xf]  ;;  %v889_v34 = vor.u32 %v996_v29, %v888_v28 }
  0x32   : > { %557 = vmatpush.bf16.msra.mxu0 %v897_v21  ;;  %v890_v35 = vld [vmem:[%s1169_s7 + $0x58] sm:$0xf0]  ;;  %v1011_v36 = vld [vmem:[%s1169_s7 + $0xd4] sm:$0xf]  ;;  %v953_v38 = vor.u32 %v1012_v32, %v952_v31  ;;  %v880_v40 = vld [vmem:[%s1169_s7 + $0x40] sm:$0xf] }
  0x33   : > { %v954_v37 = vld [vmem:[%s1169_s7 + $0xd8] sm:$0xf0]  ;;  %576 = vmatpush.bf16.msra.mxu1 %v961_v22  ;;  %595 = vmatpush.bf16.msra.mxu2 %v901_v26  ;;  %v893_v39 = vor.u32 %v995_v33, %v890_v35  ;;  %v994_v41 = vld [vmem:[%s1169_s7 + $0x44] sm:$0xf0]  ;;  %v944_v42 = vld [vmem:[%s1169_s7 + $0xc0] sm:$0xf] }
  0x34   : > { %614 = vmatpush.bf16.msra.mxu3 %v965_v30  ;;  %v957_v43 = vor.u32 %v1011_v36, %v954_v37  ;;  %v1010_v44 = vld [vmem:[%s1169_s7 + $0xc4] sm:$0xf0]  ;;  %v993_v45 = vld [vmem:[%s1169_s7 + $0x44] sm:$0xf]  ;;  %v882_v46 = vld [vmem:[%s1169_s7 + $0x48] sm:$0xf0]  ;;  %v881_v49 = vor.u32 %v994_v41, %v880_v40 }
  0x35   : > { %v1009_v47 = vld [vmem:[%s1169_s7 + $0xc4] sm:$0xf]  ;;  %v946_v48 = vld [vmem:[%s1169_s7 + $0xc8] sm:$0xf0]  ;;  %v945_v50 = vor.u32 %v1010_v44, %v944_v42  ;;  %v885_v51 = vor.u32 %v993_v45, %v882_v46  ;;  %v872_v52 = vld [vmem:[%s1169_s7 + $0x30] sm:$0xf] }
  0x36   : > { %558 = vmatpush.bf16.msra.mxu0 %v889_v34  ;;  %v992_v53 = vld [vmem:[%s1169_s7 + $0x34] sm:$0xf0]  ;;  %v936_v54 = vld [vmem:[%s1169_s7 + $0xb0] sm:$0xf]  ;;  %v949_v55 = vor.u32 %v1009_v47, %v946_v48  ;;  %v991_v57 = vld [vmem:[%s1169_s7 + $0x34] sm:$0xf] }
  0x37   : > { %577 = vmatpush.bf16.msra.mxu1 %v953_v38  ;;  %596 = vmatpush.bf16.msra.mxu2 %v893_v39  ;;  %v1008_v56 = vld [vmem:[%s1169_s7 + $0xb4] sm:$0xf0]  ;;  %v874_v58 = vld [vmem:[%s1169_s7 + $0x38] sm:$0xf0]  ;;  %v1007_v59 = vld [vmem:[%s1169_s7 + $0xb4] sm:$0xf]  ;;  %v873_v61 = vor.u32 %v992_v53, %v872_v52 }
  0x38   : > { %615 = vmatpush.bf16.msra.mxu3 %v957_v43  ;;  %v938_v60 = vld [vmem:[%s1169_s7 + $0xb8] sm:$0xf0]  ;;  %v937_v62 = vor.u32 %v1008_v56, %v936_v54  ;;  %v877_v63 = vor.u32 %v991_v57, %v874_v58  ;;  %v864_v0 = vld [vmem:[%s1169_s7 + $0x20] sm:$0xf]  ;;  %v990_v1 = vld [vmem:[%s1169_s7 + $0x24] sm:$0xf0] }
  0x39   : > { %v928_v2 = vld [vmem:[%s1169_s7 + $0xa0] sm:$0xf]  ;;  %v941_v3 = vor.u32 %v1007_v59, %v938_v60  ;;  %v1006_v4 = vld [vmem:[%s1169_s7 + $0xa4] sm:$0xf0]  ;;  %v989_v5 = vld [vmem:[%s1169_s7 + $0x24] sm:$0xf]  ;;  %v865_v9 = vor.u32 %v990_v1, %v864_v0 }
  0x3a   : > { %559 = vmatpush.bf16.msra.mxu0 %v881_v49  ;;  %v866_v6 = vld [vmem:[%s1169_s7 + $0x28] sm:$0xf0]  ;;  %v1005_v7 = vld [vmem:[%s1169_s7 + $0xa4] sm:$0xf]  ;;  %v929_v10 = vor.u32 %v1006_v4, %v928_v2  ;;  %v856_v12 = vld [vmem:[%s1169_s7 + $0x10] sm:$0xf] }
  0x3b   : > { %578 = vmatpush.bf16.msra.mxu1 %v945_v50  ;;  %597 = vmatpush.bf16.msra.mxu2 %v885_v51  ;;  %v930_v8 = vld [vmem:[%s1169_s7 + $0xa8] sm:$0xf0]  ;;  %v869_v11 = vor.u32 %v989_v5, %v866_v6  ;;  %v988_v13 = vld [vmem:[%s1169_s7 + $0x14] sm:$0xf0]  ;;  %v920_v14 = vld [vmem:[%s1169_s7 + $0x90] sm:$0xf] }
  0x3c   : > { %616 = vmatpush.bf16.msra.mxu3 %v949_v55  ;;  %v933_v15 = vor.u32 %v1005_v7, %v930_v8  ;;  %v1004_v16 = vld [vmem:[%s1169_s7 + $0x94] sm:$0xf0]  ;;  %v987_v17 = vld [vmem:[%s1169_s7 + $0x14] sm:$0xf]  ;;  %v858_v18 = vld [vmem:[%s1169_s7 + $0x18] sm:$0xf0]  ;;  %v857_v21 = vor.u32 %v988_v13, %v856_v12 }
  0x3d   : > { %v1003_v19 = vld [vmem:[%s1169_s7 + $0x94] sm:$0xf]  ;;  %v922_v20 = vld [vmem:[%s1169_s7 + $0x98] sm:$0xf0]  ;;  %v921_v22 = vor.u32 %v1004_v16, %v920_v14  ;;  %v861_v23 = vor.u32 %v987_v17, %v858_v18  ;;  %v848_v24 = vld [vmem:[%s1169_s7] sm:$0xf] }
  0x3e   : > { %560 = vmatpush.bf16.msra.mxu0 %v873_v61  ;;  %v986_v25 = vld [vmem:[%s1169_s7 + $0x4] sm:$0xf0]  ;;  %v912_v26 = vld [vmem:[%s1169_s7 + $0x80] sm:$0xf]  ;;  %v925_v27 = vor.u32 %v1003_v19, %v922_v20  ;;  %v985_v29 = vld [vmem:[%s1169_s7 + $0x4] sm:$0xf] }
  0x3f   : > { %579 = vmatpush.bf16.msra.mxu1 %v937_v62  ;;  %598 = vmatpush.bf16.msra.mxu2 %v877_v63  ;;  %v1002_v28 = vld [vmem:[%s1169_s7 + $0x84] sm:$0xf0]  ;;  %v850_v30 = vld [vmem:[%s1169_s7 + $0x8] sm:$0xf0]  ;;  %v1001_v31 = vld [vmem:[%s1169_s7 + $0x84] sm:$0xf]  ;;  %v849_v33 = vor.u32 %v986_v25, %v848_v24 }
  0x40   : > { %617 = vmatpush.bf16.msra.mxu3 %v941_v3  ;;  %v914_v32 = vld [vmem:[%s1169_s7 + $0x88] sm:$0xf0]  ;;  %v832_v34 = vld [vmem:[%s1171_s8] sm:$0xf]  ;;  %v982_v35 = vld [vmem:[%s1171_s8 + $0x4] sm:$0xf0]  ;;  %v913_v36 = vor.u32 %v1002_v28, %v912_v26  ;;  %v853_v37 = vor.u32 %v985_v29, %v850_v30 }
  0x41   : > { %v981_v38 = vld [vmem:[%s1171_s8 + $0x4] sm:$0xf]  ;;  %v834_v39 = vld [vmem:[%s1171_s8 + $0x8] sm:$0xf0]  ;;  %v917_v40 = vor.u32 %v1001_v31, %v914_v32  ;;  %v833_v41 = vor.u32 %v982_v35, %v832_v34  ;;  %v840_v43 = vld [vmem:[%s1171_s8 + $0x10] sm:$0xf] }
  0x42   : > { %561 = vmatpush.bf16.msra.mxu0 %v865_v9  ;;  %v837_v42 = vor.u32 %v981_v38, %v834_v39  ;;  %v984_v44 = vld [vmem:[%s1171_s8 + $0x14] sm:$0xf0]  ;;  %v983_v45 = vld [vmem:[%s1171_s8 + $0x14] sm:$0xf]  ;;  %v842_v46 = vld [vmem:[%s1171_s8 + $0x18] sm:$0xf0] }
  0x43   : > { %580 = vmatpush.bf16.msra.mxu1 %v929_v10  ;;  %599 = vmatpush.bf16.msra.mxu2 %v869_v11  ;;  %v841_v47 = vor.u32 %v984_v44, %v840_v43  ;;  %v845_v48 = vor.u32 %v983_v45, %v842_v46  ;;  %v332_v50 = vld [vmem:[#allocation2] sm:$0xff]  ;;  %v333_v55 = vld [vmem:[#allocation2 + $0x8] sm:$0xff]  ;;  %v334_v59 = vld [vmem:[#allocation2 + $0x10] sm:$0xff]  ;;  %vm641_vm1 = vcmask 523264   ;;  %p974_p11 = scmp.ne.s32.totalorder %s1088_s14, 6 }
  0x44   : > { %618 = vmatpush.bf16.msra.mxu3 %v933_v15  ;;  %v335_v1 = vld [vmem:[#allocation2 + $0x18] sm:$0xff]  ;;  %v336_v5 = vld [vmem:[#allocation2 + $0x20] sm:$0xff]  ;;  %v337_v11 = vld [vmem:[#allocation2 + $0x28] sm:$0xff] }
  0x45   : > { %v338_v15 = vld [vmem:[#allocation2 + $0x30] sm:$0xff] }
  0x46   : > { %562 = vmatpush.bf16.msra.mxu0 %v857_v21  ;;  %v339_v21 = vld [vmem:[#allocation2 + $0x38] sm:$0xff] }
  0x47   : > { %581 = vmatpush.bf16.msra.mxu1 %v921_v22  ;;  %600 = vmatpush.bf16.msra.mxu2 %v861_v23 }
  0x48   : > { %619 = vmatpush.bf16.msra.mxu3 %v925_v27 }
  0x4a   : > { %563 = vmatpush.bf16.msra.mxu0 %v849_v33 }
  0x4b   : > { %582 = vmatpush.bf16.msra.mxu1 %v913_v36  ;;  %601 = vmatpush.bf16.msra.mxu2 %v853_v37 }
  0x4c   : > { %620 = vmatpush.bf16.msra.mxu3 %v917_v40 }
  0x4d   : > { %564 = vmatmul.bf16.vlgmr.msra.gmra.mxu0 %v833_v41 }
  0x4e   : > { %583 = vmatmul.bf16.vlgmr.msra.gmra.mxu1 %v837_v42  ;;  %602 = vmatmul.bf16.vlgmr.msra.gmra.mxu2 %v833_v41 }
  0x4f   : > { %621 = vmatmul.bf16.vlgmr.msra.gmra.mxu3 %v837_v42 }
  0x5d   : > { %569 = vmatmul.bf16.gmra.mxu0 %v841_v47 }
  0x5e   : > { %588 = vmatmul.bf16.gmra.mxu1 %v845_v48  ;;  %607 = vmatmul.bf16.gmra.mxu2 %v841_v47 }
  0x5f   : > { %626 = vmatmul.bf16.gmra.mxu3 %v845_v48 }
  0xca   : > { %v565_v49 = vpop.f32.mrf.mxu0 }
  0xcb   : > { %v584_v51 = vpop.f32.mrf.mxu1 }
  0xcc   : > { %v585_v52 = vadd.f32 %v584_v51, %v565_v49 }
  0xce   : > { %v632_v53 = vadd.f32 %v585_v52, %v332_v50 }
  0xd0   : > { %640 = vst [vmem:[#allocation2] sm:$0xff] %v632_v53 }
  0xd1   : > { %v603_v54 = vpop.f32.mrf.mxu2 }
  0xd2   : > { %v622_v56 = vpop.f32.mrf.mxu3  ;;  %v567_v57 = vpop.f32.mrf.mxu0 }
  0xd3   : > { %v623_v58 = vadd.f32 %v622_v56, %v603_v54  ;;  %v586_v60 = vpop.f32.mrf.mxu1 }
  0xd4   : > { %v587_v61 = vadd.f32 %v586_v60, %v567_v57 }
  0xd5   : > { %v633_v62 = vadd.f32 %v623_v58, %v333_v55 }
  0xd6   : > { %v634_v63 = vadd.f32 %v587_v61, %v334_v59 }
  0xd7   : > { %642 = vst.msk [vmem:[#allocation2 + $0x8] sm:$0xff] %vm641_vm1, %v633_v62 }
  0xd8   : > { %643 = vst [vmem:[#allocation2 + $0x10] sm:$0xff] %v634_v63 }
  0xd9   : > { %v605_v0 = vpop.f32.mrf.mxu2 }
  0xda   : > { %v624_v2 = vpop.f32.mrf.mxu3  ;;  %v570_v3 = vpop.f32.mrf.mxu0 }
  0xdb   : > { %v625_v4 = vadd.f32 %v624_v2, %v605_v0  ;;  %v589_v6 = vpop.f32.mrf.mxu1 }
  0xdc   : > { %v590_v7 = vadd.f32 %v589_v6, %v570_v3 }
  0xdd   : > { %v635_v8 = vadd.f32 %v625_v4, %v335_v1 }
  0xde   : > { %v636_v9 = vadd.f32 %v590_v7, %v336_v5 }
  0xdf   : > { %644 = vst.msk [vmem:[#allocation2 + $0x18] sm:$0xff] %vm641_vm1, %v635_v8 }
  0xe0   : > { %645 = vst [vmem:[#allocation2 + $0x20] sm:$0xff] %v636_v9 }
  0xe1   : > { %v608_v10 = vpop.f32.mrf.mxu2 }
  0xe2   : > { %v627_v12 = vpop.f32.mrf.mxu3  ;;  %v572_v13 = vpop.f32.mrf.mxu0 }
  0xe3   : > { %v628_v14 = vadd.f32 %v627_v12, %v608_v10  ;;  %v591_v16 = vpop.f32.mrf.mxu1 }
  0xe4   : > { %v592_v17 = vadd.f32 %v591_v16, %v572_v13 }
  0xe5   : > { %v637_v18 = vadd.f32 %v628_v14, %v337_v11 }
  0xe6   : > { %v638_v19 = vadd.f32 %v592_v17, %v338_v15 }
  0xe7   : > { %646 = vst.msk [vmem:[#allocation2 + $0x28] sm:$0xff] %vm641_vm1, %v637_v18 }
  0xe8   : > { %647 = vst [vmem:[#allocation2 + $0x30] sm:$0xff] %v638_v19 }
  0xe9   : > { %v610_v20 = vpop.f32.mrf.mxu2 }
  0xea   : > { %v629_v22 = vpop.f32.mrf.mxu3 }
  0xeb   : > { %v630_v23 = vadd.f32 %v629_v22, %v610_v20  ;;  %652 = sbr.rel (%p974_p11) target bundleno = 254 (0xfe), region = 78 }
  0xed   : > { %v639_v24 = vadd.f32 %v630_v23, %v339_v21 }
  0xef   : > { %648 = vst.msk [vmem:[#allocation2 + $0x38] sm:$0xff] %vm641_vm1, %v639_v24 }
  0xf0   : > { %v653_v25 = vld [vmem:[#allocation2] sm:$0xff]  ;;  %v654_v26 = vld [vmem:[#allocation2 + $0x8] sm:$0xff]  ;;  %v655_v30 = vld [vmem:[#allocation2 + $0x10] sm:$0xff]  ;;  %vm687_vm2 = vcmask 1043456   ;;  %vm688_vm3 = vcmask 523268  }
  0xf1   : > { %v661_v27 = vld [vmem:[%s1285_s2] sm:$0x3]  ;;  %v656_v31 = vld [vmem:[#allocation2 + $0x18] sm:$0xff]  ;;  %v658_v33 = vld [vmem:[#allocation2 + $0x28] sm:$0xff] }
  0xf2   : > { %v663_v28 = vperm.slane %v661_v27, 0  ;;  %v664_v29 = vperm.slane %v661_v27, 1  ;;  %v657_v32 = vld [vmem:[#allocation2 + $0x20] sm:$0xff]  ;;  %v659_v34 = vld [vmem:[#allocation2 + $0x30] sm:$0xff]  ;;  %vm689_vm4 = vmor %vm688_vm3, %vm687_vm2 }
  0xf4   : > { %v667_v35 = vadd.f32 %v663_v28, %v653_v25  ;;  %v668_v36 = vadd.f32 %v664_v29, %v654_v26  ;;  %v669_v37 = vadd.f32 %v663_v28, %v655_v30  ;;  %v670_v38 = vadd.f32 %v664_v29, %v656_v31 }
  0xf5   : > { %v671_v40 = vadd.f32 %v663_v28, %v657_v32  ;;  %v672_v41 = vadd.f32 %v664_v29, %v658_v33  ;;  %v673_v42 = vadd.f32 %v663_v28, %v659_v34 }
  0xf6   : > { %v660_v39 = vld [vmem:[#allocation2 + $0x38] sm:$0xff]  ;;  %v675_v44 = vmax.f32 %v667_v35, 0.0  ;;  %v676_v45 = vmax.f32 %v668_v36, 0.0  ;;  %v677_v46 = vmax.f32 %v669_v37, 0.0  ;;  %v678_v47 = vmax.f32 %v670_v38, 0.0 }
  0xf7   : > { %v674_v43 = vadd.f32 %v664_v29, %v660_v39  ;;  %v679_v48 = vmax.f32 %v671_v40, 0.0  ;;  %v680_v49 = vmax.f32 %v672_v41, 0.0  ;;  %v681_v50 = vmax.f32 %v673_v42, 0.0 }
  0xf8   : > { %v683_v52 = vpack.c.bf16 %v676_v45, %v675_v44  ;;  %v684_v53 = vpack.c.bf16 %v678_v47, %v677_v46 }
  0xf9   : > { %v682_v51 = vmax.f32 %v674_v43, 0.0  ;;  %v685_v54 = vpack.c.bf16 %v680_v49, %v679_v48 }
  0xfa   : > { %690 = vst.msk [vmem:[%s1286_s3] sm:$0xff] %vm689_vm4, %v683_v52 }
  0xfb   : > { %v686_v55 = vpack.c.bf16 %v682_v51, %v681_v50  ;;  %691 = vst.msk [vmem:[%s1286_s3 + $0x8] sm:$0xff] %vm689_vm4, %v684_v53 }
  0xfc   : > { %692 = vst.msk [vmem:[%s1286_s3 + $0x10] sm:$0xff] %vm689_vm4, %v685_v54 }
  0xfd   : > { %693 = vst.msk [vmem:[%s1286_s3 + $0x18] sm:$0xff] %vm689_vm4, %v686_v55 }
  0xfe PF: > { %s13_s16 = sadd.s32 1, %s1096_s16   ;;  %s1287_s12 = smov %s1084_s13 }
  0xff   : > { %p10_p12 = scmp.ge.s32.totalorder %s13_s16, 9   ;;  %s1288_s13 = smov %s1154_s20 }
 0x100   : > { %s1289_s14 = smov %s1092_s15  ;;  %s1290_s15 = smov %s1292_s17 }
 0x101   :  { %12 = sbr.rel (!%p10_p12) target bundleno = 3 (0x3), region = 119 }

// kernel: allconv_forward.18
= control target key start
LH: loop header
LB: loop body
LE: loop exit
PB: predicated region body
PF: predicated region fallthrough
CT: control target
= control target key end

     0   :  { %vm63_vm0 = vcmask 523264   ;;  %vm217_vm1 = vcmask 1041409   ;;  %vm219_vm2 = vcmask 1042434   ;;  %vm221_vm3 = vcmask 1043459   ;;  %s416_s0 = inlined_call_operand.vmem [shape: bf16[8,16,192], index: 0, kind: input, shape index: {}]   ;;  %s417_s1 = inlined_call_operand.vmem [shape: f32[8,192], index: 1, kind: output, shape index: {}]  }
   0x1   :  { %v8_v0 = vld [vmem:[%s416_s0] sm:$0xff]  ;;  %v9_v1 = vld [vmem:[%s416_s0 + $0x8] sm:$0xff]  ;;  %v10_v2 = vld [vmem:[%s416_s0 + $0x10] sm:$0xff]  ;;  %vm223_vm4 = vcmask 1044484   ;;  %vm225_vm5 = vcmask 1045509   ;;  %vm227_vm6 = vcmask 1046534  }
   0x2   :  { %v11_v3 = vld [vmem:[%s416_s0 + $0x18] sm:$0xff]  ;;  %v12_v4 = vld [vmem:[%s416_s0 + $0x20] sm:$0xff]  ;;  %v13_v5 = vld [vmem:[%s416_s0 + $0x28] sm:$0xff]  ;;  %v24_v6 = vunpack.c.l.bf16 %v8_v0  ;;  %v25_v10 = vunpack.c.h.bf16 %v8_v0  ;;  %v26_v11 = vunpack.c.l.bf16 %v9_v1  ;;  %v27_v12 = vunpack.c.h.bf16 %v9_v1 }
   0x3   :  { %v14_v7 = vld [vmem:[%s416_s0 + $0x30] sm:$0xff]  ;;  %v280_v8 = vld [vmem:[%s416_s0 + $0x38] sm:$0xff]  ;;  %v285_v9 = vld [vmem:[%s416_s0 + $0x40] sm:$0xff]  ;;  %v28_v13 = vunpack.c.l.bf16 %v10_v2  ;;  %v29_v16 = vunpack.c.h.bf16 %v10_v2  ;;  %v30_v17 = vunpack.c.l.bf16 %v11_v3  ;;  %v31_v18 = vunpack.c.h.bf16 %v11_v3 }
   0x4   :  { %v290_v14 = vld [vmem:[%s416_s0 + $0x48] sm:$0xff]  ;;  %v295_v15 = vld [vmem:[%s416_s0 + $0x50] sm:$0xff]  ;;  %v32_v19 = vunpack.c.l.bf16 %v12_v4  ;;  %v300_v20 = vld [vmem:[%s416_s0 + $0x58] sm:$0xff]  ;;  %v33_v22 = vunpack.c.h.bf16 %v12_v4  ;;  %v34_v23 = vunpack.c.l.bf16 %v13_v5  ;;  %v35_v24 = vunpack.c.h.bf16 %v13_v5 }
   0x5   :  { %v305_v21 = vld [vmem:[%s416_s0 + $0x60] sm:$0xff]  ;;  %v36_v25 = vunpack.c.l.bf16 %v14_v7  ;;  %v310_v26 = vld [vmem:[%s416_s0 + $0x68] sm:$0xff]  ;;  %v315_v27 = vld [vmem:[%s416_s0 + $0x70] sm:$0xff]  ;;  %v37_v28 = vunpack.c.h.bf16 %v14_v7  ;;  %v38_v29 = vunpack.c.l.bf16 %v280_v8  ;;  %v39_v30 = vunpack.c.h.bf16 %v280_v8 }
   0x6   :  { %v40_v31 = vunpack.c.l.bf16 %v285_v9  ;;  %v41_v32 = vunpack.c.h.bf16 %v285_v9  ;;  %v42_v33 = vunpack.c.l.bf16 %v290_v14  ;;  %v43_v34 = vunpack.c.h.bf16 %v290_v14 }
   0x7   :  { %v44_v35 = vunpack.c.l.bf16 %v295_v15  ;;  %v45_v36 = vunpack.c.h.bf16 %v295_v15  ;;  %v46_v37 = vunpack.c.l.bf16 %v300_v20  ;;  %v47_v38 = vunpack.c.h.bf16 %v300_v20 }
   0x8   :  { %v48_v39 = vunpack.c.l.bf16 %v305_v21  ;;  %v49_v40 = vunpack.c.h.bf16 %v305_v21  ;;  %v50_v41 = vunpack.c.l.bf16 %v310_v26  ;;  %v51_v42 = vunpack.c.h.bf16 %v310_v26 }
   0x9   :  { %v52_v43 = vunpack.c.l.bf16 %v315_v27  ;;  %v56_v44 = vadd.f32 %v26_v11, %v24_v6  ;;  %v64_v45 = vsel %vm63_vm0, %v25_v10, 0.0  ;;  %v65_v46 = vsel %vm63_vm0, %v27_v12, 0.0 }
   0xa   :  { %v73_v47 = vadd.f32 %v30_v17, %v28_v13  ;;  %v66_v48 = vadd.f32 %v65_v46, %v64_v45  ;;  %v80_v49 = vsel %vm63_vm0, %v29_v16, 0.0  ;;  %v81_v50 = vsel %vm63_vm0, %v31_v18, 0.0 }
   0xb   :  { %v89_v51 = vadd.f32 %v34_v23, %v32_v19  ;;  %v57_v52 = vrot.slane %v56_v44, 4  ;;  %v82_v54 = vadd.f32 %v81_v50, %v80_v49  ;;  %v96_v55 = vsel %vm63_vm0, %v33_v22, 0.0  ;;  %v343_v19 = vld [vmem:[%s416_s0 + $0x78] sm:$0xff] }
   0xc   :  { %v74_v53 = vrot.slane %v73_v47, 4  ;;  %v67_v56 = vrot.slane %v66_v48, 4  ;;  %v97_v58 = vsel %vm63_vm0, %v35_v24, 0.0  ;;  %v105_v59 = vadd.f32 %v38_v29, %v36_v25 }
   0xd   :  { %v90_v57 = vrot.slane %v89_v51, 4  ;;  %v58_v60 = vadd.f32 %v57_v52, %v56_v44  ;;  %v83_v62 = vrot.slane %v82_v54, 4  ;;  %v98_v63 = vadd.f32 %v97_v58, %v96_v55 }
   0xe   :  { %v75_v61 = vadd.f32 %v74_v53, %v73_v47  ;;  %v68_v0 = vadd.f32 %v67_v56, %v66_v48  ;;  %v106_v2 = vrot.slane %v105_v59, 4  ;;  %v112_v3 = vsel %vm63_vm0, %v37_v28, 0.0 }
   0xf   :  { %v91_v1 = vadd.f32 %v90_v57, %v89_v51  ;;  %v59_v4 = vrot.slane %v58_v60, 2  ;;  %v84_v6 = vadd.f32 %v83_v62, %v82_v54  ;;  %v99_v7 = vrot.slane %v98_v63, 4 }
  0x10   :  { %v76_v5 = vrot.slane %v75_v61, 2  ;;  %v69_v8 = vrot.slane %v68_v0, 2  ;;  %v107_v11 = vadd.f32 %v106_v2, %v105_v59  ;;  %v113_v12 = vsel %vm63_vm0, %v39_v30, 0.0 }
  0x11   :  { %v92_v10 = vrot.slane %v91_v1, 2  ;;  %v60_v13 = vadd.f32 %v59_v4, %v58_v60  ;;  %v85_v17 = vrot.slane %v84_v6, 2  ;;  %v100_v18 = vadd.f32 %v99_v7, %v98_v63 }
  0x12   :  { %v77_v16 = vadd.f32 %v76_v5, %v75_v61  ;;  %v70_v22 = vadd.f32 %v69_v8, %v68_v0  ;;  %v108_v24 = vrot.slane %v107_v11, 2  ;;  %v114_v25 = vadd.f32 %v113_v12, %v112_v3 }
  0x13   :  { %v93_v23 = vadd.f32 %v92_v10, %v91_v1  ;;  %v61_v28 = vrot.slane %v60_v13, 1  ;;  %v86_v44 = vadd.f32 %v85_v17, %v84_v6  ;;  %v101_v45 = vrot.slane %v100_v18, 2 }
  0x14   :  { %v78_v29 = vrot.slane %v77_v16, 1  ;;  %v71_v46 = vrot.slane %v70_v22, 1  ;;  %v109_v30 = vadd.f32 %v108_v24, %v107_v11  ;;  %v115_v48 = vrot.slane %v114_v25, 4 }
  0x15   :  { %v94_v47 = vrot.slane %v93_v23, 1  ;;  %v53_v49 = vunpack.c.h.bf16 %v315_v27  ;;  %v54_v50 = vunpack.c.l.bf16 %v343_v19  ;;  %v55_v51 = vunpack.c.h.bf16 %v343_v19 }
  0x16   :  { %v87_v52 = vrot.slane %v86_v44, 1  ;;  %v348_v53 = vadd.f32 %v61_v28, %v60_v13  ;;  %v350_v54 = vadd.f32 %v78_v29, %v77_v16  ;;  %v102_v55 = vadd.f32 %v101_v45, %v100_v18 }
  0x17   :  { %v116_v56 = vadd.f32 %v115_v48, %v114_v25  ;;  %v352_v57 = vadd.f32 %v71_v46, %v70_v22  ;;  %v354_v58 = vadd.f32 %v94_v47, %v93_v23  ;;  %v121_v59 = vadd.f32 %v42_v33, %v40_v31 }
  0x18   :  { %v128_v60 = vsel %vm63_vm0, %v41_v32, 0.0  ;;  %v110_v61 = vrot.slane %v109_v30, 1  ;;  %v129_v63 = vsel %vm63_vm0, %v43_v34, 0.0  ;;  %v137_v0 = vadd.f32 %v46_v37, %v44_v35 }
  0x19   :  { %v117_v62 = vrot.slane %v116_v56, 2  ;;  %v370_v1 = vadd.f32 %v87_v52, %v86_v44  ;;  %v122_v2 = vrot.slane %v121_v59, 4  ;;  %v130_v3 = vadd.f32 %v129_v63, %v128_v60 }
  0x1a   :  { %v144_v9 = vsel %vm63_vm0, %v45_v36, 0.0  ;;  %v138_v32 = vrot.slane %v137_v0, 4  ;;  %v145_v14 = vsel %vm63_vm0, %v47_v38, 0.0  ;;  %v153_v33 = vadd.f32 %v50_v41, %v48_v39 }
  0x1b   :  { %v118_v31 = vadd.f32 %v117_v62, %v116_v56  ;;  %v123_v34 = vadd.f32 %v122_v2, %v121_v59  ;;  %v131_v35 = vrot.slane %v130_v3, 4  ;;  %v146_v37 = vadd.f32 %v145_v14, %v144_v9 }
  0x1c   :  { %v160_v15 = vsel %vm63_vm0, %v49_v40, 0.0  ;;  %v103_v4 = vrot.slane %v102_v55, 1  ;;  %v139_v36 = vadd.f32 %v138_v32, %v137_v0  ;;  %v154_v5 = vrot.slane %v153_v33, 4 }
  0x1d   :  { %v161_v20 = vsel %vm63_vm0, %v51_v42, 0.0  ;;  %v124_v38 = vrot.slane %v123_v34, 2  ;;  %v132_v6 = vadd.f32 %v131_v35, %v130_v3  ;;  %v147_v7 = vrot.slane %v146_v37, 4 }
  0x1e   :  { %v162_v8 = vadd.f32 %v161_v20, %v160_v15  ;;  %v119_v10 = vrot.slane %v118_v31, 1  ;;  %v140_v39 = vrot.slane %v139_v36, 2  ;;  %v155_v41 = vadd.f32 %v154_v5, %v153_v33 }
  0x1f   :  { %v169_v11 = vadd.f32 %v54_v50, %v52_v43  ;;  %v125_v21 = vadd.f32 %v124_v38, %v123_v34  ;;  %v133_v12 = vrot.slane %v132_v6, 2  ;;  %v148_v40 = vadd.f32 %v147_v7, %v146_v37 }
  0x20   :  { %v163_v13 = vrot.slane %v162_v8, 4  ;;  %v141_v16 = vadd.f32 %v140_v39, %v139_v36  ;;  %v156_v17 = vrot.slane %v155_v41, 2  ;;  %v176_v26 = vsel %vm63_vm0, %v53_v49, 0.0 }
  0x21   :  { %v170_v18 = vrot.slane %v169_v11, 4  ;;  %v126_v42 = vrot.slane %v125_v21, 1  ;;  %v134_v19 = vadd.f32 %v133_v12, %v132_v6  ;;  %v149_v22 = vrot.slane %v148_v40, 2 }
  0x22   :  { %v164_v23 = vadd.f32 %v163_v13, %v162_v8  ;;  %v142_v24 = vrot.slane %v141_v16, 1  ;;  %v157_v25 = vadd.f32 %v156_v17, %v155_v41  ;;  %v177_v29 = vsel %vm63_vm0, %v55_v51, 0.0 }
  0x23   :  { %v171_v28 = vadd.f32 %v170_v18, %v169_v11  ;;  %v111_v27 = vadd.f32 %v110_v61, %v109_v30  ;;  %v135_v43 = vrot.slane %v134_v19, 1  ;;  %v150_v44 = vadd.f32 %v149_v22, %v148_v40 }
  0x24   :  { %v165_v45 = vrot.slane %v164_v23, 2  ;;  %v104_v46 = vadd.f32 %v103_v4, %v102_v55  ;;  %v158_v47 = vrot.slane %v157_v25, 1  ;;  %v178_v50 = vadd.f32 %v177_v29, %v176_v26 }
  0x25   :  { %v172_v48 = vrot.slane %v171_v28, 2  ;;  %v120_v52 = vadd.f32 %v119_v10, %v118_v31  ;;  %v127_v56 = vadd.f32 %v126_v42, %v125_v21  ;;  %v151_v49 = vrot.slane %v150_v44, 1 }
  0x26   :  { %v166_v59 = vadd.f32 %v165_v45, %v164_v23  ;;  %v136_v60 = vadd.f32 %v135_v43, %v134_v19  ;;  %v143_v62 = vadd.f32 %v142_v24, %v141_v16  ;;  %v179_v0 = vrot.slane %v178_v50, 4 }
  0x27   :  { %v173_v63 = vadd.f32 %v172_v48, %v171_v28  ;;  %v159_v2 = vadd.f32 %v158_v47, %v157_v25  ;;  %v185_v51 = vmul.f32 0.0625, %v348_v53  ;;  %v186_v30 = vmul.f32 0.0625, %v352_v57 }
  0x28   :  { %v167_v3 = vrot.slane %v166_v59, 1  ;;  %v152_v61 = vadd.f32 %v151_v49, %v150_v44  ;;  %v180_v55 = vadd.f32 %v179_v0, %v178_v50  ;;  %v187_v32 = vmul.f32 0.0625, %v350_v54 }
  0x29   :  { %v174_v9 = vrot.slane %v173_v63, 1  ;;  %v188_v31 = vmul.f32 0.0625, %v370_v1  ;;  %v189_v33 = vmul.f32 0.0625, %v354_v58  ;;  %v190_v34 = vmul.f32 0.0625, %v104_v46 }
  0x2a   :  { %v168_v14 = vadd.f32 %v167_v3, %v166_v59  ;;  %v181_v37 = vrot.slane %v180_v55, 2  ;;  %v191_v15 = vmul.f32 0.0625, %v111_v27  ;;  %v192_v4 = vmul.f32 0.0625, %v120_v52 }
  0x2b   :  { %v175_v35 = vadd.f32 %v174_v9, %v173_v63  ;;  %v193_v36 = vmul.f32 0.0625, %v127_v56  ;;  %v194_v5 = vmul.f32 0.0625, %v136_v60  ;;  %v195_v53 = vmul.f32 0.0625, %v143_v62 }
  0x2c   :  { %v182_v57 = vadd.f32 %v181_v37, %v180_v55  ;;  %v197_v20 = vmul.f32 0.0625, %v159_v2  ;;  %v218_v38 = vsel %vm217_vm1, %v187_v32, %v185_v51  ;;  %v196_v7 = vmul.f32 0.0625, %v152_v61 }
  0x2d   :  { %v220_v54 = vsel %vm219_vm2, %v189_v33, %v218_v38  ;;  %v199_v1 = vmul.f32 0.0625, %v175_v35  ;;  %vm229_vm7 = vcmask 1047559   ;;  %v231_v10 = vsel %vm217_vm1, %v188_v31, %v186_v30 }
  0x2e   :  { %v183_v58 = vrot.slane %v182_v57, 1  ;;  %v222_v6 = vsel %vm221_vm3, %v191_v15, %v220_v54  ;;  %v198_v41 = vmul.f32 0.0625, %v168_v14  ;;  %v232_v21 = vsel %vm219_vm2, %v190_v34, %v231_v10 }
  0x2f   :  { %v224_v8 = vsel %vm223_vm4, %v193_v36, %v222_v6  ;;  %v233_v40 = vsel %vm221_vm3, %v192_v4, %v232_v21 }
  0x30   :  { %v184_v39 = vadd.f32 %v183_v58, %v182_v57  ;;  %v226_v11 = vsel %vm225_vm5, %v195_v53, %v224_v8  ;;  %v234_v17 = vsel %vm223_vm4, %v194_v5, %v233_v40 }
  0x31   :  { %v228_v12 = vsel %vm227_vm6, %v197_v20, %v226_v11  ;;  %v235_v18 = vsel %vm225_vm5, %v196_v7, %v234_v17 }
  0x32   :  { %v200_v13 = vmul.f32 0.0625, %v184_v39  ;;  %v230_v16 = vsel %vm229_vm7, %v199_v1, %v228_v12  ;;  %v236_v26 = vsel %vm227_vm6, %v198_v41, %v235_v18 }
  0x33   :  { %240 = vst [vmem:[%s417_s1] sm:$0xff] %v230_v16 }
  0x34   :  { %v237_v42 = vsel %vm229_vm7, %v200_v13, %v236_v26 }
  0x35   :  { %241 = vst.msk [vmem:[%s417_s1 + $0x8] sm:$0xff] %vm63_vm0, %v237_v42 }

// kernel: allconv_forward.17
= control target key start
LH: loop header
LB: loop body
LE: loop exit
PB: predicated region body
PF: predicated region fallthrough
CT: control target
= control target key end

     0   :  { %vm20_vm0 = vcmask 523264   ;;  %vm338_vm1 = vcmask 1043456   ;;  %vm339_vm2 = vcmask 523268   ;;  %s722_s1 = inlined_call_operand.vmem [shape: bf16[192,192], index: 1, kind: input, shape index: {}]   ;;  %s723_s0 = inlined_call_operand.vmem [shape: bf16[32,192], index: 0, kind: input, shape index: {}]   ;;  %s724_s2 = inlined_call_operand.vmem [shape: f32[1,192], index: 2, kind: input, shape index: {}]   ;;  %s725_s3 = inlined_call_operand.vmem [shape: bf16[32,192], index: 3, kind: output, shape index: {}]  }
   0x1   :  { %v423_v0 = vld [vmem:[%s722_s1 + $0x70] sm:$0xf]  ;;  %v484_v1 = vld [vmem:[%s722_s1 + $0x74] sm:$0xf0]  ;;  %v483_v2 = vld [vmem:[%s722_s1 + $0x74] sm:$0xf] }
   0x2   :  { %v424_v3 = vor.u32 %v484_v1, %v423_v0  ;;  %v425_v4 = vld [vmem:[%s722_s1 + $0x78] sm:$0xf0]  ;;  %v415_v5 = vld [vmem:[%s722_s1 + $0x60] sm:$0xf]  ;;  %v482_v6 = vld [vmem:[%s722_s1 + $0x64] sm:$0xf0] }
   0x3   :  { %v428_v7 = vor.u32 %v483_v2, %v425_v4  ;;  %v481_v8 = vld [vmem:[%s722_s1 + $0x64] sm:$0xf]  ;;  %v417_v9 = vld [vmem:[%s722_s1 + $0x68] sm:$0xf0]  ;;  %v416_v10 = vor.u32 %v482_v6, %v415_v5  ;;  %v407_v11 = vld [vmem:[%s722_s1 + $0x50] sm:$0xf] }
   0x4   :  { %209 = vmatpush.bf16.msra.mxu0 %v424_v3  ;;  %v420_v12 = vor.u32 %v481_v8, %v417_v9  ;;  %v480_v13 = vld [vmem:[%s722_s1 + $0x54] sm:$0xf0]  ;;  %v491_v14 = vld [vmem:[%s722_s1 + $0xb4] sm:$0xf]  ;;  %v457_v15 = vld [vmem:[%s722_s1 + $0xb8] sm:$0xf0] }
   0x5   :  { %247 = vmatpush.bf16.msra.mxu2 %v428_v7  ;;  %v479_v16 = vld [vmem:[%s722_s1 + $0x54] sm:$0xf]  ;;  %v409_v17 = vld [vmem:[%s722_s1 + $0x58] sm:$0xf0]  ;;  %v460_v18 = vor.u32 %v491_v14, %v457_v15  ;;  %v489_v19 = vld [vmem:[%s722_s1 + $0xa4] sm:$0xf]  ;;  %v408_v22 = vor.u32 %v480_v13, %v407_v11 }
   0x6   :  { %v449_v20 = vld [vmem:[%s722_s1 + $0xa8] sm:$0xf0]  ;;  %v455_v21 = vld [vmem:[%s722_s1 + $0xb0] sm:$0xf]  ;;  %v399_v23 = vld [vmem:[%s722_s1 + $0x40] sm:$0xf]  ;;  %v412_v27 = vor.u32 %v479_v16, %v409_v17 }
   0x7   :  { %270 = vmatpush.bf16.msra.mxu3 %v460_v18  ;;  %v478_v24 = vld [vmem:[%s722_s1 + $0x44] sm:$0xf0]  ;;  %v452_v25 = vor.u32 %v489_v19, %v449_v20  ;;  %v492_v26 = vld [vmem:[%s722_s1 + $0xb4] sm:$0xf0]  ;;  %v477_v28 = vld [vmem:[%s722_s1 + $0x44] sm:$0xf] }
   0x8   :  { %210 = vmatpush.bf16.msra.mxu0 %v416_v10  ;;  %v401_v29 = vld [vmem:[%s722_s1 + $0x48] sm:$0xf0]  ;;  %v456_v30 = vor.u32 %v492_v26, %v455_v21  ;;  %v487_v31 = vld [vmem:[%s722_s1 + $0x94] sm:$0xf]  ;;  %v441_v32 = vld [vmem:[%s722_s1 + $0x98] sm:$0xf0]  ;;  %v400_v36 = vor.u32 %v478_v24, %v399_v23 }
   0x9   :  { %248 = vmatpush.bf16.msra.mxu2 %v420_v12  ;;  %v447_v33 = vld [vmem:[%s722_s1 + $0xa0] sm:$0xf]  ;;  %v490_v34 = vld [vmem:[%s722_s1 + $0xa4] sm:$0xf0]  ;;  %v391_v37 = vld [vmem:[%s722_s1 + $0x30] sm:$0xf]  ;;  %v444_v39 = vor.u32 %v487_v31, %v441_v32  ;;  %v404_v41 = vor.u32 %v477_v28, %v401_v29 }
   0xa   :  { %232 = vmatpush.bf16.msra.mxu1 %v456_v30  ;;  %v448_v35 = vor.u32 %v490_v34, %v447_v33  ;;  %v476_v38 = vld [vmem:[%s722_s1 + $0x34] sm:$0xf0]  ;;  %v485_v40 = vld [vmem:[%s722_s1 + $0x84] sm:$0xf]  ;;  %v433_v42 = vld [vmem:[%s722_s1 + $0x88] sm:$0xf0] }
   0xb   :  { %271 = vmatpush.bf16.msra.mxu3 %v452_v25  ;;  %v439_v43 = vld [vmem:[%s722_s1 + $0x90] sm:$0xf]  ;;  %v488_v44 = vld [vmem:[%s722_s1 + $0x94] sm:$0xf0]  ;;  %v475_v45 = vld [vmem:[%s722_s1 + $0x34] sm:$0xf]  ;;  %v392_v49 = vor.u32 %v476_v38, %v391_v37  ;;  %v436_v50 = vor.u32 %v485_v40, %v433_v42 }
   0xc   :  { %211 = vmatpush.bf16.msra.mxu0 %v408_v22  ;;  %v393_v46 = vld [vmem:[%s722_s1 + $0x38] sm:$0xf0]  ;;  %v440_v47 = vor.u32 %v488_v44, %v439_v43  ;;  %v465_v48 = vld [vmem:[%s723_s0 + $0x4] sm:$0xf]  ;;  %v353_v51 = vld [vmem:[%s723_s0 + $0x8] sm:$0xf0] }
   0xd   :  { %249 = vmatpush.bf16.msra.mxu2 %v412_v27  ;;  %v431_v52 = vld [vmem:[%s722_s1 + $0x80] sm:$0xf]  ;;  %v486_v53 = vld [vmem:[%s722_s1 + $0x84] sm:$0xf0]  ;;  %v396_v54 = vor.u32 %v475_v45, %v393_v46  ;;  %v473_v57 = vld [vmem:[%s722_s1 + $0x24] sm:$0xf]  ;;  %v356_v59 = vor.u32 %v465_v48, %v353_v51 }
   0xe   :  { %233 = vmatpush.bf16.msra.mxu1 %v448_v35  ;;  %v383_v55 = vld [vmem:[%s722_s1 + $0x20] sm:$0xf]  ;;  %v474_v56 = vld [vmem:[%s722_s1 + $0x24] sm:$0xf0]  ;;  %v385_v58 = vld [vmem:[%s722_s1 + $0x28] sm:$0xf0]  ;;  %v432_v60 = vor.u32 %v486_v53, %v431_v52 }
   0xf   :  { %272 = vmatpush.bf16.msra.mxu3 %v444_v39  ;;  %v384_v61 = vor.u32 %v474_v56, %v383_v55  ;;  %v388_v62 = vor.u32 %v473_v57, %v385_v58  ;;  %v375_v63 = vld [vmem:[%s722_s1 + $0x10] sm:$0xf]  ;;  %v472_v0 = vld [vmem:[%s722_s1 + $0x14] sm:$0xf0]  ;;  %v471_v1 = vld [vmem:[%s722_s1 + $0x14] sm:$0xf] }
  0x10   :  { %212 = vmatpush.bf16.msra.mxu0 %v400_v36  ;;  %v377_v2 = vld [vmem:[%s722_s1 + $0x18] sm:$0xf0]  ;;  %v376_v3 = vor.u32 %v472_v0, %v375_v63  ;;  %v367_v5 = vld [vmem:[%s722_s1] sm:$0xf]  ;;  %v470_v6 = vld [vmem:[%s722_s1 + $0x4] sm:$0xf0] }
  0x11   :  { %250 = vmatpush.bf16.msra.mxu2 %v404_v41  ;;  %v380_v4 = vor.u32 %v471_v1, %v377_v2  ;;  %v469_v7 = vld [vmem:[%s722_s1 + $0x4] sm:$0xf]  ;;  %v369_v8 = vld [vmem:[%s722_s1 + $0x8] sm:$0xf0]  ;;  %v368_v9 = vor.u32 %v470_v6, %v367_v5  ;;  %v351_v11 = vld [vmem:[%s723_s0] sm:$0xf] }
  0x12   :  { %234 = vmatpush.bf16.msra.mxu1 %v440_v47  ;;  %v372_v10 = vor.u32 %v469_v7, %v369_v8  ;;  %v466_v12 = vld [vmem:[%s723_s0 + $0x4] sm:$0xf0]  ;;  %v467_v14 = vld [vmem:[%s723_s0 + $0x14] sm:$0xf]  ;;  %v361_v15 = vld [vmem:[%s723_s0 + $0x18] sm:$0xf0] }
  0x13   :  { %273 = vmatpush.bf16.msra.mxu3 %v436_v50  ;;  %v352_v13 = vor.u32 %v466_v12, %v351_v11  ;;  %v364_v16 = vor.u32 %v467_v14, %v361_v15  ;;  %v359_v17 = vld [vmem:[%s723_s0 + $0x10] sm:$0xf]  ;;  %v468_v18 = vld [vmem:[%s723_s0 + $0x14] sm:$0xf0]  ;;  %v494_v20 = vmov 0.0   ;;  %vm696_vm3 = vmor %vm339_vm2, %vm338_vm1 }
  0x14   :  { %213 = vmatpush.bf16.msra.mxu0 %v392_v49  ;;  %v360_v19 = vor.u32 %v468_v18, %v359_v17  ;;  %21 = vst.msk [vmem:[#allocation2 + $0x8] sm:$0xff] %vm20_vm0, %v494_v20  ;;  %v312_v30 = vld [vmem:[%s724_s2] sm:$0x3] }
  0x15   :  { %251 = vmatpush.bf16.msra.mxu2 %v396_v54  ;;  %23 = vst.msk [vmem:[#allocation2 + $0x18] sm:$0xff] %vm20_vm0, %v494_v20  ;;  %v314_v34 = vperm.slane %v312_v30, 0  ;;  %v315_v39 = vperm.slane %v312_v30, 1 }
  0x16   :  { %463 = vmatmul.msk.bf16.vlgmr.msra.gmra.mxu3 %vm20_vm0, %v356_v59  ;;  %235 = vmatpush.bf16.msra.mxu1 %v432_v60  ;;  %25 = vst.msk [vmem:[#allocation2 + $0x28] sm:$0xff] %vm20_vm0, %v494_v20 }
  0x17   :  { %27 = vst.msk [vmem:[#allocation2 + $0x38] sm:$0xff] %vm20_vm0, %v494_v20 }
  0x18   :  { %214 = vmatpush.bf16.msra.mxu0 %v384_v61 }
  0x19   :  { %252 = vmatpush.bf16.msra.mxu2 %v388_v62  ;;  %461 = vmatmul.msk.bf16.vlgmr.msra.gmra.mxu1 %vm20_vm0, %v356_v59 }
  0x1b   :  { %v29_v26 = vld [vmem:[#allocation2 + $0x8] sm:$0xff] }
  0x1c   :  { %215 = vmatpush.bf16.msra.mxu0 %v376_v3  ;;  %v31_v36 = vld [vmem:[#allocation2 + $0x18] sm:$0xff] }
  0x1d   :  { %253 = vmatpush.bf16.msra.mxu2 %v380_v4  ;;  %v33_v51 = vld [vmem:[#allocation2 + $0x28] sm:$0xff] }
  0x1e   :  { %v35_v0 = vld [vmem:[#allocation2 + $0x38] sm:$0xff] }
  0x20   :  { %216 = vmatpush.bf16.msra.mxu0 %v368_v9 }
  0x21   :  { %254 = vmatpush.bf16.msra.mxu2 %v372_v10 }
  0x23   :  { %217 = vmatmul.bf16.vlgmr.msra.gmra.mxu0 %v352_v13 }
  0x24   :  { %255 = vmatmul.bf16.vlgmr.msra.gmra.mxu2 %v352_v13 }
  0x26   :  { %464 = vmatmul.msk.bf16.gmra.mxu3 %vm20_vm0, %v364_v16 }
  0x29   :  { %462 = vmatmul.msk.bf16.gmra.mxu1 %vm20_vm0, %v364_v16 }
  0x33   :  { %222 = vmatmul.bf16.gmra.mxu0 %v360_v19 }
  0x34   :  { %260 = vmatmul.bf16.gmra.mxu2 %v360_v19 }
  0x96   :  { %v237_v21 = vpop.f32.mrf.mxu1 }
  0x99   :  { %v275_v23 = vpop.f32.mrf.mxu3 }
  0x9e   :  { %v239_v25 = vpop.f32.mrf.mxu1 }
  0xa0   :  { %v218_v22 = vpop.f32.mrf.mxu0 }
  0xa1   :  { %v238_v24 = vadd.f32 %v237_v21, %v218_v22  ;;  %v277_v33 = vpop.f32.mrf.mxu3 }
  0xa3   :  { %v318_v38 = vadd.f32 %v314_v34, %v238_v24 }
  0xa5   :  { %v326_v45 = vmax.f32 %v318_v38, 0.0 }
  0xa6   :  { %v242_v35 = vpop.f32.mrf.mxu1 }
  0xa7   :  { %v256_v27 = vpop.f32.mrf.mxu2 }
  0xa8   :  { %v276_v28 = vadd.f32 %v275_v23, %v256_v27  ;;  %v220_v29 = vpop.f32.mrf.mxu0 }
  0xa9   :  { %v240_v31 = vadd.f32 %v239_v25, %v220_v29  ;;  %v280_v47 = vpop.f32.mrf.mxu3 }
  0xaa   :  { %v286_v32 = vadd.f32 %v276_v28, %v29_v26 }
  0xab   :  { %v320_v57 = vadd.f32 %v314_v34, %v240_v31 }
  0xac   :  { %294 = vst.msk [vmem:[#allocation2 + $0x8] sm:$0xff] %vm20_vm0, %v286_v32 }
  0xad   :  { %v328_v61 = vmax.f32 %v320_v57, 0.0 }
  0xae   :  { %v244_v49 = vpop.f32.mrf.mxu1 }
  0xaf   :  { %v258_v37 = vpop.f32.mrf.mxu2 }
  0xb0   :  { %v278_v40 = vadd.f32 %v277_v33, %v258_v37  ;;  %v223_v41 = vpop.f32.mrf.mxu0 }
  0xb1   :  { %v243_v42 = vadd.f32 %v242_v35, %v223_v41  ;;  %v282_v63 = vpop.f32.mrf.mxu3 }
  0xb2   :  { %v288_v43 = vadd.f32 %v278_v40, %v31_v36 }
  0xb3   :  { %v305_v44 = vld [vmem:[#allocation2 + $0x8] sm:$0xff]  ;;  %v322_v3 = vadd.f32 %v314_v34, %v243_v42 }
  0xb4   :  { %v319_v46 = vadd.f32 %v315_v39, %v305_v44  ;;  %296 = vst.msk [vmem:[#allocation2 + $0x18] sm:$0xff] %vm20_vm0, %v288_v43 }
  0xb5   :  { %v330_v7 = vmax.f32 %v322_v3, 0.0 }
  0xb6   :  { %v327_v48 = vmax.f32 %v319_v46, 0.0 }
  0xb7   :  { %v261_v52 = vpop.f32.mrf.mxu2 }
  0xb8   :  { %v334_v53 = vpack.c.bf16 %v327_v48, %v326_v45  ;;  %v281_v54 = vadd.f32 %v280_v47, %v261_v52  ;;  %v225_v55 = vpop.f32.mrf.mxu0 }
  0xb9   :  { %v245_v56 = vadd.f32 %v244_v49, %v225_v55 }
  0xba   :  { %341 = vst.msk [vmem:[%s725_s3] sm:$0xff] %vm696_vm3, %v334_v53  ;;  %v290_v58 = vadd.f32 %v281_v54, %v33_v51 }
  0xbb   :  { %v307_v59 = vld [vmem:[#allocation2 + $0x18] sm:$0xff]  ;;  %v324_v11 = vadd.f32 %v314_v34, %v245_v56 }
  0xbc   :  { %v321_v60 = vadd.f32 %v315_v39, %v307_v59  ;;  %298 = vst.msk [vmem:[#allocation2 + $0x28] sm:$0xff] %vm20_vm0, %v290_v58 }
  0xbd   :  { %v332_v14 = vmax.f32 %v324_v11, 0.0 }
  0xbe   :  { %v329_v62 = vmax.f32 %v321_v60, 0.0 }
  0xbf   :  { %v263_v1 = vpop.f32.mrf.mxu2 }
  0xc0   :  { %v335_v2 = vpack.c.bf16 %v329_v62, %v328_v61  ;;  %v283_v4 = vadd.f32 %v282_v63, %v263_v1 }
  0xc2   :  { %342 = vst.msk [vmem:[%s725_s3 + $0x8] sm:$0xff] %vm696_vm3, %v335_v2  ;;  %v292_v5 = vadd.f32 %v283_v4, %v35_v0 }
  0xc3   :  { %v309_v6 = vld [vmem:[#allocation2 + $0x28] sm:$0xff] }
  0xc4   :  { %v323_v8 = vadd.f32 %v315_v39, %v309_v6  ;;  %300 = vst.msk [vmem:[#allocation2 + $0x38] sm:$0xff] %vm20_vm0, %v292_v5 }
  0xc6   :  { %v331_v9 = vmax.f32 %v323_v8, 0.0 }
  0xc8   :  { %v336_v10 = vpack.c.bf16 %v331_v9, %v330_v7 }
  0xca   :  { %343 = vst.msk [vmem:[%s725_s3 + $0x10] sm:$0xff] %vm696_vm3, %v336_v10 }
  0xcb   :  { %v311_v12 = vld [vmem:[#allocation2 + $0x38] sm:$0xff] }
  0xcc   :  { %v325_v13 = vadd.f32 %v315_v39, %v311_v12 }
  0xce   :  { %v333_v15 = vmax.f32 %v325_v13, 0.0 }
  0xd0   :  { %v337_v16 = vpack.c.bf16 %v333_v15, %v332_v14 }
  0xd2   :  { %344 = vst.msk [vmem:[%s725_s3 + $0x18] sm:$0xff] %vm696_vm3, %v337_v16 }

// kernel: allconv_forward.19
= control target key start
LH: loop header
LB: loop body
LE: loop exit
PB: predicated region body
PF: predicated region fallthrough
CT: control target
= control target key end

     0   :  { %vm125_vm0 = vcmask 523264   ;;  %vm19_vm1 = vcmask 80896   ;;  %v235_v17 = vmov 0.0   ;;  %s301_s1 = inlined_call_operand.vmem [shape: bf16[192,10], index: 1, kind: input, shape index: {}]   ;;  %s302_s0 = inlined_call_operand.vmem [shape: bf16[8,192], index: 0, kind: input, shape index: {}]   ;;  %s303_s2 = inlined_call_operand.vmem [shape: f32[1,10], index: 2, kind: input, shape index: {}]   ;;  %s304_s3 = inlined_call_operand.vmem [shape: f32[8,10], index: 3, kind: output, shape index: {}]  }
   0x1   :  { %v228_v0 = vld [vmem:[%s301_s1 + $0x38] sm:$0xff]  ;;  %v227_v2 = vld [vmem:[%s301_s1 + $0x30] sm:$0xff]  ;;  %v226_v4 = vld [vmem:[%s301_s1 + $0x28] sm:$0xff]  ;;  %20 = vst.msk [vmem:[#allocation2] sm:$0xff] %vm19_vm1, %v235_v17 }
   0x2   :  { %v232_v1 = vld [vmem:[%s301_s1 + $0x58] sm:$0xff]  ;;  %129 = vmatpush.bf16.msra.mxu0 %v228_v0  ;;  %v231_v3 = vld [vmem:[%s301_s1 + $0x50] sm:$0xff]  ;;  %v230_v5 = vld [vmem:[%s301_s1 + $0x48] sm:$0xff] }
   0x3   :  { %146 = vmatpush.bf16.msra.mxu1 %v232_v1  ;;  %v22_v6 = vld [vmem:[%s302_s0] sm:$0xff]  ;;  %v224_v10 = vld [vmem:[%s301_s1 + $0x18] sm:$0xff]  ;;  %v223_v12 = vld [vmem:[%s301_s1 + $0x10] sm:$0xff] }
   0x4   :  { %v225_v7 = vld [vmem:[%s301_s1 + $0x20] sm:$0xff]  ;;  %v49_v8 = vunpack.c.h.b16 %v22_v6  ;;  %v222_v13 = vld [vmem:[%s301_s1 + $0x8] sm:$0xff]  ;;  %v48_v14 = vunpack.c.l.b16 %v22_v6 }
   0x5   :  { %v229_v9 = vld [vmem:[%s301_s1 + $0x40] sm:$0xff] }
   0x6   :  { %130 = vmatpush.bf16.msra.mxu0 %v227_v2  ;;  %v51_v11 = vpack.c.b16 %v49_v8, %v49_v8  ;;  %v221_v15 = vld [vmem:[%s301_s1] sm:$0xff]  ;;  %v50_v16 = vpack.c.b16 %v48_v14, %v48_v14 }
   0x7   :  { %147 = vmatpush.bf16.msra.mxu1 %v231_v3  ;;  %v234_v25 = vld [vmem:[%s303_s2] ss:$0 sm:$0xff] }
   0x8   :  { %v21_v20 = vld [vmem:[#allocation2] sm:$0xff] }
   0xa   :  { %131 = vmatpush.bf16.msra.mxu0 %v226_v4 }
   0xb   :  { %148 = vmatpush.bf16.msra.mxu1 %v230_v5 }
   0xe   :  { %132 = vmatpush.bf16.msra.mxu0 %v225_v7 }
   0xf   :  { %149 = vmatpush.bf16.msra.mxu1 %v229_v9 }
  0x12   :  { %133 = vmatpush.bf16.msra.mxu0 %v224_v10  ;;  %220 = vmatmul.msk.bf16.vlgmr.msra.gmra.mxu1 %vm125_vm0, %v51_v11 }
  0x16   :  { %134 = vmatpush.bf16.msra.mxu0 %v223_v12 }
  0x1a   :  { %135 = vmatpush.bf16.msra.mxu0 %v222_v13 }
  0x1e   :  { %136 = vmatpush.bf16.msra.mxu0 %v221_v15 }
  0x21   :  { %137 = vmatmul.bf16.vlgmr.msra.gmra.mxu0 %v50_v16 }
  0x8f   :  { %v151_v18 = vpop.f32.mrf.mxu1 }
  0x97   :  { %v153_v19 = vpop.f32.mrf.mxu1 }
  0x9e   :  { %v138_v21 = vpop.f32.mrf.mxu0 }
  0x9f   :  { %v152_v22 = vadd.f32 %v151_v18, %v138_v21 }
  0xa1   :  { %v155_v23 = vadd.f32 %v152_v22, %v21_v20 }
  0xa3   :  { %157 = vst.msk [vmem:[#allocation2] sm:$0xff] %vm19_vm1, %v155_v23 }
  0xa6   :  { %v140_v24 = vpop.f32.mrf.mxu0 }
  0xaa   :  { %v161_v26 = vld [vmem:[#allocation2] sm:$0xff] }
  0xab   :  { %v166_v27 = vadd.f32 %v234_v25, %v161_v26 }
  0xad   :  { %167 = vst.msk [vmem:[%s304_s3] sm:$0xff] %vm19_vm1, %v166_v27 }

</bundles_post_ra>
